<compile_context>
chip_gen: v5e
topology: v5e:2x2
jax: 0.10.0
libtpu: 0.0.40
codegen_flags: <defaults>
</compile_context>

<pallas_src>
import jax
import jax.numpy as jnp
from jax.experimental import pallas as pl
from jax.experimental.pallas import tpu as pltpu


# ---------------------------------------------------------------------------
# Fused ResidualBlock kernel (one grid step = one image of the batch)
# ---------------------------------------------------------------------------
def _residual_block_kernel(x_ref,      # (H, W, C)      f32   unpadded input image
                           w1_ref,     # (9, C, C)      bf16  conv1 taps (t = dy*3+dx)
                           b1_ref,     # (1, C)         f32
                           w2_ref,     # (9, C, C)      bf16  conv2 taps
                           b2_ref,     # (1, C)         f32
                           alpha_ref,  # (1, 1)         f32   PReLU slope (SMEM)
                           o_ref,      # (H, W, C)      f32   output block
                           xpad_ref,   # (H+2, Wp, C)   bf16  padded input scratch
                           tpad_ref):  # (H+2, Wp, C)   bf16  padded intermediate scratch
    h, w, c = x_ref.shape
    m = h * w

    def reflect_pad_into(pad_ref, img_bf16):
        # Reflect the two edge columns in value space (corners then come for
        # free), store the interior rows once, then duplicate whole padded
        # rows for the top/bottom reflection.  Only columns [0, w+2) of the
        # scratch are ever written/read; the sublane-alignment tail is unused.
        rows = jnp.concatenate(
            [img_bf16[:, 1:2, :], img_bf16, img_bf16[:, w - 2:w - 1, :]], axis=1)
        pad_ref[1:h + 1, 0:w + 2, :] = rows                       # interior rows
        pad_ref[0:1, 0:w + 2, :] = rows[1:2]                      # top    <- row 1
        pad_ref[h + 1:h + 2, 0:w + 2, :] = rows[h - 2:h - 1]      # bottom <- row H-2

    def conv3x3(pad_ref, w_ref):
        # 9-tap reduction: bf16 operands on the MXU, f32 value-chain
        # accumulation (single write, no VMEM RMW; MRB-friendly on v7x).
        acc = None
        for t in range(9):
            dy, dx = divmod(t, 3)
            a = pad_ref[dy:dy + h, dx:dx + w, :].reshape(m, c)
            d = jnp.dot(a, w_ref[t], preferred_element_type=jnp.float32)
            acc = d if acc is None else acc + d
        return acc                                                # (m, c) f32

    # ---- conv1 + bias + PReLU (alpha is an SMEM scalar) ---------------------
    x_bf = x_ref[...].astype(jnp.bfloat16)                        # cast ONCE
    reflect_pad_into(xpad_ref, x_bf)

    alpha = alpha_ref[0, 0]
    t1 = conv3x3(xpad_ref, w1_ref) + b1_ref[...]
    t1 = jnp.where(t1 > 0, t1, alpha * t1)

    # ---- conv2 over the reflection-padded intermediate ----------------------
    reflect_pad_into(tpad_ref, t1.astype(jnp.bfloat16).reshape(h, w, c))

    out = (conv3x3(tpad_ref, w2_ref) + b2_ref[...]) * 0.1         # (m, c) f32

    # ---- residual add (exact f32 skip path) & store -------------------------
    o_ref[...] = out.reshape(h, w, c) + x_ref[...]


# ---------------------------------------------------------------------------
# Wrapper
# ---------------------------------------------------------------------------
def residual_block_forward(params, x_nchw):
    """Pallas forward of ResidualBlock on an NCHW f32 input (returns NCHW)."""
    n, c, h, w = x_nchw.shape
    wp_pad = ((w + 2 + 7) // 8) * 8        # sublane-aligned padded width (18 -> 24)

    # NCHW -> NHWC (channels on the 128-lane axis).  No host-side padding:
    # the reflection pad is built in VMEM inside the kernel.
    x_nhwc = jnp.transpose(x_nchw, (0, 2, 3, 1)).astype(jnp.float32)

    # HWIO conv weights -> (9, Cin, Cout) taps (t = dy*3 + dx matches the
    # in-kernel window slicing), cast ONCE to bf16 for the MXU.  Biases stay
    # f32 since they are added after f32 accumulation.
    w1 = params["w1"].reshape(9, c, c).astype(jnp.bfloat16)
    w2 = params["w2"].reshape(9, c, c).astype(jnp.bfloat16)
    b1 = params["b1"].reshape(1, c).astype(jnp.float32)
    b2 = params["b2"].reshape(1, c).astype(jnp.float32)
    alpha = jnp.reshape(params["alpha"], (1, 1)).astype(jnp.float32)

    out_nhwc = pl.pallas_call(
        _residual_block_kernel,
        out_shape=jax.ShapeDtypeStruct((n, h, w, c), jnp.float32),
        grid_spec=pltpu.PrefetchScalarGridSpec(
            num_scalar_prefetch=0,
            grid=(n,),                                    # one image per grid step
            in_specs=[
                pl.BlockSpec((None, h, w, c), lambda i: (i, 0, 0, 0)),
                pl.BlockSpec((9, c, c), lambda i: (0, 0, 0)),
                pl.BlockSpec((1, c), lambda i: (0, 0)),
                pl.BlockSpec((9, c, c), lambda i: (0, 0, 0)),
                pl.BlockSpec((1, c), lambda i: (0, 0)),
                pl.BlockSpec(memory_space=pltpu.MemorySpace.SMEM),
            ],
            out_specs=pl.BlockSpec((None, h, w, c), lambda i: (i, 0, 0, 0)),
            scratch_shapes=[
                pltpu.VMEM((h + 2, wp_pad, c), jnp.bfloat16),   # padded input
                pltpu.VMEM((h + 2, wp_pad, c), jnp.bfloat16),   # padded intermediate
            ],
        ),
        compiler_params=pltpu.CompilerParams(
            dimension_semantics=("parallel",),            # megacore split over batch
            vmem_limit_bytes=32 * 1024 * 1024,            # <= half of v7x physical
        ),
    )(x_nhwc, w1, b1, w2, b2, alpha)

    return jnp.transpose(out_nhwc, (0, 3, 1, 2))          # back to NCHW


# ---------------------------------------------------------------------------
# Pure-JAX reference (f32) for correctness checking
# ---------------------------------------------------------------------------
def residual_block_reference(params, x_nchw):
    x = jnp.transpose(x_nchw, (0, 2, 3, 1)).astype(jnp.float32)

    def conv(h_in, w_hwio, b):
        hp = jnp.pad(h_in, ((0, 0), (1, 1), (1, 1), (0, 0)), mode="reflect")
        y = jax.lax.conv_general_dilated(
            hp, w_hwio, window_strides=(1, 1), padding="VALID",
            dimension_numbers=("NHWC", "HWIO", "NHWC"))
        return y + b

    a = params["alpha"][0]
    t = conv(x, params["w1"], params["b1"])
    t = jnp.where(t > 0, t, a * t)                        # PReLU
    y = conv(t, params["w2"], params["b2"]) * 0.1 + x
    return jnp.transpose(y, (0, 3, 1, 2))


# ---------------------------------------------------------------------------
if __name__ == "__main__":
    BATCH, CH, SIZE = 2, 128, 16                          # small, lane-friendly

    key = jax.random.PRNGKey(0)
    k_x, k_w1, k_b1, k_w2, k_b2 = jax.random.split(key, 5)

    fan_in = 3 * 3 * CH
    params = {
        "w1": (1.0 / jnp.sqrt(fan_in)) * jax.random.normal(
            k_w1, (3, 3, CH, CH), jnp.float32),
        "b1": 0.1 * jax.random.normal(k_b1, (CH,), jnp.float32),
        "w2": (1.0 / jnp.sqrt(fan_in)) * jax.random.normal(
            k_w2, (3, 3, CH, CH), jnp.float32),
        "b2": 0.1 * jax.random.normal(k_b2, (CH,), jnp.float32),
        "alpha": jnp.full((1,), 0.25, jnp.float32),       # torch PReLU default
    }
    x = jax.random.normal(k_x, (BATCH, CH, SIZE, SIZE), jnp.float32)

    out = jax.jit(residual_block_forward)(params, x)
    jax.block_until_ready(out)

    ref = residual_block_reference(params, x)

    assert out.shape == (BATCH, CH, SIZE, SIZE)
    assert bool(jnp.all(jnp.isfinite(out)))
    max_err = float(jnp.max(jnp.abs(out - ref)))
    assert max_err < 5e-2, f"max abs err vs f32 reference: {max_err}"
    print("KERNEL_OK")
</pallas_src>

<mosaic_0001>
module attributes {stable_mosaic.version = 11 : i64} {
  func.func @_residual_block_kernel(%arg0: i32, %arg1: memref<1x16x16x128xf32, #tpu.memory_space<vmem>>, %arg2: memref<9x128x128xbf16, #tpu.memory_space<vmem>>, %arg3: memref<1x128xf32, #tpu.memory_space<vmem>>, %arg4: memref<9x128x128xbf16, #tpu.memory_space<vmem>>, %arg5: memref<1x128xf32, #tpu.memory_space<vmem>>, %arg6: memref<1x1xf32, #tpu.memory_space<smem>>, %arg7: memref<1x16x16x128xf32, #tpu.memory_space<vmem>>, %arg8: memref<18x24x128xbf16, #tpu.memory_space<vmem>>, %arg9: memref<18x24x128xbf16, #tpu.memory_space<vmem>>) attributes {dimension_semantics = [#tpu.dimension_semantics<parallel>], iteration_bounds = array<i64: 2>, scalar_prefetch = 0 : i64, scratch_operands = 2 : i64, tpu.core_type = #tpu.core_type<tc>, window_params = [{transform_indices = @transform_0, window_bounds = array<i64: 1, 16, 16, 128>}, {pipeline_mode = #tpu.pipeline_mode<synchronous>, transform_indices = @transform_1, window_bounds = array<i64: 9, 128, 128>}, {pipeline_mode = #tpu.pipeline_mode<synchronous>, transform_indices = @transform_2, window_bounds = array<i64: 1, 128>}, {pipeline_mode = #tpu.pipeline_mode<synchronous>, transform_indices = @transform_3, window_bounds = array<i64: 9, 128, 128>}, {pipeline_mode = #tpu.pipeline_mode<synchronous>, transform_indices = @transform_4, window_bounds = array<i64: 1, 128>}, {transform_indices = @transform_5, window_bounds = array<i64: 1, 1>}, {transform_indices = @transform_6, window_bounds = array<i64: 1, 16, 16, 128>}]} {
    %c0 = arith.constant 0 : index
    %c0_0 = arith.constant 0 : index
    %c0_1 = arith.constant 0 : index
    %c0_2 = arith.constant 0 : index
    %0 = vector.load %arg1[%c0, %c0_0, %c0_1, %c0_2] : memref<1x16x16x128xf32, #tpu.memory_space<vmem>>, vector<1x16x16x128xf32>
    %1 = vector.shape_cast %0 : vector<1x16x16x128xf32> to vector<16x16x128xf32>
    %2 = arith.truncf %1 : vector<16x16x128xf32> to vector<16x16x128xbf16>
    %3 = vector.extract_strided_slice %2 {offsets = [0, 1, 0], sizes = [16, 1, 128], strides = [1, 1, 1]} : vector<16x16x128xbf16> to vector<16x1x128xbf16>
    %4 = vector.extract_strided_slice %2 {offsets = [0, 14, 0], sizes = [16, 1, 128], strides = [1, 1, 1]} : vector<16x16x128xbf16> to vector<16x1x128xbf16>
    %5 = tpu.concatenate %3, %2, %4 in 1 : vector<16x1x128xbf16>, vector<16x16x128xbf16>, vector<16x1x128xbf16> -> vector<16x18x128xbf16>
    %c1 = arith.constant 1 : index
    %c0_3 = arith.constant 0 : index
    %c0_4 = arith.constant 0 : index
    %6 = vector.load %arg8[%c1, %c0_3, %c0_4] : memref<18x24x128xbf16, #tpu.memory_space<vmem>>, vector<16x18x128xbf16>
    tpu.vector_store %arg8[%c1, %c0_3, %c0_4], %5 {strides = array<i32>} : memref<18x24x128xbf16, #tpu.memory_space<vmem>>, vector<16x18x128xbf16>,
    %7 = vector.extract_strided_slice %5 {offsets = [1, 0, 0], sizes = [1, 18, 128], strides = [1, 1, 1]} : vector<16x18x128xbf16> to vector<1x18x128xbf16>
    %c0_5 = arith.constant 0 : index
    %c0_6 = arith.constant 0 : index
    %c0_7 = arith.constant 0 : index
    %8 = vector.load %arg8[%c0_5, %c0_6, %c0_7] : memref<18x24x128xbf16, #tpu.memory_space<vmem>>, vector<1x18x128xbf16>
    tpu.vector_store %arg8[%c0_5, %c0_6, %c0_7], %7 {strides = array<i32>} : memref<18x24x128xbf16, #tpu.memory_space<vmem>>, vector<1x18x128xbf16>,
    %9 = vector.extract_strided_slice %5 {offsets = [14, 0, 0], sizes = [1, 18, 128], strides = [1, 1, 1]} : vector<16x18x128xbf16> to vector<1x18x128xbf16>
    %c17 = arith.constant 17 : index
    %c0_8 = arith.constant 0 : index
    %c0_9 = arith.constant 0 : index
    %10 = vector.load %arg8[%c17, %c0_8, %c0_9] : memref<18x24x128xbf16, #tpu.memory_space<vmem>>, vector<1x18x128xbf16>
    tpu.vector_store %arg8[%c17, %c0_8, %c0_9], %9 {strides = array<i32>} : memref<18x24x128xbf16, #tpu.memory_space<vmem>>, vector<1x18x128xbf16>,
    %c0_10 = arith.constant 0 : index
    %c0_11 = arith.constant 0 : index
    %11 = memref.load %arg6[%c0_10, %c0_11] : memref<1x1xf32, #tpu.memory_space<smem>>
    %c0_12 = arith.constant 0 : index
    %c0_13 = arith.constant 0 : index
    %c0_14 = arith.constant 0 : index
    %12 = vector.load %arg8[%c0_12, %c0_13, %c0_14] : memref<18x24x128xbf16, #tpu.memory_space<vmem>>, vector<16x16x128xbf16>
    %13 = vector.shape_cast %12 : vector<16x16x128xbf16> to vector<256x128xbf16>
    %c0_15 = arith.constant 0 : index
    %c0_16 = arith.constant 0 : index
    %c0_17 = arith.constant 0 : index
    %14 = vector.load %arg2[%c0_15, %c0_16, %c0_17] : memref<9x128x128xbf16, #tpu.memory_space<vmem>>, vector<1x128x128xbf16>
    %15 = vector.shape_cast %14 : vector<1x128x128xbf16> to vector<128x128xbf16>
    %cst = arith.constant dense<0.000000e+00> : vector<256x128xf32>
    %16 = tpu.matmul %13, %15, %cst {dimension_numbers = #tpu.dot_dimension_numbers<[1], [0], [0], [1], [0, 0, 1, 1], [], []>} : vector<256x128xbf16>, vector<128x128xbf16>, vector<256x128xf32> -> vector<256x128xf32>
    %c0_18 = arith.constant 0 : index
    %c1_19 = arith.constant 1 : index
    %c0_20 = arith.constant 0 : index
    %17 = vector.load %arg8[%c0_18, %c1_19, %c0_20] : memref<18x24x128xbf16, #tpu.memory_space<vmem>>, vector<16x16x128xbf16>
    %18 = vector.shape_cast %17 : vector<16x16x128xbf16> to vector<256x128xbf16>
    %c1_21 = arith.constant 1 : index
    %c0_22 = arith.constant 0 : index
    %c0_23 = arith.constant 0 : index
    %19 = vector.load %arg2[%c1_21, %c0_22, %c0_23] : memref<9x128x128xbf16, #tpu.memory_space<vmem>>, vector<1x128x128xbf16>
    %20 = vector.shape_cast %19 : vector<1x128x128xbf16> to vector<128x128xbf16>
    %cst_24 = arith.constant dense<0.000000e+00> : vector<256x128xf32>
    %21 = tpu.matmul %18, %20, %cst_24 {dimension_numbers = #tpu.dot_dimension_numbers<[1], [0], [0], [1], [0, 0, 1, 1], [], []>} : vector<256x128xbf16>, vector<128x128xbf16>, vector<256x128xf32> -> vector<256x128xf32>
    %22 = arith.addf %16, %21 : vector<256x128xf32>
    %c0_25 = arith.constant 0 : index
    %c2 = arith.constant 2 : index
    %c0_26 = arith.constant 0 : index
    %23 = vector.load %arg8[%c0_25, %c2, %c0_26] : memref<18x24x128xbf16, #tpu.memory_space<vmem>>, vector<16x16x128xbf16>
    %24 = vector.shape_cast %23 : vector<16x16x128xbf16> to vector<256x128xbf16>
    %c2_27 = arith.constant 2 : index
    %c0_28 = arith.constant 0 : index
    %c0_29 = arith.constant 0 : index
    %25 = vector.load %arg2[%c2_27, %c0_28, %c0_29] : memref<9x128x128xbf16, #tpu.memory_space<vmem>>, vector<1x128x128xbf16>
    %26 = vector.shape_cast %25 : vector<1x128x128xbf16> to vector<128x128xbf16>
    %cst_30 = arith.constant dense<0.000000e+00> : vector<256x128xf32>
    %27 = tpu.matmul %24, %26, %cst_30 {dimension_numbers = #tpu.dot_dimension_numbers<[1], [0], [0], [1], [0, 0, 1, 1], [], []>} : vector<256x128xbf16>, vector<128x128xbf16>, vector<256x128xf32> -> vector<256x128xf32>
    %28 = arith.addf %22, %27 : vector<256x128xf32>
    %c1_31 = arith.constant 1 : index
    %c0_32 = arith.constant 0 : index
    %c0_33 = arith.constant 0 : index
    %29 = vector.load %arg8[%c1_31, %c0_32, %c0_33] : memref<18x24x128xbf16, #tpu.memory_space<vmem>>, vector<16x16x128xbf16>
    %30 = vector.shape_cast %29 : vector<16x16x128xbf16> to vector<256x128xbf16>
    %c3 = arith.constant 3 : index
    %c0_34 = arith.constant 0 : index
    %c0_35 = arith.constant 0 : index
    %31 = vector.load %arg2[%c3, %c0_34, %c0_35] : memref<9x128x128xbf16, #tpu.memory_space<vmem>>, vector<1x128x128xbf16>
    %32 = vector.shape_cast %31 : vector<1x128x128xbf16> to vector<128x128xbf16>
    %cst_36 = arith.constant dense<0.000000e+00> : vector<256x128xf32>
    %33 = tpu.matmul %30, %32, %cst_36 {dimension_numbers = #tpu.dot_dimension_numbers<[1], [0], [0], [1], [0, 0, 1, 1], [], []>} : vector<256x128xbf16>, vector<128x128xbf16>, vector<256x128xf32> -> vector<256x128xf32>
    %34 = arith.addf %28, %33 : vector<256x128xf32>
    %c1_37 = arith.constant 1 : index
    %c1_38 = arith.constant 1 : index
    %c0_39 = arith.constant 0 : index
    %35 = vector.load %arg8[%c1_37, %c1_38, %c0_39] : memref<18x24x128xbf16, #tpu.memory_space<vmem>>, vector<16x16x128xbf16>
    %36 = vector.shape_cast %35 : vector<16x16x128xbf16> to vector<256x128xbf16>
    %c4 = arith.constant 4 : index
    %c0_40 = arith.constant 0 : index
    %c0_41 = arith.constant 0 : index
    %37 = vector.load %arg2[%c4, %c0_40, %c0_41] : memref<9x128x128xbf16, #tpu.memory_space<vmem>>, vector<1x128x128xbf16>
    %38 = vector.shape_cast %37 : vector<1x128x128xbf16> to vector<128x128xbf16>
    %cst_42 = arith.constant dense<0.000000e+00> : vector<256x128xf32>
    %39 = tpu.matmul %36, %38, %cst_42 {dimension_numbers = #tpu.dot_dimension_numbers<[1], [0], [0], [1], [0, 0, 1, 1], [], []>} : vector<256x128xbf16>, vector<128x128xbf16>, vector<256x128xf32> -> vector<256x128xf32>
    %40 = arith.addf %34, %39 : vector<256x128xf32>
    %c1_43 = arith.constant 1 : index
    %c2_44 = arith.constant 2 : index
    %c0_45 = arith.constant 0 : index
    %41 = vector.load %arg8[%c1_43, %c2_44, %c0_45] : memref<18x24x128xbf16, #tpu.memory_space<vmem>>, vector<16x16x128xbf16>
    %42 = vector.shape_cast %41 : vector<16x16x128xbf16> to vector<256x128xbf16>
    %c5 = arith.constant 5 : index
    %c0_46 = arith.constant 0 : index
    %c0_47 = arith.constant 0 : index
    %43 = vector.load %arg2[%c5, %c0_46, %c0_47] : memref<9x128x128xbf16, #tpu.memory_space<vmem>>, vector<1x128x128xbf16>
    %44 = vector.shape_cast %43 : vector<1x128x128xbf16> to vector<128x128xbf16>
    %cst_48 = arith.constant dense<0.000000e+00> : vector<256x128xf32>
    %45 = tpu.matmul %42, %44, %cst_48 {dimension_numbers = #tpu.dot_dimension_numbers<[1], [0], [0], [1], [0, 0, 1, 1], [], []>} : vector<256x128xbf16>, vector<128x128xbf16>, vector<256x128xf32> -> vector<256x128xf32>
    %46 = arith.addf %40, %45 : vector<256x128xf32>
    %c2_49 = arith.constant 2 : index
    %c0_50 = arith.constant 0 : index
    %c0_51 = arith.constant 0 : index
    %47 = vector.load %arg8[%c2_49, %c0_50, %c0_51] : memref<18x24x128xbf16, #tpu.memory_space<vmem>>, vector<16x16x128xbf16>
    %48 = vector.shape_cast %47 : vector<16x16x128xbf16> to vector<256x128xbf16>
    %c6 = arith.constant 6 : index
    %c0_52 = arith.constant 0 : index
    %c0_53 = arith.constant 0 : index
    %49 = vector.load %arg2[%c6, %c0_52, %c0_53] : memref<9x128x128xbf16, #tpu.memory_space<vmem>>, vector<1x128x128xbf16>
    %50 = vector.shape_cast %49 : vector<1x128x128xbf16> to vector<128x128xbf16>
    %cst_54 = arith.constant dense<0.000000e+00> : vector<256x128xf32>
    %51 = tpu.matmul %48, %50, %cst_54 {dimension_numbers = #tpu.dot_dimension_numbers<[1], [0], [0], [1], [0, 0, 1, 1], [], []>} : vector<256x128xbf16>, vector<128x128xbf16>, vector<256x128xf32> -> vector<256x128xf32>
    %52 = arith.addf %46, %51 : vector<256x128xf32>
    %c2_55 = arith.constant 2 : index
    %c1_56 = arith.constant 1 : index
    %c0_57 = arith.constant 0 : index
    %53 = vector.load %arg8[%c2_55, %c1_56, %c0_57] : memref<18x24x128xbf16, #tpu.memory_space<vmem>>, vector<16x16x128xbf16>
    %54 = vector.shape_cast %53 : vector<16x16x128xbf16> to vector<256x128xbf16>
    %c7 = arith.constant 7 : index
    %c0_58 = arith.constant 0 : index
    %c0_59 = arith.constant 0 : index
    %55 = vector.load %arg2[%c7, %c0_58, %c0_59] : memref<9x128x128xbf16, #tpu.memory_space<vmem>>, vector<1x128x128xbf16>
    %56 = vector.shape_cast %55 : vector<1x128x128xbf16> to vector<128x128xbf16>
    %cst_60 = arith.constant dense<0.000000e+00> : vector<256x128xf32>
    %57 = tpu.matmul %54, %56, %cst_60 {dimension_numbers = #tpu.dot_dimension_numbers<[1], [0], [0], [1], [0, 0, 1, 1], [], []>} : vector<256x128xbf16>, vector<128x128xbf16>, vector<256x128xf32> -> vector<256x128xf32>
    %58 = arith.addf %52, %57 : vector<256x128xf32>
    %c2_61 = arith.constant 2 : index
    %c2_62 = arith.constant 2 : index
    %c0_63 = arith.constant 0 : index
    %59 = vector.load %arg8[%c2_61, %c2_62, %c0_63] : memref<18x24x128xbf16, #tpu.memory_space<vmem>>, vector<16x16x128xbf16>
    %60 = vector.shape_cast %59 : vector<16x16x128xbf16> to vector<256x128xbf16>
    %c8 = arith.constant 8 : index
    %c0_64 = arith.constant 0 : index
    %c0_65 = arith.constant 0 : index
    %61 = vector.load %arg2[%c8, %c0_64, %c0_65] : memref<9x128x128xbf16, #tpu.memory_space<vmem>>, vector<1x128x128xbf16>
    %62 = vector.shape_cast %61 : vector<1x128x128xbf16> to vector<128x128xbf16>
    %cst_66 = arith.constant dense<0.000000e+00> : vector<256x128xf32>
    %63 = tpu.matmul %60, %62, %cst_66 {dimension_numbers = #tpu.dot_dimension_numbers<[1], [0], [0], [1], [0, 0, 1, 1], [], []>} : vector<256x128xbf16>, vector<128x128xbf16>, vector<256x128xf32> -> vector<256x128xf32>
    %64 = arith.addf %58, %63 : vector<256x128xf32>
    %c0_67 = arith.constant 0 : index
    %c0_68 = arith.constant 0 : index
    %65 = vector.load %arg3[%c0_67, %c0_68] : memref<1x128xf32, #tpu.memory_space<vmem>>, vector<1x128xf32>
    %66 = vector.broadcast %65 : vector<1x128xf32> to vector<256x128xf32>
    %67 = arith.addf %64, %66 : vector<256x128xf32>
    %cst_69 = arith.constant 0.000000e+00 : f32
    %68 = vector.broadcast %cst_69 : f32 to vector<256x128xf32>
    %69 = arith.cmpf ogt, %67, %68 : vector<256x128xf32>
    %70 = vector.broadcast %11 : f32 to vector<256x128xf32>
    %71 = arith.mulf %70, %67 : vector<256x128xf32>
    %72 = arith.select %69, %67, %71 : vector<256x128xi1>, vector<256x128xf32>
    %73 = arith.truncf %72 : vector<256x128xf32> to vector<256x128xbf16>
    %74 = vector.shape_cast %73 : vector<256x128xbf16> to vector<16x16x128xbf16>
    %75 = vector.extract_strided_slice %74 {offsets = [0, 1, 0], sizes = [16, 1, 128], strides = [1, 1, 1]} : vector<16x16x128xbf16> to vector<16x1x128xbf16>
    %76 = vector.extract_strided_slice %74 {offsets = [0, 14, 0], sizes = [16, 1, 128], strides = [1, 1, 1]} : vector<16x16x128xbf16> to vector<16x1x128xbf16>
    %77 = tpu.concatenate %75, %74, %76 in 1 : vector<16x1x128xbf16>, vector<16x16x128xbf16>, vector<16x1x128xbf16> -> vector<16x18x128xbf16>
    %c1_70 = arith.constant 1 : index
    %c0_71 = arith.constant 0 : index
    %c0_72 = arith.constant 0 : index
    %78 = vector.load %arg9[%c1_70, %c0_71, %c0_72] : memref<18x24x128xbf16, #tpu.memory_space<vmem>>, vector<16x18x128xbf16>
    tpu.vector_store %arg9[%c1_70, %c0_71, %c0_72], %77 {strides = array<i32>} : memref<18x24x128xbf16, #tpu.memory_space<vmem>>, vector<16x18x128xbf16>,
    %79 = vector.extract_strided_slice %77 {offsets = [1, 0, 0], sizes = [1, 18, 128], strides = [1, 1, 1]} : vector<16x18x128xbf16> to vector<1x18x128xbf16>
    %c0_73 = arith.constant 0 : index
    %c0_74 = arith.constant 0 : index
    %c0_75 = arith.constant 0 : index
    %80 = vector.load %arg9[%c0_73, %c0_74, %c0_75] : memref<18x24x128xbf16, #tpu.memory_space<vmem>>, vector<1x18x128xbf16>
    tpu.vector_store %arg9[%c0_73, %c0_74, %c0_75], %79 {strides = array<i32>} : memref<18x24x128xbf16, #tpu.memory_space<vmem>>, vector<1x18x128xbf16>,
    %81 = vector.extract_strided_slice %77 {offsets = [14, 0, 0], sizes = [1, 18, 128], strides = [1, 1, 1]} : vector<16x18x128xbf16> to vector<1x18x128xbf16>
    %c17_76 = arith.constant 17 : index
    %c0_77 = arith.constant 0 : index
    %c0_78 = arith.constant 0 : index
    %82 = vector.load %arg9[%c17_76, %c0_77, %c0_78] : memref<18x24x128xbf16, #tpu.memory_space<vmem>>, vector<1x18x128xbf16>
    tpu.vector_store %arg9[%c17_76, %c0_77, %c0_78], %81 {strides = array<i32>} : memref<18x24x128xbf16, #tpu.memory_space<vmem>>, vector<1x18x128xbf16>,
    %c0_79 = arith.constant 0 : index
    %c0_80 = arith.constant 0 : index
    %c0_81 = arith.constant 0 : index
    %83 = vector.load %arg9[%c0_79, %c0_80, %c0_81] : memref<18x24x128xbf16, #tpu.memory_space<vmem>>, vector<16x16x128xbf16>
    %84 = vector.shape_cast %83 : vector<16x16x128xbf16> to vector<256x128xbf16>
    %c0_82 = arith.constant 0 : index
    %c0_83 = arith.constant 0 : index
    %c0_84 = arith.constant 0 : index
    %85 = vector.load %arg4[%c0_82, %c0_83, %c0_84] : memref<9x128x128xbf16, #tpu.memory_space<vmem>>, vector<1x128x128xbf16>
    %86 = vector.shape_cast %85 : vector<1x128x128xbf16> to vector<128x128xbf16>
    %cst_85 = arith.constant dense<0.000000e+00> : vector<256x128xf32>
    %87 = tpu.matmul %84, %86, %cst_85 {dimension_numbers = #tpu.dot_dimension_numbers<[1], [0], [0], [1], [0, 0, 1, 1], [], []>} : vector<256x128xbf16>, vector<128x128xbf16>, vector<256x128xf32> -> vector<256x128xf32>
    %c0_86 = arith.constant 0 : index
    %c1_87 = arith.constant 1 : index
    %c0_88 = arith.constant 0 : index
    %88 = vector.load %arg9[%c0_86, %c1_87, %c0_88] : memref<18x24x128xbf16, #tpu.memory_space<vmem>>, vector<16x16x128xbf16>
    %89 = vector.shape_cast %88 : vector<16x16x128xbf16> to vector<256x128xbf16>
    %c1_89 = arith.constant 1 : index
    %c0_90 = arith.constant 0 : index
    %c0_91 = arith.constant 0 : index
    %90 = vector.load %arg4[%c1_89, %c0_90, %c0_91] : memref<9x128x128xbf16, #tpu.memory_space<vmem>>, vector<1x128x128xbf16>
    %91 = vector.shape_cast %90 : vector<1x128x128xbf16> to vector<128x128xbf16>
    %cst_92 = arith.constant dense<0.000000e+00> : vector<256x128xf32>
    %92 = tpu.matmul %89, %91, %cst_92 {dimension_numbers = #tpu.dot_dimension_numbers<[1], [0], [0], [1], [0, 0, 1, 1], [], []>} : vector<256x128xbf16>, vector<128x128xbf16>, vector<256x128xf32> -> vector<256x128xf32>
    %93 = arith.addf %87, %92 : vector<256x128xf32>
    %c0_93 = arith.constant 0 : index
    %c2_94 = arith.constant 2 : index
    %c0_95 = arith.constant 0 : index
    %94 = vector.load %arg9[%c0_93, %c2_94, %c0_95] : memref<18x24x128xbf16, #tpu.memory_space<vmem>>, vector<16x16x128xbf16>
    %95 = vector.shape_cast %94 : vector<16x16x128xbf16> to vector<256x128xbf16>
    %c2_96 = arith.constant 2 : index
    %c0_97 = arith.constant 0 : index
    %c0_98 = arith.constant 0 : index
    %96 = vector.load %arg4[%c2_96, %c0_97, %c0_98] : memref<9x128x128xbf16, #tpu.memory_space<vmem>>, vector<1x128x128xbf16>
    %97 = vector.shape_cast %96 : vector<1x128x128xbf16> to vector<128x128xbf16>
    %cst_99 = arith.constant dense<0.000000e+00> : vector<256x128xf32>
    %98 = tpu.matmul %95, %97, %cst_99 {dimension_numbers = #tpu.dot_dimension_numbers<[1], [0], [0], [1], [0, 0, 1, 1], [], []>} : vector<256x128xbf16>, vector<128x128xbf16>, vector<256x128xf32> -> vector<256x128xf32>
    %99 = arith.addf %93, %98 : vector<256x128xf32>
    %c1_100 = arith.constant 1 : index
    %c0_101 = arith.constant 0 : index
    %c0_102 = arith.constant 0 : index
    %100 = vector.load %arg9[%c1_100, %c0_101, %c0_102] : memref<18x24x128xbf16, #tpu.memory_space<vmem>>, vector<16x16x128xbf16>
    %101 = vector.shape_cast %100 : vector<16x16x128xbf16> to vector<256x128xbf16>
    %c3_103 = arith.constant 3 : index
    %c0_104 = arith.constant 0 : index
    %c0_105 = arith.constant 0 : index
    %102 = vector.load %arg4[%c3_103, %c0_104, %c0_105] : memref<9x128x128xbf16, #tpu.memory_space<vmem>>, vector<1x128x128xbf16>
    %103 = vector.shape_cast %102 : vector<1x128x128xbf16> to vector<128x128xbf16>
    %cst_106 = arith.constant dense<0.000000e+00> : vector<256x128xf32>
    %104 = tpu.matmul %101, %103, %cst_106 {dimension_numbers = #tpu.dot_dimension_numbers<[1], [0], [0], [1], [0, 0, 1, 1], [], []>} : vector<256x128xbf16>, vector<128x128xbf16>, vector<256x128xf32> -> vector<256x128xf32>
    %105 = arith.addf %99, %104 : vector<256x128xf32>
    %c1_107 = arith.constant 1 : index
    %c1_108 = arith.constant 1 : index
    %c0_109 = arith.constant 0 : index
    %106 = vector.load %arg9[%c1_107, %c1_108, %c0_109] : memref<18x24x128xbf16, #tpu.memory_space<vmem>>, vector<16x16x128xbf16>
    %107 = vector.shape_cast %106 : vector<16x16x128xbf16> to vector<256x128xbf16>
    %c4_110 = arith.constant 4 : index
    %c0_111 = arith.constant 0 : index
    %c0_112 = arith.constant 0 : index
    %108 = vector.load %arg4[%c4_110, %c0_111, %c0_112] : memref<9x128x128xbf16, #tpu.memory_space<vmem>>, vector<1x128x128xbf16>
    %109 = vector.shape_cast %108 : vector<1x128x128xbf16> to vector<128x128xbf16>
    %cst_113 = arith.constant dense<0.000000e+00> : vector<256x128xf32>
    %110 = tpu.matmul %107, %109, %cst_113 {dimension_numbers = #tpu.dot_dimension_numbers<[1], [0], [0], [1], [0, 0, 1, 1], [], []>} : vector<256x128xbf16>, vector<128x128xbf16>, vector<256x128xf32> -> vector<256x128xf32>
    %111 = arith.addf %105, %110 : vector<256x128xf32>
    %c1_114 = arith.constant 1 : index
    %c2_115 = arith.constant 2 : index
    %c0_116 = arith.constant 0 : index
    %112 = vector.load %arg9[%c1_114, %c2_115, %c0_116] : memref<18x24x128xbf16, #tpu.memory_space<vmem>>, vector<16x16x128xbf16>
    %113 = vector.shape_cast %112 : vector<16x16x128xbf16> to vector<256x128xbf16>
    %c5_117 = arith.constant 5 : index
    %c0_118 = arith.constant 0 : index
    %c0_119 = arith.constant 0 : index
    %114 = vector.load %arg4[%c5_117, %c0_118, %c0_119] : memref<9x128x128xbf16, #tpu.memory_space<vmem>>, vector<1x128x128xbf16>
    %115 = vector.shape_cast %114 : vector<1x128x128xbf16> to vector<128x128xbf16>
    %cst_120 = arith.constant dense<0.000000e+00> : vector<256x128xf32>
    %116 = tpu.matmul %113, %115, %cst_120 {dimension_numbers = #tpu.dot_dimension_numbers<[1], [0], [0], [1], [0, 0, 1, 1], [], []>} : vector<256x128xbf16>, vector<128x128xbf16>, vector<256x128xf32> -> vector<256x128xf32>
    %117 = arith.addf %111, %116 : vector<256x128xf32>
    %c2_121 = arith.constant 2 : index
    %c0_122 = arith.constant 0 : index
    %c0_123 = arith.constant 0 : index
    %118 = vector.load %arg9[%c2_121, %c0_122, %c0_123] : memref<18x24x128xbf16, #tpu.memory_space<vmem>>, vector<16x16x128xbf16>
    %119 = vector.shape_cast %118 : vector<16x16x128xbf16> to vector<256x128xbf16>
    %c6_124 = arith.constant 6 : index
    %c0_125 = arith.constant 0 : index
    %c0_126 = arith.constant 0 : index
    %120 = vector.load %arg4[%c6_124, %c0_125, %c0_126] : memref<9x128x128xbf16, #tpu.memory_space<vmem>>, vector<1x128x128xbf16>
    %121 = vector.shape_cast %120 : vector<1x128x128xbf16> to vector<128x128xbf16>
    %cst_127 = arith.constant dense<0.000000e+00> : vector<256x128xf32>
    %122 = tpu.matmul %119, %121, %cst_127 {dimension_numbers = #tpu.dot_dimension_numbers<[1], [0], [0], [1], [0, 0, 1, 1], [], []>} : vector<256x128xbf16>, vector<128x128xbf16>, vector<256x128xf32> -> vector<256x128xf32>
    %123 = arith.addf %117, %122 : vector<256x128xf32>
    %c2_128 = arith.constant 2 : index
    %c1_129 = arith.constant 1 : index
    %c0_130 = arith.constant 0 : index
    %124 = vector.load %arg9[%c2_128, %c1_129, %c0_130] : memref<18x24x128xbf16, #tpu.memory_space<vmem>>, vector<16x16x128xbf16>
    %125 = vector.shape_cast %124 : vector<16x16x128xbf16> to vector<256x128xbf16>
    %c7_131 = arith.constant 7 : index
    %c0_132 = arith.constant 0 : index
    %c0_133 = arith.constant 0 : index
    %126 = vector.load %arg4[%c7_131, %c0_132, %c0_133] : memref<9x128x128xbf16, #tpu.memory_space<vmem>>, vector<1x128x128xbf16>
    %127 = vector.shape_cast %126 : vector<1x128x128xbf16> to vector<128x128xbf16>
    %cst_134 = arith.constant dense<0.000000e+00> : vector<256x128xf32>
    %128 = tpu.matmul %125, %127, %cst_134 {dimension_numbers = #tpu.dot_dimension_numbers<[1], [0], [0], [1], [0, 0, 1, 1], [], []>} : vector<256x128xbf16>, vector<128x128xbf16>, vector<256x128xf32> -> vector<256x128xf32>
    %129 = arith.addf %123, %128 : vector<256x128xf32>
    %c2_135 = arith.constant 2 : index
    %c2_136 = arith.constant 2 : index
    %c0_137 = arith.constant 0 : index
    %130 = vector.load %arg9[%c2_135, %c2_136, %c0_137] : memref<18x24x128xbf16, #tpu.memory_space<vmem>>, vector<16x16x128xbf16>
    %131 = vector.shape_cast %130 : vector<16x16x128xbf16> to vector<256x128xbf16>
    %c8_138 = arith.constant 8 : index
    %c0_139 = arith.constant 0 : index
    %c0_140 = arith.constant 0 : index
    %132 = vector.load %arg4[%c8_138, %c0_139, %c0_140] : memref<9x128x128xbf16, #tpu.memory_space<vmem>>, vector<1x128x128xbf16>
    %133 = vector.shape_cast %132 : vector<1x128x128xbf16> to vector<128x128xbf16>
    %cst_141 = arith.constant dense<0.000000e+00> : vector<256x128xf32>
    %134 = tpu.matmul %131, %133, %cst_141 {dimension_numbers = #tpu.dot_dimension_numbers<[1], [0], [0], [1], [0, 0, 1, 1], [], []>} : vector<256x128xbf16>, vector<128x128xbf16>, vector<256x128xf32> -> vector<256x128xf32>
    %135 = arith.addf %129, %134 : vector<256x128xf32>
    %c0_142 = arith.constant 0 : index
    %c0_143 = arith.constant 0 : index
    %136 = vector.load %arg5[%c0_142, %c0_143] : memref<1x128xf32, #tpu.memory_space<vmem>>, vector<1x128xf32>
    %137 = vector.broadcast %136 : vector<1x128xf32> to vector<256x128xf32>
    %138 = arith.addf %135, %137 : vector<256x128xf32>
    %cst_144 = arith.constant 1.000000e-01 : f32
    %139 = vector.broadcast %cst_144 : f32 to vector<256x128xf32>
    %140 = arith.mulf %138, %139 : vector<256x128xf32>
    %141 = vector.shape_cast %140 : vector<256x128xf32> to vector<16x16x128xf32>
    %c0_145 = arith.constant 0 : index
    %c0_146 = arith.constant 0 : index
    %c0_147 = arith.constant 0 : index
    %c0_148 = arith.constant 0 : index
    %142 = vector.load %arg1[%c0_145, %c0_146, %c0_147, %c0_148] : memref<1x16x16x128xf32, #tpu.memory_space<vmem>>, vector<1x16x16x128xf32>
    %143 = vector.shape_cast %142 : vector<1x16x16x128xf32> to vector<16x16x128xf32>
    %144 = arith.addf %141, %143 : vector<16x16x128xf32>
    %c0_149 = arith.constant 0 : index
    %c0_150 = arith.constant 0 : index
    %c0_151 = arith.constant 0 : index
    %c0_152 = arith.constant 0 : index
    %145 = vector.load %arg7[%c0_149, %c0_150, %c0_151, %c0_152] : memref<1x16x16x128xf32, #tpu.memory_space<vmem>>, vector<1x16x16x128xf32>
    %146 = vector.shape_cast %145 : vector<1x16x16x128xf32> to vector<16x16x128xf32>
    %147 = vector.shape_cast %144 : vector<16x16x128xf32> to vector<1x16x16x128xf32>
    tpu.vector_store %arg7[%c0_149, %c0_150, %c0_151, %c0_152], %147 {strides = array<i32>} : memref<1x16x16x128xf32, #tpu.memory_space<vmem>>, vector<1x16x16x128xf32>,
    return
  }
  func.func @transform_0(%arg0: i32) -> (i32, i32, i32, i32) {
    %c0_i32 = arith.constant 0 : i32
    %c0_i32_0 = arith.constant 0 : i32
    %c0_i32_1 = arith.constant 0 : i32
    %c0_i32_2 = arith.constant 0 : i32
    return %arg0, %c0_i32, %c0_i32_0, %c0_i32_1 : i32, i32, i32, i32
  }
  func.func @transform_1(%arg0: i32) -> (i32, i32, i32) {
    %c0_i32 = arith.constant 0 : i32
    %c0_i32_0 = arith.constant 0 : i32
    %c0_i32_1 = arith.constant 0 : i32
    %c0_i32_2 = arith.constant 0 : i32
    return %c0_i32, %c0_i32_0, %c0_i32_1 : i32, i32, i32
  }
  func.func @transform_2(%arg0: i32) -> (i32, i32) {
    %c0_i32 = arith.constant 0 : i32
    %c0_i32_0 = arith.constant 0 : i32
    %c0_i32_1 = arith.constant 0 : i32
    return %c0_i32, %c0_i32_0 : i32, i32
  }
  func.func @transform_3(%arg0: i32) -> (i32, i32, i32) {
    %c0_i32 = arith.constant 0 : i32
    %c0_i32_0 = arith.constant 0 : i32
    %c0_i32_1 = arith.constant 0 : i32
    %c0_i32_2 = arith.constant 0 : i32
    return %c0_i32, %c0_i32_0, %c0_i32_1 : i32, i32, i32
  }
  func.func @transform_4(%arg0: i32) -> (i32, i32) {
    %c0_i32 = arith.constant 0 : i32
    %c0_i32_0 = arith.constant 0 : i32
    %c0_i32_1 = arith.constant 0 : i32
    return %c0_i32, %c0_i32_0 : i32, i32
  }
  func.func @transform_5(%arg0: i32) -> (i32, i32) {
    %c0_i32 = arith.constant 0 : i32
    %c0_i32_0 = arith.constant 0 : i32
    %c0_i32_1 = arith.constant 0 : i32
    return %c0_i32, %c0_i32_0 : i32, i32
  }
  func.func @transform_6(%arg0: i32) -> (i32, i32, i32, i32) {
    %c0_i32 = arith.constant 0 : i32
    %c0_i32_0 = arith.constant 0 : i32
    %c0_i32_1 = arith.constant 0 : i32
    %c0_i32_2 = arith.constant 0 : i32
    return %arg0, %c0_i32, %c0_i32_0, %c0_i32_1 : i32, i32, i32, i32
  }
}

</mosaic_0001>

<bundles_post_ra>
// kernel: residual_block_forward.1
= control target key start
LH: loop header
LB: loop body
LE: loop exit
PB: predicated region body
PF: predicated region fallthrough
CT: control target
= control target key end

     0   :  { %s15977_s0 = inlined_call_operand.vmem [shape: f32[2,16,16,128], index: 0, kind: input, shape index: {}]   ;;  %s15978_s1 = inlined_call_operand.vmem [shape: bf16[9,128,128], index: 1, kind: input, shape index: {}]   ;;  %s15979_s2 = inlined_call_operand.vmem [shape: f32[1,128], index: 2, kind: input, shape index: {}]   ;;  %s15980_s3 = inlined_call_operand.vmem [shape: bf16[9,128,128], index: 3, kind: input, shape index: {}]   ;;  %s15981_s4 = inlined_call_operand.vmem [shape: f32[1,128], index: 4, kind: input, shape index: {}]   ;;  %s15982_s5 = inlined_call_operand.<no memory space> [shape: f32[1,1], index: 5, kind: input, shape index: {}]   ;;  %s15983_s6 = inlined_call_operand.hbm [shape: f32[2,16,16,128], index: 6, kind: output, shape index: {}]  }
   0x1   :  { %11 = sst [smem:[#allocation4]] %s15982_s5 }
   0x2   :  { %12 = vsyncpa [#allocation6], 0 }
   0x3   :  { %14 = vsyncpa [#allocation6 + $0x1], 0  ;;  %s12129_s23 = smov 0   ;;  %s12131_s24 = smov 0  }
   0x4   :  { %s12133_s25 = smov 0   ;;  %s12135_s26 = smov 0  }
   0x5 LB: > { %s12150_s5 = sadd.s32 4294967295, %s12087_s26   ;;  %s10368_s27 = sadd.s32 4294967294, %s12087_s26   ;;  %s12087_s26 = sphi %s12135_s26, %s16198_s26   ;;  %s12083_s25 = sphi %s12133_s25, %s16197_s25   ;;  %s12079_s24 = sphi %s12131_s24, %s16196_s24   ;;  %s12075_s23 = sphi %s12129_s23, %s16195_s23  }
   0x6   : > { %s12154_s28 = sadd.s32 1, %s12087_s26   ;;  %s158_s29 = sadd.s32 1, %s12083_s25 }
   0x7   : > { %s155_s30 = ssub.s32 %s12087_s26, %s12154_s28  ;;  %p168_p0 = scmp.ne.s32.totalorder %s12083_s25, %s12079_s24 }
   0x8   : > { %p156_p1 = scmp.eq.s32.totalorder %s155_s30, 0  ;;  %p169_p2 = scmp.eq.s32.totalorder %s12150_s5, 1 }
   0x9   : > { %p174_p3 = scmp.ne.s32.totalorder %s12079_s24, %s12075_s23  ;;  %p175_p4 = scmp.eq.s32.totalorder %s10368_s27, 1 }
   0xa   : > { %s12165_s7 = scalar_select %p156_p1, %s12083_s25, %s158_s29  }
   0xb   : > { %p12167_p5 = por %p169_p2, %p168_p0  ;;  %p12171_p6 = por %p175_p4, %p174_p3 }
   0xc   : > { %p10371_p7 = scmp.ge.s32.totalorder %s12087_s26, 1  ;;  %p216_p8 = scmp.lt.s32.totalorder %s12087_s26, 3 }
   0xe   : > { %p217_p9 = pnand %p10371_p7, %p216_p8 }
  0x10   : > { %220 = sbr.rel (%p217_p9) target bundleno = 1596 (0x63c), region = 44 }
  0x15   : > { %v11716_v0 = vld [vmem:[%s15978_s1 + $0x38] sm:$0xff]  ;;  %p246_p10 = scmp.lt.s32.totalorder %s12150_s5, 1  ;;  %v11715_v2 = vld [vmem:[%s15978_s1 + $0x30] sm:$0xff]  ;;  %v11714_v4 = vld [vmem:[%s15978_s1 + $0x28] sm:$0xff]  ;;  %vm715_vm0 = vcmask 1040384   ;;  %vm1933_vm6 = vcmask 1042432  }
  0x16   : > { %v11724_v1 = vld [vmem:[%s15978_s1 + $0x78] sm:$0xff]  ;;  %11942 = vmatpush.bf16.msra.mxu3 %v11716_v0  ;;  %1796 = vmatpush.bf16.msra.mxu1 %v11716_v0  ;;  %v11723_v3 = vld [vmem:[%s15978_s1 + $0x70] sm:$0xff]  ;;  %v11722_v5 = vld [vmem:[%s15978_s1 + $0x68] sm:$0xff]  ;;  %vm716_vm1 = vsmask.f32 256  ;;  %vm1934_vm7 = vcmask 1046532  }
  0x17   : > { %s247_s16 = scalar_select %p246_p10, %s12150_s5, 1  ;;  %1563 = vmatpush.bf16.msra.mxu0 %v11724_v1  ;;  %11934 = vmatpush.bf16.msra.mxu2 %v11724_v1  ;;  %v11713_v24 = vld [vmem:[%s15978_s1 + $0x20] sm:$0xff]  ;;  %v11712_v40 = vld [vmem:[%s15978_s1 + $0x18] sm:$0xff]  ;;  %vm12227_vm2 = vmand %vm715_vm0, %vm716_vm1  ;;  %vm1047_vm3 = vsmask.f32 3328 }
  0x18   : > { %v11721_v27 = vld [vmem:[%s15978_s1 + $0x60] sm:$0xff]  ;;  %v11720_v45 = vld [vmem:[%s15978_s1 + $0x58] sm:$0xff]  ;;  %v11711_v58 = vld [vmem:[%s15978_s1 + $0x10] sm:$0xff]  ;;  %vm1048_vm4 = vsmask.f32 7440  ;;  %s13468_s20 = sld [smem:[#allocation4]] }
  0x19   : > { %s11692_s19 = sshll.u32 %s247_s16, 8  ;;  %v11719_v63 = vld [vmem:[%s15978_s1 + $0x50] sm:$0xff]  ;;  %vm12318_vm5 = vmor %vm1047_vm3, %vm1048_vm4  ;;  %s243_s11 = sand.u32 1, %s12079_s24  }
  0x1a   : > { %s12200_s10 = scalar_lea.vmem %s15977_s0, %s11692_s19  ;;  %11943 = vmatpush.bf16.msra.mxu3 %v11715_v2  ;;  %1797 = vmatpush.bf16.msra.mxu1 %v11715_v2  ;;  %vm12663_vm8 = vmor %vm1933_vm6, %vm1934_vm7  ;;  %s10372_s12 = sshll.u32 %s243_s11, 8 }
  0x1b   : > { %v265_v6 = vld [vmem:[%s12200_s10 + $0x70] sm:$0xff]  ;;  %v266_v7 = vld [vmem:[%s12200_s10 + $0x78] sm:$0xff]  ;;  %1564 = vmatpush.bf16.msra.mxu0 %v11723_v3  ;;  %11935 = vmatpush.bf16.msra.mxu2 %v11723_v3  ;;  %v267_v13 = vld [vmem:[%s12200_s10 + $0x80] sm:$0xff]  ;;  %s15764_s13 = scalar_lea.vmem [#allocation5], %s10372_s12  ;;  %s11933_s14 = sshll.u32 %s12150_s5, 8 }
  0x1c   : > { %v253_v8 = vld [vmem:[%s12200_s10 + $0x10] sm:$0xff]  ;;  %v297_v9 = vpack.c.bf16 %v265_v6, %v265_v6  ;;  %v298_v10 = vpack.c.bf16 %v266_v7, %v266_v7  ;;  %v254_v11 = vld [vmem:[%s12200_s10 + $0x18] sm:$0xff]  ;;  %v268_v14 = vld [vmem:[%s12200_s10 + $0x88] sm:$0xff]  ;;  %v299_v16 = vpack.c.bf16 %v267_v13, %v267_v13  ;;  %s10302_s17 = scalar_lea.hbm %s15983_s6, %s11933_s14  ;;  %s10303_s18 = sshll.u32 %s15764_s13, 4  ;;  %s10304_s18 = int_to_ptr.vmem [resolvable:$true] %s10303_s18 }
  0x1d   : > { %v285_v12 = vpack.c.bf16 %v253_v8, %v253_v8  ;;  %v286_v15 = vpack.c.bf16 %v254_v11, %v254_v11  ;;  %v300_v17 = vpack.c.bf16 %v268_v14, %v268_v14  ;;  %v251_v18 = vld [vmem:[%s12200_s10] sm:$0xff]  ;;  %v252_v22 = vld [vmem:[%s12200_s10 + $0x8] sm:$0xff]  ;;  %s10305_s19 = sshll.u32 %s10302_s17, 4  ;;  %s10291_s5 = scalar_lea.sflag [#allocation6], %s243_s11  ;;  %s10306_s19 = int_to_ptr.hbm [resolvable:$true] %s10305_s19 }
  0x1e   : > { %v338_v19 = vunpack.c.l.b16 %v297_v9  ;;  %v450_v20 = vunpack.c.l.b16 %v298_v10  ;;  %v283_v23 = vpack.c.bf16 %v251_v18, %v251_v18  ;;  %11944 = vmatpush.bf16.msra.mxu3 %v11714_v4  ;;  %1798 = vmatpush.bf16.msra.mxu1 %v11714_v4  ;;  %v339_v26 = vunpack.c.l.b16 %v299_v16  ;;  %v270_v18 = vld [vmem:[%s12200_s10 + $0x98] sm:$0xff]  ;;  %s12045_s29 = scalar_lea.hbm %s15983_s6, 512 }
  0x1f   : > { %v332_v21 = vunpack.c.l.b16 %v285_v12  ;;  %v444_v25 = vunpack.c.l.b16 %v286_v15  ;;  %1565 = vmatpush.bf16.msra.mxu0 %v11722_v5  ;;  %11936 = vmatpush.bf16.msra.mxu2 %v11722_v5  ;;  %v12216_v31 = vunpack.c.l.b16 %v300_v17  ;;  %v284_v35 = vpack.c.bf16 %v252_v22, %v252_v22  ;;  %v11710_v12 = vld [vmem:[%s15978_s1 + $0x8] sm:$0xff]  ;;  %v269_v17 = vld [vmem:[%s12200_s10 + $0x90] sm:$0xff] }
  0x20   : > { %v354_v28 = vpack.c.b16 %v338_v19, %v338_v19  ;;  %v466_v29 = vpack.c.b16 %v450_v20, %v338_v19  ;;  %v626_v34 = vpack.c.b16 %v450_v20, %v450_v20  ;;  %v355_v38 = vpack.c.b16 %v339_v26, %v339_v26  ;;  %v11718_v19 = vld [vmem:[%s15978_s1 + $0x48] sm:$0xff] }
  0x21   : > { %v348_v30 = vpack.c.b16 %v332_v21, %v332_v21  ;;  %v460_v32 = vpack.c.b16 %v444_v25, %v332_v21  ;;  %v620_v33 = vpack.c.b16 %v444_v25, %v444_v25  ;;  %v331_v39 = vunpack.c.l.b16 %v283_v23 }
  0x22   : > { %v525_v36 = vshrl.u32 %v466_v29, 16  ;;  %v528_v37 = vshll.u32 %v466_v29, 16  ;;  %11945 = vmatpush.bf16.msra.mxu3 %v11713_v24  ;;  %1799 = vmatpush.bf16.msra.mxu1 %v11713_v24  ;;  %v664_v44 = vshll.u32 %v626_v34, 16  ;;  %v385_v46 = vshrl.u32 %v354_v28, 16 }
  0x23   : > { %v483_v41 = vshrl.u32 %v460_v32, 16  ;;  %v486_v42 = vshll.u32 %v460_v32, 16  ;;  %v640_v43 = vshll.u32 %v620_v33, 16  ;;  %1566 = vmatpush.bf16.msra.mxu0 %v11721_v27  ;;  %11937 = vmatpush.bf16.msra.mxu2 %v11721_v27  ;;  %v367_v48 = vshrl.u32 %v348_v30, 16  ;;  %v11709_v33 = vld [vmem:[%s15978_s1] sm:$0xff] }
  0x24   : > { %v527_v47 = vrot.slane %v525_v36, 7  ;;  %v467_v49 = vpack.c.b16 %v12216_v31, %v339_v26  ;;  %v666_v53 = vrot.slane %v664_v44, 3  ;;  %v443_v54 = vunpack.c.l.b16 %v284_v35 }
  0x25   : > { %v485_v51 = vrot.slane %v483_v41, 7  ;;  %v642_v52 = vrot.slane %v640_v43, 3  ;;  %v347_v57 = vpack.c.b16 %v331_v39, %v331_v39  ;;  %v388_v61 = vshrl.u32 %v355_v38, 16  ;;  %v11732_v41 = vld [vmem:[%s15978_s1 + $0xb8] sm:$0xff] }
  0x26   : > { %v530_v55 = vor.u32 %v528_v37, %v527_v47  ;;  %v532_v56 = vshrl.u32 %v467_v49, 16  ;;  %11946 = vmatpush.bf16.msra.mxu3 %v11712_v40  ;;  %1800 = vmatpush.bf16.msra.mxu1 %v11712_v40  ;;  %v535_v62 = vshll.u32 %v467_v49, 16  ;;  %v741_v2 = vsel %vm12227_vm2, %v527_v47, %v666_v53  ;;  %v11764_v47 = vld [vmem:[%s15978_s1 + $0x138] sm:$0xff]  ;;  %v12292_v53 = vld [vmem:[%s12200_s10 + $0xa0] sm:$0xff] }
  0x27   : > { %v488_v59 = vor.u32 %v486_v42, %v485_v51  ;;  %v735_v60 = vsel %vm12227_vm2, %v485_v51, %v642_v52  ;;  %1567 = vmatpush.bf16.msra.mxu0 %v11720_v45  ;;  %11938 = vmatpush.bf16.msra.mxu2 %v11720_v45  ;;  %v459_v7 = vpack.c.b16 %v443_v54, %v331_v39  ;;  %v364_v11 = vshrl.u32 %v347_v57, 16  ;;  %v11756_v42 = vld [vmem:[%s15978_s1 + $0xf8] sm:$0xff] }
  0x28   : > { %v725_v0 = vsel %vm12227_vm2, %v385_v46, %v530_v55  ;;  %v787_v1 = vunpack.c.l.b16 %v735_v60  ;;  %v12243_v3 = vrot.slane %v532_v56, 7  ;;  %v805_v22 = vunpack.c.l.b16 %v741_v2 }
  0x29   : > { %v803_v4 = vunpack.c.l.b16 %v725_v0  ;;  %v804_v5 = vunpack.c.h.b16 %v725_v0  ;;  %v719_v6 = vsel %vm12227_vm2, %v367_v48, %v488_v59  ;;  %v476_v16 = vshrl.u32 %v459_v7, 16 }
  0x2a   : > { %v785_v8 = vunpack.c.l.b16 %v719_v6  ;;  %v786_v9 = vunpack.c.h.b16 %v719_v6  ;;  %v835_v10 = vpack.c.b16 %v787_v1, %v787_v1  ;;  %11947 = vmatpush.bf16.msra.mxu3 %v11711_v58  ;;  %1801 = vmatpush.bf16.msra.mxu1 %v11711_v58  ;;  %v537_v15 = vor.u32 %v535_v62, %v12243_v3 }
  0x2b   : > { %v851_v13 = vpack.c.b16 %v803_v4, %v803_v4  ;;  %v852_v14 = vpack.c.b16 %v804_v5, %v804_v5  ;;  %1568 = vmatpush.bf16.msra.mxu0 %v11719_v63  ;;  %11939 = vmatpush.bf16.msra.mxu2 %v11719_v63  ;;  %v479_v23 = vshll.u32 %v459_v7, 16  ;;  %v478_v25 = vrot.slane %v476_v16, 7 }
  0x2c   : > { %v833_v20 = vpack.c.b16 %v785_v8, %v785_v8  ;;  %v834_v21 = vpack.c.b16 %v786_v9, %v786_v9  ;;  %977 = vst [vmem:[#allocation2 + $0x8] sm:$0x1] %v835_v10  ;;  %v726_v24 = vsel %vm12227_vm2, %v388_v61, %v537_v15  ;;  %v619_v26 = vpack.c.b16 %v443_v54, %v443_v54 }
  0x2d   : > { %948 = vst [vmem:[#allocation2 + $0x60] sm:$0xf] %v851_v13  ;;  %v627_v27 = vpack.c.b16 %v12216_v31, %v12216_v31  ;;  %v806_v28 = vunpack.c.l.b16 %v726_v24  ;;  %v807_v29 = vunpack.c.h.b16 %v726_v24  ;;  %v301_v30 = vpack.c.bf16 %v269_v17, %v269_v17  ;;  %v11717_v31 = vld [vmem:[%s15978_s1 + $0x40] sm:$0xff] }
  0x2e   : > { %949 = vst [vmem:[#allocation2 + $0x64] sm:$0xf] %v852_v14  ;;  %v302_v32 = vpack.c.bf16 %v270_v18, %v270_v18  ;;  %11948 = vmatpush.bf16.msra.mxu3 %v11710_v12  ;;  %1802 = vmatpush.bf16.msra.mxu1 %v11710_v12  ;;  %v481_v34 = vor.u32 %v479_v23, %v478_v25  ;;  %v636_v35 = vshll.u32 %v619_v26, 16  ;;  %v272_v12 = vld [vmem:[%s12200_s10 + $0xa8] sm:$0xff]  ;;  %v11763_v23 = vld [vmem:[%s15978_s1 + $0x130] sm:$0xff] }
  0x2f   : > { %975 = vst [vmem:[#allocation2] sm:$0xf] %v833_v20  ;;  %v668_v36 = vshll.u32 %v627_v27, 16  ;;  %1569 = vmatpush.bf16.msra.mxu0 %v11718_v19  ;;  %11940 = vmatpush.bf16.msra.mxu2 %v11718_v19  ;;  %v853_v37 = vpack.c.b16 %v805_v22, %v805_v22  ;;  %v12266_v38 = vpack.c.b16 %v806_v28, %v806_v28  ;;  %v12268_v39 = vunpack.c.l.b16 %v301_v30 }
  0x30   : > { %976 = vst [vmem:[#allocation2 + $0x4] sm:$0xf] %v834_v21  ;;  %v12270_v40 = vunpack.c.l.b16 %v302_v32  ;;  %v12278_v43 = vpack.c.b16 %v807_v29, %v807_v29  ;;  %v638_v44 = vrot.slane %v636_v35, 3  ;;  %v718_v45 = vsel %vm12227_vm2, %v364_v11, %v481_v34  ;;  %v11755_v11 = vld [vmem:[%s15978_s1 + $0xf0] sm:$0xff] }
  0x31   : > { %930 = vst [vmem:[#allocation2 + $0x18] sm:$0xf] %v833_v20  ;;  %v670_v46 = vrot.slane %v668_v36, 3  ;;  %v782_v48 = vunpack.c.l.b16 %v718_v45  ;;  %v783_v49 = vunpack.c.h.b16 %v718_v45  ;;  %v356_v51 = vpack.c.b16 %v12268_v39, %v12268_v39 }
  0x32   : > { %931 = vst [vmem:[#allocation2 + $0x1c] sm:$0xf] %v834_v21  ;;  %v12289_v52 = vpack.c.b16 %v12270_v40, %v12268_v39  ;;  %11949 = vmatpush.bf16.msra.mxu3 %v11709_v33  ;;  %1803 = vmatpush.bf16.msra.mxu1 %v11709_v33  ;;  %v734_v55 = vsel %vm12227_vm2, %v478_v25, %v638_v44 }
  0x33   : > { %v1031_v54 = vld [vmem:[#allocation2 + $0x8] sm:$0x1]  ;;  %932 = vst [vmem:[#allocation2 + $0x20] sm:$0x1] %v835_v10  ;;  %v742_v56 = vsel %vm12227_vm2, %v12243_v3, %v670_v46  ;;  %v628_v57 = vpack.c.b16 %v12270_v40, %v12270_v40  ;;  %1570 = vmatpush.bf16.msra.mxu0 %v11717_v31  ;;  %11941 = vmatpush.bf16.msra.mxu2 %v11717_v31  ;;  %v784_v60 = vunpack.c.l.b16 %v734_v55  ;;  %v11731_v3 = vld [vmem:[%s15978_s1 + $0xb0] sm:$0xff]  ;;  %v391_v33 = vshrl.u32 %v356_v51, 16 }
  0x34   : > { %v1070_v58 = vshll.u32 %v1031_v54, 16  ;;  %950 = vst [vmem:[#allocation2 + $0x68] sm:$0x1] %v853_v37  ;;  %v999_v59 = vld [vmem:[#allocation2 + $0x60] sm:$0xf]  ;;  %v830_v61 = vpack.c.b16 %v782_v48, %v782_v48  ;;  %v831_v62 = vpack.c.b16 %v783_v49, %v783_v49  ;;  %v808_v4 = vunpack.c.l.b16 %v742_v56 }
  0x35   : > { %v11701_v63 = vld [vmem:[#allocation2 + $0x60] sm:$0xff]  ;;  %v1243_v1 = vshrl.u32 %v999_v59, 16  ;;  %v1246_v2 = vshll.u32 %v999_v59, 16  ;;  %v303_v5 = vpack.c.bf16 %v12292_v53, %v12292_v53  ;;  %v832_v10 = vpack.c.b16 %v784_v60, %v784_v60  ;;  %951 = vst [vmem:[#allocation2 + $0x6c] sm:$0xf] %v12266_v38 }
  0x36   : > { %v1000_v0 = vld [vmem:[#allocation2 + $0x64] sm:$0xf]  ;;  %2491 = vmatpush.bf16.msrb.mxu3 %v11756_v42  ;;  %v983_v6 = vld [vmem:[#allocation2] sm:$0xf]  ;;  %v12306_v7 = vrot.slane %v1070_v58, 5  ;;  %v856_v27 = vpack.c.b16 %v808_v4, %v808_v4  ;;  %v539_v37 = vshrl.u32 %v12289_v52, 16  ;;  %v304_v38 = vpack.c.bf16 %v272_v12, %v272_v12 }
  0x37   : > { %2177 = vmatpush.bf16.msrb.mxu2 %v11732_v41  ;;  %v1252_v8 = vshll.u32 %v1000_v0, 16  ;;  %v1256_v9 = vshrl.u32 %v1000_v0, 16  ;;  %3173 = vmatpush.bf16.msrb.mxu0 %v11764_v47  ;;  %v984_v13 = vld [vmem:[#allocation2 + $0x4] sm:$0xf]  ;;  %v1051_v14 = vshrl.u32 %v983_v6, 16  ;;  %v1054_v15 = vshll.u32 %v983_v6, 16 }
  0x38   : > { %1844 = vmatmul.bf16.vlgmr.msra.gmra.mxu3 %v11701_v63  ;;  %v1245_v16 = vrot.slane %v1243_v1, 4  ;;  %v1248_v17 = vrot.slane %v1246_v2, 5  ;;  %v1060_v18 = vshll.u32 %v984_v13, 16  ;;  %v1064_v19 = vshrl.u32 %v984_v13, 16  ;;  %v11693_v22 = vld [vmem:[#allocation2] sm:$0xff] }
  0x39   : > { %v1254_v20 = vrot.slane %v1252_v8, 5  ;;  %v1258_v21 = vrot.slane %v1256_v9, 4  ;;  %v1053_v24 = vrot.slane %v1051_v14, 4  ;;  %v1056_v25 = vrot.slane %v1054_v15, 5  ;;  %1804 = vmatmul.bf16.vlgmr.msra.gmra.mxu1 %v11693_v22  ;;  %952 = vst [vmem:[#allocation2 + $0x70] sm:$0xf] %v12278_v43 }
  0x3a   : > { %v1249_v26 = vor.u32 %v1248_v17, %v1245_v16  ;;  %2492 = vmatpush.bf16.msrb.mxu3 %v11755_v11  ;;  %v1062_v29 = vrot.slane %v1060_v18, 5  ;;  %v1066_v30 = vrot.slane %v1064_v19, 4  ;;  %v12323_v34 = vld [vmem:[#allocation2 + $0x18] sm:$0xf]  ;;  %927 = vst [vmem:[#allocation2 + $0xc] sm:$0xf] %v830_v61  ;;  %v12333_v48 = vunpack.c.l.b16 %v303_v5 }
  0x3b   : > { %2178 = vmatpush.bf16.msrb.mxu2 %v11731_v3  ;;  %v1259_v32 = vor.u32 %v1258_v21, %v1254_v20  ;;  %3174 = vmatpush.bf16.msrb.mxu0 %v11763_v23  ;;  %v1057_v35 = vor.u32 %v1056_v25, %v1053_v24  ;;  %v1039_v36 = vld [vmem:[#allocation2 + $0x68] sm:$0x1]  ;;  %928 = vst [vmem:[#allocation2 + $0x10] sm:$0xf] %v831_v62  ;;  %v542_v44 = vshll.u32 %v12289_v52, 16  ;;  %v12329_v46 = vrot.slane %v539_v37, 7 }
  0x3c   : > { %v1250_v31 = vrot.slane %v1249_v26, 4  ;;  %v1067_v39 = vor.u32 %v1066_v30, %v1062_v29  ;;  %v1262_v42 = vshll.u32 %v1039_v36, 16  ;;  %929 = vst [vmem:[#allocation2 + $0x14] sm:$0x1] %v832_v10  ;;  %v12331_v47 = vld [vmem:[#allocation2 + $0x1c] sm:$0xf]  ;;  %v12335_v54 = vunpack.c.l.b16 %v304_v38 }
  0x3d   : > { %v1260_v41 = vrot.slane %v1259_v32, 4  ;;  %v1058_v45 = vrot.slane %v1057_v35, 4  ;;  %953 = vst [vmem:[#allocation2 + $0x74] sm:$0x1] %v856_v27  ;;  %v544_v55 = vor.u32 %v542_v44, %v12329_v46  ;;  %v1099_v56 = vshrl.u32 %v12323_v34, 16 }
  0x3e   : > { %v1255_v43 = vsel %vm12318_vm5, %v1250_v31, %v1254_v20  ;;  %v1068_v49 = vrot.slane %v1067_v39, 4  ;;  %v1264_v51 = vrot.slane %v1262_v42, 5  ;;  %v1102_v58 = vshll.u32 %v12323_v34, 16  ;;  %v1001_v62 = vld [vmem:[#allocation2 + $0x6c] sm:$0xf] }
  0x3f   : > { %v1467_v53 = vunpack.c.l.b16 %v1255_v43  ;;  %v1063_v52 = vsel %vm12318_vm5, %v1058_v45, %v1062_v29  ;;  %v1108_v63 = vshll.u32 %v12331_v47, 16  ;;  %v1267_v4 = vshrl.u32 %v1001_v62, 16  ;;  %v11754_v42 = vld [vmem:[%s15978_s1 + $0xe8] sm:$0xff] }
  0x40   : > { %v1073_v59 = vsel %vm12318_vm5, %v1068_v49, %v12306_v7  ;;  %v1451_v60 = vunpack.c.l.b16 %v1063_v52  ;;  %v1265_v61 = vsel %vm12318_vm5, %v1260_v41, %v1264_v51  ;;  %v1002_v2 = vld [vmem:[#allocation2 + $0x70] sm:$0xf]  ;;  %v1270_v3 = vshll.u32 %v1001_v62, 16  ;;  %v11730_v41 = vld [vmem:[%s15978_s1 + $0xa8] sm:$0xff]  ;;  %2493 = vmatpush.bf16.msrb.mxu3 %v11754_v42 }
  0x41   : > { %v1452_v0 = vunpack.c.l.b16 %v1073_v59  ;;  %v1468_v1 = vunpack.c.l.b16 %v1265_v61  ;;  %v985_v5 = vld [vmem:[#allocation2 + $0xc] sm:$0xf]  ;;  %v1276_v6 = vshll.u32 %v1002_v2, 16  ;;  %v1280_v8 = vshrl.u32 %v1002_v2, 16  ;;  %v1033_v59 = vld [vmem:[#allocation2 + $0x20] sm:$0x1]  ;;  %2179 = vmatpush.bf16.msrb.mxu2 %v11730_v41 }
  0x42   : > { %v727_v9 = vsel %vm12227_vm2, %v391_v33, %v544_v55  ;;  %v1101_v10 = vrot.slane %v1099_v56, 4  ;;  %v11702_v12 = vld [vmem:[#allocation2 + $0x6c] sm:$0xff]  ;;  %v1075_v14 = vshrl.u32 %v985_v5, 16  ;;  %v1078_v15 = vshll.u32 %v985_v5, 16  ;;  %v274_v41 = vld [vmem:[%s12200_s10 + $0xb8] sm:$0xff] }
  0x43   : > { %v1483_v7 = vpack.c.b16 %v1452_v0, %v1451_v60  ;;  %v1491_v11 = vpack.c.b16 %v1468_v1, %v1467_v53  ;;  %v986_v13 = vld [vmem:[#allocation2 + $0x10] sm:$0xf]  ;;  %v1032_v16 = vld [vmem:[#allocation2 + $0x14] sm:$0x1]  ;;  %v1269_v19 = vrot.slane %v1267_v4, 4  ;;  %v1272_v20 = vrot.slane %v1270_v3, 5 }
  0x44   : > { %v1084_v17 = vshll.u32 %v986_v13, 16  ;;  %v1088_v18 = vshrl.u32 %v986_v13, 16  ;;  %v1077_v21 = vrot.slane %v1075_v14, 4  ;;  %v1080_v22 = vrot.slane %v1078_v15, 5  ;;  %v1040_v24 = vld [vmem:[#allocation2 + $0x74] sm:$0x1] }
  0x45   : > { %1571 = vmatmul.bf16.vlgmr.msra.gmra.mxu0 %v1483_v7  ;;  %1611 = vmatmul.bf16.vlgmr.msra.gmra.mxu2 %v1491_v11  ;;  %v1094_v23 = vshll.u32 %v1032_v16, 16  ;;  %v1278_v25 = vrot.slane %v1276_v6, 5  ;;  %v1273_v29 = vor.u32 %v1272_v20, %v1269_v19  ;;  %v1282_v30 = vrot.slane %v1280_v8, 4  ;;  %v11694_v32 = vld [vmem:[#allocation2 + $0xc] sm:$0xff]  ;;  %v255_v11 = vld [vmem:[%s12200_s10 + $0x20] sm:$0xff] }
  0x46   : > { %v1086_v26 = vrot.slane %v1084_v17, 5  ;;  %v1090_v27 = vrot.slane %v1088_v18, 4  ;;  %v1081_v33 = vor.u32 %v1080_v22, %v1077_v21  ;;  %v1286_v35 = vshll.u32 %v1040_v24, 16  ;;  %v11762_v51 = vld [vmem:[%s15978_s1 + $0x128] sm:$0xff]  ;;  %v273_v16 = vld [vmem:[%s12200_s10 + $0xb0] sm:$0xff] }
  0x47   : > { %v1096_v34 = vrot.slane %v1094_v23, 5  ;;  %v809_v36 = vunpack.c.l.b16 %v727_v9  ;;  %v1274_v37 = vrot.slane %v1273_v29, 4  ;;  %v1283_v38 = vor.u32 %v1282_v30, %v1278_v25  ;;  %3175 = vmatpush.bf16.msrb.mxu0 %v11762_v51 }
  0x48   : > { %1849 = vmatmul.bf16.gmra.mxu3 %v11702_v12  ;;  %v1091_v31 = vor.u32 %v1090_v27, %v1086_v26  ;;  %v810_v39 = vunpack.c.h.b16 %v727_v9  ;;  %v1082_v44 = vrot.slane %v1081_v33, 4  ;;  %v1288_v45 = vrot.slane %v1286_v35, 5  ;;  %v256_v12 = vld [vmem:[%s12200_s10 + $0x28] sm:$0xff] }
  0x49   : > { %v857_v43 = vpack.c.b16 %v809_v36, %v809_v36  ;;  %v1104_v49 = vrot.slane %v1102_v58, 5  ;;  %v1279_v52 = vsel %vm12318_vm5, %v1274_v37, %v1278_v25  ;;  %v1284_v55 = vrot.slane %v1283_v38, 4  ;;  %1809 = vmatmul.bf16.gmra.mxu1 %v11694_v32 }
  0x4a   : > { %v1092_v53 = vrot.slane %v1091_v31, 4  ;;  %v858_v56 = vpack.c.b16 %v810_v39, %v810_v39  ;;  %v1087_v60 = vsel %vm12318_vm5, %v1082_v44, %v1086_v26  ;;  %v1469_v61 = vunpack.c.l.b16 %v1279_v52 }
  0x4b   : > { %954 = vst [vmem:[#allocation2 + $0x78] sm:$0xf] %v857_v43  ;;  %v1105_v62 = vor.u32 %v1104_v49, %v1101_v10  ;;  %v1110_v58 = vrot.slane %v1108_v63, 5  ;;  %v1453_v1 = vunpack.c.l.b16 %v1087_v60  ;;  %v1289_v2 = vsel %vm12318_vm5, %v1284_v55, %v1288_v45  ;;  %v11695_v45 = vld [vmem:[#allocation2 + $0x18] sm:$0xff] }
  0x4c   : > { %v1097_v0 = vsel %vm12318_vm5, %v1092_v53, %v1096_v34  ;;  %955 = vst [vmem:[#allocation2 + $0x7c] sm:$0xf] %v858_v56  ;;  %v1112_v4 = vshrl.u32 %v12331_v47, 16  ;;  %v1470_v5 = vunpack.c.l.b16 %v1289_v2  ;;  %v1118_v8 = vshll.u32 %v1033_v59, 16 }
  0x4d   : > { %v1454_v3 = vunpack.c.l.b16 %v1097_v0  ;;  %v1106_v6 = vrot.slane %v1105_v62, 4  ;;  %v672_v9 = vshll.u32 %v628_v57, 16  ;;  %v357_v10 = vpack.c.b16 %v12333_v48, %v12333_v48 }
  0x4e   : > { %v1114_v63 = vrot.slane %v1112_v4, 4  ;;  %v469_v7 = vpack.c.b16 %v12335_v54, %v12333_v48  ;;  %v1492_v14 = vpack.c.b16 %v1470_v5, %v1469_v61  ;;  %v1120_v15 = vrot.slane %v1118_v8, 5 }
  0x4f   : > { %v1484_v13 = vpack.c.b16 %v1454_v3, %v1453_v1  ;;  %v1111_v47 = vsel %vm12318_vm5, %v1106_v6, %v1110_v58  ;;  %v674_v40 = vrot.slane %v672_v9, 3  ;;  %v394_v57 = vshrl.u32 %v357_v10, 16  ;;  %v257_v9 = vld [vmem:[%s12200_s10 + $0x30] sm:$0xff]  ;;  %v258_v10 = vld [vmem:[%s12200_s10 + $0x38] sm:$0xff] }
  0x50   : > { %v1115_v17 = vor.u32 %v1114_v63, %v1110_v58  ;;  %v12380_v18 = vunpack.c.l.b16 %v1111_v47  ;;  %v546_v19 = vshrl.u32 %v469_v7, 16  ;;  %v549_v20 = vshll.u32 %v469_v7, 16  ;;  %v11753_v47 = vld [vmem:[%s15978_s1 + $0xe0] sm:$0xff] }
  0x51   : > { %v287_v21 = vpack.c.bf16 %v255_v11, %v255_v11  ;;  %v288_v22 = vpack.c.bf16 %v256_v12, %v256_v12  ;;  %v743_v48 = vsel %vm12227_vm2, %v12329_v46, %v674_v40  ;;  %v629_v25 = vpack.c.b16 %v12335_v54, %v12335_v54  ;;  %2494 = vmatpush.bf16.msrb.mxu3 %v11753_v47 }
  0x52   : > { %v1116_v23 = vrot.slane %v1115_v17, 4  ;;  %v1003_v24 = vld [vmem:[#allocation2 + $0x78] sm:$0xf]  ;;  %v305_v26 = vpack.c.bf16 %v273_v16, %v273_v16  ;;  %v811_v29 = vunpack.c.l.b16 %v743_v48  ;;  %v548_v34 = vrot.slane %v546_v19, 7 }
  0x53   : > { %v11703_v27 = vld [vmem:[#allocation2 + $0x78] sm:$0xff]  ;;  %v1291_v32 = vshrl.u32 %v1003_v24, 16  ;;  %v1294_v33 = vshll.u32 %v1003_v24, 16  ;;  %v333_v37 = vunpack.c.l.b16 %v287_v21  ;;  %v445_v53 = vunpack.c.l.b16 %v288_v22 }
  0x54   : > { %v1004_v30 = vld [vmem:[#allocation2 + $0x7c] sm:$0xf]  ;;  %v1121_v35 = vsel %vm12318_vm5, %v1116_v23, %v1120_v15  ;;  %v859_v38 = vpack.c.b16 %v811_v29, %v811_v29  ;;  %v551_v43 = vor.u32 %v549_v20, %v548_v34  ;;  %v676_v52 = vshll.u32 %v629_v25, 16  ;;  %v11761_v15 = vld [vmem:[%s15978_s1 + $0x120] sm:$0xff] }
  0x55   : > { %v1300_v36 = vshll.u32 %v1004_v30, 16  ;;  %v1304_v31 = vshrl.u32 %v1004_v30, 16  ;;  %1576 = vmatmul.bf16.gmra.mxu0 %v1484_v13  ;;  %1616 = vmatmul.bf16.gmra.mxu2 %v1492_v14  ;;  %v12389_v46 = vunpack.c.l.b16 %v1121_v35  ;;  %v1293_v54 = vrot.slane %v1291_v32, 4  ;;  %v11729_v14 = vld [vmem:[%s15978_s1 + $0xa0] sm:$0xff] }
  0x56   : > { %v1296_v39 = vrot.slane %v1294_v33, 5  ;;  %v349_v49 = vpack.c.b16 %v333_v37, %v333_v37  ;;  %956 = vst [vmem:[#allocation2 + $0x80] sm:$0x1] %v859_v38  ;;  %v728_v59 = vsel %vm12227_vm2, %v394_v57, %v551_v43  ;;  %v306_v60 = vpack.c.bf16 %v274_v41, %v274_v41  ;;  %2180 = vmatpush.bf16.msrb.mxu2 %v11729_v14  ;;  %v12424_v41 = vld [vmem:[%s12200_s10 + $0xc8] sm:$0xff] }
  0x57   : > { %v1302_v42 = vrot.slane %v1300_v36, 5  ;;  %v1306_v44 = vrot.slane %v1304_v31, 4  ;;  %v1485_v55 = vpack.c.b16 %v12389_v46, %v12380_v18  ;;  %v812_v62 = vunpack.c.l.b16 %v728_v59  ;;  %3176 = vmatpush.bf16.msrb.mxu0 %v11761_v15 }
  0x58   : > { %1854 = vmatmul.bf16.gmra.mxu3 %v11703_v27  ;;  %v1297_v51 = vor.u32 %v1296_v39, %v1293_v54  ;;  %v813_v58 = vunpack.c.h.b16 %v728_v59  ;;  %v461_v0 = vpack.c.b16 %v445_v53, %v333_v37  ;;  %v370_v1 = vshrl.u32 %v349_v49, 16  ;;  %v12421_v39 = vld [vmem:[%s12200_s10 + $0xc0] sm:$0xff] }
  0x59   : > { %v1307_v56 = vor.u32 %v1306_v44, %v1302_v42  ;;  %1814 = vmatmul.bf16.gmra.mxu1 %v11695_v45  ;;  %v621_v2 = vpack.c.b16 %v445_v53, %v445_v53  ;;  %v678_v4 = vrot.slane %v676_v52, 3  ;;  %v342_v3 = vunpack.c.l.b16 %v305_v26 }
  0x5a   : > { %v1298_v61 = vrot.slane %v1297_v51, 4  ;;  %v860_v6 = vpack.c.b16 %v812_v62, %v812_v62  ;;  %v861_v8 = vpack.c.b16 %v813_v58, %v813_v58  ;;  %v490_v63 = vshrl.u32 %v461_v0, 16 }
  0x5b   : > { %v1308_v7 = vrot.slane %v1307_v56, 4  ;;  %v493_v11 = vshll.u32 %v461_v0, 16  ;;  %v644_v12 = vshll.u32 %v621_v2, 16  ;;  %v744_v13 = vsel %vm12227_vm2, %v548_v34, %v678_v4 }
  0x5c   : > { %v1303_v5 = vsel %vm12318_vm5, %v1298_v61, %v1302_v42  ;;  %957 = vst [vmem:[#allocation2 + $0x84] sm:$0xf] %v860_v6  ;;  %v492_v16 = vrot.slane %v490_v63, 7  ;;  %v814_v17 = vunpack.c.l.b16 %v744_v13  ;;  %v358_v40 = vpack.c.b16 %v342_v3, %v342_v3 }
  0x5d   : > { %v12411_v57 = vunpack.c.l.b16 %v306_v60  ;;  %v1041_v19 = vld [vmem:[#allocation2 + $0x80] sm:$0x1]  ;;  %v1471_v20 = vunpack.c.l.b16 %v1303_v5  ;;  %958 = vst [vmem:[#allocation2 + $0x88] sm:$0xf] %v861_v8  ;;  %v646_v21 = vrot.slane %v644_v12, 3  ;;  %v289_v22 = vpack.c.bf16 %v257_v9, %v257_v9 }
  0x5e   : > { %v290_v23 = vpack.c.bf16 %v258_v10, %v258_v10  ;;  %v1310_v48 = vshll.u32 %v1041_v19, 16  ;;  %v495_v24 = vor.u32 %v493_v11, %v492_v16  ;;  %v862_v25 = vpack.c.b16 %v814_v17, %v814_v17 }
  0x5f   : > { %v397_v26 = vshrl.u32 %v358_v40, 16  ;;  %v736_v27 = vsel %vm12227_vm2, %v492_v16, %v646_v21  ;;  %v470_v29 = vpack.c.b16 %v12411_v57, %v342_v3  ;;  %v334_v30 = vunpack.c.l.b16 %v289_v22 }
  0x60   : > { %v446_v32 = vunpack.c.l.b16 %v290_v23  ;;  %v1312_v33 = vrot.slane %v1310_v48, 5  ;;  %v720_v34 = vsel %vm12227_vm2, %v370_v1, %v495_v24  ;;  %v790_v35 = vunpack.c.l.b16 %v736_v27  ;;  %959 = vst [vmem:[#allocation2 + $0x8c] sm:$0x1] %v862_v25  ;;  %v11728_v24 = vld [vmem:[%s15978_s1 + $0x98] sm:$0xff] }
  0x61   : > { %v630_v36 = vpack.c.b16 %v12411_v57, %v12411_v57  ;;  %v788_v31 = vunpack.c.l.b16 %v720_v34  ;;  %v789_v37 = vunpack.c.h.b16 %v720_v34  ;;  %v553_v38 = vshrl.u32 %v470_v29, 16  ;;  %v11752_v25 = vld [vmem:[%s15978_s1 + $0xd8] sm:$0xff]  ;;  %2181 = vmatpush.bf16.msrb.mxu2 %v11728_v24 }
  0x62   : > { %v556_v54 = vshll.u32 %v470_v29, 16  ;;  %v1313_v42 = vsel %vm12318_vm5, %v1308_v7, %v1312_v33  ;;  %v838_v44 = vpack.c.b16 %v790_v35, %v790_v35  ;;  %v350_v45 = vpack.c.b16 %v334_v30, %v334_v30  ;;  %2495 = vmatpush.bf16.msrb.mxu3 %v11752_v25 }
  0x63   : > { %v462_v43 = vpack.c.b16 %v446_v32, %v334_v30  ;;  %v1472_v49 = vunpack.c.l.b16 %v1313_v42  ;;  %v836_v51 = vpack.c.b16 %v788_v31, %v788_v31  ;;  %v837_v53 = vpack.c.b16 %v789_v37, %v789_v37  ;;  %v1005_v52 = vld [vmem:[#allocation2 + $0x84] sm:$0xf] }
  0x64   : > { %v12428_v56 = vrot.slane %v553_v38, 7  ;;  %v11704_v59 = vld [vmem:[#allocation2 + $0x84] sm:$0xff]  ;;  %935 = vst [vmem:[#allocation2 + $0x2c] sm:$0x1] %v838_v44  ;;  %v1315_v61 = vshrl.u32 %v1005_v52, 16  ;;  %v622_v62 = vpack.c.b16 %v446_v32, %v446_v32  ;;  %v307_v58 = vpack.c.bf16 %v12421_v39, %v12421_v39 }
  0x65   : > { %1581 = vmatmul.bf16.gmra.mxu0 %v1485_v55  ;;  %v1006_v60 = vld [vmem:[#allocation2 + $0x88] sm:$0xf]  ;;  %v308_v0 = vpack.c.bf16 %v12424_v41, %v12424_v41  ;;  %v1493_v1 = vpack.c.b16 %v1472_v49, %v1471_v20  ;;  %933 = vst [vmem:[#allocation2 + $0x24] sm:$0xf] %v836_v51  ;;  %v1318_v2 = vshll.u32 %v1005_v52, 16  ;;  %v373_v55 = vshrl.u32 %v350_v45, 16 }
  0x66   : > { %v1324_v4 = vshll.u32 %v1006_v60, 16  ;;  %v1328_v3 = vshrl.u32 %v1006_v60, 16  ;;  %934 = vst [vmem:[#allocation2 + $0x28] sm:$0xf] %v837_v53  ;;  %v1317_v18 = vrot.slane %v1315_v61, 4  ;;  %v558_v46 = vor.u32 %v556_v54, %v12428_v56  ;;  %v11760_v45 = vld [vmem:[%s15978_s1 + $0x118] sm:$0xff] }
  0x67   : > { %v497_v5 = vshrl.u32 %v462_v43, 16  ;;  %1621 = vmatmul.bf16.gmra.mxu2 %v1493_v1  ;;  %v1042_v6 = vld [vmem:[#allocation2 + $0x8c] sm:$0x1]  ;;  %v1320_v8 = vrot.slane %v1318_v2, 5  ;;  %v500_v10 = vshll.u32 %v462_v43, 16  ;;  %v648_v13 = vshll.u32 %v622_v62, 16  ;;  %3177 = vmatpush.bf16.msrb.mxu0 %v11760_v45 }
  0x68   : > { %1859 = vmatmul.bf16.gmra.mxu3 %v11704_v59  ;;  %v1326_v63 = vrot.slane %v1324_v4, 5  ;;  %v1330_v9 = vrot.slane %v1328_v3, 4  ;;  %v1334_v7 = vshll.u32 %v1042_v6, 16  ;;  %v729_v11 = vsel %vm12227_vm2, %v397_v26, %v558_v46  ;;  %v259_v62 = vld [vmem:[%s12200_s10 + $0x40] sm:$0xff]  ;;  %v12463_v46 = vld [vmem:[%s12200_s10 + $0xd0] sm:$0xff] }
  0x69   : > { %v499_v12 = vrot.slane %v497_v5, 7  ;;  %v1321_v14 = vor.u32 %v1320_v8, %v1317_v18  ;;  %v815_v15 = vunpack.c.l.b16 %v729_v11  ;;  %v816_v16 = vunpack.c.h.b16 %v729_v11  ;;  %v260_v18 = vld [vmem:[%s12200_s10 + $0x48] sm:$0xff] }
  0x6a   : > { %v1331_v47 = vor.u32 %v1330_v9, %v1326_v63  ;;  %v1336_v17 = vrot.slane %v1334_v7, 5  ;;  %v650_v57 = vrot.slane %v648_v13, 3  ;;  %v680_v19 = vshll.u32 %v630_v36, 16 }
  0x6b   : > { %v502_v40 = vor.u32 %v500_v10, %v499_v12  ;;  %v1034_v20 = vld [vmem:[#allocation2 + $0x2c] sm:$0x1]  ;;  %v1322_v21 = vrot.slane %v1321_v14, 4  ;;  %v863_v23 = vpack.c.b16 %v815_v15, %v815_v15  ;;  %v864_v48 = vpack.c.b16 %v816_v16, %v816_v16 }
  0x6c   : > { %v1332_v22 = vrot.slane %v1331_v47, 4  ;;  %v989_v26 = vld [vmem:[#allocation2 + $0x24] sm:$0xf]  ;;  %v1142_v27 = vshll.u32 %v1034_v20, 16  ;;  %v737_v30 = vsel %vm12227_vm2, %v499_v12, %v650_v57  ;;  %v682_v32 = vrot.slane %v680_v19, 3 }
  0x6d   : > { %v721_v29 = vsel %vm12227_vm2, %v373_v55, %v502_v40  ;;  %v990_v33 = vld [vmem:[#allocation2 + $0x28] sm:$0xf]  ;;  %v1123_v34 = vshrl.u32 %v989_v26, 16  ;;  %v1126_v35 = vshll.u32 %v989_v26, 16  ;;  %v1327_v36 = vsel %vm12318_vm5, %v1322_v21, %v1326_v63  ;;  %960 = vst [vmem:[#allocation2 + $0x90] sm:$0xf] %v863_v23 }
  0x6e   : > { %v1337_v31 = vsel %vm12318_vm5, %v1332_v22, %v1336_v17  ;;  %v11696_v37 = vld [vmem:[#allocation2 + $0x24] sm:$0xff]  ;;  %v1132_v38 = vshll.u32 %v990_v33, 16  ;;  %v1136_v54 = vshrl.u32 %v990_v33, 16  ;;  %v1144_v42 = vrot.slane %v1142_v27, 5  ;;  %961 = vst [vmem:[#allocation2 + $0x94] sm:$0xf] %v864_v48 }
  0x6f   : > { %v1473_v44 = vunpack.c.l.b16 %v1327_v36  ;;  %v1125_v43 = vrot.slane %v1123_v34, 4  ;;  %v1128_v49 = vrot.slane %v1126_v35, 5  ;;  %v1474_v51 = vunpack.c.l.b16 %v1337_v31  ;;  %1819 = vmatmul.bf16.gmra.mxu1 %v11696_v37 }
  0x70   : > { %v791_v53 = vunpack.c.l.b16 %v721_v29  ;;  %v1134_v52 = vrot.slane %v1132_v38, 5  ;;  %v1138_v59 = vrot.slane %v1136_v54, 4  ;;  %v792_v60 = vunpack.c.h.b16 %v721_v29 }
  0x71   : > { %v793_v61 = vunpack.c.l.b16 %v737_v30  ;;  %v1129_v1 = vor.u32 %v1128_v49, %v1125_v43  ;;  %v1494_v2 = vpack.c.b16 %v1474_v51, %v1473_v44  ;;  %v745_v3 = vsel %vm12227_vm2, %v12428_v56, %v682_v32 }
  0x72   : > { %v839_v4 = vpack.c.b16 %v791_v53, %v791_v53  ;;  %v1139_v55 = vor.u32 %v1138_v59, %v1134_v52  ;;  %v840_v5 = vpack.c.b16 %v792_v60, %v792_v60  ;;  %v817_v8 = vunpack.c.l.b16 %v745_v3 }
  0x73   : > { %v841_v6 = vpack.c.b16 %v793_v61, %v793_v61  ;;  %v1130_v63 = vrot.slane %v1129_v1, 4  ;;  %v343_v9 = vunpack.c.l.b16 %v307_v58  ;;  %v12471_v10 = vunpack.c.l.b16 %v308_v0 }
  0x74   : > { %936 = vst [vmem:[#allocation2 + $0x30] sm:$0xf] %v839_v4  ;;  %v291_v7 = vpack.c.bf16 %v259_v62, %v259_v62  ;;  %v1140_v56 = vrot.slane %v1139_v55, 4  ;;  %v865_v11 = vpack.c.b16 %v817_v8, %v817_v8  ;;  %v292_v12 = vpack.c.bf16 %v260_v18, %v260_v18  ;;  %v1007_v47 = vld [vmem:[#allocation2 + $0x90] sm:$0xf] }
  0x75   : > { %937 = vst [vmem:[#allocation2 + $0x34] sm:$0xf] %v840_v5  ;;  %v309_v13 = vpack.c.bf16 %v12463_v46, %v12463_v46  ;;  %v1135_v14 = vsel %vm12318_vm5, %v1130_v63, %v1134_v52  ;;  %v359_v39 = vpack.c.b16 %v343_v9, %v343_v9  ;;  %v471_v58 = vpack.c.b16 %v12471_v10, %v343_v9  ;;  %v11705_v16 = vld [vmem:[#allocation2 + $0x90] sm:$0xff]  ;;  %v279_v46 = vld [vmem:[%s12200_s10 + $0xe0] sm:$0xff] }
  0x76   : > { %938 = vst [vmem:[#allocation2 + $0x38] sm:$0x1] %v841_v6  ;;  %v335_v15 = vunpack.c.l.b16 %v291_v7  ;;  %v1145_v41 = vsel %vm12318_vm5, %v1140_v56, %v1144_v42  ;;  %v1457_v0 = vunpack.c.l.b16 %v1135_v14  ;;  %v1008_v17 = vld [vmem:[#allocation2 + $0x94] sm:$0xf]  ;;  %v1339_v40 = vshrl.u32 %v1007_v47, 16 }
  0x77   : > { %962 = vst [vmem:[#allocation2 + $0x98] sm:$0x1] %v865_v11  ;;  %v447_v57 = vunpack.c.l.b16 %v292_v12  ;;  %v1458_v19 = vunpack.c.l.b16 %v1145_v41  ;;  %1626 = vmatmul.bf16.gmra.mxu2 %v1494_v2  ;;  %v1342_v20 = vshll.u32 %v1007_v47, 16  ;;  %v1348_v21 = vshll.u32 %v1008_v17, 16  ;;  %v278_v47 = vld [vmem:[%s12200_s10 + $0xd8] sm:$0xff] }
  0x78   : > { %v1352_v22 = vshrl.u32 %v1008_v17, 16  ;;  %1864 = vmatmul.bf16.gmra.mxu3 %v11705_v16  ;;  %v1341_v23 = vrot.slane %v1339_v40, 4  ;;  %v400_v48 = vshrl.u32 %v359_v39, 16  ;;  %v560_v24 = vshrl.u32 %v471_v58, 16  ;;  %v11751_v16 = vld [vmem:[%s15978_s1 + $0xd0] sm:$0xff] }
  0x79   : > { %v563_v25 = vshll.u32 %v471_v58, 16  ;;  %v1486_v26 = vpack.c.b16 %v1458_v19, %v1457_v0  ;;  %v1344_v27 = vrot.slane %v1342_v20, 5  ;;  %v1350_v29 = vrot.slane %v1348_v21, 5  ;;  %v11727_v0 = vld [vmem:[%s15978_s1 + $0x90] sm:$0xff]  ;;  %2496 = vmatpush.bf16.msrb.mxu3 %v11751_v16 }
  0x7a   : > { %v1354_v30 = vrot.slane %v1352_v22, 4  ;;  %v12480_v33 = vrot.slane %v560_v24, 7  ;;  %v351_v34 = vpack.c.b16 %v335_v15, %v335_v15  ;;  %v463_v35 = vpack.c.b16 %v447_v57, %v335_v15  ;;  %v11759_v17 = vld [vmem:[%s15978_s1 + $0x110] sm:$0xff]  ;;  %2182 = vmatpush.bf16.msrb.mxu2 %v11727_v0 }
  0x7b   : > { %v991_v32 = vld [vmem:[#allocation2 + $0x30] sm:$0xf]  ;;  %v623_v36 = vpack.c.b16 %v447_v57, %v447_v57  ;;  %1586 = vmatmul.bf16.gmra.mxu0 %v1486_v26  ;;  %v1345_v54 = vor.u32 %v1344_v27, %v1341_v23  ;;  %v631_v24 = vpack.c.b16 %v12471_v10, %v12471_v10 }
  0x7c   : > { %v992_v31 = vld [vmem:[#allocation2 + $0x34] sm:$0xf]  ;;  %v1147_v37 = vshrl.u32 %v991_v32, 16  ;;  %v1150_v38 = vshll.u32 %v991_v32, 16  ;;  %v1355_v42 = vor.u32 %v1354_v30, %v1350_v29  ;;  %v565_v51 = vor.u32 %v563_v25, %v12480_v33  ;;  %3178 = vmatpush.bf16.msrb.mxu0 %v11759_v17 }
  0x7d   : > { %v11697_v44 = vld [vmem:[#allocation2 + $0x30] sm:$0xff]  ;;  %v1035_v45 = vld [vmem:[#allocation2 + $0x38] sm:$0x1]  ;;  %v1156_v43 = vshll.u32 %v992_v31, 16  ;;  %v1160_v49 = vshrl.u32 %v992_v31, 16  ;;  %v376_v53 = vshrl.u32 %v351_v34, 16  ;;  %v344_v34 = vunpack.c.l.b16 %v309_v13 }
  0x7e   : > { %v1149_v52 = vrot.slane %v1147_v37, 4  ;;  %v1152_v59 = vrot.slane %v1150_v38, 5  ;;  %v1166_v60 = vshll.u32 %v1035_v45, 16  ;;  %v1043_v61 = vld [vmem:[#allocation2 + $0x98] sm:$0x1]  ;;  %v1346_v62 = vrot.slane %v1345_v54, 4 }
  0x7f   : > { %v1158_v1 = vrot.slane %v1156_v43, 5  ;;  %v1162_v2 = vrot.slane %v1160_v49, 4  ;;  %v1356_v4 = vrot.slane %v1355_v42, 4  ;;  %v1358_v3 = vshll.u32 %v1043_v61, 16  ;;  %1824 = vmatmul.bf16.gmra.mxu1 %v11697_v44  ;;  %v261_v21 = vld [vmem:[%s12200_s10 + $0x50] sm:$0xff] }
  0x80   : > { %v1153_v18 = vor.u32 %v1152_v59, %v1149_v52  ;;  %v1168_v55 = vrot.slane %v1166_v60, 5  ;;  %v1351_v5 = vsel %vm12318_vm5, %v1346_v62, %v1350_v29  ;;  %v730_v6 = vsel %vm12227_vm2, %v400_v48, %v565_v51 }
  0x81   : > { %v1163_v8 = vor.u32 %v1162_v2, %v1158_v1  ;;  %v1360_v63 = vrot.slane %v1358_v3, 5  ;;  %v1475_v9 = vunpack.c.l.b16 %v1351_v5  ;;  %v818_v7 = vunpack.c.l.b16 %v730_v6 }
  0x82   : > { %v1154_v56 = vrot.slane %v1153_v18, 4  ;;  %v819_v11 = vunpack.c.h.b16 %v730_v6  ;;  %v504_v12 = vshrl.u32 %v463_v35, 16  ;;  %v507_v14 = vshll.u32 %v463_v35, 16  ;;  %v262_v35 = vld [vmem:[%s12200_s10 + $0x58] sm:$0xff] }
  0x83   : > { %v1164_v39 = vrot.slane %v1163_v8, 4  ;;  %v1361_v58 = vsel %vm12318_vm5, %v1356_v4, %v1360_v63  ;;  %v866_v15 = vpack.c.b16 %v818_v7, %v818_v7  ;;  %v652_v41 = vshll.u32 %v623_v36, 16 }
  0x84   : > { %v1159_v40 = vsel %vm12318_vm5, %v1154_v56, %v1158_v1  ;;  %v1476_v57 = vunpack.c.l.b16 %v1361_v58  ;;  %v867_v19 = vpack.c.b16 %v819_v11, %v819_v11  ;;  %v506_v20 = vrot.slane %v504_v12, 7 }
  0x85   : > { %v1169_v22 = vsel %vm12318_vm5, %v1164_v39, %v1168_v55  ;;  %v1459_v23 = vunpack.c.l.b16 %v1159_v40  ;;  %963 = vst [vmem:[#allocation2 + $0x9c] sm:$0xf] %v866_v15  ;;  %v654_v48 = vrot.slane %v652_v41, 3  ;;  %v310_v29 = vpack.c.bf16 %v278_v47, %v278_v47  ;;  %v12519_v47 = vld [vmem:[%s12200_s10 + $0xe8] sm:$0xff] }
  0x86   : > { %v1460_v25 = vunpack.c.l.b16 %v1169_v22  ;;  %v1495_v26 = vpack.c.b16 %v1476_v57, %v1475_v9  ;;  %964 = vst [vmem:[#allocation2 + $0xa0] sm:$0xf] %v867_v19  ;;  %v509_v27 = vor.u32 %v507_v14, %v506_v20  ;;  %v684_v32 = vshll.u32 %v631_v24, 16 }
  0x87   : > { %v738_v30 = vsel %vm12227_vm2, %v506_v20, %v654_v48  ;;  %v293_v36 = vpack.c.bf16 %v261_v21, %v261_v21  ;;  %v456_v38 = vunpack.c.l.b16 %v310_v29  ;;  %v360_v45 = vpack.c.b16 %v344_v34, %v344_v34 }
  0x88   : > { %v1487_v10 = vpack.c.b16 %v1460_v25, %v1459_v23  ;;  %1631 = vmatmul.bf16.gmra.mxu2 %v1495_v26  ;;  %v722_v31 = vsel %vm12227_vm2, %v376_v53, %v509_v27  ;;  %v796_v37 = vunpack.c.l.b16 %v738_v30  ;;  %v686_v44 = vrot.slane %v684_v32, 3 }
  0x89   : > { %v794_v54 = vunpack.c.l.b16 %v722_v31  ;;  %v795_v42 = vunpack.c.h.b16 %v722_v31  ;;  %v472_v49 = vpack.c.b16 %v456_v38, %v344_v34  ;;  %v294_v51 = vpack.c.bf16 %v262_v35, %v262_v35  ;;  %v11726_v34 = vld [vmem:[%s15978_s1 + $0x88] sm:$0xff] }
  0x8a   : > { %v844_v43 = vpack.c.b16 %v796_v37, %v796_v37  ;;  %v336_v52 = vunpack.c.l.b16 %v293_v36  ;;  %v746_v60 = vsel %vm12227_vm2, %v12480_v33, %v686_v44  ;;  %v403_v61 = vshrl.u32 %v360_v45, 16  ;;  %2183 = vmatpush.bf16.msrb.mxu2 %v11726_v34 }
  0x8b   : > { %v842_v13 = vpack.c.b16 %v794_v54, %v794_v54  ;;  %v843_v59 = vpack.c.b16 %v795_v42, %v795_v42  ;;  %1591 = vmatmul.bf16.gmra.mxu0 %v1487_v10  ;;  %v820_v53 = vunpack.c.l.b16 %v746_v60  ;;  %v567_v1 = vshrl.u32 %v472_v49, 16  ;;  %v11750_v54 = vld [vmem:[%s15978_s1 + $0xc8] sm:$0xff] }
  0x8c   : > { %941 = vst [vmem:[#allocation2 + $0x44] sm:$0x1] %v844_v43  ;;  %v1009_v62 = vld [vmem:[#allocation2 + $0x9c] sm:$0xf]  ;;  %v570_v2 = vshll.u32 %v472_v49, 16  ;;  %v352_v4 = vpack.c.b16 %v336_v52, %v336_v52  ;;  %v448_v5 = vunpack.c.l.b16 %v294_v51  ;;  %v632_v6 = vpack.c.b16 %v456_v38, %v456_v38  ;;  %2497 = vmatpush.bf16.msrb.mxu3 %v11750_v54 }
  0x8d   : > { %v11706_v3 = vld [vmem:[#allocation2 + $0x9c] sm:$0xff]  ;;  %939 = vst [vmem:[#allocation2 + $0x3c] sm:$0xf] %v842_v13  ;;  %v1363_v55 = vshrl.u32 %v1009_v62, 16  ;;  %v311_v8 = vpack.c.bf16 %v279_v46, %v279_v46  ;;  %v868_v63 = vpack.c.b16 %v820_v53, %v820_v53  ;;  %v1366_v9 = vshll.u32 %v1009_v62, 16 }
  0x8e   : > { %v1010_v18 = vld [vmem:[#allocation2 + $0xa0] sm:$0xf]  ;;  %940 = vst [vmem:[#allocation2 + $0x40] sm:$0xf] %v843_v59  ;;  %1869 = vmatmul.bf16.gmra.mxu3 %v11706_v3  ;;  %v569_v11 = vrot.slane %v567_v1, 7  ;;  %v379_v12 = vshrl.u32 %v352_v4, 16  ;;  %v464_v14 = vpack.c.b16 %v448_v5, %v336_v52  ;;  %v624_v41 = vpack.c.b16 %v448_v5, %v448_v5 }
  0x8f   : > { %v1372_v33 = vshll.u32 %v1010_v18, 16  ;;  %v1376_v7 = vshrl.u32 %v1010_v18, 16  ;;  %v1365_v56 = vrot.slane %v1363_v55, 4  ;;  %965 = vst [vmem:[#allocation2 + $0xa4] sm:$0x1] %v868_v63  ;;  %v1368_v39 = vrot.slane %v1366_v9, 5 }
  0x90   : > { %v572_v0 = vor.u32 %v570_v2, %v569_v11  ;;  %v511_v16 = vshrl.u32 %v464_v14, 16  ;;  %v514_v17 = vshll.u32 %v464_v14, 16  ;;  %v688_v40 = vshll.u32 %v632_v6, 16  ;;  %v11758_v3 = vld [vmem:[%s15978_s1 + $0x108] sm:$0xff]  ;;  %v11772_v18 = vld [vmem:[%s15978_s1 + $0x178] sm:$0xff] }
  0x91   : > { %v1374_v58 = vrot.slane %v1372_v33, 5  ;;  %v1378_v15 = vrot.slane %v1376_v7, 4  ;;  %v1369_v57 = vor.u32 %v1368_v39, %v1365_v56  ;;  %v656_v20 = vshll.u32 %v624_v41, 16  ;;  %3179 = vmatpush.bf16.msrb.mxu0 %v11758_v3  ;;  %3599 = vmatpush.bf16.msrb.mxu1 %v11772_v18  ;;  %v263_v39 = vld [vmem:[%s12200_s10 + $0x60] sm:$0xff] }
  0x92   : > { %v312_v21 = vpack.c.bf16 %v12519_v47, %v12519_v47  ;;  %v731_v23 = vsel %vm12227_vm2, %v403_v61, %v572_v0  ;;  %v513_v48 = vrot.slane %v511_v16, 7  ;;  %v690_v24 = vrot.slane %v688_v40, 3  ;;  %v264_v16 = vld [vmem:[%s12200_s10 + $0x68] sm:$0xff] }
  0x93   : > { %v1379_v19 = vor.u32 %v1378_v15, %v1374_v58  ;;  %v1036_v22 = vld [vmem:[#allocation2 + $0x44] sm:$0x1]  ;;  %v12525_v25 = vunpack.c.l.b16 %v311_v8  ;;  %v1370_v29 = vrot.slane %v1369_v57, 4  ;;  %v821_v32 = vunpack.c.l.b16 %v731_v23 }
  0x94   : > { %v993_v26 = vld [vmem:[#allocation2 + $0x3c] sm:$0xf]  ;;  %v1190_v27 = vshll.u32 %v1036_v22, 16  ;;  %v822_v37 = vunpack.c.h.b16 %v731_v23  ;;  %v516_v38 = vor.u32 %v514_v17, %v513_v48  ;;  %v658_v1 = vrot.slane %v656_v20, 3 }
  0x95   : > { %v1380_v30 = vrot.slane %v1379_v19, 4  ;;  %v994_v35 = vld [vmem:[#allocation2 + $0x40] sm:$0xf]  ;;  %v1171_v36 = vshrl.u32 %v993_v26, 16  ;;  %v1174_v10 = vshll.u32 %v993_v26, 16  ;;  %v1375_v43 = vsel %vm12318_vm5, %v1370_v29, %v1374_v58 }
  0x96   : > { %v11698_v31 = vld [vmem:[#allocation2 + $0x3c] sm:$0xff]  ;;  %v1180_v42 = vshll.u32 %v994_v35, 16  ;;  %v1184_v44 = vshrl.u32 %v994_v35, 16  ;;  %v1192_v45 = vrot.slane %v1190_v27, 5  ;;  %v1044_v52 = vld [vmem:[#allocation2 + $0xa4] sm:$0x1]  ;;  %v1477_v46 = vunpack.c.l.b16 %v1375_v43 }
  0x97   : > { %v1173_v49 = vrot.slane %v1171_v36, 4  ;;  %v1176_v51 = vrot.slane %v1174_v10, 5  ;;  %1829 = vmatmul.bf16.gmra.mxu1 %v11698_v31  ;;  %v869_v13 = vpack.c.b16 %v821_v32, %v821_v32  ;;  %v1382_v61 = vshll.u32 %v1044_v52, 16 }
  0x98   : > { %v1182_v59 = vrot.slane %v1180_v42, 5  ;;  %v1186_v60 = vrot.slane %v1184_v44, 4  ;;  %v870_v53 = vpack.c.b16 %v822_v37, %v822_v37  ;;  %v723_v2 = vsel %vm12227_vm2, %v379_v12, %v516_v38 }
  0x99   : > { %v1177_v62 = vor.u32 %v1176_v51, %v1173_v49  ;;  %966 = vst [vmem:[#allocation2 + $0xa8] sm:$0xf] %v869_v13  ;;  %v747_v4 = vsel %vm12227_vm2, %v569_v11, %v690_v24  ;;  %v1384_v5 = vrot.slane %v1382_v61, 5  ;;  %v797_v6 = vunpack.c.l.b16 %v723_v2 }
  0x9a   : > { %v1187_v55 = vor.u32 %v1186_v60, %v1182_v59  ;;  %967 = vst [vmem:[#allocation2 + $0xac] sm:$0xf] %v870_v53  ;;  %v798_v8 = vunpack.c.h.b16 %v723_v2  ;;  %v739_v9 = vsel %vm12227_vm2, %v513_v48, %v658_v1  ;;  %v823_v33 = vunpack.c.l.b16 %v747_v4 }
  0x9b   : > { %v1178_v63 = vrot.slane %v1177_v62, 4  ;;  %v361_v7 = vpack.c.b16 %v12525_v25, %v12525_v25  ;;  %v1385_v11 = vsel %vm12318_vm5, %v1380_v30, %v1384_v5  ;;  %v799_v12 = vunpack.c.l.b16 %v739_v9 }
  0x9c   : > { %v1188_v56 = vrot.slane %v1187_v55, 4  ;;  %v845_v14 = vpack.c.b16 %v797_v6, %v797_v6  ;;  %v1478_v15 = vunpack.c.l.b16 %v1385_v11  ;;  %v846_v41 = vpack.c.b16 %v798_v8, %v798_v8 }
  0x9d   : > { %v1183_v58 = vsel %vm12318_vm5, %v1178_v63, %v1182_v59  ;;  %v871_v0 = vpack.c.b16 %v823_v33, %v823_v33  ;;  %v847_v57 = vpack.c.b16 %v799_v12, %v799_v12  ;;  %v12560_v22 = vunpack.c.l.b16 %v312_v21 }
  0x9e   : > { %v1193_v17 = vsel %vm12318_vm5, %v1188_v56, %v1192_v45  ;;  %v1461_v40 = vunpack.c.l.b16 %v1183_v58  ;;  %942 = vst [vmem:[#allocation2 + $0x48] sm:$0xf] %v845_v14  ;;  %v1496_v20 = vpack.c.b16 %v1478_v15, %v1477_v46  ;;  %v295_v23 = vpack.c.bf16 %v263_v39, %v263_v39  ;;  %v11771_v58 = vld [vmem:[%s15978_s1 + $0x170] sm:$0xff]  ;;  %v11749_v15 = vld [vmem:[%s15978_s1 + $0xc0] sm:$0xff] }
  0x9f   : > { %v1462_v19 = vunpack.c.l.b16 %v1193_v17  ;;  %943 = vst [vmem:[#allocation2 + $0x4c] sm:$0xf] %v846_v41  ;;  %v406_v24 = vshrl.u32 %v361_v7, 16  ;;  %v296_v26 = vpack.c.bf16 %v264_v16, %v264_v16  ;;  %v473_v34 = vpack.c.b16 %v12560_v22, %v12525_v25  ;;  %3600 = vmatpush.bf16.msrb.mxu1 %v11771_v58  ;;  %2498 = vmatpush.bf16.msrb.mxu3 %v11749_v15  ;;  %v11796_v58 = vld [vmem:[%s15978_s1 + $0x1b8] sm:$0xff] }
  0xa0   : > { %944 = vst [vmem:[#allocation2 + $0x50] sm:$0x1] %v847_v57  ;;  %v1011_v48 = vld [vmem:[#allocation2 + $0xa8] sm:$0xf]  ;;  %1636 = vmatmul.bf16.gmra.mxu2 %v1496_v20  ;;  %v337_v35 = vunpack.c.l.b16 %v295_v23  ;;  %v633_v46 = vpack.c.b16 %v12560_v22, %v12560_v22  ;;  %v11804_v15 = vld [vmem:[%s15978_s1 + $0x1f8] sm:$0xff] }
  0xa1   : > { %v1488_v27 = vpack.c.b16 %v1462_v19, %v1461_v40  ;;  %v11707_v29 = vld [vmem:[#allocation2 + $0xa8] sm:$0xff]  ;;  %968 = vst [vmem:[#allocation2 + $0xb0] sm:$0x1] %v871_v0  ;;  %v1387_v32 = vshrl.u32 %v1011_v48, 16  ;;  %v1390_v36 = vshll.u32 %v1011_v48, 16  ;;  %v449_v21 = vunpack.c.l.b16 %v296_v26  ;;  %v11725_v40 = vld [vmem:[%s15978_s1 + $0x80] sm:$0xff] }
  0xa2   : > { %v1012_v30 = vld [vmem:[#allocation2 + $0xac] sm:$0xf]  ;;  %1874 = vmatmul.bf16.gmra.mxu3 %v11707_v29  ;;  %v574_v37 = vshrl.u32 %v473_v34, 16  ;;  %v577_v38 = vshll.u32 %v473_v34, 16  ;;  %v353_v54 = vpack.c.b16 %v337_v35, %v337_v35  ;;  %v11757_v48 = vld [vmem:[%s15978_s1 + $0x100] sm:$0xff]  ;;  %2184 = vmatpush.bf16.msrb.mxu2 %v11725_v40 }
  0xa3   : > { %v1396_v10 = vshll.u32 %v1012_v30, 16  ;;  %v1400_v47 = vshrl.u32 %v1012_v30, 16  ;;  %1596 = vmatmul.bf16.gmra.mxu0 %v1488_v27  ;;  %v1389_v31 = vrot.slane %v1387_v32, 4  ;;  %v1392_v42 = vrot.slane %v1390_v36, 5  ;;  %v11770_v23 = vld [vmem:[%s15978_s1 + $0x168] sm:$0xff]  ;;  %4596 = vmatpush.bf16.msra.mxu3 %v11804_v15 }
  0xa4   : > { %v465_v43 = vpack.c.b16 %v449_v21, %v337_v35  ;;  %v12564_v51 = vrot.slane %v574_v37, 7  ;;  %v382_v52 = vshrl.u32 %v353_v54, 16  ;;  %v625_v25 = vpack.c.b16 %v449_v21, %v449_v21  ;;  %3180 = vmatpush.bf16.msrb.mxu0 %v11757_v48  ;;  %3601 = vmatpush.bf16.msrb.mxu1 %v11770_v23  ;;  %v11769_v54 = vld [vmem:[%s15978_s1 + $0x160] sm:$0xff] }
  0xa5   : > { %v1398_v44 = vrot.slane %v1396_v10, 5  ;;  %v1402_v45 = vrot.slane %v1400_v47, 4  ;;  %v995_v49 = vld [vmem:[#allocation2 + $0x48] sm:$0xf]  ;;  %v1393_v61 = vor.u32 %v1392_v42, %v1389_v31  ;;  %v692_v21 = vshll.u32 %v633_v46, 16 }
  0xa6   : > { %v996_v13 = vld [vmem:[#allocation2 + $0x4c] sm:$0xf]  ;;  %v1195_v59 = vshrl.u32 %v995_v49, 16  ;;  %v1198_v60 = vshll.u32 %v995_v49, 16  ;;  %v579_v3 = vor.u32 %v577_v38, %v12564_v51  ;;  %v518_v18 = vshrl.u32 %v465_v43, 16  ;;  %3914 = vmatpush.bf16.msra.mxu2 %v11796_v58 }
  0xa7   : > { %v1403_v53 = vor.u32 %v1402_v45, %v1398_v44  ;;  %v11699_v62 = vld [vmem:[#allocation2 + $0x48] sm:$0xff]  ;;  %v1037_v1 = vld [vmem:[#allocation2 + $0x50] sm:$0x1]  ;;  %v1204_v2 = vshll.u32 %v996_v13, 16  ;;  %v1208_v4 = vshrl.u32 %v996_v13, 16  ;;  %v1394_v63 = vrot.slane %v1393_v61, 4 }
  0xa8   : > { %v1197_v55 = vrot.slane %v1195_v59, 4  ;;  %v1200_v5 = vrot.slane %v1198_v60, 5  ;;  %v1214_v6 = vshll.u32 %v1037_v1, 16  ;;  %v1045_v8 = vld [vmem:[#allocation2 + $0xb0] sm:$0x1]  ;;  %1834 = vmatmul.bf16.gmra.mxu1 %v11699_v62  ;;  %v732_v39 = vsel %vm12227_vm2, %v406_v24, %v579_v3 }
  0xa9   : > { %v1206_v9 = vrot.slane %v1204_v2, 5  ;;  %v1210_v33 = vrot.slane %v1208_v4, 4  ;;  %v1404_v7 = vrot.slane %v1403_v53, 4  ;;  %v1406_v56 = vshll.u32 %v1045_v8, 16  ;;  %v2612_v59 = vld [vmem:[#allocation2 + $0xc] sm:$0xf]  ;;  %3602 = vmatpush.bf16.msrb.mxu1 %v11769_v54 }
  0xaa   : > { %v1201_v11 = vor.u32 %v1200_v5, %v1197_v55  ;;  %v1216_v12 = vrot.slane %v1214_v6, 5  ;;  %v1399_v14 = vsel %vm12318_vm5, %v1394_v63, %v1398_v44  ;;  %v824_v17 = vunpack.c.l.b16 %v732_v39  ;;  %v11768_v53 = vld [vmem:[%s15978_s1 + $0x158] sm:$0xff]  ;;  %v12607_v2 = vld [vmem:[#allocation2 + $0x10] sm:$0xf]  ;;  %v1885_v15 = vld [vmem:[#allocation2] sm:$0xe] }
  0xab   : > { %v1211_v41 = vor.u32 %v1210_v33, %v1206_v9  ;;  %v1408_v0 = vrot.slane %v1406_v56, 5  ;;  %v1479_v16 = vunpack.c.l.b16 %v1399_v14  ;;  %v825_v19 = vunpack.c.h.b16 %v732_v39 }
  0xac   : > { %v1202_v57 = vrot.slane %v1201_v11, 4  ;;  %v520_v20 = vrot.slane %v518_v18, 7  ;;  %v521_v22 = vshll.u32 %v465_v43, 16  ;;  %v872_v27 = vpack.c.b16 %v824_v17, %v824_v17 }
  0xad   : > { %v1212_v24 = vrot.slane %v1211_v41, 4  ;;  %v1409_v26 = vsel %vm12318_vm5, %v1404_v7, %v1408_v0  ;;  %v660_v29 = vshll.u32 %v625_v25, 16  ;;  %v873_v34 = vpack.c.b16 %v825_v19, %v825_v19  ;;  %3603 = vmatpush.bf16.msrb.mxu1 %v11768_v53 }
  0xae   : > { %v1207_v30 = vsel %vm12318_vm5, %v1202_v57, %v1206_v9  ;;  %v1480_v32 = vunpack.c.l.b16 %v1409_v26  ;;  %v523_v35 = vor.u32 %v521_v22, %v520_v20  ;;  %969 = vst [vmem:[#allocation2 + $0xb4] sm:$0xf] %v872_v27  ;;  %v694_v43 = vrot.slane %v692_v21, 3  ;;  %v11766_v57 = vld [vmem:[%s15978_s1 + $0x148] sm:$0xff]  ;;  %v11812_v21 = vld [vmem:[%s15978_s1 + $0x238] sm:$0xff] }
  0xaf   : > { %v1217_v36 = vsel %vm12318_vm5, %v1212_v24, %v1216_v12  ;;  %v1463_v10 = vunpack.c.l.b16 %v1207_v30  ;;  %v662_v47 = vrot.slane %v660_v29, 3  ;;  %970 = vst [vmem:[#allocation2 + $0xb8] sm:$0xf] %v873_v34  ;;  %v2661_v4 = vshrl.u32 %v2612_v59, 16  ;;  %v11767_v12 = vld [vmem:[%s15978_s1 + $0x150] sm:$0xff]  ;;  %5022 = vmatpush.bf16.msra.mxu0 %v11812_v21 }
  0xb0   : > { %v1464_v31 = vunpack.c.l.b16 %v1217_v36  ;;  %v1497_v37 = vpack.c.b16 %v1480_v32, %v1479_v16  ;;  %v724_v38 = vsel %vm12227_vm2, %v382_v52, %v523_v35  ;;  %979 = vst [vmem:[#allocation2 + $0xcc] sm:$0xf] %v872_v27  ;;  %v748_v52 = vsel %vm12227_vm2, %v12564_v51, %v694_v43  ;;  %v12638_v32 = vld [vmem:[#allocation2 + $0x14] sm:$0x1]  ;;  %v3295_v21 = vld [vmem:[#allocation2 + $0x18] sm:$0xe] }
  0xb1   : > { %v740_v42 = vsel %vm12227_vm2, %v520_v20, %v662_v47  ;;  %v800_v44 = vunpack.c.l.b16 %v724_v38  ;;  %v801_v45 = vunpack.c.h.b16 %v724_v38  ;;  %980 = vst [vmem:[#allocation2 + $0xd0] sm:$0xf] %v873_v34  ;;  %v826_v61 = vunpack.c.l.b16 %v748_v52  ;;  %3604 = vmatpush.bf16.msrb.mxu1 %v11767_v12 }
  0xb2   : > { %v1489_v49 = vpack.c.b16 %v1464_v31, %v1463_v10  ;;  %1641 = vmatmul.bf16.gmra.mxu2 %v1497_v37  ;;  %v802_v25 = vunpack.c.l.b16 %v740_v42  ;;  %v2664_v63 = vshll.u32 %v2612_v59, 16  ;;  %v12616_v14 = vrot.slane %v2661_v4, 4  ;;  %v11765_v42 = vld [vmem:[%s15978_s1 + $0x140] sm:$0xff] }
  0xb3   : > { %v848_v46 = vpack.c.b16 %v800_v44, %v800_v44  ;;  %v849_v13 = vpack.c.b16 %v801_v45, %v801_v45  ;;  %v874_v62 = vpack.c.b16 %v826_v61, %v826_v61  ;;  %v2670_v39 = vshll.u32 %v12607_v2, 16  ;;  %v3294_v44 = vld [vmem:[#allocation2 + $0xc] sm:$0xe] }
  0xb4   : > { %1601 = vmatmul.bf16.gmra.mxu0 %v1489_v49  ;;  %v850_v60 = vpack.c.b16 %v802_v25, %v802_v25  ;;  %v12625_v17 = vrot.slane %v2664_v63, 5  ;;  %v2674_v40 = vshrl.u32 %v12607_v2, 16  ;;  %v3360_v48 = vrot.slane %v12607_v2, 5  ;;  %v11733_v63 = vld [vmem:[#allocation2 + $0xc] sm:$0xff] }
  0xb5   : > { %945 = vst [vmem:[#allocation2 + $0x54] sm:$0xf] %v848_v46  ;;  %v1013_v1 = vld [vmem:[#allocation2 + $0xb4] sm:$0xf]  ;;  %3605 = vmatpush.bf16.msrb.mxu1 %v11766_v57  ;;  %v12651_v43 = vrot.slane %v2670_v39, 5  ;;  %v3363_v25 = vrot.slane %v12638_v32, 5 }
  0xb6   : > { %946 = vst [vmem:[#allocation2 + $0x58] sm:$0xf] %v849_v13  ;;  %v11708_v3 = vld [vmem:[#allocation2 + $0xb4] sm:$0xff]  ;;  %v1411_v51 = vshrl.u32 %v1013_v1, 16  ;;  %v12609_v55 = vpop.f32.mrf.mxu1  ;;  %v1414_v5 = vshll.u32 %v1013_v1, 16  ;;  %v2676_v49 = vrot.slane %v2674_v40, 4 }
  0xb7   : > { %947 = vst [vmem:[#allocation2 + $0x5c] sm:$0x1] %v850_v60  ;;  %v1014_v18 = vld [vmem:[#allocation2 + $0xb8] sm:$0xf]  ;;  %1879 = vmatmul.bf16.gmra.mxu3 %v11708_v3  ;;  %v10743_v1 = vrot.slane %v3294_v44, 9  ;;  %v3362_v2 = vrot.slane %v3360_v48, 4 }
  0xb8   : > { %971 = vst [vmem:[#allocation2 + $0xbc] sm:$0x1] %v874_v62  ;;  %v1420_v6 = vshll.u32 %v1014_v18, 16  ;;  %v1424_v8 = vshrl.u32 %v1014_v18, 16  ;;  %v1413_v9 = vrot.slane %v1411_v51, 4  ;;  %v1416_v33 = vrot.slane %v1414_v5, 5 }
  0xb9   : > { %981 = vst [vmem:[#allocation2 + $0xd4] sm:$0x1] %v874_v62  ;;  %v11993_v51 = vld [vmem:[#allocation2 + $0x4] sm:$0xf]  ;;  %3606 = vmatpush.bf16.msrb.mxu1 %v11765_v42  ;;  %v2680_v12 = vshll.u32 %v12638_v32, 16 }
  0xba   : > { %v1422_v7 = vrot.slane %v1420_v6, 5  ;;  %v1426_v56 = vrot.slane %v1424_v8, 4  ;;  %v1417_v0 = vor.u32 %v1416_v33, %v1413_v9  ;;  %v1938_v5 = vrot.slane %v11993_v51, 5  ;;  %v2617_v42 = vld [vmem:[#allocation2 + $0x20] sm:$0x1] }
  0xbb   : > { %v12611_v11 = vpop.f32.mrf.mxu3  ;;  %v2667_v6 = vor.u32 %v12625_v17, %v12616_v14  ;;  %v2677_v9 = vor.u32 %v2676_v49, %v12651_v43  ;;  %v3361_v33 = vsel %vm12663_vm8, %v10743_v1, %v3360_v48  ;;  %v3364_v14 = vsel %vm12663_vm8, %v3362_v2, %v3363_v25 }
  0xbc   : > { %v997_v41 = vld [vmem:[#allocation2 + $0x54] sm:$0xf]  ;;  %v1427_v16 = vor.u32 %v1426_v56, %v1422_v7  ;;  %v1418_v29 = vrot.slane %v1417_v0, 4  ;;  %v3488_v0 = vunpack.c.l.b16 %v3364_v14  ;;  %v2682_v32 = vrot.slane %v2680_v12, 5 }
  0xbd   : > { %v12631_v19 = vld [vmem:[#allocation2 + $0x58] sm:$0xf]  ;;  %v1219_v20 = vshrl.u32 %v997_v41, 16  ;;  %v1222_v22 = vshll.u32 %v997_v41, 16  ;;  %v3487_v41 = vunpack.c.l.b16 %v3361_v33  ;;  %v2704_v14 = vshll.u32 %v2617_v42, 16 }
  0xbe   : > { %v11700_v23 = vld [vmem:[#allocation2 + $0x54] sm:$0xff]  ;;  %v12634_v24 = vld [vmem:[#allocation2 + $0x5c] sm:$0x1]  ;;  %v1228_v26 = vshll.u32 %v12631_v19, 16  ;;  %v1232_v27 = vshrl.u32 %v12631_v19, 16  ;;  %v1428_v30 = vrot.slane %v1427_v16, 4  ;;  %v12641_v47 = vpop.f32.mrf.mxu1  ;;  %v1423_v38 = vsel %vm12318_vm5, %v1418_v29, %v1422_v7 }
  0xbf   : > { %v1221_v34 = vrot.slane %v1219_v20, 4  ;;  %v1224_v35 = vrot.slane %v1222_v22, 5  ;;  %v1238_v36 = vshll.u32 %v12634_v24, 16  ;;  %v1046_v10 = vld [vmem:[#allocation2 + $0xbc] sm:$0x1]  ;;  %1839 = vmatmul.bf16.gmra.mxu1 %v11700_v23  ;;  %v1481_v59 = vunpack.c.l.b16 %v1423_v38 }
  0xc0   : > { %v1230_v31 = vrot.slane %v1228_v26, 5  ;;  %v1234_v37 = vrot.slane %v1232_v27, 4  ;;  %v1430_v54 = vshll.u32 %v1046_v10, 16  ;;  %v10519_v20 = vrot.slane %v1885_v15, 9  ;;  %v11994_v23 = vld [vmem:[#allocation2 + $0x8] sm:$0x1] }
  0xc1   : > { %v1225_v45 = vor.u32 %v1224_v35, %v1221_v34  ;;  %v1240_v13 = vrot.slane %v1238_v36, 5  ;;  %v1940_v22 = vrot.slane %v1938_v5, 4  ;;  %v1941_v48 = vrot.slane %v11994_v23, 5  ;;  %v2615_v35 = vld [vmem:[#allocation2 + $0x18] sm:$0xf] }
  0xc2   : > { %v1235_v46 = vor.u32 %v1234_v37, %v1230_v31  ;;  %v1432_v52 = vrot.slane %v1430_v54, 5  ;;  %v1572_v60 = vpop.f32.mrf.mxu0  ;;  %v2668_v26 = vrot.slane %v2667_v6, 4  ;;  %v3519_v34 = vpack.c.b16 %v3488_v0, %v3487_v41  ;;  %v2616_v36 = vld [vmem:[#allocation2 + $0x1c] sm:$0xf] }
  0xc3   : > { %v12654_v61 = vpop.f32.mrf.mxu3  ;;  %v1226_v53 = vrot.slane %v1225_v45, 4  ;;  %v12657_v62 = vadd.f32 %v12609_v55, %v1572_v60  ;;  %v3367_v10 = vrot.slane %v2616_v36, 5  ;;  %v2685_v38 = vshrl.u32 %v2615_v35, 16  ;;  %v11734_v33 = vld [vmem:[#allocation2 + $0x18] sm:$0xff] }
  0xc4   : > { %v1236_v4 = vrot.slane %v1235_v46, 4  ;;  %v1433_v3 = vsel %vm12318_vm5, %v1428_v30, %v1432_v52  ;;  %v2678_v30 = vrot.slane %v2677_v9, 4  ;;  %v2673_v37 = vsel %vm12318_vm5, %v2668_v26, %v12651_v43 }
  0xc5   : > { %v1231_v55 = vsel %vm12318_vm5, %v1226_v53, %v1230_v31  ;;  %v1482_v8 = vunpack.c.l.b16 %v1433_v3  ;;  %v1942_v31 = vsel %vm12663_vm8, %v1940_v22, %v1941_v48  ;;  %v2688_v44 = vshll.u32 %v2615_v35, 16  ;;  %v11996_v22 = vld [vmem:[#allocation2 + $0x14] sm:$0x1] }
  0xc6   : > { %v1241_v7 = vsel %vm12318_vm5, %v1236_v4, %v1240_v13  ;;  %v1465_v56 = vunpack.c.l.b16 %v1231_v55  ;;  %v1810_v16 = vpop.f32.mrf.mxu1  ;;  %v2683_v54 = vsel %vm12318_vm5, %v2678_v30, %v2682_v32  ;;  %v2694_v45 = vshll.u32 %v2616_v36, 16  ;;  %v2618_v32 = vld [vmem:[#allocation2 + $0x24] sm:$0xf] }
  0xc7   : > { %v1466_v39 = vunpack.c.l.b16 %v1241_v7  ;;  %v1498_v58 = vpack.c.b16 %v1482_v8, %v1481_v59  ;;  %2499 = vmatmul.bf16.vlgmr.msrb.gmra.mxu3 %v11733_v63  ;;  %v2698_v49 = vshrl.u32 %v2616_v36, 16  ;;  %v10744_v46 = vrot.slane %v3295_v21, 9  ;;  %v2619_v21 = vld [vmem:[#allocation2 + $0x28] sm:$0xf] }
  0xc8   : > { %v1612_v17 = vpop.f32.mrf.mxu2  ;;  %v3369_v13 = vrot.slane %v3367_v10, 4  ;;  %v3370_v52 = vrot.slane %v2617_v42, 5  ;;  %v2066_v60 = vunpack.c.l.b16 %v1942_v31  ;;  %v3061_v1 = vunpack.c.l.b16 %v2673_v37  ;;  %v11811_v31 = vld [vmem:[%s15978_s1 + $0x230] sm:$0xff] }
  0xc9   : > { %v1490_v40 = vpack.c.b16 %v1466_v39, %v1465_v56  ;;  %1646 = vmatmul.bf16.gmra.mxu2 %v1498_v58  ;;  %v12680_v57 = vadd.f32 %v12611_v11, %v1612_v17  ;;  %v1939_v11 = vsel %vm12663_vm8, %v10519_v20, %v1938_v5  ;;  %v3062_v43 = vunpack.c.l.b16 %v2683_v54  ;;  %v11995_v56 = vld [vmem:[#allocation2 + $0x10] sm:$0xf]  ;;  %v1886_v39 = vld [vmem:[#allocation2 + $0xc] sm:$0xe]  ;;  %5023 = vmatpush.bf16.msra.mxu0 %v11811_v31 }
  0xca   : > { %v12682_v27 = vpop.f32.mrf.mxu0  ;;  %v2065_v59 = vunpack.c.l.b16 %v1939_v11  ;;  %v2687_v3 = vrot.slane %v2685_v38, 4  ;;  %v2690_v5 = vrot.slane %v2688_v44, 5  ;;  %v2696_v6 = vrot.slane %v2694_v45, 5  ;;  %v11803_v11 = vld [vmem:[%s15978_s1 + $0x1f0] sm:$0xff]  ;;  %v3296_v38 = vld [vmem:[#allocation2 + $0x24] sm:$0xe] }
  0xcb   : > { %v1850_v29 = vpop.f32.mrf.mxu3  ;;  %1606 = vmatmul.bf16.gmra.mxu0 %v1490_v40  ;;  %v2700_v55 = vrot.slane %v2698_v49, 4  ;;  %v3368_v8 = vsel %vm12663_vm8, %v10744_v46, %v3367_v10  ;;  %v3371_v63 = vsel %vm12663_vm8, %v3369_v13, %v3370_v52  ;;  %v3093_v7 = vpack.c.b16 %v3062_v43, %v3061_v1  ;;  %4597 = vmatpush.bf16.msra.mxu3 %v11803_v11  ;;  %v2620_v46 = vld [vmem:[#allocation2 + $0x2c] sm:$0x1] }
  0xcc   : > { %v2097_v9 = vpack.c.b16 %v2066_v60, %v2065_v59  ;;  %v1945_v12 = vrot.slane %v11995_v56, 5  ;;  %v2691_v58 = vor.u32 %v2690_v5, %v2687_v3  ;;  %v3489_v41 = vunpack.c.l.b16 %v3368_v8 }
  0xcd   : > { %v2701_v15 = vor.u32 %v2700_v55, %v2696_v6  ;;  %v3490_v0 = vunpack.c.l.b16 %v3371_v63  ;;  %v10520_v40 = vrot.slane %v1886_v39, 9  ;;  %v1948_v23 = vrot.slane %v11996_v22, 5 }
  0xce   : > { %v12695_v53 = vpop.f32.mrf.mxu1  ;;  %v1947_v20 = vrot.slane %v1945_v12, 4  ;;  %v2706_v48 = vrot.slane %v2704_v14, 5  ;;  %v3374_v37 = vrot.slane %v2619_v21, 5  ;;  %v2709_v44 = vshrl.u32 %v2618_v32, 16 }
  0xcf   : > { %3607 = vmatmul.bf16.vlgmr.msrb.gmra.mxu1 %v3519_v34  ;;  %v2692_v34 = vrot.slane %v2691_v58, 4  ;;  %v2702_v35 = vrot.slane %v2701_v15, 4  ;;  %v3520_v36 = vpack.c.b16 %v3490_v0, %v3489_v41  ;;  %v1946_v54 = vsel %vm12663_vm8, %v10520_v40, %v1945_v12  ;;  %v11735_v15 = vld [vmem:[#allocation2 + $0x24] sm:$0xff]  ;;  %v11997_v41 = vld [vmem:[#allocation2 + $0x1c] sm:$0xf] }
  0xd0   : > { %v12693_v25 = vpop.f32.mrf.mxu2  ;;  %v1949_v42 = vsel %vm12663_vm8, %v1947_v20, %v1948_v23  ;;  %v2712_v13 = vshll.u32 %v2618_v32, 16  ;;  %v2718_v52 = vshll.u32 %v2619_v21, 16  ;;  %v2722_v59 = vshrl.u32 %v2619_v21, 16  ;;  %v1887_v40 = vld [vmem:[#allocation2 + $0x18] sm:$0xe] }
  0xd1   : > { %v2697_v45 = vsel %vm12318_vm5, %v2692_v34, %v2696_v6  ;;  %v2707_v49 = vsel %vm12318_vm5, %v2702_v35, %v2706_v48  ;;  %v10745_v60 = vrot.slane %v3296_v38, 9  ;;  %v3376_v1 = vrot.slane %v3374_v37, 4  ;;  %v2622_v38 = vld [vmem:[#allocation2 + $0x34] sm:$0xf] }
  0xd2   : > { %v1577_v2 = vpop.f32.mrf.mxu0  ;;  %v3377_v43 = vrot.slane %v2620_v46, 5  ;;  %v2068_v3 = vunpack.c.l.b16 %v1949_v42  ;;  %v2711_v63 = vrot.slane %v2709_v44, 4  ;;  %v3063_v6 = vunpack.c.l.b16 %v2697_v45 }
  0xd3   : > { %v12697_v4 = vpop.f32.mrf.mxu3  ;;  %v12699_v51 = vadd.f32 %v1810_v16, %v1577_v2  ;;  %v2067_v2 = vunpack.c.l.b16 %v1946_v54  ;;  %v2720_v56 = vrot.slane %v2718_v52, 5  ;;  %v2724_v12 = vrot.slane %v2722_v59, 4  ;;  %v3297_v52 = vld [vmem:[#allocation2 + $0x30] sm:$0xe] }
  0xd4   : > { %15993 = vst [vmem:[#allocation8_spill] sm:$0xff] %v12697_v4  ;;  %v3375_v14 = vsel %vm12663_vm8, %v10745_v60, %v3374_v37  ;;  %v3378_v39 = vsel %vm12663_vm8, %v3376_v1, %v3377_v43  ;;  %v1952_v0 = vrot.slane %v11997_v41, 5  ;;  %v2728_v34 = vshll.u32 %v2620_v46, 16  ;;  %v2621_v37 = vld [vmem:[#allocation2 + $0x30] sm:$0xf] }
  0xd5   : > { %v2098_v58 = vpack.c.b16 %v2068_v3, %v2067_v2  ;;  %v3491_v23 = vunpack.c.l.b16 %v3375_v14  ;;  %v3492_v48 = vunpack.c.l.b16 %v3378_v39  ;;  %v2725_v32 = vor.u32 %v2724_v12, %v2720_v56 }
  0xd6   : > { %v1815_v10 = vpop.f32.mrf.mxu1  ;;  %v10521_v35 = vrot.slane %v1887_v40, 9  ;;  %v2730_v42 = vrot.slane %v2728_v34, 5  ;;  %v2733_v59 = vshrl.u32 %v2621_v37, 16  ;;  %v2736_v60 = vshll.u32 %v2621_v37, 16 }
  0xd7   : > { %2504 = vmatmul.bf16.gmra.mxu3 %v11734_v33  ;;  %v3521_v31 = vpack.c.b16 %v3492_v48, %v3491_v23  ;;  %v2726_v54 = vrot.slane %v2725_v32, 4  ;;  %v2742_v1 = vshll.u32 %v2622_v38, 16  ;;  %v2746_v43 = vshrl.u32 %v2622_v38, 16  ;;  %v11736_v48 = vld [vmem:[#allocation2 + $0x30] sm:$0xff]  ;;  %v11999_v32 = vld [vmem:[#allocation2 + $0x28] sm:$0xf] }
  0xd8   : > { %v1617_v16 = vpop.f32.mrf.mxu2  ;;  %v1953_v46 = vsel %vm12663_vm8, %v10521_v35, %v1952_v0  ;;  %v2735_v39 = vrot.slane %v2733_v59, 4  ;;  %v1959_v34 = vrot.slane %v11999_v32, 5 }
  0xd9   : > { %2185 = vmatmul.bf16.vlgmr.msrb.gmra.mxu2 %v2097_v9  ;;  %v12705_v17 = vadd.f32 %v1850_v29, %v1617_v16  ;;  %v11795_v29 = vld [vmem:[%s15978_s1 + $0x1b0] sm:$0xff]  ;;  %v3064_v9 = vunpack.c.l.b16 %v2707_v49  ;;  %v3381_v49 = vrot.slane %v2622_v38, 5  ;;  %v2069_v12 = vunpack.c.l.b16 %v1953_v46 }
  0xda   : > { %v12707_v26 = vpop.f32.mrf.mxu0  ;;  %3915 = vmatpush.bf16.msra.mxu2 %v11795_v29  ;;  %v2748_v41 = vrot.slane %v2746_v43, 4 }
  0xdb   : > { %v12709_v30 = vpop.f32.mrf.mxu3  ;;  %3181 = vmatmul.bf16.vlgmr.msrb.gmra.mxu0 %v3093_v7  ;;  %v2714_v7 = vrot.slane %v2712_v13, 5  ;;  %v3094_v20 = vpack.c.b16 %v3064_v9, %v3063_v6  ;;  %v10746_v6 = vrot.slane %v3297_v52, 9  ;;  %v3383_v9 = vrot.slane %v3381_v49, 4 }
  0xdd   : > { %v2715_v22 = vor.u32 %v2714_v7, %v2711_v63  ;;  %v2731_v63 = vsel %vm12318_vm5, %v2726_v54, %v2730_v42  ;;  %v1961_v42 = vrot.slane %v1959_v34, 4 }
  0xde   : > { %v12738_v16 = vpop.f32.mrf.mxu1  ;;  %v3066_v40 = vunpack.c.l.b16 %v2731_v63  ;;  %v11794_v63 = vld [vmem:[%s15978_s1 + $0x1a8] sm:$0xff] }
  0xdf   : > { %3612 = vmatmul.bf16.gmra.mxu1 %v3520_v36  ;;  %v1954_v36 = vrot.slane %v1952_v0, 4  ;;  %v2716_v29 = vrot.slane %v2715_v22, 4  ;;  %3916 = vmatpush.bf16.msra.mxu2 %v11794_v63 }
  0xe0   : > { %v12728_v5 = vpop.f32.mrf.mxu2 }
  0xe1   : > { %15994 = vst [vmem:[#allocation9_spill] sm:$0xff] %v12728_v5  ;;  %v2721_v2 = vsel %vm12318_vm5, %v2716_v29, %v2720_v56 }
  0xe2   : > { %v1582_v55 = vpop.f32.mrf.mxu0  ;;  %v3065_v0 = vunpack.c.l.b16 %v2721_v2 }
  0xe3   : > { %v12730_v8 = vpop.f32.mrf.mxu3  ;;  %v12732_v33 = vadd.f32 %v1815_v10, %v1582_v55  ;;  %v11998_v10 = vld [vmem:[#allocation2 + $0x20] sm:$0x1]  ;;  %v2623_v55 = vld [vmem:[#allocation2 + $0x38] sm:$0x1] }
  0xe4   : > { %15995 = vst [vmem:[#allocation10_spill] sm:$0xff] %v12730_v8  ;;  %v1955_v21 = vrot.slane %v11998_v10, 5  ;;  %v3384_v7 = vrot.slane %v2623_v55, 5  ;;  %v2752_v29 = vshll.u32 %v2623_v55, 16  ;;  %v2625_v55 = vld [vmem:[#allocation2 + $0x40] sm:$0xf] }
  0xe6   : > { %v1956_v13 = vsel %vm12663_vm8, %v1954_v36, %v1955_v21  ;;  %v3385_v22 = vsel %vm12663_vm8, %v3383_v9, %v3384_v7  ;;  %v1888_v36 = vld [vmem:[#allocation2 + $0x24] sm:$0xe]  ;;  %v2624_v7 = vld [vmem:[#allocation2 + $0x3c] sm:$0xf] }
  0xe7   : > { %2509 = vmatmul.bf16.gmra.mxu3 %v11735_v15  ;;  %v2070_v14 = vunpack.c.l.b16 %v1956_v13  ;;  %v2744_v15 = vrot.slane %v2742_v1, 5  ;;  %v3494_v37 = vunpack.c.l.b16 %v3385_v22  ;;  %v10522_v54 = vrot.slane %v1888_v36, 9 }
  0xe8   : > { %v2754_v1 = vrot.slane %v2752_v29, 5  ;;  %v2766_v22 = vshll.u32 %v2625_v55, 16 }
  0xe9   : > { %2190 = vmatmul.bf16.gmra.mxu2 %v2098_v58  ;;  %v2738_v58 = vrot.slane %v2736_v60, 5  ;;  %v2099_v23 = vpack.c.b16 %v2070_v14, %v2069_v12  ;;  %v2749_v21 = vor.u32 %v2748_v41, %v2744_v15  ;;  %v3388_v12 = vrot.slane %v2625_v55, 5  ;;  %v3298_v14 = vld [vmem:[#allocation2 + $0x3c] sm:$0xe] }
  0xea   : > { %v1622_v11 = vpop.f32.mrf.mxu2  ;;  %v12749_v3 = vpop.f32.mrf.mxu0  ;;  %v10747_v32 = vrot.slane %v3298_v14, 9 }
  0xeb   : > { %3186 = vmatmul.bf16.gmra.mxu0 %v3094_v20  ;;  %v12741_v44 = vadd.f32 %v12709_v30, %v1622_v11  ;;  %v1860_v45 = vpop.f32.mrf.mxu3  ;;  %v3382_v20 = vsel %vm12663_vm8, %v10746_v6, %v3381_v49  ;;  %v2739_v10 = vor.u32 %v2738_v58, %v2735_v39  ;;  %v3095_v11 = vpack.c.b16 %v3066_v40, %v3065_v0  ;;  %v12000_v49 = vld [vmem:[#allocation2 + $0x2c] sm:$0x1]  ;;  %v2626_v0 = vld [vmem:[#allocation2 + $0x44] sm:$0x1] }
  0xec   : > { %v1820_v30 = vpop.f32.mrf.mxu1  ;;  %v1962_v46 = vrot.slane %v12000_v49, 5  ;;  %v2750_v60 = vrot.slane %v2749_v21, 4  ;;  %v11802_v6 = vld [vmem:[%s15978_s1 + $0x1e8] sm:$0xff]  ;;  %v1960_v39 = vsel %vm12663_vm8, %v10522_v54, %v1959_v34  ;;  %v2757_v40 = vshrl.u32 %v2624_v7, 16 }
  0xed   : > { %15996 = vst [vmem:[#allocation11_spill] sm:$0xff] %v12741_v44  ;;  %v2740_v59 = vrot.slane %v2739_v10, 4  ;;  %4598 = vmatpush.bf16.msra.mxu3 %v11802_v6  ;;  %v3390_v36 = vrot.slane %v3388_v12, 4  ;;  %v3391_v34 = vrot.slane %v2626_v0, 5  ;;  %v2071_v10 = vunpack.c.l.b16 %v1960_v39  ;;  %v1889_v6 = vld [vmem:[#allocation2 + $0x30] sm:$0xe] }
  0xee   : > { %v1963_v58 = vsel %vm12663_vm8, %v1961_v42, %v1962_v46  ;;  %v2768_v42 = vrot.slane %v2766_v22, 5  ;;  %v3389_v46 = vsel %vm12663_vm8, %v10747_v32, %v3388_v12  ;;  %v2776_v63 = vshll.u32 %v2626_v0, 16 }
  0xef   : > { %3617 = vmatmul.bf16.gmra.mxu1 %v3521_v31  ;;  %v3493_v31 = vunpack.c.l.b16 %v3382_v20  ;;  %v2745_v41 = vsel %vm12318_vm5, %v2740_v59, %v2744_v15  ;;  %v2760_v20 = vshll.u32 %v2624_v7, 16  ;;  %v2072_v21 = vunpack.c.l.b16 %v1963_v58 }
  0xf0   : > { %v3392_v59 = vsel %vm12663_vm8, %v3390_v36, %v3391_v34  ;;  %v3495_v14 = vunpack.c.l.b16 %v3389_v46  ;;  %v2778_v0 = vrot.slane %v2776_v63, 5 }
  0xf1   : > { %v3522_v2 = vpack.c.b16 %v3494_v37, %v3493_v31  ;;  %v2762_v54 = vrot.slane %v2760_v20, 5  ;;  %v3496_v39 = vunpack.c.l.b16 %v3392_v59  ;;  %v12002_v20 = vld [vmem:[#allocation2 + $0x38] sm:$0x1] }
  0xf2   : > { %v12753_v56 = vpop.f32.mrf.mxu2  ;;  %v1969_v22 = vrot.slane %v12002_v20, 5 }
  0xf3   : > { %15997 = vst [vmem:[#allocation12_spill] sm:$0xff] %v12753_v56  ;;  %v12759_v35 = vpop.f32.mrf.mxu3  ;;  %v3523_v34 = vpack.c.b16 %v3496_v39, %v3495_v14 }
  0xf4   : > { %15998 = vst [vmem:[#allocation13_spill] sm:$0xff] %v12759_v35  ;;  %v12761_v13 = vpop.f32.mrf.mxu1 }
  0xf7   : > { %2514 = vmatmul.bf16.gmra.mxu3 %v11736_v48 }
  0xf8   : > { %v1587_v38 = vpop.f32.mrf.mxu0 }
  0xf9   : > { %2195 = vmatmul.bf16.gmra.mxu2 %v2099_v23  ;;  %v12763_v52 = vadd.f32 %v1820_v30, %v1587_v38  ;;  %v11810_v30 = vld [vmem:[%s15978_s1 + $0x228] sm:$0xff]  ;;  %v2770_v23 = vshrl.u32 %v2625_v55, 16  ;;  %v2759_v38 = vrot.slane %v2757_v40, 4 }
  0xfa   : > { %v1627_v43 = vpop.f32.mrf.mxu2  ;;  %5024 = vmatpush.bf16.msra.mxu0 %v11810_v30 }
  0xfb   : > { %3191 = vmatmul.bf16.gmra.mxu0 %v3095_v11  ;;  %v12771_v9 = vadd.f32 %v1860_v45, %v1627_v43  ;;  %v2755_v45 = vsel %vm12318_vm5, %v2750_v60, %v2754_v1  ;;  %v1865_v48 = vpop.f32.mrf.mxu3  ;;  %v3067_v11 = vunpack.c.l.b16 %v2745_v41  ;;  %v2772_v49 = vrot.slane %v2770_v23, 4  ;;  %v11737_v1 = vld [vmem:[#allocation2 + $0x3c] sm:$0xff] }
  0xfc   : > { %v3068_v15 = vunpack.c.l.b16 %v2755_v45  ;;  %v1825_v37 = vpop.f32.mrf.mxu1  ;;  %v2100_v60 = vpack.c.b16 %v2072_v21, %v2071_v10  ;;  %v2763_v7 = vor.u32 %v2762_v54, %v2759_v38  ;;  %v10523_v45 = vrot.slane %v1889_v6, 9  ;;  %v2627_v10 = vld [vmem:[#allocation2 + $0x48] sm:$0xf] }
  0xfd   : > { %15999 = vst [vmem:[#allocation14_spill] sm:$0xff] %v12771_v9  ;;  %v2773_v30 = vor.u32 %v2772_v49, %v2768_v42  ;;  %v2781_v46 = vshrl.u32 %v2627_v10, 16  ;;  %v2784_v59 = vshll.u32 %v2627_v10, 16  ;;  %v1890_v10 = vld [vmem:[#allocation2 + $0x3c] sm:$0xe] }
  0xfe   : > { %v3096_v43 = vpack.c.b16 %v3068_v15, %v3067_v11  ;;  %v2764_v23 = vrot.slane %v2763_v7, 4  ;;  %v2628_v11 = vld [vmem:[#allocation2 + $0x4c] sm:$0xf] }
  0xff   : > { %3622 = vmatmul.bf16.gmra.mxu1 %v3522_v2  ;;  %v12001_v2 = vld [vmem:[#allocation2 + $0x34] sm:$0xf]  ;;  %v2774_v32 = vrot.slane %v2773_v30, 4  ;;  %v3395_v38 = vrot.slane %v2628_v11, 5 }
 0x100   : > { %v12784_v29 = vpop.f32.mrf.mxu0  ;;  %v1966_v55 = vrot.slane %v12001_v2, 5  ;;  %v2794_v2 = vshrl.u32 %v2628_v11, 16 }
 0x101   : > { %v3397_v6 = vrot.slane %v3395_v38, 4 }
 0x102   : > { %v12786_v31 = vpop.f32.mrf.mxu2  ;;  %v1968_v40 = vrot.slane %v1966_v55, 4  ;;  %v1967_v54 = vsel %vm12663_vm8, %v10523_v45, %v1966_v55  ;;  %v2786_v45 = vrot.slane %v2784_v59, 5  ;;  %v2796_v20 = vrot.slane %v2794_v2, 4 }
 0x103   : > { %16000 = vst [vmem:[#allocation15_spill] sm:$0xff] %v12786_v31  ;;  %v12794_v12 = vpop.f32.mrf.mxu3  ;;  %v2073_v30 = vunpack.c.l.b16 %v1967_v54  ;;  %v11740_v31 = vld [vmem:[#allocation2 + $0x60] sm:$0xff] }
 0x104   : > { %16001 = vst [vmem:[#allocation16_spill] sm:$0xff] %v12794_v12  ;;  %v12798_v15 = vpop.f32.mrf.mxu1  ;;  %v1970_v49 = vsel %vm12663_vm8, %v1968_v40, %v1969_v22 }
 0x105   : > { %v2074_v55 = vunpack.c.l.b16 %v1970_v49 }
 0x107   : > { %2519 = vmatmul.bf16.gmra.mxu3 %v11737_v1  ;;  %v2629_v1 = vld [vmem:[#allocation2 + $0x50] sm:$0x1] }
 0x108   : > { %v1592_v58 = vpop.f32.mrf.mxu0  ;;  %v3398_v7 = vrot.slane %v2629_v1, 5  ;;  %v2800_v59 = vshll.u32 %v2629_v1, 16  ;;  %v11793_v1 = vld [vmem:[%s15978_s1 + $0x1a0] sm:$0xff] }
 0x109   : > { %2200 = vmatmul.bf16.gmra.mxu2 %v2100_v60  ;;  %v12792_v41 = vadd.f32 %v1825_v37, %v1592_v58  ;;  %v3299_v37 = vld [vmem:[#allocation2 + $0x48] sm:$0xe]  ;;  %v2769_v60 = vsel %vm12318_vm5, %v2764_v23, %v2768_v42  ;;  %v2783_v58 = vrot.slane %v2781_v46, 4 }
 0x10a   : > { %v10748_v63 = vrot.slane %v3299_v37, 9  ;;  %v3069_v14 = vunpack.c.l.b16 %v2769_v60  ;;  %v3399_v23 = vsel %vm12663_vm8, %v3397_v6, %v3398_v7  ;;  %3917 = vmatpush.bf16.msra.mxu2 %v11793_v1 }
 0x10b   : > { %3196 = vmatmul.bf16.gmra.mxu0 %v3096_v43  ;;  %v1632_v36 = vpop.f32.mrf.mxu2  ;;  %v2790_v43 = vshll.u32 %v2628_v11, 16  ;;  %v12003_v11 = vld [vmem:[#allocation2 + $0x40] sm:$0xf]  ;;  %v2787_v54 = vor.u32 %v2786_v45, %v2783_v58  ;;  %v2631_v45 = vld [vmem:[#allocation2 + $0x58] sm:$0xf] }
 0x10c   : > { %v12796_v21 = vadd.f32 %v1865_v48, %v1632_v36  ;;  %v2779_v48 = vsel %vm12318_vm5, %v2774_v32, %v2778_v0  ;;  %v3396_v42 = vsel %vm12663_vm8, %v10748_v63, %v3395_v38  ;;  %v2101_v32 = vpack.c.b16 %v2074_v55, %v2073_v30  ;;  %v11738_v0 = vld [vmem:[#allocation2 + $0x48] sm:$0xff]  ;;  %v12004_v63 = vld [vmem:[#allocation2 + $0x44] sm:$0x1] }
 0x10d   : > { %v3070_v39 = vunpack.c.l.b16 %v2779_v48  ;;  %v2792_v40 = vrot.slane %v2790_v43, 5  ;;  %v1973_v37 = vrot.slane %v12003_v11, 5  ;;  %v3497_v60 = vunpack.c.l.b16 %v3396_v42  ;;  %v11801_v58 = vld [vmem:[%s15978_s1 + $0x1e0] sm:$0xff] }
 0x10e   : > { %16002 = vst [vmem:[#allocation17_spill] sm:$0xff] %v12796_v21  ;;  %v3498_v48 = vunpack.c.l.b16 %v3399_v23  ;;  %v10524_v38 = vrot.slane %v1890_v10, 9  ;;  %v1976_v6 = vrot.slane %v12004_v63, 5  ;;  %v2788_v7 = vrot.slane %v2787_v54, 4  ;;  %4599 = vmatpush.bf16.msra.mxu3 %v11801_v58  ;;  %v3300_v10 = vld [vmem:[#allocation2 + $0x54] sm:$0xe] }
 0x10f   : > { %3627 = vmatmul.bf16.gmra.mxu1 %v3523_v34  ;;  %v3097_v36 = vpack.c.b16 %v3070_v39, %v3069_v14  ;;  %v2797_v46 = vor.u32 %v2796_v20, %v2792_v40  ;;  %v1975_v2 = vrot.slane %v1973_v37, 4  ;;  %v2802_v55 = vrot.slane %v2800_v59, 5  ;;  %v2630_v39 = vld [vmem:[#allocation2 + $0x54] sm:$0xf]  ;;  %v11809_v20 = vld [vmem:[%s15978_s1 + $0x220] sm:$0xff] }
 0x110   : > { %v12814_v34 = vpop.f32.mrf.mxu0  ;;  %v3524_v14 = vpack.c.b16 %v3498_v48, %v3497_v60  ;;  %v1974_v42 = vsel %vm12663_vm8, %v10524_v38, %v1973_v37  ;;  %5025 = vmatpush.bf16.msra.mxu0 %v11809_v20  ;;  %v3402_v11 = vrot.slane %v2631_v45, 5  ;;  %v2793_v54 = vsel %vm12318_vm5, %v2788_v7, %v2792_v40  ;;  %v2632_v59 = vld [vmem:[#allocation2 + $0x5c] sm:$0x1] }
 0x111   : > { %v12808_v22 = vpop.f32.mrf.mxu3  ;;  %v2798_v30 = vrot.slane %v2797_v46, 4  ;;  %v2814_v37 = vshll.u32 %v2631_v45, 16  ;;  %v2818_v60 = vshrl.u32 %v2631_v45, 16  ;;  %v10749_v38 = vrot.slane %v3300_v10, 9 }
 0x112   : > { %v3404_v63 = vrot.slane %v3402_v11, 4  ;;  %v3405_v1 = vrot.slane %v2632_v59, 5  ;;  %v3071_v20 = vunpack.c.l.b16 %v2793_v54 }
 0x113   : > { %v12816_v43 = vpop.f32.mrf.mxu2  ;;  %v2803_v46 = vsel %vm12318_vm5, %v2798_v30, %v2802_v55  ;;  %v2820_v30 = vrot.slane %v2818_v60, 4 }
 0x114   : > { %v1830_v49 = vpop.f32.mrf.mxu1  ;;  %16003 = vst [vmem:[#allocation18_spill] sm:$0xff] %v12816_v43  ;;  %v3072_v12 = vunpack.c.l.b16 %v2803_v46  ;;  %v2816_v43 = vrot.slane %v2814_v37, 5  ;;  %v3406_v45 = vsel %vm12663_vm8, %v3404_v63, %v3405_v1  ;;  %v1891_v46 = vld [vmem:[#allocation2 + $0x48] sm:$0xe]  ;;  %v2824_v37 = vshll.u32 %v2632_v59, 16 }
 0x115   : > { %v3500_v21 = vunpack.c.l.b16 %v3406_v45  ;;  %v12006_v1 = vld [vmem:[#allocation2 + $0x50] sm:$0x1]  ;;  %v2634_v59 = vld [vmem:[#allocation2 + $0x64] sm:$0xf] }
 0x116   : > { %v3098_v54 = vpack.c.b16 %v3072_v12, %v3071_v20  ;;  %v2826_v12 = vrot.slane %v2824_v37, 5 }
 0x117   : > { %2524 = vmatmul.bf16.gmra.mxu3 %v11738_v0  ;;  %v2805_v0 = vshrl.u32 %v2630_v39, 16 }
 0x119   : > { %2205 = vmatmul.bf16.gmra.mxu2 %v2101_v32  ;;  %v1872_v23 = vpop.f32.mrf.mxu3  ;;  %v1977_v32 = vsel %vm12663_vm8, %v1975_v2, %v1976_v6  ;;  %v2075_v6 = vunpack.c.l.b16 %v1974_v42  ;;  %v2807_v40 = vrot.slane %v2805_v0, 4  ;;  %v11739_v42 = vld [vmem:[#allocation2 + $0x54] sm:$0xff] }
 0x11b   : > { %3201 = vmatmul.bf16.gmra.mxu0 %v3097_v36  ;;  %v2808_v36 = vshll.u32 %v2630_v39, 16  ;;  %v2076_v39 = vunpack.c.l.b16 %v1977_v32  ;;  %v12005_v32 = vld [vmem:[#allocation2 + $0x4c] sm:$0xf] }
 0x11c   : > { %v12837_v58 = vpop.f32.mrf.mxu1 }
 0x11d   : > { %v2810_v7 = vrot.slane %v2808_v36, 5  ;;  %v2102_v10 = vpack.c.b16 %v2076_v39, %v2075_v6  ;;  %v2821_v36 = vor.u32 %v2820_v30, %v2816_v43 }
 0x11f   : > { %3632 = vmatmul.bf16.gmra.mxu1 %v3524_v14  ;;  %v3403_v14 = vsel %vm12663_vm8, %v10749_v38, %v3402_v11  ;;  %v2811_v0 = vor.u32 %v2810_v7, %v2807_v40  ;;  %v10525_v38 = vrot.slane %v1891_v46, 9  ;;  %v2633_v40 = vld [vmem:[#allocation2 + $0x60] sm:$0xf]  ;;  %v2635_v46 = vld [vmem:[#allocation2 + $0x68] sm:$0x1] }
 0x120   : > { %v1597_v48 = vpop.f32.mrf.mxu0  ;;  %v3499_v60 = vunpack.c.l.b16 %v3403_v14 }
 0x121   : > { %v12835_v2 = vadd.f32 %v1830_v49, %v1597_v48  ;;  %v1980_v48 = vrot.slane %v12005_v32, 5  ;;  %v2812_v6 = vrot.slane %v2811_v0, 4  ;;  %v2832_v32 = vshll.u32 %v2633_v40, 16 }
 0x122   : > { %v3525_v20 = vpack.c.b16 %v3500_v21, %v3499_v60  ;;  %v2838_v0 = vshll.u32 %v2634_v59, 16 }
 0x123   : > { %v1637_v55 = vpop.f32.mrf.mxu2  ;;  %v1982_v63 = vrot.slane %v1980_v48, 4  ;;  %v1981_v14 = vsel %vm12663_vm8, %v10525_v38, %v1980_v48  ;;  %v3412_v48 = vrot.slane %v2635_v46, 5 }
 0x124   : > { %v12844_v49 = vadd.f32 %v12808_v22, %v1637_v55  ;;  %v1983_v22 = vrot.slane %v12006_v1, 5  ;;  %v2822_v55 = vrot.slane %v2821_v36, 4  ;;  %v3301_v36 = vld [vmem:[#allocation2 + $0x60] sm:$0xe]  ;;  %v2077_v1 = vunpack.c.l.b16 %v1981_v14 }
 0x125   : > { %v1875_v11 = vpop.f32.mrf.mxu3  ;;  %v1835_v39 = vpop.f32.mrf.mxu1  ;;  %v10750_v37 = vrot.slane %v3301_v36, 9 }
 0x126   : > { %16004 = vst [vmem:[#allocation19_spill] sm:$0xff] %v12844_v49  ;;  %v1984_v45 = vsel %vm12663_vm8, %v1982_v63, %v1983_v22  ;;  %v2827_v21 = vsel %vm12318_vm5, %v2822_v55, %v2826_v12  ;;  %v2840_v49 = vrot.slane %v2838_v0, 5  ;;  %v2848_v0 = vshll.u32 %v2635_v46, 16 }
 0x127   : > { %2529 = vmatmul.bf16.gmra.mxu3 %v11739_v42  ;;  %v2829_v42 = vshrl.u32 %v2633_v40, 16  ;;  %v2078_v63 = vunpack.c.l.b16 %v1984_v45 }
 0x128   : > { %v12846_v35 = vpop.f32.mrf.mxu0 }
 0x129   : > { %2210 = vmatmul.bf16.gmra.mxu2 %v2102_v10  ;;  %v2817_v10 = vsel %vm12318_vm5, %v2812_v6, %v2816_v43  ;;  %v3074_v6 = vunpack.c.l.b16 %v2827_v21  ;;  %v2831_v40 = vrot.slane %v2829_v42, 4  ;;  %v1892_v42 = vld [vmem:[#allocation2 + $0x54] sm:$0xe] }
 0x12a   : > { %v3073_v22 = vunpack.c.l.b16 %v2817_v10 }
 0x12b   : > { %3206 = vmatmul.bf16.gmra.mxu0 %v3098_v54  ;;  %v1639_v7 = vpop.f32.mrf.mxu2  ;;  %v3409_v54 = vrot.slane %v2634_v59, 5 }
 0x12c   : > { %v12848_v30 = vadd.f32 %v1872_v23, %v1639_v7  ;;  %v2842_v23 = vshrl.u32 %v2634_v59, 16  ;;  %v2103_v59 = vpack.c.b16 %v2078_v63, %v2077_v1  ;;  %v3099_v45 = vpack.c.b16 %v3074_v6, %v3073_v22  ;;  %v2636_v22 = vld [vmem:[#allocation2 + $0x6c] sm:$0xf] }
 0x12d   : > { %v3411_v60 = vrot.slane %v3409_v54, 4  ;;  %v1877_v43 = vpop.f32.mrf.mxu3  ;;  %v3410_v12 = vsel %vm12663_vm8, %v10750_v37, %v3409_v54  ;;  %v12864_v14 = vpop.f32.mrf.mxu1  ;;  %v10526_v54 = vrot.slane %v1892_v42, 9  ;;  %v2850_v63 = vrot.slane %v2848_v0, 5 }
 0x12e   : > { %16005 = vst [vmem:[#allocation20_spill] sm:$0xff] %v12848_v30  ;;  %v2834_v30 = vrot.slane %v2832_v32, 5  ;;  %v2844_v55 = vrot.slane %v2842_v23, 4  ;;  %v3501_v23 = vunpack.c.l.b16 %v3410_v12 }
 0x12f   : > { %3637 = vmatmul.bf16.gmra.mxu1 %v3525_v20  ;;  %v3413_v20 = vsel %vm12663_vm8, %v3411_v60, %v3412_v48  ;;  %v1990_v60 = vrot.slane %v12634_v24, 5 }
 0x130   : > { %v2835_v32 = vor.u32 %v2834_v30, %v2831_v40  ;;  %v2845_v21 = vor.u32 %v2844_v55, %v2840_v49  ;;  %v11800_v30 = vld [vmem:[%s15978_s1 + $0x1d8] sm:$0xff] }
 0x131   : > { %v1602_v38 = vpop.f32.mrf.mxu0  ;;  %4600 = vmatpush.bf16.msra.mxu3 %v11800_v30 }
 0x132   : > { %v12858_v7 = vadd.f32 %v1835_v39, %v1602_v38  ;;  %v1987_v39 = vrot.slane %v12631_v19, 5  ;;  %v3502_v38 = vunpack.c.l.b16 %v3413_v20  ;;  %v2836_v48 = vrot.slane %v2835_v32, 4 }
 0x133   : > { %v2846_v1 = vrot.slane %v2845_v21, 4  ;;  %v2853_v20 = vshrl.u32 %v2636_v22, 16 }
 0x134   : > { %v1989_v37 = vrot.slane %v1987_v39, 4  ;;  %v3526_v19 = vpack.c.b16 %v3502_v38, %v3501_v23  ;;  %v1988_v24 = vsel %vm12663_vm8, %v10526_v54, %v1987_v39  ;;  %v2841_v42 = vsel %vm12318_vm5, %v2836_v48, %v2840_v49  ;;  %v2638_v39 = vld [vmem:[#allocation2 + $0x74] sm:$0x1]  ;;  %v3302_v23 = vld [vmem:[#allocation2 + $0x6c] sm:$0xe]  ;;  %v11808_v49 = vld [vmem:[%s15978_s1 + $0x218] sm:$0xff] }
 0x135   : > { %v1642_v36 = vpop.f32.mrf.mxu2  ;;  %v2851_v32 = vsel %vm12318_vm5, %v2846_v1, %v2850_v63  ;;  %v10751_v38 = vrot.slane %v3302_v23, 9  ;;  %v2855_v30 = vrot.slane %v2853_v20, 4  ;;  %5026 = vmatpush.bf16.msra.mxu0 %v11808_v49  ;;  %v12007_v20 = vld [vmem:[#allocation2 + $0x64] sm:$0xf] }
 0x136   : > { %v12867_v10 = vadd.f32 %v1875_v11, %v1642_v36  ;;  %v11792_v11 = vld [vmem:[%s15978_s1 + $0x198] sm:$0xff]  ;;  %v1991_v40 = vsel %vm12663_vm8, %v1989_v37, %v1990_v60  ;;  %v3419_v37 = vrot.slane %v2638_v39, 5 }
 0x137   : > { %2534 = vmatmul.bf16.gmra.mxu3 %v11740_v31  ;;  %v2637_v31 = vld [vmem:[#allocation2 + $0x70] sm:$0xf]  ;;  %3918 = vmatpush.bf16.msra.mxu2 %v11792_v11  ;;  %v2080_v60 = vunpack.c.l.b16 %v1991_v40  ;;  %v3075_v11 = vunpack.c.l.b16 %v2841_v42  ;;  %v1893_v40 = vld [vmem:[#allocation2 + $0x60] sm:$0xe] }
 0x138   : > { %16006 = vst [vmem:[#allocation21_spill] sm:$0xff] %v12867_v10  ;;  %v3416_v36 = vrot.slane %v2637_v31, 5  ;;  %v2862_v21 = vshll.u32 %v2637_v31, 16  ;;  %v2866_v0 = vshrl.u32 %v2637_v31, 16  ;;  %v11741_v31 = vld [vmem:[#allocation2 + $0x6c] sm:$0xff] }
 0x139   : > { %2215 = vmatmul.bf16.gmra.mxu2 %v2103_v59  ;;  %v12882_v55 = vpop.f32.mrf.mxu0  ;;  %v2856_v59 = vshll.u32 %v2636_v22, 16  ;;  %v3076_v22 = vunpack.c.l.b16 %v2851_v32 }
 0x13a   : > { %v12876_v46 = vpop.f32.mrf.mxu3  ;;  %v3418_v54 = vrot.slane %v3416_v36, 4  ;;  %v2868_v10 = vrot.slane %v2866_v0, 4  ;;  %v3417_v1 = vsel %vm12663_vm8, %v10751_v38, %v3416_v36  ;;  %v10527_v38 = vrot.slane %v1893_v40, 9 }
 0x13b   : > { %3211 = vmatmul.bf16.gmra.mxu0 %v3099_v45  ;;  %v3503_v0 = vunpack.c.l.b16 %v3417_v1 }
 0x13c   : > { %v1840_v45 = vpop.f32.mrf.mxu1  ;;  %v3420_v63 = vsel %vm12663_vm8, %v3418_v54, %v3419_v37  ;;  %v12008_v37 = vld [vmem:[#allocation2 + $0x68] sm:$0x1] }
 0x13d   : > { %v1644_v6 = vpop.f32.mrf.mxu2  ;;  %v3504_v23 = vunpack.c.l.b16 %v3420_v63 }
 0x13e   : > { %v12884_v12 = vadd.f32 %v1877_v43, %v1644_v6  ;;  %v2079_v43 = vunpack.c.l.b16 %v1988_v24  ;;  %v2858_v6 = vrot.slane %v2856_v59, 5  ;;  %v3100_v24 = vpack.c.b16 %v3076_v22, %v3075_v11 }
 0x13f   : > { %3642 = vmatmul.bf16.gmra.mxu1 %v3526_v19  ;;  %v1994_v59 = vrot.slane %v12007_v20, 5  ;;  %v3527_v49 = vpack.c.b16 %v3504_v23, %v3503_v0  ;;  %v2641_v20 = vld [vmem:[#allocation2 + $0x80] sm:$0x1] }
 0x140   : > { %16007 = vst [vmem:[#allocation22_spill] sm:$0xff] %v12884_v12  ;;  %v2864_v12 = vrot.slane %v2862_v21, 5  ;;  %v2104_v19 = vpack.c.b16 %v2080_v60, %v2079_v43  ;;  %v2859_v42 = vor.u32 %v2858_v6, %v2855_v30  ;;  %v2872_v21 = vshll.u32 %v2638_v39, 16  ;;  %v2639_v30 = vld [vmem:[#allocation2 + $0x78] sm:$0xf] }
 0x141   : > { %v1996_v54 = vrot.slane %v1994_v59, 4  ;;  %v1997_v43 = vrot.slane %v12008_v37, 5  ;;  %v2640_v6 = vld [vmem:[#allocation2 + $0x7c] sm:$0xf]  ;;  %v2877_v63 = vshrl.u32 %v2639_v30, 16  ;;  %v3426_v23 = vrot.slane %v2641_v20, 5 }
 0x142   : > { %v12893_v48 = vpop.f32.mrf.mxu3  ;;  %v2869_v32 = vor.u32 %v2868_v10, %v2864_v12  ;;  %v2860_v60 = vrot.slane %v2859_v42, 4  ;;  %v2874_v22 = vrot.slane %v2872_v21, 5  ;;  %v2886_v42 = vshll.u32 %v2640_v6, 16 }
 0x143   : > { %v1998_v1 = vsel %vm12663_vm8, %v1996_v54, %v1997_v43 }
 0x144   : > { %v1842_v36 = vpop.f32.mrf.mxu1  ;;  %v2870_v11 = vrot.slane %v2869_v32, 4  ;;  %v3303_v32 = vld [vmem:[#allocation2 + $0x78] sm:$0xe]  ;;  %v2082_v37 = vunpack.c.l.b16 %v1998_v1 }
 0x145   : > { %v10752_v0 = vrot.slane %v3303_v32, 9  ;;  %v11742_v32 = vld [vmem:[#allocation2 + $0x78] sm:$0xff] }
 0x146   : > { %v2875_v40 = vsel %vm12318_vm5, %v2870_v11, %v2874_v22  ;;  %v2888_v11 = vrot.slane %v2886_v42, 5 }
 0x147   : > { %2539 = vmatmul.bf16.gmra.mxu3 %v11741_v31  ;;  %v3423_v31 = vrot.slane %v2640_v6, 5 }
 0x148   : > { %v1607_v9 = vpop.f32.mrf.mxu0 }
 0x149   : > { %v12899_v8 = vadd.f32 %v1840_v45, %v1607_v9  ;;  %2220 = vmatmul.bf16.gmra.mxu2 %v2104_v19  ;;  %v1995_v45 = vsel %vm12663_vm8, %v10527_v38, %v1994_v59  ;;  %v2880_v19 = vshll.u32 %v2639_v30, 16  ;;  %v3425_v59 = vrot.slane %v3423_v31, 4 }
 0x14a   : > { %v12901_v39 = vpop.f32.mrf.mxu3  ;;  %v2081_v54 = vunpack.c.l.b16 %v1995_v45 }
 0x14b   : > { %3216 = vmatmul.bf16.gmra.mxu0 %v3100_v24  ;;  %v2865_v24 = vsel %vm12318_vm5, %v2860_v60, %v2864_v12  ;;  %v3078_v12 = vunpack.c.l.b16 %v2875_v40  ;;  %v2879_v60 = vrot.slane %v2877_v63, 4 }
 0x14c   : > { %v1647_v10 = vpop.f32.mrf.mxu2  ;;  %v12916_v43 = vpop.f32.mrf.mxu1  ;;  %v3077_v30 = vunpack.c.l.b16 %v2865_v24  ;;  %v2105_v1 = vpack.c.b16 %v2082_v37, %v2081_v54  ;;  %v12009_v24 = vld [vmem:[#allocation2 + $0x70] sm:$0xf] }
 0x14d   : > { %v12904_v9 = vadd.f32 %v12876_v46, %v1647_v10  ;;  %v2890_v46 = vshrl.u32 %v2640_v6, 16  ;;  %v2882_v10 = vrot.slane %v2880_v19, 5  ;;  %v3424_v6 = vsel %vm12663_vm8, %v10752_v0, %v3423_v31  ;;  %v1894_v19 = vld [vmem:[#allocation2 + $0x6c] sm:$0xe] }
 0x14e   : > { %v2001_v40 = vrot.slane %v12009_v24, 5  ;;  %v3101_v63 = vpack.c.b16 %v3078_v12, %v3077_v30  ;;  %v3505_v56 = vunpack.c.l.b16 %v3424_v6  ;;  %v10528_v31 = vrot.slane %v1894_v19, 9  ;;  %v2642_v12 = vld [vmem:[#allocation2 + $0x84] sm:$0xf]  ;;  %v2643_v6 = vld [vmem:[#allocation2 + $0x88] sm:$0xf] }
 0x14f   : > { %16008 = vst [vmem:[#allocation23_spill] sm:$0xff] %v12904_v9  ;;  %3647 = vmatmul.bf16.gmra.mxu1 %v3527_v49  ;;  %v2892_v22 = vrot.slane %v2890_v46, 4  ;;  %v2883_v42 = vor.u32 %v2882_v10, %v2879_v60  ;;  %v11799_v60 = vld [vmem:[%s15978_s1 + $0x1d0] sm:$0xff]  ;;  %v2904_v24 = vshll.u32 %v2642_v12, 16 }
 0x150   : > { %v1609_v21 = vpop.f32.mrf.mxu0  ;;  %v2003_v0 = vrot.slane %v2001_v40, 4  ;;  %4601 = vmatpush.bf16.msra.mxu3 %v11799_v60 }
 0x151   : > { %v12914_v38 = vadd.f32 %v1842_v36, %v1609_v21  ;;  %v3427_v36 = vsel %vm12663_vm8, %v3425_v59, %v3426_v23  ;;  %v2893_v46 = vor.u32 %v2892_v22, %v2888_v11  ;;  %v2896_v21 = vshll.u32 %v2641_v20, 16  ;;  %v12010_v59 = vld [vmem:[#allocation2 + $0x74] sm:$0x1] }
 0x152   : > { %v12918_v9 = vpop.f32.mrf.mxu3  ;;  %v3506_v44 = vunpack.c.l.b16 %v3427_v36  ;;  %v2004_v23 = vrot.slane %v12010_v59, 5  ;;  %v11791_v20 = vld [vmem:[%s15978_s1 + $0x190] sm:$0xff] }
 0x153   : > { %v2894_v54 = vrot.slane %v2893_v46, 4  ;;  %v2898_v37 = vrot.slane %v2896_v21, 5  ;;  %3919 = vmatpush.bf16.msra.mxu2 %v11791_v20  ;;  %v2910_v46 = vshll.u32 %v2643_v6, 16  ;;  %v3304_v21 = vld [vmem:[#allocation2 + $0x84] sm:$0xe] }
 0x154   : > { %v1649_v49 = vpop.f32.mrf.mxu2  ;;  %v3528_v30 = vpack.c.b16 %v3506_v44, %v3505_v56  ;;  %v2005_v44 = vsel %vm12663_vm8, %v2003_v0, %v2004_v23  ;;  %v10753_v0 = vrot.slane %v3304_v21, 9 }
 0x155   : > { %v12925_v45 = vadd.f32 %v12893_v48, %v1649_v49  ;;  %v2884_v48 = vrot.slane %v2883_v42, 4  ;;  %v12927_v49 = vpop.f32.mrf.mxu1  ;;  %v2899_v42 = vsel %vm12318_vm5, %v2894_v54, %v2898_v37  ;;  %v2912_v37 = vrot.slane %v2910_v46, 5 }
 0x157   : > { %16009 = vst [vmem:[#allocation24_spill] sm:$0xff] %v12925_v45  ;;  %2544 = vmatmul.bf16.gmra.mxu3 %v11742_v32  ;;  %v2889_v56 = vsel %vm12318_vm5, %v2884_v48, %v2888_v11  ;;  %v2901_v32 = vshrl.u32 %v2642_v12, 16  ;;  %v2084_v11 = vunpack.c.l.b16 %v2005_v44  ;;  %v3080_v12 = vunpack.c.l.b16 %v2899_v42  ;;  %v1895_v42 = vld [vmem:[#allocation2 + $0x78] sm:$0xe] }
 0x158   : > { %v3182_v4 = vpop.f32.mrf.mxu0  ;;  %v3079_v48 = vunpack.c.l.b16 %v2889_v56  ;;  %v2906_v45 = vrot.slane %v2904_v24, 5 }
 0x159   : > { %2225 = vmatmul.bf16.gmra.mxu2 %v2105_v1  ;;  %v2002_v1 = vsel %vm12663_vm8, %v10528_v31, %v2001_v40  ;;  %v2914_v40 = vshrl.u32 %v2643_v6, 16 }
 0x15a   : > { %v12935_v22 = vpop.f32.mrf.mxu3  ;;  %v2083_v60 = vunpack.c.l.b16 %v2002_v1 }
 0x15b   : > { %3221 = vmatmul.bf16.gmra.mxu0 %v3101_v63  ;;  %v3430_v63 = vrot.slane %v2643_v6, 5  ;;  %v11807_v6 = vld [vmem:[%s15978_s1 + $0x210] sm:$0xff] }
 0x15c   : > { %v2186_v10 = vpop.f32.mrf.mxu2  ;;  %5027 = vmatpush.bf16.msra.mxu0 %v11807_v6  ;;  %v2646_v6 = vld [vmem:[#allocation2 + $0x94] sm:$0xf] }
 0x15d   : > { %v2266_v36 = vadd.f32 %v2186_v10, %v12657_v62  ;;  %v2644_v62 = vld [vmem:[#allocation2 + $0x8c] sm:$0x1]  ;;  %v3432_v59 = vrot.slane %v3430_v63, 4  ;;  %v2903_v10 = vrot.slane %v2901_v32, 4  ;;  %v3431_v1 = vsel %vm12663_vm8, %v10753_v0, %v3430_v63  ;;  %v12011_v32 = vld [vmem:[#allocation2 + $0x7c] sm:$0xf] }
 0x15e   : > { %v3433_v23 = vrot.slane %v2644_v62, 5  ;;  %v2008_v24 = vrot.slane %v12011_v32, 5  ;;  %v2934_v32 = vshll.u32 %v2646_v6, 16 }
 0x15f   : > { %v2580_v19 = vadd.f32 %v12901_v39, %v2266_v36  ;;  %3652 = vmatmul.bf16.gmra.mxu1 %v3528_v30  ;;  %v1808_v39 = vadd.f32 %v12641_v47, %v12682_v27  ;;  %v2916_v30 = vrot.slane %v2914_v40, 4  ;;  %v2106_v47 = vpack.c.b16 %v2084_v11, %v2083_v60  ;;  %v11743_v27 = vld [vmem:[#allocation2 + $0x84] sm:$0xff]  ;;  %v12012_v60 = vld [vmem:[#allocation2 + $0x80] sm:$0x1] }
 0x160   : > { %v3184_v31 = vpop.f32.mrf.mxu0  ;;  %v3434_v44 = vsel %vm12663_vm8, %v3432_v59, %v3433_v23  ;;  %v2907_v46 = vor.u32 %v2906_v45, %v2903_v10  ;;  %v2920_v40 = vshll.u32 %v2644_v62, 16  ;;  %v10529_v59 = vrot.slane %v1895_v42, 9 }
 0x161   : > { %v3262_v20 = vadd.f32 %v3182_v4, %v2580_v19  ;;  %v3102_v19 = vpack.c.b16 %v3080_v12, %v3079_v48  ;;  %v3508_v5 = vunpack.c.l.b16 %v3434_v44  ;;  %v2010_v23 = vrot.slane %v2008_v24, 4 }
 0x162   : > { %v12955_v4 = vpop.f32.mrf.mxu3  ;;  %v2011_v11 = vrot.slane %v12012_v60, 5  ;;  %v2922_v62 = vrot.slane %v2920_v40, 5 }
 0x163   : > { %v12950_v54 = vadd.f32 %v12916_v43, %v3262_v20  ;;  %v3613_v43 = vpop.f32.mrf.mxu1  ;;  %v2917_v20 = vor.u32 %v2916_v30, %v2912_v37 }
 0x164   : > { %v2188_v36 = vpop.f32.mrf.mxu2 }
 0x165   : > { %16010 = vst [vmem:[#allocation25_spill] sm:$0xff] %v12950_v54  ;;  %v2267_v56 = vadd.f32 %v2188_v36, %v1808_v39  ;;  %v3507_v54 = vunpack.c.l.b16 %v3431_v1  ;;  %v2908_v39 = vrot.slane %v2907_v46, 4  ;;  %v2918_v45 = vrot.slane %v2917_v20, 4 }
 0x166   : > { %v2009_v36 = vsel %vm12663_vm8, %v10529_v59, %v2008_v24  ;;  %v2012_v1 = vsel %vm12663_vm8, %v2010_v23, %v2011_v11  ;;  %v3305_v24 = vld [vmem:[#allocation2 + $0x90] sm:$0xe]  ;;  %v1813_v11 = vadd.f32 %v12695_v53, %v12707_v26 }
 0x167   : > { %v2581_v21 = vadd.f32 %v12918_v9, %v2267_v56  ;;  %2549 = vmatmul.bf16.gmra.mxu3 %v11743_v27  ;;  %v3529_v12 = vpack.c.b16 %v3508_v5, %v3507_v54  ;;  %v2645_v9 = vld [vmem:[#allocation2 + $0x90] sm:$0xf]  ;;  %v2923_v54 = vsel %vm12318_vm5, %v2918_v45, %v2922_v62  ;;  %v10754_v46 = vrot.slane %v3305_v24, 9  ;;  %v1896_v45 = vld [vmem:[#allocation2 + $0x84] sm:$0xe] }
 0x168   : > { %v3187_v63 = vpop.f32.mrf.mxu0  ;;  %v2925_v44 = vshrl.u32 %v2645_v9, 16  ;;  %v2928_v56 = vshll.u32 %v2645_v9, 16  ;;  %v3082_v23 = vunpack.c.l.b16 %v2923_v54  ;;  %v12981_v62 = vrot.slane %v2934_v32, 5  ;;  %v11744_v53 = vld [vmem:[#allocation2 + $0x90] sm:$0xff] }
 0x169   : > { %2230 = vmatmul.bf16.gmra.mxu2 %v2106_v47  ;;  %v3263_v0 = vadd.f32 %v3184_v31, %v2581_v21  ;;  %v3437_v47 = vrot.slane %v2646_v6, 5 }
 0x16a   : > { %v12965_v30 = vpop.f32.mrf.mxu3  ;;  %v2927_v60 = vrot.slane %v2925_v44, 4 }
 0x16b   : > { %3226 = vmatmul.bf16.gmra.mxu0 %v3102_v19  ;;  %v12963_v48 = vadd.f32 %v12927_v49, %v3263_v0  ;;  %v2913_v49 = vsel %vm12318_vm5, %v2908_v39, %v2912_v37  ;;  %v3615_v27 = vpop.f32.mrf.mxu1  ;;  %v2938_v19 = vshrl.u32 %v2646_v6, 16  ;;  %v3439_v40 = vrot.slane %v3437_v47, 4  ;;  %v12013_v6 = vld [vmem:[#allocation2 + $0x88] sm:$0xf] }
 0x16c   : > { %v2191_v10 = vpop.f32.mrf.mxu2  ;;  %v2085_v37 = vunpack.c.l.b16 %v2009_v36  ;;  %v2086_v0 = vunpack.c.l.b16 %v2012_v1  ;;  %v3081_v59 = vunpack.c.l.b16 %v2913_v49 }
 0x16d   : > { %v2268_v31 = vadd.f32 %v2191_v10, %v12699_v51  ;;  %v2647_v51 = vld [vmem:[#allocation2 + $0x98] sm:$0x1] }
 0x16e   : > { %v3440_v21 = vrot.slane %v2647_v51, 5  ;;  %v2107_v49 = vpack.c.b16 %v2086_v0, %v2085_v37  ;;  %v3103_v26 = vpack.c.b16 %v3082_v23, %v3081_v59  ;;  %v2649_v59 = vld [vmem:[#allocation2 + $0xa0] sm:$0xf] }
 0x16f   : > { %v2582_v5 = vadd.f32 %v12935_v22, %v2268_v31  ;;  %3657 = vmatmul.bf16.gmra.mxu1 %v3529_v12  ;;  %v2930_v22 = vrot.slane %v2928_v56, 5  ;;  %v2940_v12 = vrot.slane %v2938_v19, 4  ;;  %v3438_v31 = vsel %vm12663_vm8, %v10754_v46, %v3437_v47 }
 0x170   : > { %v3189_v42 = vpop.f32.mrf.mxu0  ;;  %v3441_v36 = vsel %vm12663_vm8, %v3439_v40, %v3440_v21  ;;  %v2944_v56 = vshll.u32 %v2647_v51, 16  ;;  %v3509_v32 = vunpack.c.l.b16 %v3438_v31  ;;  %v2648_v21 = vld [vmem:[#allocation2 + $0x9c] sm:$0xf]  ;;  %v2958_v31 = vshll.u32 %v2649_v59, 16 }
 0x171   : > { %v3264_v20 = vadd.f32 %v3187_v63, %v2582_v5  ;;  %v2015_v63 = vrot.slane %v12013_v6, 5  ;;  %v2931_v44 = vor.u32 %v2930_v22, %v2927_v60  ;;  %v2941_v54 = vor.u32 %v2940_v12, %v12981_v62  ;;  %v12014_v6 = vld [vmem:[#allocation2 + $0x8c] sm:$0x1] }
 0x172   : > { %v12983_v10 = vpop.f32.mrf.mxu3  ;;  %v3510_v19 = vunpack.c.l.b16 %v3441_v36  ;;  %v2018_v47 = vrot.slane %v12014_v6, 5  ;;  %v2946_v0 = vrot.slane %v2944_v56, 5  ;;  %v11790_v22 = vld [vmem:[%s15978_s1 + $0x188] sm:$0xff]  ;;  %v2949_v12 = vshrl.u32 %v2648_v21, 16  ;;  %v2650_v56 = vld [vmem:[#allocation2 + $0xa4] sm:$0x1] }
 0x173   : > { %v12979_v39 = vadd.f32 %v3613_v43, %v3264_v20  ;;  %v10530_v43 = vrot.slane %v1896_v45, 9  ;;  %v2017_v20 = vrot.slane %v2015_v63, 4  ;;  %v3618_v40 = vpop.f32.mrf.mxu1  ;;  %v2932_v37 = vrot.slane %v2931_v44, 4  ;;  %3920 = vmatpush.bf16.msra.mxu2 %v11790_v22  ;;  %v12015_v22 = vld [vmem:[#allocation2 + $0x94] sm:$0xf] }
 0x174   : > { %v2193_v9 = vpop.f32.mrf.mxu2  ;;  %v2942_v23 = vrot.slane %v2941_v54, 4  ;;  %v3530_v60 = vpack.c.b16 %v3510_v19, %v3509_v32  ;;  %v2962_v36 = vshrl.u32 %v2649_v59, 16  ;;  %v2951_v54 = vrot.slane %v2949_v12, 4  ;;  %v1897_v12 = vld [vmem:[#allocation2 + $0x90] sm:$0xe] }
 0x175   : > { %v2269_v1 = vadd.f32 %v2193_v9, %v1813_v11 }
 0x176   : > { %v2947_v44 = vsel %vm12318_vm5, %v2942_v23, %v2946_v0 }
 0x177   : > { %v2583_v5 = vadd.f32 %v12955_v4, %v2269_v1  ;;  %2554 = vmatmul.bf16.gmra.mxu3 %v11744_v53  ;;  %v2016_v4 = vsel %vm12663_vm8, %v10530_v43, %v2015_v63  ;;  %v2952_v63 = vshll.u32 %v2648_v21, 16  ;;  %v2937_v43 = vsel %vm12318_vm5, %v2932_v37, %v12981_v62 }
 0x178   : > { %v3192_v24 = vpop.f32.mrf.mxu0  ;;  %v2087_v1 = vunpack.c.l.b16 %v2016_v4  ;;  %v1818_v62 = vadd.f32 %v12738_v16, %v12749_v3  ;;  %v3083_v37 = vunpack.c.l.b16 %v2937_v43  ;;  %v3084_v0 = vunpack.c.l.b16 %v2947_v44  ;;  %v11806_v4 = vld [vmem:[%s15978_s1 + $0x208] sm:$0xff]  ;;  %v281_v3 = vld [vmem:[%s12200_s10 + $0xf0] sm:$0xff] }
 0x179   : > { %2235 = vmatmul.bf16.gmra.mxu2 %v2107_v49  ;;  %v3265_v46 = vadd.f32 %v3189_v42, %v2583_v5  ;;  %v11798_v42 = vld [vmem:[%s15978_s1 + $0x1c8] sm:$0xff]  ;;  %v3444_v49 = vrot.slane %v2649_v59, 5  ;;  %5028 = vmatpush.bf16.msra.mxu0 %v11806_v4 }
 0x17a   : > { %v13001_v45 = vpop.f32.mrf.mxu3  ;;  %4602 = vmatpush.bf16.msra.mxu3 %v11798_v42  ;;  %v2022_v42 = vrot.slane %v12015_v22, 5 }
 0x17b   : > { %3231 = vmatmul.bf16.gmra.mxu0 %v3103_v26  ;;  %v12991_v51 = vadd.f32 %v3615_v27, %v3265_v46  ;;  %v2019_v27 = vsel %vm12663_vm8, %v2017_v20, %v2018_v47  ;;  %v3446_v19 = vrot.slane %v3444_v49, 4  ;;  %v3447_v20 = vrot.slane %v2650_v56, 5  ;;  %v3620_v59 = vpop.f32.mrf.mxu1 }
 0x17c   : > { %v2196_v11 = vpop.f32.mrf.mxu2  ;;  %v2088_v26 = vunpack.c.l.b16 %v2019_v27  ;;  %v2954_v47 = vrot.slane %v2952_v63, 5  ;;  %v2964_v46 = vrot.slane %v2962_v36, 4  ;;  %v11745_v27 = vld [vmem:[#allocation2 + $0x9c] sm:$0xff] }
 0x17d   : > { %v2270_v9 = vadd.f32 %v2196_v11, %v12732_v33  ;;  %v3306_v33 = vld [vmem:[#allocation2 + $0x9c] sm:$0xe]  ;;  %v3448_v16 = vsel %vm12663_vm8, %v3446_v19, %v3447_v20  ;;  %v2024_v19 = vrot.slane %v2022_v42, 4  ;;  %v12016_v20 = vld [vmem:[#allocation2 + $0x98] sm:$0x1] }
 0x17e   : > { %v10755_v32 = vrot.slane %v3306_v33, 9  ;;  %v282_v36 = vld [vmem:[%s12200_s10 + $0xf8] sm:$0xff]  ;;  %v3512_v44 = vunpack.c.l.b16 %v3448_v16 }
 0x17f   : > { %v2584_v53 = vadd.f32 %v12965_v30, %v2270_v9  ;;  %3662 = vmatmul.bf16.gmra.mxu1 %v3530_v60  ;;  %v13012_v30 = vrot.slane %v2958_v31, 5  ;;  %v2955_v9 = vor.u32 %v2954_v47, %v2951_v54  ;;  %v2968_v31 = vshll.u32 %v2650_v56, 16  ;;  %v11844_v54 = vld [vmem:[%s15980_s3 + $0x78] sm:$0xff]  ;;  %v2652_v47 = vld [vmem:[#allocation2 + $0xac] sm:$0xf] }
 0x180   : > { %v3194_v5 = vpop.f32.mrf.mxu0  ;;  %v3445_v11 = vsel %vm12663_vm8, %v10755_v32, %v3444_v49  ;;  %v2651_v49 = vld [vmem:[#allocation2 + $0xa8] sm:$0xf]  ;;  %v10531_v32 = vrot.slane %v1897_v12, 9  ;;  %v314_v56 = vpack.c.bf16 %v282_v36, %v282_v36  ;;  %6549 = vmatpush.bf16.msra.mxu1 %v11844_v54  ;;  %v2653_v36 = vld [vmem:[#allocation2 + $0xb0] sm:$0x1] }
 0x181   : > { %v3266_v6 = vadd.f32 %v3192_v24, %v2584_v53  ;;  %v2108_v24 = vpack.c.b16 %v2088_v26, %v2087_v1  ;;  %v2965_v63 = vor.u32 %v2964_v46, %v13012_v30  ;;  %v313_v1 = vpack.c.bf16 %v281_v3, %v281_v3 }
 0x182   : > { %v13021_v60 = vpop.f32.mrf.mxu3  ;;  %v3104_v26 = vpack.c.b16 %v3084_v0, %v3083_v37  ;;  %v3511_v43 = vunpack.c.l.b16 %v3445_v11  ;;  %v2970_v37 = vrot.slane %v2968_v31, 5  ;;  %v2973_v0 = vshrl.u32 %v2651_v49, 16 }
 0x183   : > { %v13016_v21 = vadd.f32 %v3618_v40, %v3266_v6  ;;  %v2025_v6 = vrot.slane %v12016_v20, 5  ;;  %v2976_v4 = vshll.u32 %v2651_v49, 16  ;;  %v13036_v22 = vunpack.c.l.b16 %v314_v56  ;;  %v3623_v31 = vpop.f32.mrf.mxu1  ;;  %v12017_v49 = vld [vmem:[#allocation2 + $0xa0] sm:$0xf] }
 0x184   : > { %v2198_v23 = vpop.f32.mrf.mxu2  ;;  %v3531_v16 = vpack.c.b16 %v3512_v44, %v3511_v43  ;;  %v2982_v3 = vshll.u32 %v2652_v47, 16  ;;  %v1898_v44 = vld [vmem:[#allocation2 + $0x9c] sm:$0xe] }
 0x185   : > { %v2271_v40 = vadd.f32 %v2198_v23, %v1818_v62  ;;  %v2956_v62 = vrot.slane %v2955_v9, 4  ;;  %v13034_v23 = vunpack.c.l.b16 %v313_v1  ;;  %v2026_v9 = vsel %vm12663_vm8, %v2024_v19, %v2025_v6 }
 0x186   : > { %v2975_v1 = vrot.slane %v2973_v0, 4  ;;  %v13055_v19 = vrot.slane %v2982_v3, 5  ;;  %v10532_v0 = vrot.slane %v1898_v44, 9  ;;  %v2654_v44 = vld [vmem:[#allocation2 + $0xb4] sm:$0xf] }
 0x187   : > { %v2585_v53 = vadd.f32 %v12983_v10, %v2271_v40  ;;  %2559 = vmatmul.bf16.gmra.mxu3 %v11745_v27  ;;  %v2966_v10 = vrot.slane %v2965_v63, 4  ;;  %v2961_v63 = vsel %vm12318_vm5, %v2956_v62, %v13012_v30  ;;  %v3307_v30 = vld [vmem:[#allocation2 + $0xa8] sm:$0xe] }
 0x188   : > { %v3197_v33 = vpop.f32.mrf.mxu0  ;;  %v10756_v54 = vrot.slane %v3307_v30, 9 }
 0x189   : > { %2240 = vmatmul.bf16.gmra.mxu2 %v2108_v24  ;;  %v3267_v46 = vadd.f32 %v3194_v5, %v2585_v53  ;;  %v2023_v5 = vsel %vm12663_vm8, %v10531_v32, %v2022_v42  ;;  %v2986_v24 = vshrl.u32 %v2652_v47, 16  ;;  %v2978_v53 = vrot.slane %v2976_v4, 5 }
 0x18a   : > { %v13040_v12 = vpop.f32.mrf.mxu3  ;;  %v474_v42 = vpack.c.b16 %v13036_v22, %v13034_v23  ;;  %v2089_v43 = vunpack.c.l.b16 %v2023_v5  ;;  %v2029_v32 = vrot.slane %v12017_v49, 5 }
 0x18b   : > { %3236 = vmatmul.bf16.gmra.mxu0 %v3104_v26  ;;  %v13038_v11 = vadd.f32 %v3620_v59, %v3267_v46  ;;  %v2971_v59 = vsel %vm12318_vm5, %v2966_v10, %v2970_v37  ;;  %v3451_v26 = vrot.slane %v2652_v47, 5  ;;  %v2988_v6 = vrot.slane %v2986_v24, 4 }
 0x18c   : > { %v2201_v40 = vpop.f32.mrf.mxu2  ;;  %v3454_v46 = vrot.slane %v2653_v36, 5  ;;  %v2090_v47 = vunpack.c.l.b16 %v2026_v9  ;;  %v3085_v10 = vunpack.c.l.b16 %v2961_v63  ;;  %v3086_v37 = vunpack.c.l.b16 %v2971_v59 }
 0x18d   : > { %v2272_v27 = vadd.f32 %v2201_v40, %v12763_v52  ;;  %v3453_v56 = vrot.slane %v3451_v26, 4  ;;  %v2979_v4 = vor.u32 %v2978_v53, %v2975_v1  ;;  %v581_v40 = vshrl.u32 %v474_v42, 16 }
 0x18e   : > { %v2031_v3 = vrot.slane %v2029_v32, 4  ;;  %v3452_v9 = vsel %vm12663_vm8, %v10756_v54, %v3451_v26  ;;  %v362_v59 = vpack.c.b16 %v13034_v23, %v13034_v23  ;;  %v13072_v1 = vsel %vm12663_vm8, %v10532_v0, %v2029_v32 }
 0x18f   : > { %v2586_v52 = vadd.f32 %v13001_v45, %v2272_v27  ;;  %3667 = vmatmul.bf16.gmra.mxu1 %v3531_v16  ;;  %v2992_v45 = vshll.u32 %v2653_v36, 16  ;;  %v1823_v16 = vadd.f32 %v12761_v13, %v12784_v29  ;;  %v12018_v27 = vld [vmem:[#allocation2 + $0xa4] sm:$0x1]  ;;  %v3455_v63 = vsel %vm12663_vm8, %v3453_v56, %v3454_v46  ;;  %v11746_v36 = vld [vmem:[#allocation2 + $0xa8] sm:$0xff]  ;;  %v13083_v56 = vld [vmem:[#allocation2 + $0xb8] sm:$0xf] }
 0x190   : > { %v3199_v20 = vpop.f32.mrf.mxu0  ;;  %v2032_v49 = vrot.slane %v12018_v27, 5  ;;  %v2109_v29 = vpack.c.b16 %v2090_v47, %v2089_v43  ;;  %v13074_v53 = vrot.slane %v2979_v4, 4  ;;  %v583_v26 = vrot.slane %v581_v40, 7 }
 0x191   : > { %v3268_v62 = vadd.f32 %v3197_v33, %v2586_v52  ;;  %v2989_v33 = vor.u32 %v2988_v6, %v13055_v19  ;;  %v13076_v52 = vrot.slane %v2992_v45, 5  ;;  %v3513_v23 = vunpack.c.l.b16 %v3452_v9 }
 0x192   : > { %v13061_v30 = vpop.f32.mrf.mxu3  ;;  %v13081_v54 = vsel %vm12663_vm8, %v2031_v3, %v2032_v49  ;;  %v3514_v43 = vunpack.c.l.b16 %v3455_v63  ;;  %v409_v47 = vshrl.u32 %v362_v59, 16  ;;  %v2997_v4 = vshrl.u32 %v2654_v44, 16 }
 0x193   : > { %v13059_v5 = vadd.f32 %v3623_v31, %v3268_v62  ;;  %v3105_v31 = vpack.c.b16 %v3086_v37, %v3085_v10  ;;  %v3625_v62 = vpop.f32.mrf.mxu1  ;;  %v2990_v32 = vrot.slane %v2989_v33, 4  ;;  %v584_v10 = vshll.u32 %v474_v42, 16 }
 0x194   : > { %v2203_v24 = vpop.f32.mrf.mxu2  ;;  %v634_v37 = vpack.c.b16 %v13036_v22, %v13036_v22  ;;  %v3000_v45 = vshll.u32 %v2654_v44, 16  ;;  %v3006_v40 = vshll.u32 %v13083_v56, 16  ;;  %v2092_v49 = vunpack.c.l.b16 %v13081_v54 }
 0x195   : > { %16011 = vst [vmem:[#allocation26_spill] sm:$0xff] %v13059_v5  ;;  %v2273_v13 = vadd.f32 %v2203_v24, %v1823_v16  ;;  %v586_v16 = vor.u32 %v584_v10, %v583_v26  ;;  %v2985_v22 = vsel %vm12318_vm5, %v13074_v53, %v13055_v19  ;;  %v3532_v42 = vpack.c.b16 %v3514_v43, %v3513_v23  ;;  %v11797_v24 = vld [vmem:[%s15978_s1 + $0x1c0] sm:$0xff]  ;;  %v2656_v23 = vld [vmem:[#allocation2 + $0xbc] sm:$0x1] }
 0x196   : > { %v696_v3 = vshll.u32 %v634_v37, 16  ;;  %v2995_v63 = vsel %vm12318_vm5, %v2990_v32, %v13076_v52  ;;  %v3010_v59 = vshrl.u32 %v13083_v56, 16  ;;  %4603 = vmatpush.bf16.msra.mxu3 %v11797_v24  ;;  %v3002_v53 = vrot.slane %v3000_v45, 5 }
 0x197   : > { %v2587_v6 = vadd.f32 %v13021_v60, %v2273_v13  ;;  %2564 = vmatmul.bf16.gmra.mxu3 %v11746_v36  ;;  %v2091_v60 = vunpack.c.l.b16 %v13072_v1  ;;  %v733_v19 = vsel %vm12227_vm2, %v409_v47, %v586_v16  ;;  %v13111_v44 = vrot.slane %v3006_v40, 5  ;;  %v12019_v40 = vld [vmem:[#allocation2 + $0xac] sm:$0xf] }
 0x198   : > { %v3202_v46 = vpop.f32.mrf.mxu0  ;;  %v698_v13 = vrot.slane %v696_v3, 3  ;;  %v827_v36 = vunpack.c.l.b16 %v733_v19  ;;  %v828_v1 = vunpack.c.h.b16 %v733_v19  ;;  %v3012_v10 = vrot.slane %v3010_v59, 4 }
 0x199   : > { %2245 = vmatmul.bf16.gmra.mxu2 %v2109_v29  ;;  %v3269_v0 = vadd.f32 %v3199_v20, %v2587_v6  ;;  %v11789_v20 = vld [vmem:[%s15978_s1 + $0x180] sm:$0xff]  ;;  %v3458_v6 = vrot.slane %v13083_v56, 5  ;;  %v2036_v56 = vrot.slane %v12019_v40, 5  ;;  %v2110_v3 = vpack.c.b16 %v2092_v49, %v2091_v60  ;;  %v11747_v49 = vld [vmem:[#allocation2 + $0xb4] sm:$0xff] }
 0x19a   : > { %v13102_v9 = vpop.f32.mrf.mxu3  ;;  %3921 = vmatpush.bf16.msra.mxu2 %v11789_v20  ;;  %v749_v52 = vsel %vm12227_vm2, %v583_v26, %v698_v13  ;;  %v875_v43 = vpack.c.b16 %v827_v36, %v827_v36  ;;  %v1899_v26 = vld [vmem:[#allocation2 + $0xa8] sm:$0xe]  ;;  %v3088_v20 = vunpack.c.l.b16 %v2995_v63  ;;  %v3016_v24 = vshll.u32 %v2656_v23, 16 }
 0x19b   : > { %3241 = vmatmul.bf16.gmra.mxu0 %v3105_v31  ;;  %v13089_v27 = vadd.f32 %v3625_v62, %v3269_v0  ;;  %v2999_v31 = vrot.slane %v2997_v4, 4  ;;  %v876_v62 = vpack.c.b16 %v828_v1, %v828_v1  ;;  %v829_v32 = vunpack.c.l.b16 %v749_v52 }
 0x19c   : > { %v2206_v33 = vpop.f32.mrf.mxu2  ;;  %v3460_v0 = vrot.slane %v3458_v6, 4  ;;  %v3461_v4 = vrot.slane %v2656_v23, 5  ;;  %972 = vst [vmem:[#allocation2 + $0xc0] sm:$0xf] %v875_v43  ;;  %v3013_v13 = vor.u32 %v3012_v10, %v13111_v44  ;;  %v2038_v63 = vrot.slane %v2036_v56, 4 }
 0x19d   : > { %16012 = vst [vmem:[#allocation27_spill] sm:$0xff] %v13089_v27  ;;  %v2274_v29 = vadd.f32 %v2206_v33, %v12792_v41  ;;  %v3308_v41 = vld [vmem:[#allocation2 + $0xb4] sm:$0xe]  ;;  %v877_v16 = vpack.c.b16 %v829_v32, %v829_v32  ;;  %v11805_v33 = vld [vmem:[%s15978_s1 + $0x200] sm:$0xff]  ;;  %v3003_v19 = vor.u32 %v3002_v53, %v2999_v31  ;;  %v4035_v10 = vld [vmem:[#allocation2 + $0x18] sm:$0xf] }
 0x19e   : > { %v10757_v37 = vrot.slane %v3308_v41, 9  ;;  %973 = vst [vmem:[#allocation2 + $0xc4] sm:$0xf] %v876_v62  ;;  %5029 = vmatpush.bf16.msra.mxu0 %v11805_v33  ;;  %v3014_v43 = vrot.slane %v3013_v13, 4  ;;  %v3018_v62 = vrot.slane %v3016_v24, 5  ;;  %v4087_v24 = vshll.u32 %v4035_v10, 16 }
 0x19f   : > { %v2588_v54 = vadd.f32 %v13040_v12, %v2274_v29  ;;  %3672 = vmatmul.bf16.gmra.mxu1 %v3532_v42  ;;  %v1828_v12 = vadd.f32 %v12798_v15, %v12814_v34  ;;  %v3087_v42 = vunpack.c.l.b16 %v2985_v22  ;;  %974 = vst [vmem:[#allocation2 + $0xc8] sm:$0x1] %v877_v16  ;;  %v3462_v34 = vsel %vm12663_vm8, %v3460_v0, %v3461_v4  ;;  %v12020_v29 = vld [vmem:[#allocation2 + $0xb0] sm:$0x1] }
 0x1a0   : > { %v3204_v47 = vpop.f32.mrf.mxu0  ;;  %v3459_v15 = vsel %vm12663_vm8, %v10757_v37, %v3458_v6  ;;  %v10533_v22 = vrot.slane %v1899_v26, 9  ;;  %v2039_v36 = vrot.slane %v12020_v29, 5  ;;  %v3516_v31 = vunpack.c.l.b16 %v3462_v34  ;;  %v11843_v6 = vld [vmem:[%s15980_s3 + $0x70] sm:$0xff]  ;;  %v13141_v37 = vld [vmem:[#allocation2 + $0x1c] sm:$0xf] }
 0x1a1   : > { %v13117_v45 = vadd.f32 %v3202_v46, %v2588_v54  ;;  %v3106_v52 = vpack.c.b16 %v3088_v20, %v3087_v42  ;;  %v3515_v54 = vunpack.c.l.b16 %v3459_v15  ;;  %v3004_v23 = vrot.slane %v3003_v19, 4  ;;  %6550 = vmatpush.bf16.msra.mxu1 %v11843_v6 }
 0x1a2   : > { %v13124_v59 = vpop.f32.mrf.mxu3  ;;  %v2037_v32 = vsel %vm12663_vm8, %v10533_v22, %v2036_v56  ;;  %v3019_v56 = vsel %vm12318_vm5, %v3014_v43, %v3018_v62  ;;  %v4084_v20 = vshrl.u32 %v4035_v10, 16  ;;  %v4093_v33 = vshll.u32 %v13141_v37, 16 }
 0x1a3   : > { %v3533_v0 = vpack.c.b16 %v3516_v31, %v3515_v54  ;;  %v2657_v4 = vld [vmem:[#allocation2 + $0xc0] sm:$0xf]  ;;  %v3009_v26 = vsel %vm12318_vm5, %v3004_v23, %v13111_v44  ;;  %v4097_v13 = vshrl.u32 %v13141_v37, 16  ;;  %v1900_v31 = vld [vmem:[#allocation2 + $0xb4] sm:$0xe]  ;;  %v4089_v43 = vrot.slane %v4087_v24, 5 }
 0x1a4   : > { %v2208_v46 = vpop.f32.mrf.mxu2  ;;  %v3024_v19 = vshll.u32 %v2657_v4, 16  ;;  %v4086_v23 = vrot.slane %v4084_v20, 4  ;;  %v1833_v10 = vadd.f32 %v12837_v58, %v12846_v35 }
 0x1a5   : > { %v2275_v60 = vadd.f32 %v2208_v46, %v1828_v12  ;;  %v2093_v12 = vunpack.c.l.b16 %v2037_v32  ;;  %v3021_v46 = vshrl.u32 %v2657_v4, 16  ;;  %v13156_v32 = vld [vmem:[#allocation2 + $0x20] sm:$0x1] }
 0x1a6   : > { %v2659_v44 = vld [vmem:[#allocation2 + $0xc8] sm:$0x1]  ;;  %v3026_v6 = vrot.slane %v3024_v19, 5  ;;  %v11748_v24 = vld [vmem:[#allocation2 + $0xc0] sm:$0xff]  ;;  %v4103_v35 = vshll.u32 %v13156_v32, 16 }
 0x1a7   : > { %v2589_v1 = vadd.f32 %v13061_v30, %v2275_v60  ;;  %2569 = vmatmul.bf16.gmra.mxu3 %v11747_v49  ;;  %v2040_v30 = vsel %vm12663_vm8, %v2038_v63, %v2039_v36  ;;  %v3089_v60 = vunpack.c.l.b16 %v3009_v26  ;;  %v3309_v63 = vld [vmem:[#allocation2 + $0xc0] sm:$0xe]  ;;  %v3090_v36 = vunpack.c.l.b16 %v3019_v56 }
 0x1a8   : > { %v3207_v53 = vpop.f32.mrf.mxu0  ;;  %v3023_v62 = vrot.slane %v3021_v46, 4  ;;  %v12021_v46 = vld [vmem:[#allocation2 + $0xb8] sm:$0xf] }
 0x1a9   : > { %2250 = vmatmul.bf16.gmra.mxu2 %v2110_v3  ;;  %v13135_v41 = vadd.f32 %v3204_v47, %v2589_v1  ;;  %v2094_v47 = vunpack.c.l.b16 %v2040_v30  ;;  %v2658_v3 = vld [vmem:[#allocation2 + $0xc4] sm:$0xf]  ;;  %v4099_v30 = vrot.slane %v4097_v13, 4  ;;  %v3107_v56 = vpack.c.b16 %v3090_v36, %v3089_v60 }
 0x1aa   : > { %v13143_v16 = vpop.f32.mrf.mxu3  ;;  %v3465_v15 = vrot.slane %v2658_v3, 5  ;;  %v3030_v49 = vshll.u32 %v2658_v3, 16  ;;  %v3034_v22 = vshrl.u32 %v2658_v3, 16  ;;  %v2043_v19 = vrot.slane %v12021_v46, 5 }
 0x1ab   : > { %3246 = vmatmul.bf16.gmra.mxu0 %v3106_v52  ;;  %v3468_v52 = vrot.slane %v2659_v44, 5  ;;  %v2111_v26 = vpack.c.b16 %v2094_v47, %v2093_v12  ;;  %v3027_v58 = vor.u32 %v3026_v6, %v3023_v62  ;;  %v3040_v13 = vshll.u32 %v2659_v44, 16 }
 0x1ac   : > { %v2211_v40 = vpop.f32.mrf.mxu2  ;;  %v3467_v1 = vrot.slane %v3465_v15, 4  ;;  %v3036_v4 = vrot.slane %v3034_v22, 4  ;;  %v2045_v36 = vrot.slane %v2043_v19, 4 }
 0x1ad   : > { %v2276_v42 = vadd.f32 %v2211_v40, %v12835_v2  ;;  %v10758_v2 = vrot.slane %v3309_v63, 9  ;;  %v3028_v62 = vrot.slane %v3027_v58, 4 }
 0x1af   : > { %v2590_v34 = vadd.f32 %v13102_v9, %v2276_v42  ;;  %3677 = vmatmul.bf16.gmra.mxu1 %v3533_v0  ;;  %v13158_v9 = vrot.slane %v4093_v33, 5  ;;  %v13162_v0 = vrot.slane %v3030_v49, 5  ;;  %v3466_v3 = vsel %vm12663_vm8, %v10758_v2, %v3465_v15  ;;  %v12022_v2 = vld [vmem:[#allocation2 + $0xbc] sm:$0x1] }
 0x1b0   : > { %v3209_v29 = vpop.f32.mrf.mxu0  ;;  %v3469_v42 = vsel %vm12663_vm8, %v3467_v1, %v3468_v52  ;;  %v10534_v33 = vrot.slane %v1900_v31, 9  ;;  %v3517_v15 = vunpack.c.l.b16 %v3466_v3  ;;  %v2046_v1 = vrot.slane %v12022_v2, 5  ;;  %v4038_v52 = vld [vmem:[#allocation2 + $0x24] sm:$0xf]  ;;  %v13176_v31 = vld [vmem:[#allocation2 + $0x28] sm:$0xf] }
 0x1b1   : > { %v13154_v54 = vadd.f32 %v3207_v53, %v2590_v34  ;;  %v4090_v34 = vor.u32 %v4089_v43, %v4086_v23  ;;  %v4100_v12 = vor.u32 %v4099_v30, %v13158_v9  ;;  %v3037_v60 = vor.u32 %v3036_v4, %v13162_v0 }
 0x1b2   : > { %v13164_v53 = vpop.f32.mrf.mxu3  ;;  %v3518_v49 = vunpack.c.l.b16 %v3469_v42  ;;  %v2044_v44 = vsel %vm12663_vm8, %v10534_v33, %v2043_v19  ;;  %v4105_v43 = vrot.slane %v4103_v35, 5  ;;  %v3042_v30 = vrot.slane %v3040_v13, 5 }
 0x1b3   : > { %v4091_v23 = vrot.slane %v4090_v34, 4  ;;  %v3038_v6 = vrot.slane %v3037_v60, 4  ;;  %v4117_v3 = vshll.u32 %v13176_v31, 16  ;;  %v4121_v42 = vshrl.u32 %v13176_v31, 16 }
 0x1b4   : > { %v2213_v40 = vpop.f32.mrf.mxu2  ;;  %v2095_v19 = vunpack.c.l.b16 %v2044_v44  ;;  %v3033_v35 = vsel %vm12318_vm5, %v3028_v62, %v13162_v0 }
 0x1b5   : > { %v2277_v20 = vadd.f32 %v2213_v40, %v1833_v10  ;;  %v3534_v10 = vpack.c.b16 %v3518_v49, %v3517_v15  ;;  %v4108_v40 = vshrl.u32 %v4038_v52, 16  ;;  %v3091_v0 = vunpack.c.l.b16 %v3033_v35 }
 0x1b7   : > { %v2591_v47 = vadd.f32 %v13124_v59, %v2277_v20  ;;  %2574 = vmatmul.bf16.gmra.mxu3 %v11748_v24  ;;  %v4101_v59 = vrot.slane %v4100_v12, 4  ;;  %v2047_v24 = vsel %vm12663_vm8, %v2045_v36, %v2046_v1  ;;  %v4110_v13 = vrot.slane %v4108_v40, 4 }
 0x1b8   : > { %v3212_v22 = vpop.f32.mrf.mxu0  ;;  %v4119_v12 = vrot.slane %v4117_v3, 5  ;;  %v2096_v60 = vunpack.c.l.b16 %v2047_v24  ;;  %v1838_v36 = vadd.f32 %v12864_v14, %v12882_v55  ;;  %v4783_v40 = vrot.slane %v13141_v37, 5  ;;  %v11842_v3 = vld [vmem:[%s15980_s3 + $0x68] sm:$0xff]  ;;  %v13212_v24 = vld [vmem:[#allocation2 + $0x34] sm:$0xf] }
 0x1b9   : > { %2255 = vmatmul.bf16.gmra.mxu2 %v2111_v26  ;;  %v13174_v63 = vadd.f32 %v3209_v29, %v2591_v47  ;;  %v4111_v26 = vshll.u32 %v4038_v52, 16  ;;  %v4106_v33 = vsel %vm12318_vm5, %v4101_v59, %v4105_v43  ;;  %v4123_v47 = vrot.slane %v4121_v42, 4  ;;  %6551 = vmatpush.bf16.msra.mxu1 %v11842_v3 }
 0x1ba   : > { %v13180_v4 = vpop.f32.mrf.mxu3  ;;  %v4485_v49 = vunpack.c.l.b16 %v4106_v33  ;;  %v2112_v62 = vpack.c.b16 %v2096_v60, %v2095_v19  ;;  %v4790_v3 = vrot.slane %v13176_v31, 5 }
 0x1bb   : > { %3251 = vmatmul.bf16.gmra.mxu0 %v3107_v56  ;;  %v4096_v56 = vsel %vm12318_vm5, %v4091_v23, %v13158_v9  ;;  %v4113_v34 = vrot.slane %v4111_v26, 5  ;;  %v4124_v23 = vor.u32 %v4123_v47, %v4119_v12  ;;  %v4145_v47 = vshrl.u32 %v13212_v24, 16 }
 0x1bc   : > { %v2216_v29 = vpop.f32.mrf.mxu2  ;;  %v4484_v15 = vunpack.c.l.b16 %v4096_v56  ;;  %v4786_v56 = vrot.slane %v13156_v32, 5 }
 0x1bd   : > { %v2278_v20 = vadd.f32 %v2216_v29, %v12858_v7  ;;  %v3043_v7 = vsel %vm12318_vm5, %v3038_v6, %v3042_v30  ;;  %v4114_v44 = vor.u32 %v4113_v34, %v4110_v13  ;;  %v4125_v14 = vrot.slane %v4124_v23, 4  ;;  %v13229_v23 = vld [vmem:[#allocation2 + $0x38] sm:$0x1] }
 0x1be   : > { %v3092_v2 = vunpack.c.l.b16 %v3043_v7  ;;  %v4141_v34 = vshll.u32 %v13212_v24, 16 }
 0x1bf   : > { %v2592_v46 = vadd.f32 %v13143_v16, %v2278_v20  ;;  %3682 = vmatmul.bf16.gmra.mxu1 %v3534_v10  ;;  %v13200_v16 = vld [vmem:[#allocation2 + $0x2c] sm:$0x1]  ;;  %v4717_v10 = vld [vmem:[#allocation2 + $0x18] sm:$0xe]  ;;  %v4115_v26 = vrot.slane %v4114_v44, 4  ;;  %v4147_v44 = vrot.slane %v4145_v47, 4 }
 0x1c0   : > { %v3214_v58 = vpop.f32.mrf.mxu0  ;;  %v4127_v59 = vshll.u32 %v13200_v16, 16  ;;  %v3108_v30 = vpack.c.b16 %v3092_v2, %v3091_v0  ;;  %v4041_v20 = vld [vmem:[#allocation2 + $0x30] sm:$0xf] }
 0x1c1   : > { %v13198_v9 = vadd.f32 %v3212_v22, %v2592_v46  ;;  %v4516_v22 = vpack.c.b16 %v4485_v49, %v4484_v15  ;;  %v4785_v46 = vrot.slane %v4783_v40, 4  ;;  %v4120_v19 = vsel %vm12318_vm5, %v4115_v26, %v4119_v12 }
 0x1c2   : > { %v2537_v52 = vpop.f32.mrf.mxu3  ;;  %v4129_v55 = vrot.slane %v4127_v59, 5  ;;  %v4132_v7 = vshrl.u32 %v4041_v20, 16  ;;  %v4135_v13 = vshll.u32 %v4041_v20, 16  ;;  %v4486_v49 = vunpack.c.l.b16 %v4120_v19  ;;  %v13236_v19 = vld [vmem:[#allocation2 + $0x40] sm:$0xf] }
 0x1c3   : > { %v4787_v12 = vsel %vm12663_vm8, %v4785_v46, %v4786_v56  ;;  %v4151_v26 = vshll.u32 %v13229_v23, 16 }
 0x1c4   : > { %v2218_v1 = vpop.f32.mrf.mxu2  ;;  %v4130_v35 = vsel %vm12318_vm5, %v4125_v14, %v4129_v55  ;;  %v4134_v0 = vrot.slane %v4132_v7, 4 }
 0x1c5   : > { %v2279_v43 = vadd.f32 %v2218_v1, %v1838_v36  ;;  %v4487_v36 = vunpack.c.l.b16 %v4130_v35  ;;  %v4143_v1 = vrot.slane %v4141_v34, 5  ;;  %v4153_v46 = vrot.slane %v4151_v26, 5 }
 0x1c7   : > { %v2593_v6 = vadd.f32 %v13164_v53, %v2279_v43  ;;  %4604 = vmatmul.bf16.vlgmr.msra.gmra.mxu3 %v4516_v22  ;;  %v10967_v53 = vrot.slane %v4717_v10, 9  ;;  %v4911_v43 = vunpack.c.l.b16 %v4787_v12  ;;  %v4517_v22 = vpack.c.b16 %v4487_v36, %v4486_v49 }
 0x1c8   : > { %v3217_v29 = vpop.f32.mrf.mxu0  ;;  %v4169_v12 = vshrl.u32 %v13236_v19, 16 }
 0x1c9   : > { %2260 = vmatmul.bf16.gmra.mxu2 %v2112_v62  ;;  %v13210_v42 = vadd.f32 %v3214_v58, %v2593_v6  ;;  %v4784_v32 = vsel %vm12663_vm8, %v10967_v53, %v4783_v40  ;;  %v4148_v40 = vor.u32 %v4147_v44, %v4143_v1  ;;  %v4718_v53 = vld [vmem:[#allocation2 + $0x24] sm:$0xe] }
 0x1ca   : > { %v2540_v33 = vpop.f32.mrf.mxu3  ;;  %v4910_v59 = vunpack.c.l.b16 %v4784_v32 }
 0x1cb   : > { %3256 = vmatmul.bf16.gmra.mxu0 %v3108_v30  ;;  %v11773_v30 = vld [vmem:[#allocation2 + $0x18] sm:$0xff] }
 0x1cc   : > { %v2221_v37 = vpop.f32.mrf.mxu2 }
 0x1cd   : > { %v2280_v58 = vadd.f32 %v2221_v37, %v12899_v8  ;;  %v4137_v8 = vrot.slane %v4135_v13, 5  ;;  %v4149_v37 = vrot.slane %v4148_v40, 4  ;;  %v4793_v13 = vrot.slane %v13200_v16, 5 }
 0x1cf   : > { %v2594_v60 = vadd.f32 %v13180_v4, %v2280_v58  ;;  %v4138_v10 = vor.u32 %v4137_v8, %v4134_v0  ;;  %v4792_v58 = vrot.slane %v4790_v3, 4  ;;  %v4154_v47 = vsel %vm12318_vm5, %v4149_v37, %v4153_v46 }
 0x1d0   : > { %v3219_v15 = vpop.f32.mrf.mxu0  ;;  %v4797_v46 = vrot.slane %v13212_v24, 5 }
 0x1d1   : > { %v13227_v2 = vadd.f32 %v3217_v29, %v2594_v60  ;;  %v4942_v29 = vpack.c.b16 %v4911_v43, %v4910_v59  ;;  %v4139_v56 = vrot.slane %v4138_v10, 4 }
 0x1d2   : > { %v2542_v62 = vpop.f32.mrf.mxu3  ;;  %v4799_v24 = vrot.slane %v4797_v46, 4 }
 0x1d3   : > { %v4144_v34 = vsel %vm12318_vm5, %v4139_v56, %v4143_v1  ;;  %v4489_v1 = vunpack.c.l.b16 %v4154_v47  ;;  %v4800_v47 = vrot.slane %v13229_v23, 5 }
 0x1d4   : > { %v2223_v4 = vpop.f32.mrf.mxu2  ;;  %v4488_v8 = vunpack.c.l.b16 %v4144_v34 }
 0x1d5   : > { %v2281_v6 = vadd.f32 %v2223_v4, %v12914_v38  ;;  %v4044_v38 = vld [vmem:[#allocation2 + $0x3c] sm:$0xf]  ;;  %v4171_v4 = vrot.slane %v4169_v12, 4 }
 0x1d6   : > { %v4156_v60 = vshrl.u32 %v4044_v38, 16  ;;  %v4159_v32 = vshll.u32 %v4044_v38, 16 }
 0x1d7   : > { %v2595_v14 = vadd.f32 %v2537_v52, %v2281_v6  ;;  %4609 = vmatmul.bf16.gmra.mxu3 %v4517_v22  ;;  %v10968_v52 = vrot.slane %v4718_v53, 9  ;;  %v1848_v22 = vadd.f32 %v12654_v61, %v12693_v25  ;;  %v11841_v61 = vld [vmem:[%s15980_s3 + $0x60] sm:$0xff] }
 0x1d8   : > { %v3222_v55 = vpop.f32.mrf.mxu0  ;;  %v4158_v44 = vrot.slane %v4156_v60, 4  ;;  %v4161_v59 = vrot.slane %v4159_v32, 5  ;;  %6552 = vmatpush.bf16.msra.mxu1 %v11841_v61 }
 0x1d9   : > { %3922 = vmatmul.bf16.vlgmr.msra.gmra.mxu2 %v11773_v30  ;;  %v13234_v20 = vadd.f32 %v3219_v15, %v2595_v14  ;;  %v4165_v15 = vshll.u32 %v13236_v19, 16  ;;  %v4791_v0 = vsel %vm12663_vm8, %v10968_v52, %v4790_v3  ;;  %v13256_v30 = vld [vmem:[#allocation2 + $0x44] sm:$0x1]  ;;  %v4047_v52 = vld [vmem:[#allocation2 + $0x48] sm:$0xf] }
 0x1da   : > { %v13238_v7 = vpop.f32.mrf.mxu3  ;;  %v4912_v6 = vunpack.c.l.b16 %v4791_v0  ;;  %v11774_v14 = vld [vmem:[#allocation2 + $0x24] sm:$0xff]  ;;  %v4175_v53 = vshll.u32 %v13256_v30, 16  ;;  %v4183_v12 = vshll.u32 %v4047_v52, 16 }
 0x1db   : > { %5030 = vmatmul.bf16.vlgmr.msra.gmra.mxu0 %v4942_v29  ;;  %v4167_v43 = vrot.slane %v4165_v15, 5  ;;  %v4518_v29 = vpack.c.b16 %v4489_v1, %v4488_v8  ;;  %v4180_v15 = vshrl.u32 %v4047_v52, 16  ;;  %v11775_v52 = vld [vmem:[#allocation2 + $0x30] sm:$0xff] }
 0x1dc   : > { %v2226_v35 = vpop.f32.mrf.mxu2  ;;  %v4177_v34 = vrot.slane %v4175_v53, 5 }
 0x1dd   : > { %v2282_v31 = vadd.f32 %v2226_v35, %v12680_v57  ;;  %v4794_v57 = vsel %vm12663_vm8, %v4792_v58, %v4793_v13  ;;  %v4172_v3 = vor.u32 %v4171_v4, %v4167_v43  ;;  %v4719_v35 = vld [vmem:[#allocation2 + $0x30] sm:$0xe]  ;;  %v13265_v58 = vld [vmem:[#allocation2 + $0x4c] sm:$0xf]  ;;  %v4182_v4 = vrot.slane %v4180_v15, 4 }
 0x1df   : > { %v2596_v49 = vadd.f32 %v2540_v33, %v2282_v31  ;;  %v4913_v33 = vunpack.c.l.b16 %v4794_v57  ;;  %v4173_v31 = vrot.slane %v4172_v3, 4 }
 0x1e0   : > { %v3224_v36 = vpop.f32.mrf.mxu0 }
 0x1e1   : > { %v13252_v16 = vadd.f32 %v3222_v55, %v2596_v49  ;;  %v4162_v55 = vor.u32 %v4161_v59, %v4158_v44  ;;  %v4943_v37 = vpack.c.b16 %v4913_v33, %v4912_v6  ;;  %v4189_v49 = vshll.u32 %v13265_v58, 16 }
 0x1e2   : > { %v2547_v40 = vpop.f32.mrf.mxu3  ;;  %v4178_v8 = vsel %vm12318_vm5, %v4173_v31, %v4177_v34  ;;  %v4801_v44 = vsel %vm12663_vm8, %v4799_v24, %v4800_v47  ;;  %v4804_v34 = vrot.slane %v13236_v19, 5  ;;  %v4720_v24 = vld [vmem:[#allocation2 + $0x3c] sm:$0xe] }
 0x1e3   : > { %v4163_v13 = vrot.slane %v4162_v55, 4  ;;  %v4191_v6 = vrot.slane %v4189_v49, 5  ;;  %v4915_v3 = vunpack.c.l.b16 %v4801_v44  ;;  %v4050_v49 = vld [vmem:[#allocation2 + $0x54] sm:$0xf] }
 0x1e4   : > { %v2228_v10 = vpop.f32.mrf.mxu2  ;;  %v4204_v44 = vshrl.u32 %v4050_v49, 16 }
 0x1e5   : > { %v2283_v26 = vadd.f32 %v2228_v10, %v1848_v22  ;;  %v4168_v57 = vsel %vm12318_vm5, %v4163_v13, %v4167_v43  ;;  %v4185_v22 = vrot.slane %v4183_v12, 5  ;;  %v4491_v43 = vunpack.c.l.b16 %v4178_v8 }
 0x1e6   : > { %v4490_v10 = vunpack.c.l.b16 %v4168_v57  ;;  %v4806_v57 = vrot.slane %v4804_v34, 4 }
 0x1e7   : > { %v2597_v56 = vadd.f32 %v2542_v62, %v2283_v26  ;;  %4614 = vmatmul.bf16.gmra.mxu3 %v4518_v29  ;;  %v10969_v62 = vrot.slane %v4719_v35, 9  ;;  %v13282_v26 = vld [vmem:[#allocation2 + $0x50] sm:$0x1] }
 0x1e8   : > { %v3227_v38 = vpop.f32.mrf.mxu0  ;;  %v16014_v29 = vld [vmem:[#allocation8_spill] sm:$0xff]  ;;  %v4199_v35 = vshll.u32 %v13282_v26, 16  ;;  %v4519_v13 = vpack.c.b16 %v4491_v43, %v4490_v10 }
 0x1e9   : > { %3927 = vmatmul.bf16.gmra.mxu2 %v11774_v14  ;;  %v13263_v25 = vadd.f32 %v3224_v36, %v2597_v56  ;;  %v4193_v36 = vshrl.u32 %v13265_v58, 16  ;;  %v4798_v23 = vsel %vm12663_vm8, %v10969_v62, %v4797_v46  ;;  %v16013_v14 = vld [vmem:[#allocation9_spill] sm:$0xff] }
 0x1ea   : > { %v2550_v32 = vpop.f32.mrf.mxu3  ;;  %v4914_v55 = vunpack.c.l.b16 %v4798_v23  ;;  %v4201_v15 = vrot.slane %v4199_v35, 5  ;;  %v13306_v35 = vld [vmem:[#allocation2 + $0x5c] sm:$0x1] }
 0x1eb   : > { %5035 = vmatmul.bf16.gmra.mxu0 %v4943_v37  ;;  %v4195_v33 = vrot.slane %v4193_v36, 4  ;;  %v4186_v37 = vor.u32 %v4185_v22, %v4182_v4  ;;  %v13290_v36 = vld [vmem:[#allocation2 + $0x58] sm:$0xf]  ;;  %v4207_v22 = vshll.u32 %v4050_v49, 16 }
 0x1ec   : > { %v2231_v60 = vpop.f32.mrf.mxu2  ;;  %v4944_v31 = vpack.c.b16 %v4915_v3, %v4914_v55  ;;  %v4217_v10 = vshrl.u32 %v13290_v36, 16  ;;  %v4206_v55 = vrot.slane %v4204_v44, 4 }
 0x1ed   : > { %v2284_v0 = vadd.f32 %v2231_v60, %v12705_v17  ;;  %v4196_v46 = vor.u32 %v4195_v33, %v4191_v6  ;;  %v4187_v47 = vrot.slane %v4186_v37, 4  ;;  %v4213_v33 = vshll.u32 %v13290_v36, 16 }
 0x1ef   : > { %v2598_v1 = vadd.f32 %v13238_v7, %v2284_v0  ;;  %v1853_v7 = vadd.f32 %v16014_v29, %v16013_v14  ;;  %v4197_v60 = vrot.slane %v4196_v46, 4  ;;  %v10970_v0 = vrot.slane %v4720_v24, 9 }
 0x1f0   : > { %v3229_v59 = vpop.f32.mrf.mxu0  ;;  %v4192_v19 = vsel %vm12318_vm5, %v4187_v47, %v4191_v6  ;;  %v4215_v37 = vrot.slane %v4213_v33, 5  ;;  %v4219_v46 = vrot.slane %v4217_v10, 4  ;;  %v4053_v10 = vld [vmem:[#allocation2 + $0x60] sm:$0xf] }
 0x1f1   : > { %v13280_v17 = vadd.f32 %v3227_v38, %v2598_v1  ;;  %v4807_v1 = vrot.slane %v13256_v30, 5  ;;  %v4202_v23 = vsel %vm12318_vm5, %v4197_v60, %v4201_v15  ;;  %v4805_v14 = vsel %vm12663_vm8, %v10970_v0, %v4804_v34  ;;  %v11776_v60 = vld [vmem:[#allocation2 + $0x3c] sm:$0xff]  ;;  %v13311_v0 = vpop.f32.mrf.mxu1 }
 0x1f2   : > { %v2552_v56 = vpop.f32.mrf.mxu3  ;;  %v4492_v6 = vunpack.c.l.b16 %v4192_v19  ;;  %v4220_v49 = vor.u32 %v4219_v46, %v4215_v37  ;;  %v4811_v19 = vrot.slane %v13265_v58, 5  ;;  %v4228_v46 = vshrl.u32 %v4053_v10, 16 }
 0x1f3   : > { %v4808_v30 = vsel %vm12663_vm8, %v4806_v57, %v4807_v1 }
 0x1f4   : > { %v2233_v53 = vpop.f32.mrf.mxu2 }
 0x1f5   : > { %v2285_v61 = vadd.f32 %v2233_v53, %v1853_v7  ;;  %v4493_v7 = vunpack.c.l.b16 %v4202_v23  ;;  %v4209_v53 = vrot.slane %v4207_v22, 5  ;;  %v11840_v23 = vld [vmem:[%s15980_s3 + $0x58] sm:$0xff]  ;;  %v4221_v22 = vrot.slane %v4220_v49, 4 }
 0x1f6   : > { %6553 = vmatpush.bf16.msra.mxu1 %v11840_v23  ;;  %v16022_v23 = vld [vmem:[#allocation13_spill] sm:$0xff] }
 0x1f7   : > { %v2599_v38 = vadd.f32 %v2547_v40, %v2285_v61  ;;  %4619 = vmatmul.bf16.gmra.mxu3 %v4519_v13  ;;  %v16016_v61 = vld [vmem:[#allocation12_spill] sm:$0xff]  ;;  %v4916_v13 = vunpack.c.l.b16 %v4805_v14  ;;  %v4520_v24 = vpack.c.b16 %v4493_v7, %v4492_v6  ;;  %v4210_v15 = vor.u32 %v4209_v53, %v4206_v55  ;;  %v16019_v7 = vld [vmem:[#allocation14_spill] sm:$0xff] }
 0x1f8   : > { %v3232_v62 = vpop.f32.mrf.mxu0  ;;  %v4814_v6 = vrot.slane %v13282_v26, 5 }
 0x1f9   : > { %3932 = vmatmul.bf16.gmra.mxu2 %v11775_v52  ;;  %v13288_v12 = vadd.f32 %v3229_v59, %v2599_v38  ;;  %v16015_v59 = vld [vmem:[#allocation11_spill] sm:$0xff]  ;;  %v16017_v52 = vld [vmem:[#allocation10_spill] sm:$0xff]  ;;  %v4917_v38 = vunpack.c.l.b16 %v4808_v30  ;;  %v4813_v30 = vrot.slane %v4811_v19, 4 }
 0x1fa   : > { %v2555_v40 = vpop.f32.mrf.mxu3 }
 0x1fb   : > { %5040 = vmatmul.bf16.gmra.mxu0 %v4944_v31  ;;  %v4815_v26 = vsel %vm12663_vm8, %v4813_v30, %v4814_v6 }
 0x1fc   : > { %v2236_v8 = vpop.f32.mrf.mxu2 }
 0x1fd   : > { %v2286_v4 = vadd.f32 %v2236_v8, %v16015_v59  ;;  %v4945_v8 = vpack.c.b16 %v4917_v38, %v4916_v13  ;;  %v4721_v59 = vld [vmem:[#allocation2 + $0x48] sm:$0xe] }
 0x1fe   : > { %v10971_v58 = vrot.slane %v4721_v59, 9 }
 0x1ff   : > { %v2600_v43 = vadd.f32 %v2550_v32, %v2286_v4  ;;  %v1858_v32 = vadd.f32 %v16017_v52, %v16016_v61  ;;  %v4211_v4 = vrot.slane %v4210_v15, 4  ;;  %v4231_v61 = vshll.u32 %v4053_v10, 16 }
 0x200   : > { %v3234_v29 = vpop.f32.mrf.mxu0  ;;  %v4230_v15 = vrot.slane %v4228_v46, 4  ;;  %v4722_v46 = vld [vmem:[#allocation2 + $0x54] sm:$0xe] }
 0x201   : > { %v13304_v3 = vadd.f32 %v3232_v62, %v2600_v43  ;;  %v4223_v62 = vshll.u32 %v13306_v35, 16  ;;  %v4216_v55 = vsel %vm12318_vm5, %v4211_v4, %v4215_v37  ;;  %v4233_v49 = vrot.slane %v4231_v61, 5 }
 0x202   : > { %v2557_v34 = vpop.f32.mrf.mxu3  ;;  %v4919_v4 = vunpack.c.l.b16 %v4815_v26 }
 0x203   : > { %v4225_v33 = vrot.slane %v4223_v62, 5 }
 0x204   : > { %v2238_v31 = vpop.f32.mrf.mxu2 }
 0x205   : > { %v2287_v47 = vadd.f32 %v2238_v31, %v1858_v32  ;;  %v4226_v53 = vsel %vm12318_vm5, %v4221_v22, %v4225_v33  ;;  %v4812_v31 = vsel %vm12663_vm8, %v10971_v58, %v4811_v19  ;;  %v13341_v22 = vld [vmem:[#allocation2 + $0x68] sm:$0x1] }
 0x206   : > { %v4918_v59 = vunpack.c.l.b16 %v4812_v31  ;;  %v4247_v6 = vshll.u32 %v13341_v22, 16 }
 0x207   : > { %v2601_v57 = vadd.f32 %v2552_v56, %v2287_v47  ;;  %4624 = vmatmul.bf16.gmra.mxu3 %v4520_v24  ;;  %v13319_v56 = vld [vmem:[#allocation2 + $0x64] sm:$0xf]  ;;  %v13335_v24 = vpop.f32.mrf.mxu1  ;;  %v4494_v47 = vunpack.c.l.b16 %v4216_v55  ;;  %v4818_v55 = vrot.slane %v13290_v36, 5 }
 0x208   : > { %v3237_v1 = vpop.f32.mrf.mxu0  ;;  %v4237_v52 = vshll.u32 %v13319_v56, 16  ;;  %v4241_v32 = vshrl.u32 %v13319_v56, 16  ;;  %v4249_v26 = vrot.slane %v4247_v6, 5 }
 0x209   : > { %3937 = vmatmul.bf16.gmra.mxu2 %v11776_v60  ;;  %v13317_v44 = vadd.f32 %v3234_v29, %v2601_v57  ;;  %v4495_v60 = vunpack.c.l.b16 %v4226_v53 }
 0x20a   : > { %v13321_v14 = vpop.f32.mrf.mxu3  ;;  %v4239_v62 = vrot.slane %v4237_v52, 5  ;;  %v4243_v57 = vrot.slane %v4241_v32, 4  ;;  %v4056_v52 = vld [vmem:[#allocation2 + $0x6c] sm:$0xf]  ;;  %v13347_v32 = vld [vmem:[#allocation2 + $0x70] sm:$0xf] }
 0x20b   : > { %16018 = vst [vmem:[#allocation9_spill] sm:$0xff] %v13317_v44  ;;  %5045 = vmatmul.bf16.gmra.mxu0 %v4945_v8  ;;  %v16021_v8 = vld [vmem:[#allocation15_spill] sm:$0xff]  ;;  %v4521_v58 = vpack.c.b16 %v4495_v60, %v4494_v47  ;;  %v10972_v60 = vrot.slane %v4722_v46, 9  ;;  %v4726_v44 = vld [vmem:[#allocation2 + $0x84] sm:$0xe] }
 0x20c   : > { %v2241_v43 = vpop.f32.mrf.mxu2  ;;  %v4244_v30 = vor.u32 %v4243_v57, %v4239_v62  ;;  %v4252_v57 = vshrl.u32 %v4056_v52, 16 }
 0x20d   : > { %v2288_v29 = vadd.f32 %v2241_v43, %v16019_v7  ;;  %v11777_v43 = vld [vmem:[#allocation2 + $0x48] sm:$0xff] }
 0x20e   : > { %v4245_v31 = vrot.slane %v4244_v30, 4 }
 0x20f   : > { %v2602_v13 = vadd.f32 %v2555_v40, %v2288_v29  ;;  %v1863_v40 = vadd.f32 %v16022_v23, %v16021_v8  ;;  %v4946_v29 = vpack.c.b16 %v4919_v4, %v4918_v59  ;;  %v13349_v47 = vpop.f32.mrf.mxu1  ;;  %v4255_v8 = vshll.u32 %v4056_v52, 16  ;;  %v13366_v52 = vld [vmem:[#allocation2 + $0x74] sm:$0x1] }
 0x210   : > { %v3239_v38 = vpop.f32.mrf.mxu0  ;;  %v4265_v23 = vshrl.u32 %v13347_v32, 16 }
 0x211   : > { %v13337_v37 = vadd.f32 %v3237_v1, %v2602_v13  ;;  %v4234_v1 = vor.u32 %v4233_v49, %v4230_v15  ;;  %v4821_v15 = vrot.slane %v13306_v35, 5  ;;  %v4819_v35 = vsel %vm12663_vm8, %v10972_v60, %v4818_v55 }
 0x212   : > { %v2562_v33 = vpop.f32.mrf.mxu3  ;;  %v4257_v30 = vrot.slane %v4255_v8, 5 }
 0x213   : > { %16020 = vst [vmem:[#allocation8_spill] sm:$0xff] %v13337_v37  ;;  %v4235_v13 = vrot.slane %v4234_v1, 4  ;;  %v4254_v1 = vrot.slane %v4252_v57, 4 }
 0x214   : > { %v2243_v19 = vpop.f32.mrf.mxu2 }
 0x215   : > { %v2289_v10 = vadd.f32 %v2243_v19, %v1863_v40  ;;  %v16024_v40 = vld [vmem:[#allocation17_spill] sm:$0xff]  ;;  %v4240_v4 = vsel %vm12318_vm5, %v4235_v13, %v4239_v62  ;;  %v4250_v19 = vsel %vm12318_vm5, %v4245_v31, %v4249_v26  ;;  %v16026_v13 = vld [vmem:[#allocation18_spill] sm:$0xff]  ;;  %v16027_v31 = vld [vmem:[#allocation16_spill] sm:$0xff]  ;;  %v4920_v26 = vunpack.c.l.b16 %v4819_v35 }
 0x216   : > { %v4496_v46 = vunpack.c.l.b16 %v4240_v4  ;;  %v4497_v62 = vunpack.c.l.b16 %v4250_v19  ;;  %v4825_v4 = vrot.slane %v13319_v56, 5 }
 0x217   : > { %v2603_v7 = vadd.f32 %v2557_v34, %v2289_v10  ;;  %4629 = vmatmul.bf16.gmra.mxu3 %v4521_v58  ;;  %v4820_v34 = vrot.slane %v4818_v55, 4  ;;  %v13371_v57 = vpop.f32.mrf.mxu1 }
 0x218   : > { %v3242_v53 = vpop.f32.mrf.mxu0  ;;  %v4827_v56 = vrot.slane %v4825_v4, 4 }
 0x219   : > { %3942 = vmatmul.bf16.gmra.mxu2 %v11777_v43  ;;  %v13345_v61 = vadd.f32 %v3239_v38, %v2603_v7  ;;  %v4261_v38 = vshll.u32 %v13347_v32, 16  ;;  %v4822_v43 = vsel %vm12663_vm8, %v4820_v34, %v4821_v15  ;;  %v4267_v7 = vrot.slane %v4265_v23, 4 }
 0x21a   : > { %v2565_v49 = vpop.f32.mrf.mxu3  ;;  %v4271_v15 = vshll.u32 %v13366_v52, 16 }
 0x21b   : > { %16023 = vst [vmem:[#allocation11_spill] sm:$0xff] %v13345_v61  ;;  %5050 = vmatmul.bf16.gmra.mxu0 %v4946_v29  ;;  %v4263_v6 = vrot.slane %v4261_v38, 5  ;;  %v4522_v38 = vpack.c.b16 %v4497_v62, %v4496_v46  ;;  %v13379_v46 = vld [vmem:[#allocation2 + $0x7c] sm:$0xf]  ;;  %v11779_v61 = vld [vmem:[#allocation2 + $0x60] sm:$0xff] }
 0x21c   : > { %v2246_v36 = vpop.f32.mrf.mxu2 }
 0x21d   : > { %v2290_v59 = vadd.f32 %v2246_v36, %v16024_v40  ;;  %v4921_v36 = vunpack.c.l.b16 %v4822_v43  ;;  %v4258_v40 = vor.u32 %v4257_v30, %v4254_v1  ;;  %v4268_v34 = vor.u32 %v4267_v7, %v4263_v6  ;;  %v11839_v1 = vld [vmem:[%s15980_s3 + $0x50] sm:$0xff]  ;;  %v4059_v7 = vld [vmem:[#allocation2 + $0x78] sm:$0xf] }
 0x21e   : > { %v4273_v43 = vrot.slane %v4271_v15, 5  ;;  %6554 = vmatpush.bf16.msra.mxu1 %v11839_v1  ;;  %v4285_v15 = vshll.u32 %v13379_v46, 16 }
 0x21f   : > { %v2604_v10 = vadd.f32 %v13321_v14, %v2290_v59  ;;  %v1868_v14 = vadd.f32 %v16027_v31, %v16026_v13  ;;  %v4947_v59 = vpack.c.b16 %v4921_v36, %v4920_v26  ;;  %v4259_v13 = vrot.slane %v4258_v40, 4 }
 0x220   : > { %v3244_v58 = vpop.f32.mrf.mxu0  ;;  %v4269_v35 = vrot.slane %v4268_v34, 4  ;;  %v4279_v34 = vshll.u32 %v4059_v7, 16  ;;  %v4287_v1 = vrot.slane %v4285_v15, 5 }
 0x221   : > { %v13364_v29 = vadd.f32 %v3242_v53, %v2604_v10  ;;  %v11778_v53 = vld [vmem:[#allocation2 + $0x54] sm:$0xff]  ;;  %v4723_v10 = vld [vmem:[#allocation2 + $0x60] sm:$0xe]  ;;  %v4264_v26 = vsel %vm12318_vm5, %v4259_v13, %v4263_v6 }
 0x222   : > { %v2567_v60 = vpop.f32.mrf.mxu3  ;;  %v4274_v36 = vsel %vm12318_vm5, %v4269_v35, %v4273_v43  ;;  %v4281_v43 = vrot.slane %v4279_v34, 5 }
 0x223   : > { %16025 = vst [vmem:[#allocation12_spill] sm:$0xff] %v13364_v29 }
 0x224   : > { %v2248_v55 = vpop.f32.mrf.mxu2 }
 0x225   : > { %v2291_v8 = vadd.f32 %v2248_v55, %v1868_v14  ;;  %v4828_v14 = vrot.slane %v13341_v22, 5  ;;  %v16029_v55 = vld [vmem:[#allocation19_spill] sm:$0xff] }
 0x227   : > { %v2605_v23 = vadd.f32 %v2562_v33, %v2291_v8  ;;  %4634 = vmatmul.bf16.gmra.mxu3 %v4522_v38  ;;  %v10973_v33 = vrot.slane %v4723_v10, 9  ;;  %v4289_v8 = vshrl.u32 %v13379_v46, 16  ;;  %v4829_v6 = vsel %vm12663_vm8, %v4827_v56, %v4828_v14 }
 0x228   : > { %v3247_v19 = vpop.f32.mrf.mxu0  ;;  %v4499_v10 = vunpack.c.l.b16 %v4274_v36 }
 0x229   : > { %3947 = vmatmul.bf16.gmra.mxu2 %v11778_v53  ;;  %v13377_v30 = vadd.f32 %v3244_v58, %v2605_v23  ;;  %v4276_v58 = vshrl.u32 %v4059_v7, 16  ;;  %v13389_v53 = vpop.f32.mrf.mxu1  ;;  %v4826_v22 = vsel %vm12663_vm8, %v10973_v33, %v4825_v4  ;;  %v4291_v7 = vrot.slane %v4289_v8, 4  ;;  %v16031_v4 = vld [vmem:[#allocation20_spill] sm:$0xff]  ;;  %v4724_v8 = vld [vmem:[#allocation2 + $0x6c] sm:$0xe] }
 0x22a   : > { %v2570_v31 = vpop.f32.mrf.mxu3 }
 0x22b   : > { %16028 = vst [vmem:[#allocation10_spill] sm:$0xff] %v13377_v30  ;;  %5055 = vmatmul.bf16.gmra.mxu0 %v4947_v59  ;;  %v4498_v59 = vunpack.c.l.b16 %v4264_v26  ;;  %v4278_v13 = vrot.slane %v4276_v58, 4  ;;  %v4923_v30 = vunpack.c.l.b16 %v4829_v6  ;;  %v4292_v56 = vor.u32 %v4291_v7, %v4287_v1  ;;  %v16033_v7 = vld [vmem:[#allocation21_spill] sm:$0xff] }
 0x22c   : > { %v2251_v62 = vpop.f32.mrf.mxu2  ;;  %v4832_v58 = vrot.slane %v13347_v32, 5  ;;  %v4835_v32 = vrot.slane %v13366_v52, 5 }
 0x22d   : > { %v2292_v40 = vadd.f32 %v2251_v62, %v16029_v55  ;;  %v13397_v62 = vld [vmem:[#allocation2 + $0x80] sm:$0x1]  ;;  %v4922_v55 = vunpack.c.l.b16 %v4826_v22  ;;  %v4523_v29 = vpack.c.b16 %v4499_v10, %v4498_v59  ;;  %v4282_v37 = vor.u32 %v4281_v43, %v4278_v13  ;;  %v4062_v59 = vld [vmem:[#allocation2 + $0x84] sm:$0xf]  ;;  %v13406_v10 = vld [vmem:[#allocation2 + $0x88] sm:$0xf] }
 0x22e   : > { %v4295_v14 = vshll.u32 %v13397_v62, 16  ;;  %v4293_v22 = vrot.slane %v4292_v56, 4  ;;  %v4834_v43 = vrot.slane %v4832_v58, 4 }
 0x22f   : > { %v2606_v38 = vadd.f32 %v2565_v49, %v2292_v40 }
 0x230   : > { %v3249_v23 = vpop.f32.mrf.mxu0  ;;  %v4297_v6 = vrot.slane %v4295_v14, 5  ;;  %v4836_v52 = vsel %vm12663_vm8, %v4834_v43, %v4835_v32 }
 0x231   : > { %v13395_v35 = vadd.f32 %v3247_v19, %v2606_v38  ;;  %v4948_v19 = vpack.c.b16 %v4923_v30, %v4922_v55  ;;  %v13402_v34 = vpop.f32.mrf.mxu1  ;;  %v4283_v38 = vrot.slane %v4282_v37, 4  ;;  %v10974_v30 = vrot.slane %v4724_v8, 9 }
 0x232   : > { %v2572_v40 = vpop.f32.mrf.mxu3  ;;  %v4298_v37 = vsel %vm12318_vm5, %v4293_v22, %v4297_v6  ;;  %v4303_v55 = vshll.u32 %v4062_v59, 16 }
 0x233   : > { %16030 = vst [vmem:[#allocation14_spill] sm:$0xff] %v13395_v35  ;;  %v4833_v14 = vsel %vm12663_vm8, %v10974_v30, %v4832_v58  ;;  %v16035_v58 = vld [vmem:[#allocation22_spill] sm:$0xff]  ;;  %v11780_v35 = vld [vmem:[#allocation2 + $0x6c] sm:$0xff] }
 0x234   : > { %v2253_v49 = vpop.f32.mrf.mxu2 }
 0x235   : > { %v2293_v33 = vadd.f32 %v2253_v49, %v16031_v4  ;;  %v4309_v49 = vshll.u32 %v13406_v10, 16  ;;  %v4313_v4 = vshrl.u32 %v13406_v10, 16 }
 0x237   : > { %v2607_v26 = vadd.f32 %v2567_v60, %v2293_v33  ;;  %4639 = vmatmul.bf16.gmra.mxu3 %v4523_v29  ;;  %v4288_v29 = vsel %vm12318_vm5, %v4283_v38, %v4287_v1  ;;  %v4305_v38 = vrot.slane %v4303_v55, 5  ;;  %v4311_v22 = vrot.slane %v4309_v49, 5  ;;  %v4725_v55 = vld [vmem:[#allocation2 + $0x78] sm:$0xe] }
 0x238   : > { %v3252_v36 = vpop.f32.mrf.mxu0  ;;  %v4500_v1 = vunpack.c.l.b16 %v4288_v29  ;;  %v4315_v6 = vrot.slane %v4313_v4, 4  ;;  %v4839_v49 = vrot.slane %v13379_v46, 5 }
 0x239   : > { %3952 = vmatmul.bf16.gmra.mxu2 %v11779_v61  ;;  %v13404_v15 = vadd.f32 %v3249_v23, %v2607_v26  ;;  %v4300_v23 = vshrl.u32 %v4062_v59, 16  ;;  %v13424_v59 = vpop.f32.mrf.mxu1 }
 0x23a   : > { %v13408_v60 = vpop.f32.mrf.mxu3  ;;  %v4316_v32 = vor.u32 %v4315_v6, %v4311_v22 }
 0x23b   : > { %16032 = vst [vmem:[#allocation15_spill] sm:$0xff] %v13404_v15  ;;  %5060 = vmatmul.bf16.gmra.mxu0 %v4948_v19  ;;  %v4501_v19 = vunpack.c.l.b16 %v4298_v37  ;;  %v4302_v8 = vrot.slane %v4300_v23, 4 }
 0x23c   : > { %v2256_v13 = vpop.f32.mrf.mxu2 }
 0x23d   : > { %v2294_v61 = vadd.f32 %v2256_v13, %v16033_v7  ;;  %v4924_v13 = vunpack.c.l.b16 %v4833_v14  ;;  %v4925_v7 = vunpack.c.l.b16 %v4836_v52  ;;  %v4524_v43 = vpack.c.b16 %v4501_v19, %v4500_v1  ;;  %v13433_v52 = vld [vmem:[#allocation2 + $0x94] sm:$0xf] }
 0x23e   : > { %v4317_v1 = vrot.slane %v4316_v32, 4 }
 0x23f   : > { %v2608_v33 = vadd.f32 %v2570_v31, %v2294_v61  ;;  %v13426_v31 = vld [vmem:[#allocation2 + $0x8c] sm:$0x1]  ;;  %v4949_v23 = vpack.c.b16 %v4925_v7, %v4924_v13 }
 0x240   : > { %v3254_v56 = vpop.f32.mrf.mxu0  ;;  %v4319_v29 = vshll.u32 %v13426_v31, 16 }
 0x241   : > { %v13422_v26 = vadd.f32 %v3252_v36, %v2608_v33  ;;  %v4306_v36 = vor.u32 %v4305_v38, %v4302_v8  ;;  %v4065_v33 = vld [vmem:[#allocation2 + $0x90] sm:$0xf]  ;;  %v4841_v8 = vrot.slane %v4839_v49, 4  ;;  %v13440_v7 = vpop.f32.mrf.mxu1 }
 0x242   : > { %v2577_v15 = vpop.f32.mrf.mxu3  ;;  %v4321_v19 = vrot.slane %v4319_v29, 5  ;;  %v4324_v38 = vshrl.u32 %v4065_v33, 16  ;;  %v4327_v6 = vshll.u32 %v4065_v33, 16 }
 0x243   : > { %16034 = vst [vmem:[#allocation13_spill] sm:$0xff] %v13422_v26 }
 0x244   : > { %v2258_v61 = vpop.f32.mrf.mxu2 }
 0x245   : > { %v2295_v30 = vadd.f32 %v2258_v61, %v16035_v58  ;;  %v10975_v61 = vrot.slane %v4725_v55, 9  ;;  %v4307_v58 = vrot.slane %v4306_v36, 4  ;;  %v4329_v55 = vrot.slane %v4327_v6, 5 }
 0x247   : > { %v2609_v37 = vadd.f32 %v2572_v40, %v2295_v30  ;;  %4644 = vmatmul.bf16.gmra.mxu3 %v4524_v43  ;;  %v4842_v40 = vrot.slane %v13397_v62, 5  ;;  %v16037_v30 = vld [vmem:[#allocation23_spill] sm:$0xff]  ;;  %v4840_v36 = vsel %vm12663_vm8, %v10975_v61, %v4839_v49  ;;  %v4312_v32 = vsel %vm12318_vm5, %v4307_v58, %v4311_v22  ;;  %v13454_v61 = vld [vmem:[#allocation2 + $0x98] sm:$0x1] }
 0x248   : > { %v3257_v4 = vpop.f32.mrf.mxu0  ;;  %v4322_v62 = vsel %vm12318_vm5, %v4317_v1, %v4321_v19  ;;  %v4926_v22 = vunpack.c.l.b16 %v4840_v36  ;;  %v4846_v1 = vrot.slane %v13406_v10, 5 }
 0x249   : > { %3957 = vmatmul.bf16.gmra.mxu2 %v11780_v35  ;;  %v13431_v14 = vadd.f32 %v3254_v56, %v2609_v37  ;;  %v4333_v35 = vshll.u32 %v13433_v52, 16  ;;  %v4337_v56 = vshrl.u32 %v13433_v52, 16  ;;  %v4843_v37 = vsel %vm12663_vm8, %v4841_v8, %v4842_v40 }
 0x24a   : > { %v13436_v46 = vpop.f32.mrf.mxu3  ;;  %v4503_v49 = vunpack.c.l.b16 %v4322_v62  ;;  %v4927_v58 = vunpack.c.l.b16 %v4843_v37  ;;  %v4343_v40 = vshll.u32 %v13454_v61, 16  ;;  %v13461_v62 = vpop.f32.mrf.mxu1  ;;  %v4849_v37 = vrot.slane %v13426_v31, 5 }
 0x24b   : > { %16036 = vst [vmem:[#allocation17_spill] sm:$0xff] %v13431_v14  ;;  %5065 = vmatmul.bf16.gmra.mxu0 %v4949_v23  ;;  %v4326_v23 = vrot.slane %v4324_v38, 4  ;;  %v4335_v14 = vrot.slane %v4333_v35, 5  ;;  %v4339_v26 = vrot.slane %v4337_v56, 4  ;;  %v16039_v38 = vld [vmem:[#allocation24_spill] sm:$0xff] }
 0x24c   : > { %v2261_v13 = vpop.f32.mrf.mxu2  ;;  %v4950_v56 = vpack.c.b16 %v4927_v58, %v4926_v22  ;;  %v4345_v27 = vrot.slane %v4343_v40, 5 }
 0x24d   : > { %v2296_v43 = vadd.f32 %v2261_v13, %v16037_v30  ;;  %v4502_v30 = vunpack.c.l.b16 %v4312_v32  ;;  %v4340_v8 = vor.u32 %v4339_v26, %v4335_v14  ;;  %v10976_v32 = vrot.slane %v4726_v44, 9  ;;  %v13464_v26 = vld [vmem:[#allocation2 + $0xa0] sm:$0xf] }
 0x24e   : > { %v4357_v22 = vshll.u32 %v13464_v26, 16 }
 0x24f   : > { %v2610_v29 = vadd.f32 %v13408_v60, %v2296_v43  ;;  %v4330_v60 = vor.u32 %v4329_v55, %v4326_v23  ;;  %v4525_v35 = vpack.c.b16 %v4503_v49, %v4502_v30  ;;  %v4068_v23 = vld [vmem:[#allocation2 + $0x9c] sm:$0xf]  ;;  %v4847_v44 = vsel %vm12663_vm8, %v10976_v32, %v4846_v1 }
 0x250   : > { %v3259_v33 = vpop.f32.mrf.mxu0  ;;  %v4351_v30 = vshll.u32 %v4068_v23, 16  ;;  %v4928_v40 = vunpack.c.l.b16 %v4847_v44  ;;  %v13511_v44 = vadd.f32 %v13389_v53, %v13198_v9 }
 0x251   : > { %v13452_v13 = vadd.f32 %v3257_v4, %v2610_v29  ;;  %v11781_v4 = vld [vmem:[#allocation2 + $0x78] sm:$0xff]  ;;  %v4848_v29 = vrot.slane %v4846_v1, 4  ;;  %v4331_v10 = vrot.slane %v4330_v60, 4 }
 0x252   : > { %v13457_v43 = vpop.f32.mrf.mxu3  ;;  %v16041_v1 = vld [vmem:[#allocation25_spill] sm:$0xff]  ;;  %16043 = vst [vmem:[#allocation20_spill] sm:$0xff] %v13511_v44 }
 0x253   : > { %16038 = vst [vmem:[#allocation18_spill] sm:$0xff] %v13452_v13  ;;  %v4341_v13 = vrot.slane %v4340_v8, 4  ;;  %v4850_v31 = vsel %vm12663_vm8, %v4848_v29, %v4849_v37  ;;  %v4336_v49 = vsel %vm12318_vm5, %v4331_v10, %v4335_v14  ;;  %v13491_v29 = vrot.slane %v4357_v22, 5 }
 0x254   : > { %v2263_v19 = vpop.f32.mrf.mxu2  ;;  %v13499_v37 = vadd.f32 %v13335_v24, %v13135_v41  ;;  %v13503_v10 = vadd.f32 %v13349_v47, %v13154_v54  ;;  %v11838_v41 = vld [vmem:[%s15980_s3 + $0x48] sm:$0xff]  ;;  %v4853_v54 = vrot.slane %v13433_v52, 5 }
 0x255   : > { %v2297_v6 = vadd.f32 %v2263_v19, %v16039_v38  ;;  %v4346_v19 = vsel %vm12318_vm5, %v4341_v13, %v4345_v27  ;;  %v4929_v38 = vunpack.c.l.b16 %v4850_v31  ;;  %v13495_v13 = vadd.f32 %v13311_v0, %v13117_v45  ;;  %v4727_v0 = vld [vmem:[#allocation2 + $0x90] sm:$0xe]  ;;  %v4071_v31 = vld [vmem:[#allocation2 + $0xa8] sm:$0xf]  ;;  %6555 = vmatpush.bf16.msra.mxu1 %v11838_v41 }
 0x256   : > { %v4505_v32 = vunpack.c.l.b16 %v4346_v19  ;;  %v4375_v19 = vshll.u32 %v4071_v31, 16 }
 0x257   : > { %v2611_v36 = vadd.f32 %v2577_v15, %v2297_v6  ;;  %4649 = vmatmul.bf16.gmra.mxu3 %v4525_v35  ;;  %v4348_v15 = vshrl.u32 %v4068_v23, 16  ;;  %v4504_v6 = vunpack.c.l.b16 %v4336_v49  ;;  %v4353_v35 = vrot.slane %v4351_v30, 5 }
 0x258   : > { %v5031_v55 = vpop.f32.mrf.mxu0  ;;  %v13507_v23 = vadd.f32 %v13371_v57, %v13174_v63  ;;  %v13516_v30 = vstv %s13468_s20  ;;  %v4951_v57 = vpack.c.b16 %v4929_v38, %v4928_v40  ;;  %v11782_v40 = vld [vmem:[#allocation2 + $0x84] sm:$0xff]  ;;  %v4377_v44 = vrot.slane %v4375_v19, 5  ;;  %s12039_s20 = sshra.s32 %s10306_s19, 4  ;;  %s12040_s20 = int_to_ptr.hbm [resolvable:$true] %s12039_s20 }
 0x259   : > { %3962 = vmatmul.bf16.gmra.mxu2 %v11781_v4  ;;  %v13466_v5 = vadd.f32 %v3259_v33, %v2611_v36  ;;  %v4361_v33 = vshrl.u32 %v13464_v26, 16  ;;  %v4350_v4 = vrot.slane %v4348_v15, 4  ;;  %v13489_v36 = vld [vmem:[#allocation2 + $0xa4] sm:$0x1]  ;;  %v13513_v15 = vpop.f32.mrf.mxu1  ;;  %v4526_v9 = vpack.c.b16 %v4505_v32, %v4504_v6  ;;  %s12041_s21 = scalar_lea.hbm %s12040_s20, 256  ;;  %p12046_p0 = scmp.lt.s32.totalorder %s12040_s20, %s15983_s6 }
 0x25a   : > { %v13478_v60 = vpop.f32.mrf.mxu3  ;;  %16042 = vst [vmem:[#allocation19_spill] sm:$0xff] %v13507_v23  ;;  %v4367_v63 = vshll.u32 %v13489_v36, 16  ;;  %v4855_v6 = vrot.slane %v4853_v54, 4  ;;  %p12042_p11 = scmp.ne.s32.totalorder %s12040_s20, %s12041_s21  ;;  %p12047_p1 = scmp.lt.s32.totalorder %s12045_s29, %s12041_s21 }
 0x25b   : > { %16040 = vst [vmem:[#allocation16_spill] sm:$0xff] %v13466_v5  ;;  %5070 = vmatmul.bf16.gmra.mxu0 %v4950_v56  ;;  %v13487_v56 = vld [vmem:[%s15979_s2] ss:$0 sm:$0xff]  ;;  %v4363_v27 = vrot.slane %v4361_v33, 4  ;;  %v4354_v24 = vor.u32 %v4353_v35, %v4350_v4  ;;  %v10977_v33 = vrot.slane %v4727_v0, 9  ;;  %v4856_v4 = vrot.slane %v13454_v61, 5 }
 0x25c   : > { %v3923_v58 = vpop.f32.mrf.mxu2  ;;  %v4728_v5 = vld [vmem:[#allocation2 + $0x9c] sm:$0xe]  ;;  %v13544_v61 = vadd.f32 %v13424_v59, %v13227_v2  ;;  %p12043_p12 = pnand %p12042_p11, %p12167_p5  ;;  %p12048_p2 = por %p12047_p1, %p12046_p0 }
 0x25d   : > { %v4003_v8 = vadd.f32 %v3923_v58, %v16041_v1  ;;  %v4364_v53 = vor.u32 %v4363_v27, %v13491_v29  ;;  %v4372_v58 = vshrl.u32 %v4071_v31, 16  ;;  %v4355_v35 = vrot.slane %v4354_v24, 4 }
 0x25e   : > { %v4854_v24 = vsel %vm12663_vm8, %v10977_v33, %v4853_v54  ;;  %p12044_p13 = pneg %p12043_p12 }
 0x25f   : > { %v4685_v14 = vadd.f32 %v13436_v46, %v4003_v8  ;;  %v4365_v27 = vrot.slane %v4364_v53, 4  ;;  %v4374_v0 = vrot.slane %v4372_v58, 4  ;;  %v4863_v53 = vrot.slane %v13489_v36, 5 }
 0x260   : > { %v5033_v46 = vpop.f32.mrf.mxu0  ;;  %p12049_p3 = pnand %p12048_p2, %p12044_p13 }
 0x261   : > { %v5111_v45 = vadd.f32 %v5031_v55, %v4685_v14  ;;  %v13525_v55 = vld [vmem:[#allocation2 + $0xac] sm:$0xf]  ;;  %v4369_v14 = vrot.slane %v4367_v63, 5  ;;  %v4857_v63 = vsel %vm12663_vm8, %v4855_v6, %v4856_v4  ;;  %v3653_v2 = vpop.f32.mrf.mxu1  ;;  %v4378_v33 = vor.u32 %v4377_v44, %v4374_v0 }
 0x262   : > { %v13527_v22 = vpop.f32.mrf.mxu3  ;;  %v4381_v52 = vshll.u32 %v13525_v55, 16  ;;  %v4385_v38 = vshrl.u32 %v13525_v55, 16 }
 0x263   : > { %v5147_v47 = vadd.f32 %v13487_v56, %v5111_v45  ;;  %v4860_v45 = vrot.slane %v13464_v26, 5  ;;  %v13548_v26 = vadd.f32 %v13440_v7, %v13234_v20  ;;  %v4370_v20 = vsel %vm12318_vm5, %v4365_v27, %v4369_v14 }
 0x264   : > { %v3925_v49 = vpop.f32.mrf.mxu2  ;;  %v13536_v23 = vrot.slane %v4381_v52, 5  ;;  %v10978_v7 = vrot.slane %v4728_v5, 9  ;;  %v4930_v52 = vunpack.c.l.b16 %v4854_v24  ;;  %v4507_v5 = vunpack.c.l.b16 %v4370_v20 }
 0x265   : > { %vm5179_vm9 = vcmp.gt.f32.partialorder %v5147_v47, 0.0  ;;  %v5212_v1 = vmul.f32 %v13516_v30, %v5147_v47  ;;  %v4004_v8 = vadd.f32 %v3925_v49, %v12963_v48  ;;  %v4387_v48 = vrot.slane %v4385_v38, 4 }
 0x266   : > { %v13540_v49 = vadd.f32 %v13402_v34, %v13210_v42  ;;  %v4360_v42 = vsel %vm12318_vm5, %v4355_v35, %v13491_v29  ;;  %v13557_v34 = vld [vmem:[#allocation2 + $0xb0] sm:$0x1]  ;;  %v13576_v35 = vsel %vm12663_vm8, %v10978_v7, %v4860_v45  ;;  %v4379_v14 = vrot.slane %v4378_v33, 4 }
 0x267   : > { %v4686_v32 = vadd.f32 %v13457_v43, %v4004_v8  ;;  %v5244_v41 = vsel %vm5179_vm9, %v5147_v47, %v5212_v1  ;;  %4654 = vmatmul.bf16.gmra.mxu3 %v4526_v9  ;;  %v4862_v9 = vrot.slane %v4860_v45, 4  ;;  %v4388_v29 = vor.u32 %v4387_v48, %v13536_v23  ;;  %v11783_v7 = vld [vmem:[#allocation2 + $0x90] sm:$0xff] }
 0x268   : > { %v5036_v31 = vpop.f32.mrf.mxu0  ;;  %v5276_v59 = vpack.c.bf16 %v5244_v41, %v5244_v41  ;;  %v4931_v1 = vunpack.c.l.b16 %v4857_v63  ;;  %v4506_v8 = vunpack.c.l.b16 %v4360_v42  ;;  %v4932_v24 = vunpack.c.l.b16 %v13576_v35  ;;  %v4074_v42 = vld [vmem:[#allocation2 + $0xb4] sm:$0xf] }
 0x269   : > { %v5112_v43 = vadd.f32 %v5033_v46, %v4686_v32  ;;  %3967 = vmatmul.bf16.gmra.mxu2 %v11782_v40  ;;  %v13571_v40 = vadd.f32 %v13461_v62, %v13252_v16  ;;  %v13584_v32 = vadd.f32 %v13513_v15, %v13263_v25  ;;  %v4389_v62 = vrot.slane %v4388_v29, 4 }
 0x26a   : > { %v13562_v54 = vpop.f32.mrf.mxu3  ;;  %v5324_v38 = vunpack.c.l.b16 %v5276_v59  ;;  %v4952_v41 = vpack.c.b16 %v4931_v1, %v4930_v52  ;;  %v4527_v48 = vpack.c.b16 %v4507_v5, %v4506_v8 }
 0x26b   : > { %v5148_v46 = vadd.f32 %v13487_v56, %v5112_v43  ;;  %5075 = vmatmul.bf16.gmra.mxu0 %v4951_v57  ;;  %v4391_v57 = vshll.u32 %v13557_v34, 16 }
 0x26c   : > { %v3928_v47 = vpop.f32.mrf.mxu2  ;;  %v5340_v45 = vpack.c.b16 %v5324_v38, %v5324_v38 }
 0x26d   : > { %vm5180_vm10 = vcmp.gt.f32.partialorder %v5148_v46, 0.0  ;;  %v5213_v58 = vmul.f32 %v13516_v30, %v5148_v46  ;;  %v4005_v19 = vadd.f32 %v3928_v47, %v12979_v39  ;;  %v13580_v39 = vsel %vm12663_vm8, %v4862_v9, %v4863_v53  ;;  %v4729_v9 = vld [vmem:[#allocation2 + $0xa8] sm:$0xe]  ;;  %v3655_v53 = vpop.f32.mrf.mxu1 }
 0x26e   : > { %v4393_v27 = vrot.slane %v4391_v57, 5  ;;  %v4933_v63 = vunpack.c.l.b16 %v13580_v39 }
 0x26f   : > { %v5245_v36 = vsel %vm5180_vm10, %v5148_v46, %v5213_v58  ;;  %v4687_v44 = vadd.f32 %v13478_v60, %v4005_v19  ;;  %v13587_v60 = vadd.f32 %v3653_v2, %v13280_v17  ;;  %v4384_v17 = vsel %vm12318_vm5, %v4379_v14, %v13536_v23 }
 0x270   : > { %v5277_v6 = vpack.c.bf16 %v5245_v36, %v5245_v36  ;;  %v5038_v4 = vpop.f32.mrf.mxu0  ;;  %v4867_v2 = vrot.slane %v13525_v55, 5  ;;  %v4394_v47 = vsel %vm12318_vm5, %v4389_v62, %v4393_v27  ;;  %v4396_v58 = vshrl.u32 %v4074_v42, 16  ;;  %v13604_v36 = vld [vmem:[#allocation2 + $0xb8] sm:$0xf] }
 0x271   : > { %v5113_v16 = vadd.f32 %v5036_v31, %v4687_v44  ;;  %v4399_v19 = vshll.u32 %v4074_v42, 16  ;;  %v10979_v55 = vrot.slane %v4729_v9, 9  ;;  %v5357_v44 = vshrl.u32 %v5340_v45, 16 }
 0x272   : > { %v5436_v0 = vunpack.c.l.b16 %v5277_v6  ;;  %v13592_v31 = vpop.f32.mrf.mxu3  ;;  %v13606_v14 = vunpack.c.l.b16 %v4384_v17  ;;  %v4405_v45 = vshll.u32 %v13604_v36, 16  ;;  %v4409_v17 = vshrl.u32 %v13604_v36, 16 }
 0x273   : > { %v5149_v43 = vadd.f32 %v13487_v56, %v5113_v16  ;;  %v13608_v16 = vunpack.c.l.b16 %v4394_v47 }
 0x274   : > { %v5452_v59 = vpack.c.b16 %v5436_v0, %v5324_v38  ;;  %v5612_v25 = vpack.c.b16 %v5436_v0, %v5436_v0  ;;  %v3930_v15 = vpop.f32.mrf.mxu2  ;;  %v4869_v38 = vrot.slane %v4867_v2, 4  ;;  %v4398_v0 = vrot.slane %v4396_v58, 4 }
 0x275   : > { %vm5181_vm11 = vcmp.gt.f32.partialorder %v5149_v43, 0.0  ;;  %v5214_v46 = vmul.f32 %v13516_v30, %v5149_v43  ;;  %v4006_v20 = vadd.f32 %v3930_v15, %v12991_v51  ;;  %v4870_v51 = vrot.slane %v13557_v34, 5 }
 0x276   : > { %v5469_v33 = vshrl.u32 %v5452_v59, 16  ;;  %v5629_v29 = vshll.u32 %v5612_v25, 16  ;;  %v5472_v57 = vshll.u32 %v5452_v59, 16  ;;  %v4401_v34 = vrot.slane %v4399_v19, 5 }
 0x277   : > { %v5246_v52 = vsel %vm5181_vm11, %v5149_v43, %v5214_v46  ;;  %v4688_v23 = vadd.f32 %v13527_v22, %v4006_v20  ;;  %4659 = vmatmul.bf16.gmra.mxu3 %v4527_v48  ;;  %v4868_v25 = vsel %vm12663_vm8, %v10979_v55, %v4867_v2  ;;  %v4871_v15 = vsel %vm12663_vm8, %v4869_v38, %v4870_v51 }
 0x278   : > { %v5471_v1 = vrot.slane %v5469_v33, 7  ;;  %v5631_v8 = vrot.slane %v5629_v29, 3  ;;  %v5041_v5 = vpop.f32.mrf.mxu0  ;;  %v5278_v27 = vpack.c.bf16 %v5246_v52, %v5246_v52  ;;  %v4402_v29 = vor.u32 %v4401_v34, %v4398_v0  ;;  %v3658_v52 = vpop.f32.mrf.mxu1 }
 0x279   : > { %v5114_v6 = vadd.f32 %v5038_v4, %v4688_v23  ;;  %3972 = vmatmul.bf16.gmra.mxu2 %v11783_v7  ;;  %v13623_v7 = vld [vmem:[#allocation2 + $0xbc] sm:$0x1]  ;;  %v4407_v2 = vrot.slane %v4405_v45, 5  ;;  %v13630_v51 = vadd.f32 %v3655_v53, %v13288_v12 }
 0x27a   : > { %v5474_v62 = vor.u32 %v5472_v57, %v5471_v1  ;;  %v5724_v22 = vsel %vm12227_vm2, %v5471_v1, %v5631_v8  ;;  %v13616_v59 = vpop.f32.mrf.mxu3  ;;  %v5325_v47 = vunpack.c.l.b16 %v5278_v27  ;;  %v4411_v57 = vrot.slane %v4409_v17, 4 }
 0x27b   : > { %v5774_v43 = vunpack.c.l.b16 %v5724_v22  ;;  %v5150_v42 = vadd.f32 %v13487_v56, %v5114_v6  ;;  %5080 = vmatmul.bf16.gmra.mxu0 %v4952_v41  ;;  %v4403_v8 = vrot.slane %v4402_v29, 4  ;;  %v4415_v38 = vshll.u32 %v13623_v7, 16  ;;  %v11837_v22 = vld [vmem:[%s15980_s3 + $0x40] sm:$0xff] }
 0x27c   : > { %v5708_v4 = vsel %vm12227_vm2, %v5357_v44, %v5474_v62  ;;  %v3933_v48 = vpop.f32.mrf.mxu2  ;;  %v4412_v6 = vor.u32 %v4411_v57, %v4407_v2  ;;  %v4935_v27 = vunpack.c.l.b16 %v4871_v15  ;;  %v5341_v12 = vpack.c.b16 %v5325_v47, %v5325_v47  ;;  %6556 = vmatpush.bf16.msra.mxu1 %v11837_v22 }
 0x27d   : > { %v5772_v46 = vunpack.c.l.b16 %v5708_v4  ;;  %v5773_v20 = vunpack.c.h.b16 %v5708_v4  ;;  %v5822_v41 = vpack.c.b16 %v5774_v43, %v5774_v43  ;;  %vm5182_vm12 = vcmp.gt.f32.partialorder %v5150_v42, 0.0 }
 0x27e   : > { %v5215_v9 = vmul.f32 %v13516_v30, %v5150_v42  ;;  %v4007_v33 = vadd.f32 %v3933_v48, %v13016_v21  ;;  %v4934_v21 = vunpack.c.l.b16 %v4868_v25  ;;  %v4417_v0 = vrot.slane %v4415_v38, 5 }
 0x27f   : > { %v5820_v58 = vpack.c.b16 %v5772_v46, %v5772_v46  ;;  %v5821_v19 = vpack.c.b16 %v5773_v20, %v5773_v20  ;;  %5919 = vst [vmem:[#allocation3 + $0x14] sm:$0x1] %v5822_v41  ;;  %v13638_v43 = vadd.f32 %v3658_v52, %v13304_v3  ;;  %v4953_v4 = vpack.c.b16 %v4933_v63, %v4932_v24  ;;  %v11784_v46 = vld [vmem:[#allocation2 + $0x9c] sm:$0xff] }
 0x280   : > { %v5247_v23 = vsel %vm5182_vm12, %v5150_v42, %v5215_v9  ;;  %v4689_v55 = vadd.f32 %v13562_v54, %v4007_v33  ;;  %v5043_v1 = vpop.f32.mrf.mxu0  ;;  %v4408_v54 = vsel %vm12318_vm5, %v4403_v8, %v4407_v2  ;;  %v4413_v42 = vrot.slane %v4412_v6, 4 }
 0x281   : > { %5917 = vst [vmem:[#allocation3 + $0xc] sm:$0xf] %v5820_v58  ;;  %v5279_v44 = vpack.c.bf16 %v5247_v23, %v5247_v23  ;;  %v4528_v48 = vpack.c.b16 %v13608_v16, %v13606_v14  ;;  %v13649_v25 = vunpack.c.l.b16 %v4408_v54  ;;  %v13655_v35 = vpack.c.b16 %v4935_v27, %v4934_v21  ;;  %v4730_v23 = vld [vmem:[#allocation2 + $0xb4] sm:$0xe] }
 0x282   : > { %5918 = vst [vmem:[#allocation3 + $0x10] sm:$0xf] %v5821_v19  ;;  %v5115_v62 = vadd.f32 %v5041_v5, %v4689_v55  ;;  %v13641_v5 = vpop.f32.mrf.mxu3  ;;  %v4418_v20 = vsel %vm12318_vm5, %v4413_v42, %v4417_v0  ;;  %v5360_v24 = vshrl.u32 %v5341_v12, 16  ;;  %v4874_v58 = vrot.slane %v13604_v36, 5 }
 0x283   : > { %v5437_v53 = vunpack.c.l.b16 %v5279_v44  ;;  %v13657_v39 = vunpack.c.l.b16 %v4418_v20  ;;  %v10980_v55 = vrot.slane %v4730_v23, 9  ;;  %v13686_v20 = vld [vmem:[#allocation2 + $0xc8] sm:$0x1] }
 0x284   : > { %v5151_v34 = vadd.f32 %v13487_v56, %v5115_v62  ;;  %v3935_v45 = vpop.f32.mrf.mxu2  ;;  %v4876_v8 = vrot.slane %v4874_v58, 4 }
 0x285   : > { %v5453_v3 = vpack.c.b16 %v5437_v53, %v5325_v47  ;;  %v5613_v15 = vpack.c.b16 %v5437_v53, %v5437_v53  ;;  %v4008_v17 = vadd.f32 %v3935_v45, %v13038_v11  ;;  %v4077_v47 = vld [vmem:[#allocation2 + $0xc0] sm:$0xf]  ;;  %v4529_v29 = vpack.c.b16 %v13657_v39, %v13649_v25 }
 0x286   : > { %vm5183_vm13 = vcmp.gt.f32.partialorder %v5151_v34, 0.0  ;;  %v5216_v41 = vmul.f32 %v13516_v30, %v5151_v34  ;;  %v4420_v38 = vshrl.u32 %v4077_v47, 16  ;;  %v4423_v54 = vshll.u32 %v4077_v47, 16 }
 0x287   : > { %v5476_v63 = vshrl.u32 %v5453_v3, 16  ;;  %v5633_v14 = vshll.u32 %v5613_v15, 16  ;;  %v4690_v16 = vadd.f32 %v13592_v31, %v4008_v17  ;;  %v5479_v9 = vshll.u32 %v5453_v3, 16  ;;  %4664 = vmatmul.bf16.gmra.mxu3 %v4528_v48  ;;  %v13681_v3 = vld [vmem:[#allocation2 + $0xc4] sm:$0xf] }
 0x288   : > { %v5248_v33 = vsel %vm5183_vm13, %v5151_v34, %v5216_v41  ;;  %v5046_v11 = vpop.f32.mrf.mxu0  ;;  %v4877_v31 = vrot.slane %v13623_v7, 5  ;;  %v4422_v41 = vrot.slane %v4420_v38, 4 }
 0x289   : > { %v5478_v19 = vrot.slane %v5476_v63, 7  ;;  %v5635_v2 = vrot.slane %v5633_v14, 3  ;;  %v5280_v57 = vpack.c.bf16 %v5248_v33, %v5248_v33  ;;  %v5116_v52 = vadd.f32 %v5043_v1, %v4690_v16  ;;  %3977 = vmatmul.bf16.gmra.mxu2 %v11784_v46  ;;  %v11852_v33 = vld [vmem:[%s15980_s3 + $0xb8] sm:$0xff] }
 0x28a   : > { %v13667_v27 = vpop.f32.mrf.mxu3  ;;  %v13671_v1 = vsel %vm12663_vm8, %v10980_v55, %v4874_v58  ;;  %v13675_v7 = vsel %vm12663_vm8, %v4876_v8, %v4877_v31  ;;  %7160 = vmatpush.bf16.msrb.mxu3 %v11852_v33  ;;  %v4439_v55 = vshll.u32 %v13686_v20, 16  ;;  %v11836_v8 = vld [vmem:[%s15980_s3 + $0x38] sm:$0xff] }
 0x28b   : > { %v5481_v44 = vor.u32 %v5479_v9, %v5478_v19  ;;  %v5725_v21 = vsel %vm12227_vm2, %v5478_v19, %v5635_v2  ;;  %v5326_v6 = vunpack.c.l.b16 %v5280_v57  ;;  %v5152_v62 = vadd.f32 %v13487_v56, %v5116_v52  ;;  %5085 = vmatmul.bf16.gmra.mxu0 %v4953_v4  ;;  %v16044_v4 = vld [vmem:[#allocation26_spill] sm:$0xff]  ;;  %6782 = vmatpush.bf16.msrb.mxu2 %v11836_v8 }
 0x28c   : > { %v5777_v36 = vunpack.c.l.b16 %v5725_v21  ;;  %v3938_v22 = vpop.f32.mrf.mxu2  ;;  %v4936_v46 = vunpack.c.l.b16 %v13671_v1  ;;  %v4937_v58 = vunpack.c.l.b16 %v13675_v7  ;;  %v4425_v19 = vrot.slane %v4423_v54, 5  ;;  %v16045_v54 = vld [vmem:[#allocation27_spill] sm:$0xff] }
 0x28d   : > { %v5709_v0 = vsel %vm12227_vm2, %v5360_v24, %v5481_v44  ;;  %v5342_v12 = vpack.c.b16 %v5326_v6, %v5326_v6  ;;  %vm5184_vm14 = vcmp.gt.f32.partialorder %v5152_v62, 0.0  ;;  %v5217_v53 = vmul.f32 %v13516_v30, %v5152_v62  ;;  %v5974_v24 = vld [vmem:[#allocation3 + $0xc] sm:$0xf] }
 0x28e   : > { %v5775_v42 = vunpack.c.l.b16 %v5709_v0  ;;  %v5776_v34 = vunpack.c.h.b16 %v5709_v0  ;;  %v5825_v45 = vpack.c.b16 %v5777_v36, %v5777_v36  ;;  %v4009_v48 = vadd.f32 %v3938_v22, %v16044_v4 }
 0x28f   : > { %v13683_v15 = vshrl.u32 %v5342_v12, 16  ;;  %v5249_v17 = vsel %vm5184_vm14, %v5152_v62, %v5217_v53  ;;  %v4429_v2 = vshll.u32 %v13681_v3, 16  ;;  %v4433_v57 = vshrl.u32 %v13681_v3, 16  ;;  %v11785_v12 = vld [vmem:[#allocation2 + $0xa8] sm:$0xff] }
 0x290   : > { %v5823_v63 = vpack.c.b16 %v5775_v42, %v5775_v42  ;;  %v5824_v14 = vpack.c.b16 %v5776_v34, %v5776_v34  ;;  %5922 = vst [vmem:[#allocation3 + $0x20] sm:$0x1] %v5825_v45  ;;  %v5281_v16 = vpack.c.bf16 %v5249_v17, %v5249_v17  ;;  %v4691_v47 = vadd.f32 %v13616_v59, %v4009_v48  ;;  %v5048_v9 = vpop.f32.mrf.mxu0 }
 0x291   : > { %5967 = vst [vmem:[#allocation3 + $0x8] sm:$0x1] %v5825_v45  ;;  %v6061_v59 = vshrl.u32 %v5974_v24, 16  ;;  %v4426_v31 = vor.u32 %v4425_v19, %v4422_v41  ;;  %v4431_v38 = vrot.slane %v4429_v2, 5  ;;  %v4435_v44 = vrot.slane %v4433_v57, 4  ;;  %v11851_v19 = vld [vmem:[%s15980_s3 + $0xb0] sm:$0xff] }
 0x292   : > { %5920 = vst [vmem:[#allocation3 + $0x18] sm:$0xf] %v5823_v63  ;;  %v5438_v52 = vunpack.c.l.b16 %v5281_v16  ;;  %v5117_v23 = vadd.f32 %v5046_v11, %v4691_v47  ;;  %v6064_v21 = vshll.u32 %v5974_v24, 16  ;;  %v13700_v11 = vpop.f32.mrf.mxu3  ;;  %v4441_v7 = vrot.slane %v4439_v55, 5  ;;  %7161 = vmatpush.bf16.msrb.mxu3 %v11851_v19 }
 0x293   : > { %5921 = vst [vmem:[#allocation3 + $0x1c] sm:$0xf] %v5824_v14  ;;  %v4427_v53 = vrot.slane %v4426_v31, 4  ;;  %v4436_v42 = vor.u32 %v4435_v44, %v4431_v38  ;;  %v13703_v34 = vrot.slane %v6061_v59, 4  ;;  %v13711_v33 = vpack.c.b16 %v4937_v58, %v4936_v46 }
 0x294   : > { %5965 = vst [vmem:[#allocation3] sm:$0xf] %v5823_v63  ;;  %v5454_v62 = vpack.c.b16 %v5438_v52, %v5326_v6  ;;  %v5614_v36 = vpack.c.b16 %v5438_v52, %v5438_v52  ;;  %v5153_v22 = vadd.f32 %v13487_v56, %v5117_v23  ;;  %v3940_v1 = vpop.f32.mrf.mxu2  ;;  %v6066_v2 = vrot.slane %v6064_v21, 5 }
 0x295   : > { %5966 = vst [vmem:[#allocation3 + $0x4] sm:$0xf] %v5824_v14  ;;  %v4010_v0 = vadd.f32 %v3940_v1, %v16045_v54  ;;  %v4432_v41 = vsel %vm12318_vm5, %v4427_v53, %v4431_v38  ;;  %v4437_v24 = vrot.slane %v4436_v42, 4 }
 0x296   : > { %v5483_v45 = vshrl.u32 %v5454_v62, 16  ;;  %v5486_v4 = vshll.u32 %v5454_v62, 16  ;;  %v5637_v48 = vshll.u32 %v5614_v36, 16  ;;  %vm5185_vm15 = vcmp.gt.f32.partialorder %v5153_v22, 0.0  ;;  %v11876_v62 = vld [vmem:[%s15980_s3 + $0xf8] sm:$0xff] }
 0x297   : > { %v5218_v6 = vmul.f32 %v13516_v30, %v5153_v22  ;;  %v4692_v17 = vadd.f32 %v13641_v5, %v4010_v0  ;;  %4669 = vmatmul.bf16.gmra.mxu3 %v4529_v29  ;;  %v4442_v5 = vsel %vm12318_vm5, %v4437_v24, %v4441_v7  ;;  %v13721_v23 = vunpack.c.l.b16 %v4432_v41  ;;  %7474 = vmatpush.bf16.msrb.mxu0 %v11876_v62 }
 0x298   : > { %v5485_v63 = vrot.slane %v5483_v45, 7  ;;  %v5639_v14 = vrot.slane %v5637_v48, 3  ;;  %v5051_v16 = vpop.f32.mrf.mxu0  ;;  %v13709_v47 = vld [vmem:[#allocation3 + $0x8] sm:$0x1]  ;;  %v13728_v39 = vunpack.c.l.b16 %v4442_v5  ;;  %v6067_v29 = vor.u32 %v6066_v2, %v13703_v34  ;;  %v13744_v48 = vld [vmem:[#allocation3 + $0x10] sm:$0xf] }
 0x299   : > { %v5250_v57 = vsel %vm5185_vm15, %v5153_v22, %v5218_v6  ;;  %v5118_v52 = vadd.f32 %v5048_v9, %v4692_v17  ;;  %3982 = vmatmul.bf16.gmra.mxu2 %v11785_v12  ;;  %v6056_v59 = vshll.u32 %v13709_v47, 16 }
 0x29a   : > { %v5488_v55 = vor.u32 %v5486_v4, %v5485_v63  ;;  %v5726_v46 = vsel %vm12227_vm2, %v5485_v63, %v5639_v14  ;;  %v5282_v58 = vpack.c.bf16 %v5250_v57, %v5250_v57  ;;  %v13734_v21 = vpop.f32.mrf.mxu3  ;;  %v13750_v57 = vld [vmem:[#allocation3 + $0x14] sm:$0x1] }
 0x29b   : > { %v5780_v8 = vunpack.c.l.b16 %v5726_v46  ;;  %v5154_v9 = vadd.f32 %v13487_v56, %v5118_v52  ;;  %5090 = vmatmul.bf16.gmra.mxu0 %v13655_v35  ;;  %v5972_v25 = vld [vmem:[#allocation3] sm:$0xf]  ;;  %v6058_v63 = vrot.slane %v6056_v59, 5  ;;  %v6070_v46 = vshll.u32 %v13744_v48, 16 }
 0x29c   : > { %v5710_v31 = vsel %vm12227_vm2, %v13683_v15, %v5488_v55  ;;  %v5327_v38 = vunpack.c.l.b16 %v5282_v58  ;;  %v3943_v44 = vpop.f32.mrf.mxu2  ;;  %v13739_v36 = vld [vmem:[#allocation3 + $0x4] sm:$0xf]  ;;  %v6037_v35 = vshrl.u32 %v5972_v25, 16  ;;  %v6040_v22 = vshll.u32 %v5972_v25, 16 }
 0x29d   : > { %v5778_v1 = vunpack.c.l.b16 %v5710_v31  ;;  %v5779_v7 = vunpack.c.h.b16 %v5710_v31  ;;  %v5828_v54 = vpack.c.b16 %v5780_v8, %v5780_v8  ;;  %vm5186_vm0 = vcmp.gt.f32.partialorder %v5154_v9, 0.0  ;;  %v11884_v55 = vld [vmem:[%s15980_s3 + $0x138] sm:$0xff] }
 0x29e   : > { %v5343_v0 = vpack.c.b16 %v5327_v38, %v5327_v38  ;;  %v5219_v12 = vmul.f32 %v13516_v30, %v5154_v9  ;;  %v4011_v15 = vadd.f32 %v3943_v44, %v13495_v13  ;;  %v6039_v53 = vrot.slane %v6037_v35, 4  ;;  %8156 = vmatpush.bf16.msrb.mxu1 %v11884_v55 }
 0x29f   : > { %v5826_v42 = vpack.c.b16 %v5778_v1, %v5778_v1  ;;  %v5827_v34 = vpack.c.b16 %v5779_v7, %v5779_v7  ;;  %5925 = vst [vmem:[#allocation3 + $0x2c] sm:$0x1] %v5828_v54  ;;  %v6042_v45 = vrot.slane %v6040_v22, 5  ;;  %v6046_v4 = vshll.u32 %v13739_v36, 16 }
 0x2a0   : > { %v5251_v6 = vsel %vm5186_vm0, %v5154_v9, %v5219_v12  ;;  %v4693_v17 = vadd.f32 %v13667_v27, %v4011_v15  ;;  %v5053_v41 = vpop.f32.mrf.mxu0  ;;  %v6050_v24 = vshrl.u32 %v13739_v36, 16  ;;  %v13748_v14 = vshrl.u32 %v5343_v0, 16 }
 0x2a1   : > { %5923 = vst [vmem:[#allocation3 + $0x24] sm:$0xf] %v5826_v42  ;;  %v5283_v13 = vpack.c.bf16 %v5251_v6, %v5251_v6  ;;  %v6043_v19 = vor.u32 %v6042_v45, %v6039_v53  ;;  %v6048_v2 = vrot.slane %v6046_v4, 5  ;;  %v4530_v27 = vpack.c.b16 %v13728_v39, %v13721_v23 }
 0x2a2   : > { %5924 = vst [vmem:[#allocation3 + $0x28] sm:$0xf] %v5827_v34  ;;  %v5119_v52 = vadd.f32 %v5051_v16, %v4693_v17  ;;  %v6052_v5 = vrot.slane %v6050_v24, 4  ;;  %v6068_v8 = vrot.slane %v6067_v29, 4  ;;  %v6074_v9 = vshrl.u32 %v13744_v48, 16  ;;  %v13760_v16 = vpop.f32.mrf.mxu3  ;;  %v11786_v29 = vld [vmem:[#allocation2 + $0xb4] sm:$0xff] }
 0x2a3   : > { %v5439_v58 = vunpack.c.l.b16 %v5283_v13  ;;  %v6044_v59 = vrot.slane %v6043_v19, 4  ;;  %v6072_v62 = vrot.slane %v6070_v46, 5  ;;  %v6080_v35 = vshll.u32 %v13750_v57, 16  ;;  %v13768_v34 = vld [vmem:[#allocation3 + $0x18] sm:$0xf] }
 0x2a4   : > { %v5155_v25 = vadd.f32 %v13487_v56, %v5119_v52  ;;  %v3945_v31 = vpop.f32.mrf.mxu2  ;;  %v6053_v44 = vor.u32 %v6052_v5, %v6048_v2  ;;  %v6076_v6 = vrot.slane %v6074_v9, 4  ;;  %v6085_v5 = vshrl.u32 %v13768_v34, 16 }
 0x2a5   : > { %v5455_v22 = vpack.c.b16 %v5439_v58, %v5327_v38  ;;  %v5615_v1 = vpack.c.b16 %v5439_v58, %v5439_v58  ;;  %v4012_v23 = vadd.f32 %v3945_v31, %v13499_v37  ;;  %v6049_v39 = vsel %vm12318_vm5, %v6044_v59, %v6048_v2 }
 0x2a6   : > { %vm5187_vm1 = vcmp.gt.f32.partialorder %v5155_v25, 0.0  ;;  %v5220_v7 = vmul.f32 %v13516_v30, %v5155_v25  ;;  %v6054_v54 = vrot.slane %v6053_v44, 4  ;;  %v6437_v0 = vunpack.c.l.b16 %v6049_v39 }
 0x2a7   : > { %v5490_v12 = vshrl.u32 %v5455_v22, 16  ;;  %v5493_v15 = vshll.u32 %v5455_v22, 16  ;;  %v5641_v53 = vshll.u32 %v5615_v1, 16  ;;  %v4694_v42 = vadd.f32 %v13700_v11, %v4012_v23  ;;  %4674 = vmatmul.bf16.gmra.mxu3 %v4530_v27 }
 0x2a8   : > { %v5252_v38 = vsel %vm5187_vm1, %v5155_v25, %v5220_v7  ;;  %v5056_v45 = vpop.f32.mrf.mxu0  ;;  %v6059_v37 = vsel %vm12318_vm5, %v6054_v54, %v6058_v63  ;;  %v6073_v4 = vsel %vm12318_vm5, %v6068_v8, %v6072_v62  ;;  %v6077_v52 = vor.u32 %v6076_v6, %v6072_v62 }
 0x2a9   : > { %v5492_v17 = vrot.slane %v5490_v12, 7  ;;  %v5643_v24 = vrot.slane %v5641_v53, 3  ;;  %v5284_v13 = vpack.c.bf16 %v5252_v38, %v5252_v38  ;;  %v5120_v19 = vadd.f32 %v5053_v41, %v4694_v42  ;;  %3987 = vmatmul.bf16.gmra.mxu2 %v11786_v29  ;;  %v4080_v53 = vld [vmem:[#allocation2 + $0xcc] sm:$0xf]  ;;  %v13795_v42 = vld [vmem:[#allocation2 + $0xd0] sm:$0xf] }
 0x2aa   : > { %v6438_v2 = vunpack.c.l.b16 %v6059_v37  ;;  %v6082_v11 = vrot.slane %v6080_v35, 5  ;;  %v13779_v41 = vpop.f32.mrf.mxu3  ;;  %v6078_v27 = vrot.slane %v6077_v52, 4  ;;  %v13781_v25 = vunpack.c.l.b16 %v6073_v4 }
 0x2ab   : > { %v5495_v55 = vor.u32 %v5493_v15, %v5492_v17  ;;  %v5727_v46 = vsel %vm12227_vm2, %v5492_v17, %v5643_v24  ;;  %v5328_v63 = vunpack.c.l.b16 %v5284_v13  ;;  %v5156_v58 = vadd.f32 %v13487_v56, %v5120_v19  ;;  %5095 = vmatmul.bf16.gmra.mxu0 %v13711_v33  ;;  %v4731_v24 = vld [vmem:[#allocation2 + $0xc0] sm:$0xe] }
 0x2ac   : > { %v5783_v59 = vunpack.c.l.b16 %v5727_v46  ;;  %v6469_v8 = vpack.c.b16 %v6438_v2, %v6437_v0  ;;  %v3948_v9 = vpop.f32.mrf.mxu2  ;;  %v6083_v29 = vsel %vm12318_vm5, %v6078_v27, %v6082_v11  ;;  %v13792_v7 = vrot.slane %v6085_v5, 4  ;;  %v11850_v2 = vld [vmem:[%s15980_s3 + $0xa8] sm:$0xff] }
 0x2ad   : > { %v5711_v31 = vsel %vm12227_vm2, %v13748_v14, %v5495_v55  ;;  %v5344_v44 = vpack.c.b16 %v5328_v63, %v5328_v63  ;;  %vm5188_vm3 = vcmp.gt.f32.partialorder %v5156_v58, 0.0  ;;  %v5221_v62 = vmul.f32 %v13516_v30, %v5156_v58  ;;  %7162 = vmatpush.bf16.msrb.mxu3 %v11850_v2 }
 0x2ae   : > { %v5781_v35 = vunpack.c.l.b16 %v5711_v31  ;;  %v5782_v22 = vunpack.c.h.b16 %v5711_v31  ;;  %v5831_v1 = vpack.c.b16 %v5783_v59, %v5783_v59  ;;  %6557 = vmatmul.bf16.vlgmr.msra.gmra.mxu1 %v6469_v8  ;;  %v4013_v33 = vadd.f32 %v3948_v9, %v13503_v10  ;;  %v11835_v8 = vld [vmem:[%s15980_s3 + $0x30] sm:$0xff]  ;;  %v16046_v9 = vld [vmem:[#allocation19_spill] sm:$0xff]  ;;  %v11787_v31 = vld [vmem:[#allocation2 + $0xc0] sm:$0xff] }
 0x2af   : > { %v13788_v23 = vshrl.u32 %v5344_v44, 16  ;;  %v5253_v39 = vsel %vm5188_vm3, %v5156_v58, %v5221_v62  ;;  %v13797_v38 = vunpack.c.l.b16 %v6083_v29  ;;  %v4881_v10 = vrot.slane %v13681_v3, 5  ;;  %6783 = vmatpush.bf16.msrb.mxu2 %v11835_v8  ;;  %v11834_v29 = vld [vmem:[%s15980_s3 + $0x28] sm:$0xff] }
 0x2b0   : > { %v5829_v54 = vpack.c.b16 %v5781_v35, %v5781_v35  ;;  %v5830_v14 = vpack.c.b16 %v5782_v22, %v5782_v22  ;;  %5928 = vst [vmem:[#allocation3 + $0x38] sm:$0x1] %v5831_v1  ;;  %v5285_v0 = vpack.c.bf16 %v5253_v39, %v5253_v39  ;;  %v4695_v12 = vadd.f32 %v13734_v21, %v4013_v33  ;;  %v5058_v15 = vpop.f32.mrf.mxu0  ;;  %v3660_v22 = vpop.f32.mrf.mxu1 }
 0x2b1   : > { %v4444_v37 = vshrl.u32 %v4080_v53, 16  ;;  %v4447_v4 = vshll.u32 %v4080_v53, 16  ;;  %v4453_v13 = vshll.u32 %v13795_v42, 16  ;;  %v6088_v19 = vshll.u32 %v13768_v34, 16  ;;  %v11874_v53 = vld [vmem:[%s15980_s3 + $0xe8] sm:$0xff]  ;;  %v16048_v34 = vld [vmem:[#allocation20_spill] sm:$0xff] }
 0x2b2   : > { %5926 = vst [vmem:[#allocation3 + $0x30] sm:$0xf] %v5829_v54  ;;  %v5440_v6 = vunpack.c.l.b16 %v5285_v0  ;;  %v5121_v17 = vadd.f32 %v5056_v45, %v4695_v12  ;;  %v6470_v21 = vpack.c.b16 %v13797_v38, %v13781_v25  ;;  %v10981_v52 = vrot.slane %v4731_v24, 9  ;;  %v13809_v58 = vpop.f32.mrf.mxu3 }
 0x2b3   : > { %5927 = vst [vmem:[#allocation3 + $0x34] sm:$0xf] %v5830_v14  ;;  %v4883_v3 = vrot.slane %v4881_v10, 4  ;;  %v4457_v11 = vshrl.u32 %v13795_v42, 16  ;;  %v4884_v59 = vrot.slane %v13686_v20, 5  ;;  %v4446_v62 = vrot.slane %v4444_v37, 4  ;;  %6784 = vmatpush.bf16.msrb.mxu2 %v11834_v29 }
 0x2b4   : > { %v5456_v5 = vpack.c.b16 %v5440_v6, %v5328_v63  ;;  %v5616_v55 = vpack.c.b16 %v5440_v6, %v5440_v6  ;;  %v5157_v45 = vadd.f32 %v13487_v56, %v5121_v17  ;;  %v3950_v46 = vpop.f32.mrf.mxu2  ;;  %v4882_v44 = vsel %vm12663_vm8, %v10981_v52, %v4881_v10  ;;  %v11849_v63 = vld [vmem:[%s15980_s3 + $0xa0] sm:$0xff]  ;;  %v11875_v20 = vld [vmem:[%s15980_s3 + $0xf0] sm:$0xff] }
 0x2b5   : > { %v4014_v27 = vadd.f32 %v3950_v46, %v16046_v9  ;;  %v4449_v35 = vrot.slane %v4447_v4, 5  ;;  %v4885_v0 = vsel %vm12663_vm8, %v4883_v3, %v4884_v59  ;;  %v4938_v12 = vunpack.c.l.b16 %v4882_v44  ;;  %7475 = vmatpush.bf16.msrb.mxu0 %v11875_v20  ;;  %7163 = vmatpush.bf16.msrb.mxu3 %v11849_v63  ;;  %v13834_v52 = vld [vmem:[#allocation2 + $0xd4] sm:$0x1]  ;;  %v11848_v3 = vld [vmem:[%s15980_s3 + $0x98] sm:$0xff] }
 0x2b6   : > { %v5497_v1 = vshrl.u32 %v5456_v5, 16  ;;  %v5500_v33 = vshll.u32 %v5456_v5, 16  ;;  %v5645_v39 = vshll.u32 %v5616_v55, 16  ;;  %vm5189_vm4 = vcmp.gt.f32.partialorder %v5157_v45, 0.0 }
 0x2b7   : > { %v5222_v54 = vmul.f32 %v13516_v30, %v5157_v45  ;;  %v4696_v14 = vadd.f32 %v13760_v16, %v4014_v27  ;;  %v4939_v6 = vunpack.c.l.b16 %v4885_v0  ;;  %v4450_v17 = vor.u32 %v4449_v35, %v4446_v62 }
 0x2b8   : > { %v5499_v10 = vrot.slane %v5497_v1, 7  ;;  %v5647_v37 = vrot.slane %v5645_v39, 3  ;;  %v5061_v4 = vpop.f32.mrf.mxu0  ;;  %v4455_v16 = vrot.slane %v4453_v13, 5  ;;  %v4459_v5 = vrot.slane %v4457_v11, 4  ;;  %v11847_v1 = vld [vmem:[%s15980_s3 + $0x90] sm:$0xff] }
 0x2b9   : > { %v5254_v24 = vsel %vm5189_vm4, %v5157_v45, %v5222_v54  ;;  %v5122_v2 = vadd.f32 %v5058_v15, %v4696_v14  ;;  %3992 = vmatmul.bf16.gmra.mxu2 %v11787_v31  ;;  %v4956_v8 = vpack.c.b16 %v4939_v6, %v4938_v12  ;;  %v4451_v45 = vrot.slane %v4450_v17, 4  ;;  %7476 = vmatpush.bf16.msrb.mxu0 %v11874_v53  ;;  %v13863_v54 = vld [vmem:[#allocation3 + $0x1c] sm:$0xf] }
 0x2ba   : > { %v5502_v55 = vor.u32 %v5500_v33, %v5499_v10  ;;  %v5728_v46 = vsel %vm12227_vm2, %v5499_v10, %v5647_v37  ;;  %v5286_v59 = vpack.c.bf16 %v5254_v24, %v5254_v24  ;;  %v4460_v27 = vor.u32 %v4459_v5, %v4455_v16  ;;  %v13846_v63 = vpop.f32.mrf.mxu3  ;;  %7164 = vmatpush.bf16.msrb.mxu3 %v11848_v3  ;;  %v3663_v10 = vpop.f32.mrf.mxu1 }
 0x2bb   : > { %v5786_v9 = vunpack.c.l.b16 %v5728_v46  ;;  %v5158_v15 = vadd.f32 %v13487_v56, %v5122_v2  ;;  %5100 = vmatmul.bf16.gmra.mxu0 %v4956_v8  ;;  %v4463_v44 = vshll.u32 %v13834_v52, 16  ;;  %v6090_v62 = vrot.slane %v6088_v19, 5  ;;  %v16049_v8 = vld [vmem:[#allocation8_spill] sm:$0xff] }
 0x2bc   : > { %v5712_v13 = vsel %vm12227_vm2, %v13788_v23, %v5502_v55  ;;  %v5329_v11 = vunpack.c.l.b16 %v5286_v59  ;;  %v3953_v31 = vpop.f32.mrf.mxu2  ;;  %v16047_v23 = vld [vmem:[#allocation9_spill] sm:$0xff]  ;;  %v4456_v29 = vsel %vm12318_vm5, %v4451_v45, %v4455_v16  ;;  %v4461_v12 = vrot.slane %v4460_v27, 4  ;;  %v11873_v59 = vld [vmem:[%s15980_s3 + $0xe0] sm:$0xff]  ;;  %v11846_v27 = vld [vmem:[%s15980_s3 + $0x88] sm:$0xff] }
 0x2bd   : > { %v5784_v35 = vunpack.c.l.b16 %v5712_v13  ;;  %v5785_v20 = vunpack.c.h.b16 %v5712_v13  ;;  %v5834_v56 = vpack.c.b16 %v5786_v9, %v5786_v9  ;;  %vm5190_vm6 = vcmp.gt.f32.partialorder %v5158_v15, 0.0  ;;  %v13893_v13 = vld [vmem:[%s15979_s2] ss:$0 sm:$0xff]  ;;  %7477 = vmatpush.bf16.msrb.mxu0 %v11873_v59 }
 0x2be   : > { %v13854_v33 = vadd.f32 %v3660_v22, %v16047_v23  ;;  %v5223_v39 = vmul.f32 %v13516_v30, %v5158_v15  ;;  %6562 = vmatmul.bf16.gmra.mxu1 %v6470_v21  ;;  %v4015_v19 = vadd.f32 %v3953_v31, %v16048_v34  ;;  %v4465_v53 = vrot.slane %v4463_v44, 5  ;;  %v13865_v22 = vld [vmem:[#allocation3 + $0x20] sm:$0x1]  ;;  %7165 = vmatpush.bf16.msrb.mxu3 %v11847_v1 }
 0x2bf   : > { %v5832_v14 = vpack.c.b16 %v5784_v35, %v5784_v35  ;;  %v5833_v0 = vpack.c.b16 %v5785_v20, %v5785_v20  ;;  %5931 = vst [vmem:[#allocation3 + $0x44] sm:$0x1] %v5834_v56  ;;  %v5345_v37 = vpack.c.b16 %v5329_v11, %v5329_v11  ;;  %v4514_v38 = vunpack.c.l.b16 %v4456_v29  ;;  %v11832_v1 = vld [vmem:[%s15980_s3 + $0x18] sm:$0xff] }
 0x2c0   : > { %v5255_v6 = vsel %vm5190_vm6, %v5158_v15, %v5223_v39  ;;  %v4697_v25 = vadd.f32 %v13779_v41, %v4015_v19  ;;  %v5063_v21 = vpop.f32.mrf.mxu0  ;;  %v4466_v24 = vsel %vm12318_vm5, %v4461_v12, %v4465_v53  ;;  %v6091_v2 = vor.u32 %v6090_v62, %v13792_v7  ;;  %v11833_v41 = vld [vmem:[%s15980_s3 + $0x20] sm:$0xff]  ;;  %v11872_v23 = vld [vmem:[%s15980_s3 + $0xd8] sm:$0xff] }
 0x2c1   : > { %5929 = vst [vmem:[#allocation3 + $0x3c] sm:$0xf] %v5832_v14  ;;  %v5287_v17 = vpack.c.bf16 %v5255_v6, %v5255_v6  ;;  %v6094_v16 = vshll.u32 %v13863_v54, 16  ;;  %v4515_v3 = vunpack.c.l.b16 %v4466_v24  ;;  %v6098_v55 = vshrl.u32 %v13863_v54, 16  ;;  %6785 = vmatpush.bf16.msrb.mxu2 %v11833_v41  ;;  %v11788_v14 = vld [vmem:[#allocation2 + $0xcc] sm:$0xff]  ;;  %7478 = vmatpush.bf16.msrb.mxu0 %v11872_v23 }
 0x2c2   : > { %5930 = vst [vmem:[#allocation3 + $0x40] sm:$0xf] %v5833_v0  ;;  %v5123_v5 = vadd.f32 %v5061_v4, %v4697_v25  ;;  %v6104_v46 = vshll.u32 %v13865_v22, 16  ;;  %v13882_v9 = vadd.f32 %v3663_v10, %v16049_v8  ;;  %v6092_v15 = vrot.slane %v6091_v2, 4  ;;  %v11883_v4 = vld [vmem:[%s15980_s3 + $0x130] sm:$0xff]  ;;  %v13896_v20 = vpop.f32.mrf.mxu3  ;;  %7166 = vmatpush.bf16.msrb.mxu3 %v11846_v27 }
 0x2c3   : > { %v5441_v7 = vunpack.c.l.b16 %v5287_v17  ;;  %v6096_v45 = vrot.slane %v6094_v16, 5  ;;  %v4531_v44 = vpack.c.b16 %v4515_v3, %v4514_v38  ;;  %v6100_v35 = vrot.slane %v6098_v55, 4  ;;  %8157 = vmatpush.bf16.msrb.mxu1 %v11883_v4  ;;  %v4732_v0 = vld [vmem:[#allocation2 + $0xcc] sm:$0xe]  ;;  %v11871_v16 = vld [vmem:[%s15980_s3 + $0xd0] sm:$0xff] }
 0x2c4   : > { %v5159_v31 = vadd.f32 %v13893_v13, %v5123_v5  ;;  %v3955_v62 = vpop.f32.mrf.mxu2  ;;  %v4888_v56 = vrot.slane %v13795_v42, 5  ;;  %v5372_v39 = vshrl.u32 %v5345_v37, 16  ;;  %v6106_v53 = vrot.slane %v6104_v46, 5  ;;  %v6871_v41 = vld [vmem:[#allocation3] sm:$0xe] }
 0x2c5   : > { %v5457_v34 = vpack.c.b16 %v5441_v7, %v5329_v11  ;;  %v5617_v19 = vpack.c.b16 %v5441_v7, %v5441_v7  ;;  %v4016_v29 = vadd.f32 %v3955_v62, %v13540_v49  ;;  %4679 = vmatmul.bf16.gmra.mxu3 %v4531_v44  ;;  %v6101_v42 = vor.u32 %v6100_v35, %v6096_v45  ;;  %v11845_v49 = vld [vmem:[%s15980_s3 + $0x80] sm:$0xff] }
 0x2c6   : > { %vm5191_vm7 = vcmp.gt.f32.partialorder %v5159_v31, 0.0  ;;  %v5224_v12 = vmul.f32 %v13516_v30, %v5159_v31  ;;  %v6097_v37 = vsel %vm12318_vm5, %v6092_v15, %v6096_v45  ;;  %v10982_v24 = vrot.slane %v4732_v0, 9  ;;  %6786 = vmatpush.bf16.msrb.mxu2 %v11832_v1  ;;  %7167 = vmatpush.bf16.msrb.mxu3 %v11845_v49 }
 0x2c7   : > { %v5504_v10 = vshrl.u32 %v5457_v34, 16  ;;  %v5649_v6 = vshll.u32 %v5617_v19, 16  ;;  %v4698_v25 = vadd.f32 %v13809_v58, %v4016_v29  ;;  %v6102_v17 = vrot.slane %v6101_v42, 4  ;;  %v11831_v58 = vld [vmem:[%s15980_s3 + $0x10] sm:$0xff]  ;;  %7479 = vmatpush.bf16.msrb.mxu0 %v11871_v16  ;;  %v11830_v19 = vld [vmem:[%s15980_s3 + $0x8] sm:$0xff] }
 0x2c8   : > { %v5256_v11 = vsel %vm5191_vm7, %v5159_v31, %v5224_v12  ;;  %v13913_v38 = vpop.f32.mrf.mxu0  ;;  %v4890_v2 = vrot.slane %v4888_v56, 4  ;;  %v5507_v3 = vshll.u32 %v5457_v34, 16  ;;  %v6441_v8 = vunpack.c.l.b16 %v6097_v37  ;;  %v11870_v29 = vld [vmem:[%s15980_s3 + $0xc8] sm:$0xff] }
 0x2c9   : > { %v5506_v5 = vrot.slane %v5504_v10, 7  ;;  %v5651_v55 = vrot.slane %v5649_v6, 3  ;;  %v5124_v46 = vadd.f32 %v5063_v21, %v4698_v25  ;;  %3997 = vmatmul.bf16.gmra.mxu2 %v11788_v14  ;;  %v6107_v59 = vsel %vm12318_vm5, %v6102_v17, %v6106_v53  ;;  %v5978_v53 = vld [vmem:[#allocation3 + $0x24] sm:$0xf] }
 0x2ca   : > { %v4889_v7 = vsel %vm12663_vm8, %v10982_v24, %v4888_v56  ;;  %v4891_v15 = vrot.slane %v13834_v52, 5  ;;  %v5288_v27 = vpack.c.bf16 %v5256_v11, %v5256_v11  ;;  %v6442_v44 = vunpack.c.l.b16 %v6107_v59  ;;  %6787 = vmatpush.bf16.msrb.mxu2 %v11831_v58  ;;  %v13931_v56 = vpop.f32.mrf.mxu3  ;;  %v13950_v59 = vpop.f32.mrf.mxu1 }
 0x2cb   : > { %v5509_v45 = vor.u32 %v5507_v3, %v5506_v5  ;;  %v5729_v4 = vsel %vm12227_vm2, %v5506_v5, %v5651_v55  ;;  %v5160_v31 = vadd.f32 %v13893_v13, %v5124_v46  ;;  %v11175_v1 = vrot.slane %v6871_v41, 9  ;;  %7480 = vmatpush.bf16.msrb.mxu0 %v11870_v29  ;;  %v13948_v46 = vld [vmem:[#allocation3 + $0x28] sm:$0xf] }
 0x2cc   : > { %v5789_v21 = vunpack.c.l.b16 %v5729_v4  ;;  %v4892_v62 = vsel %vm12663_vm8, %v4890_v2, %v4891_v15  ;;  %v3958_v35 = vpop.f32.mrf.mxu2  ;;  %v4940_v34 = vunpack.c.l.b16 %v4889_v7  ;;  %v6471_v42 = vpack.c.b16 %v6442_v44, %v6441_v8  ;;  %v11829_v7 = vld [vmem:[%s15980_s3] sm:$0xff] }
 0x2cd   : > { %v5713_v52 = vsel %vm12227_vm2, %v5372_v39, %v5509_v45  ;;  %vm5192_vm9 = vcmp.gt.f32.partialorder %v5160_v31, 0.0  ;;  %v5225_v23 = vmul.f32 %v13516_v30, %v5160_v31  ;;  %v5330_v10 = vunpack.c.l.b16 %v5288_v27  ;;  %v11869_v15 = vld [vmem:[%s15980_s3 + $0xc0] sm:$0xff] }
 0x2ce   : > { %v5787_v14 = vunpack.c.l.b16 %v5713_v52  ;;  %v5788_v0 = vunpack.c.h.b16 %v5713_v52  ;;  %v5837_v12 = vpack.c.b16 %v5789_v21, %v5789_v21  ;;  %v4941_v39 = vunpack.c.l.b16 %v4892_v62  ;;  %6567 = vmatmul.bf16.gmra.mxu1 %v6471_v42  ;;  %6788 = vmatpush.bf16.msrb.mxu2 %v11830_v19  ;;  %v11813_v42 = vld [vmem:[#allocation3] sm:$0xff] }
 0x2cf   : > { %v5257_v6 = vsel %vm5192_vm9, %v5160_v31, %v5225_v23  ;;  %v4017_v25 = vadd.f32 %v3958_v35, %v13544_v61  ;;  %v6921_v24 = vrot.slane %v13739_v36, 5  ;;  %v6924_v16 = vrot.slane %v13709_v47, 5  ;;  %7481 = vmatpush.bf16.msrb.mxu0 %v11869_v15 }
 0x2d0   : > { %v5835_v37 = vpack.c.b16 %v5787_v14, %v5787_v14  ;;  %v5836_v49 = vpack.c.b16 %v5788_v0, %v5788_v0  ;;  %5934 = vst [vmem:[#allocation3 + $0x50] sm:$0x1] %v5837_v12  ;;  %v5289_v11 = vpack.c.bf16 %v5257_v6, %v5257_v6  ;;  %v5068_v17 = vpop.f32.mrf.mxu0  ;;  %v4957_v2 = vpack.c.b16 %v4941_v39, %v4940_v34  ;;  %v13968_v12 = vld [vmem:[#allocation3 + $0x2c] sm:$0x1] }
 0x2d1   : > { %v4699_v58 = vadd.f32 %v13846_v63, %v4017_v25  ;;  %v6109_v5 = vshrl.u32 %v5978_v53, 16  ;;  %v6922_v61 = vsel %vm12663_vm8, %v11175_v1, %v6921_v24  ;;  %v6923_v55 = vrot.slane %v6921_v24, 4  ;;  %v6872_v25 = vld [vmem:[#allocation3 + $0xc] sm:$0xe] }
 0x2d2   : > { %5932 = vst [vmem:[#allocation3 + $0x48] sm:$0xf] %v5835_v37  ;;  %v5442_v3 = vunpack.c.l.b16 %v5289_v11  ;;  %v6112_v41 = vshll.u32 %v5978_v53, 16  ;;  %v5346_v36 = vpack.c.b16 %v5330_v10, %v5330_v10  ;;  %5105 = vmatmul.bf16.gmra.mxu0 %v4957_v2  ;;  %v7048_v47 = vunpack.c.l.b16 %v6922_v61  ;;  %v13961_v44 = vpop.f32.mrf.mxu3  ;;  %6789 = vmatpush.bf16.msrb.mxu2 %v11829_v7  ;;  %v13982_v7 = vpop.f32.mrf.mxu1 }
 0x2d3   : > { %5933 = vst [vmem:[#allocation3 + $0x4c] sm:$0xf] %v5836_v49  ;;  %v5125_v63 = vadd.f32 %v13913_v38, %v4699_v58  ;;  %v6111_v8 = vrot.slane %v6109_v5, 4  ;;  %v6925_v27 = vsel %vm12663_vm8, %v6923_v55, %v6924_v16  ;;  %v6118_v1 = vshll.u32 %v13948_v46, 16 }
 0x2d4   : > { %v5458_v45 = vpack.c.b16 %v5442_v3, %v5330_v10  ;;  %v5618_v4 = vpack.c.b16 %v5442_v3, %v5442_v3  ;;  %v3960_v31 = vpop.f32.mrf.mxu2  ;;  %v6114_v21 = vrot.slane %v6112_v41, 5  ;;  %v7049_v62 = vunpack.c.l.b16 %v6925_v27 }
 0x2d5   : > { %v5161_v38 = vadd.f32 %v13893_v13, %v5125_v63  ;;  %v4018_v35 = vadd.f32 %v3960_v31, %v13548_v26  ;;  %v6122_v39 = vshrl.u32 %v13948_v46, 16  ;;  %v5375_v37 = vshrl.u32 %v5346_v36, 16 }
 0x2d6   : > { %v5511_v52 = vshrl.u32 %v5458_v45, 16  ;;  %v5514_v23 = vshll.u32 %v5458_v45, 16  ;;  %v5653_v34 = vshll.u32 %v5618_v4, 16  ;;  %v6115_v19 = vor.u32 %v6114_v21, %v6111_v8 }
 0x2d7   : > { %vm5193_vm10 = vcmp.gt.f32.partialorder %v5161_v38, 0.0  ;;  %v5226_v29 = vmul.f32 %v13516_v30, %v5161_v38  ;;  %v7080_v14 = vpack.c.b16 %v7049_v62, %v7048_v47  ;;  %v4700_v0 = vadd.f32 %v13896_v20, %v4018_v35 }
 0x2d8   : > { %v5513_v53 = vrot.slane %v5511_v52, 7  ;;  %v5655_v10 = vrot.slane %v5653_v34, 3  ;;  %v5071_v26 = vpop.f32.mrf.mxu0  ;;  %v6116_v6 = vrot.slane %v6115_v19, 4  ;;  %v6120_v24 = vrot.slane %v6118_v1, 5 }
 0x2d9   : > { %v5258_v49 = vsel %vm5193_vm10, %v5161_v38, %v5226_v29  ;;  %7168 = vmatmul.bf16.vlgmr.msrb.gmra.mxu3 %v7080_v14  ;;  %v5126_v11 = vadd.f32 %v5068_v17, %v4700_v0  ;;  %6790 = vmatmul.bf16.vlgmr.msrb.gmra.mxu2 %v11813_v42  ;;  %v6128_v16 = vshll.u32 %v13968_v12, 16  ;;  %v6124_v61 = vrot.slane %v6122_v39, 4 }
 0x2da   : > { %v5516_v2 = vor.u32 %v5514_v23, %v5513_v53  ;;  %v5730_v20 = vsel %vm12227_vm2, %v5513_v53, %v5655_v10  ;;  %v5290_v58 = vpack.c.bf16 %v5258_v49, %v5258_v49  ;;  %v11176_v55 = vrot.slane %v6872_v25, 9  ;;  %v13980_v8 = vpop.f32.mrf.mxu3  ;;  %v11853_v53 = vld [vmem:[#allocation3 + $0xc] sm:$0xff]  ;;  %v13998_v49 = vld [vmem:[#allocation3 + $0x34] sm:$0xf] }
 0x2db   : > { %v5792_v5 = vunpack.c.l.b16 %v5730_v20  ;;  %v5162_v3 = vadd.f32 %v13893_v13, %v5126_v11  ;;  %v6121_v17 = vsel %vm12318_vm5, %v6116_v6, %v6120_v24  ;;  %v6928_v47 = vrot.slane %v13744_v48, 5  ;;  %v16050_v10 = vld [vmem:[#allocation11_spill] sm:$0xff] }
 0x2dc   : > { %v5714_v41 = vsel %vm12227_vm2, %v5375_v37, %v5516_v2  ;;  %v5331_v36 = vunpack.c.l.b16 %v5290_v58  ;;  %v3963_v63 = vpop.f32.mrf.mxu2  ;;  %v6125_v21 = vor.u32 %v6124_v61, %v6120_v24  ;;  %v6130_v34 = vrot.slane %v6128_v16, 5 }
 0x2dd   : > { %v5790_v15 = vunpack.c.l.b16 %v5714_v41  ;;  %v5791_v45 = vunpack.c.h.b16 %v5714_v41  ;;  %v5840_v4 = vpack.c.b16 %v5792_v5, %v5792_v5  ;;  %vm5194_vm11 = vcmp.gt.f32.partialorder %v5162_v3, 0.0 }
 0x2de   : > { %v5347_v27 = vpack.c.b16 %v5331_v36, %v5331_v36  ;;  %v5227_v31 = vmul.f32 %v13516_v30, %v5162_v3  ;;  %v4019_v38 = vadd.f32 %v3963_v63, %v13571_v40  ;;  %v6929_v48 = vsel %vm12663_vm8, %v11176_v55, %v6928_v47 }
 0x2df   : > { %v5838_v62 = vpack.c.b16 %v5790_v15, %v5790_v15  ;;  %v5839_v35 = vpack.c.b16 %v5791_v45, %v5791_v45  ;;  %5937 = vst [vmem:[#allocation3 + $0x5c] sm:$0x1] %v5840_v4  ;;  %v6930_v1 = vrot.slane %v6928_v47, 4  ;;  %v6126_v23 = vrot.slane %v6125_v21, 4  ;;  %v6873_v45 = vld [vmem:[#allocation3 + $0x18] sm:$0xe]  ;;  %v3670_v4 = vpop.f32.mrf.mxu1 }
 0x2e0   : > { %v5259_v52 = vsel %vm5194_vm11, %v5162_v3, %v5227_v31  ;;  %v4701_v19 = vadd.f32 %v13931_v56, %v4019_v38  ;;  %v5073_v29 = vpop.f32.mrf.mxu0  ;;  %v13989_v14 = vshrl.u32 %v5347_v27, 16  ;;  %v6443_v42 = vunpack.c.l.b16 %v6121_v17  ;;  %v5980_v56 = vld [vmem:[#allocation3 + $0x30] sm:$0xf] }
 0x2e1   : > { %5935 = vst [vmem:[#allocation3 + $0x54] sm:$0xf] %v5838_v62  ;;  %v5291_v0 = vpack.c.bf16 %v5259_v52, %v5259_v52  ;;  %v6931_v40 = vrot.slane %v13750_v57, 5  ;;  %v13994_v6 = vadd.f32 %v13950_v59, %v16050_v10  ;;  %v6131_v39 = vsel %vm12318_vm5, %v6126_v23, %v6130_v34  ;;  %v11882_v59 = vld [vmem:[%s15980_s3 + $0x128] sm:$0xff]  ;;  %v14012_v62 = vld [vmem:[#allocation3 + $0x38] sm:$0x1] }
 0x2e2   : > { %5936 = vst [vmem:[#allocation3 + $0x58] sm:$0xf] %v5839_v35  ;;  %v5127_v25 = vadd.f32 %v5071_v26, %v4701_v19  ;;  %v7050_v37 = vunpack.c.l.b16 %v6929_v48  ;;  %v6444_v24 = vunpack.c.l.b16 %v6131_v39  ;;  %7482 = vmatmul.bf16.vlgmr.msrb.gmra.mxu0 %v11853_v53  ;;  %v6133_v57 = vshrl.u32 %v5980_v56, 16  ;;  %v14007_v3 = vpop.f32.mrf.mxu3  ;;  %8158 = vmatpush.bf16.msrb.mxu1 %v11882_v59 }
 0x2e3   : > { %v5443_v11 = vunpack.c.l.b16 %v5291_v0  ;;  %v6932_v2 = vsel %vm12663_vm8, %v6930_v1, %v6931_v40  ;;  %v6136_v26 = vshll.u32 %v5980_v56, 16  ;;  %v6142_v5 = vshll.u32 %v13998_v49, 16 }
 0x2e4   : > { %v5163_v20 = vadd.f32 %v13893_v13, %v5127_v25  ;;  %v7051_v58 = vunpack.c.l.b16 %v6932_v2  ;;  %v3965_v16 = vpop.f32.mrf.mxu2  ;;  %v6472_v41 = vpack.c.b16 %v6444_v24, %v6443_v42  ;;  %v6135_v15 = vrot.slane %v6133_v57, 4 }
 0x2e5   : > { %v5459_v61 = vpack.c.b16 %v5443_v11, %v5331_v36  ;;  %v5619_v55 = vpack.c.b16 %v5443_v11, %v5443_v11  ;;  %v4020_v17 = vadd.f32 %v3965_v16, %v13584_v32  ;;  %v11814_v36 = vld [vmem:[#allocation3 + $0xc] sm:$0xff]  ;;  %v6138_v32 = vrot.slane %v6136_v26, 5 }
 0x2e6   : > { %vm5195_vm12 = vcmp.gt.f32.partialorder %v5163_v20, 0.0  ;;  %v5228_v63 = vmul.f32 %v13516_v30, %v5163_v20  ;;  %v7081_v47 = vpack.c.b16 %v7051_v58, %v7050_v37  ;;  %6572 = vmatmul.bf16.gmra.mxu1 %v6472_v41  ;;  %v6144_v1 = vrot.slane %v6142_v5, 5 }
 0x2e7   : > { %v5518_v27 = vshrl.u32 %v5459_v61, 16  ;;  %v5521_v31 = vshll.u32 %v5459_v61, 16  ;;  %v5657_v21 = vshll.u32 %v5619_v55, 16  ;;  %v4702_v38 = vadd.f32 %v13961_v44, %v4020_v17 }
 0x2e8   : > { %v5260_v35 = vsel %vm5195_vm12, %v5163_v20, %v5228_v63  ;;  %v14014_v48 = vpop.f32.mrf.mxu0  ;;  %v6146_v52 = vshrl.u32 %v13998_v49, 16  ;;  %v6139_v42 = vor.u32 %v6138_v32, %v6135_v15  ;;  %v6152_v44 = vshll.u32 %v14012_v62, 16  ;;  %v16051_v32 = vld [vmem:[#allocation12_spill] sm:$0xff] }
 0x2e9   : > { %v5520_v23 = vrot.slane %v5518_v27, 7  ;;  %v5659_v34 = vrot.slane %v5657_v21, 3  ;;  %v5292_v19 = vpack.c.bf16 %v5260_v35, %v5260_v35  ;;  %7173 = vmatmul.bf16.gmra.mxu3 %v7081_v47  ;;  %v5128_v0 = vadd.f32 %v5073_v29, %v4702_v38  ;;  %6795 = vmatmul.bf16.gmra.mxu2 %v11814_v36  ;;  %v3673_v27 = vpop.f32.mrf.mxu1  ;;  %v11854_v21 = vld [vmem:[#allocation3 + $0x18] sm:$0xff] }
 0x2ea   : > { %v6148_v53 = vrot.slane %v6146_v52, 4  ;;  %v11177_v40 = vrot.slane %v6873_v45, 9  ;;  %v6140_v11 = vrot.slane %v6139_v42, 4  ;;  %v6935_v57 = vrot.slane %v13863_v54, 5  ;;  %v14022_v29 = vpop.f32.mrf.mxu3 }
 0x2eb   : > { %v5523_v10 = vor.u32 %v5521_v31, %v5520_v23  ;;  %v5731_v39 = vsel %vm12227_vm2, %v5520_v23, %v5659_v34  ;;  %v5332_v25 = vunpack.c.l.b16 %v5292_v19  ;;  %v5164_v37 = vadd.f32 %v13893_v13, %v5128_v0  ;;  %v16052_v34 = vld [vmem:[#allocation10_spill] sm:$0xff] }
 0x2ec   : > { %v5795_v56 = vunpack.c.l.b16 %v5731_v39  ;;  %v6149_v24 = vor.u32 %v6148_v53, %v6144_v1  ;;  %v3968_v2 = vpop.f32.mrf.mxu2  ;;  %v6154_v58 = vrot.slane %v6152_v44, 5  ;;  %v6145_v61 = vsel %vm12318_vm5, %v6140_v11, %v6144_v1 }
 0x2ed   : > { %v5715_v59 = vsel %vm12227_vm2, %v13989_v14, %v5523_v10  ;;  %vm5196_vm13 = vcmp.gt.f32.partialorder %v5164_v37, 0.0  ;;  %v5229_v20 = vmul.f32 %v13516_v30, %v5164_v37  ;;  %v5348_v55 = vpack.c.b16 %v5332_v25, %v5332_v25 }
 0x2ee   : > { %v5793_v16 = vunpack.c.l.b16 %v5715_v59  ;;  %v5794_v26 = vunpack.c.h.b16 %v5715_v59  ;;  %v5843_v5 = vpack.c.b16 %v5795_v56, %v5795_v56  ;;  %v6150_v17 = vrot.slane %v6149_v24, 4 }
 0x2ef   : > { %v5261_v41 = vsel %vm5196_vm13, %v5164_v37, %v5229_v20  ;;  %v6445_v54 = vunpack.c.l.b16 %v6145_v61  ;;  %v4021_v14 = vadd.f32 %v3968_v2, %v13587_v60  ;;  %v6936_v38 = vsel %vm12663_vm8, %v11177_v40, %v6935_v57  ;;  %v14051_v20 = vld [vmem:[#allocation3 + $0x40] sm:$0xf] }
 0x2f0   : > { %v5841_v63 = vpack.c.b16 %v5793_v16, %v5793_v16  ;;  %v5842_v47 = vpack.c.b16 %v5794_v26, %v5794_v26  ;;  %5940 = vst [vmem:[#allocation3 + $0x68] sm:$0x1] %v5843_v5  ;;  %v5293_v15 = vpack.c.bf16 %v5261_v41, %v5261_v41  ;;  %v5078_v45 = vpop.f32.mrf.mxu0  ;;  %v6155_v31 = vsel %vm12318_vm5, %v6150_v17, %v6154_v58  ;;  %v11815_v5 = vld [vmem:[#allocation3 + $0x18] sm:$0xff] }
 0x2f1   : > { %v6937_v36 = vrot.slane %v6935_v57, 4  ;;  %v6938_v35 = vrot.slane %v13865_v22, 5  ;;  %v14038_v1 = vadd.f32 %v13982_v7, %v16051_v32  ;;  %v6446_v23 = vunpack.c.l.b16 %v6155_v31  ;;  %v5982_v22 = vld [vmem:[#allocation3 + $0x3c] sm:$0xf] }
 0x2f2   : > { %5938 = vst [vmem:[#allocation3 + $0x60] sm:$0xf] %v5841_v63  ;;  %v5444_v52 = vunpack.c.l.b16 %v5293_v15  ;;  %v4703_v60 = vadd.f32 %v13980_v8, %v4021_v14  ;;  %v14042_v19 = vadd.f32 %v3670_v4, %v16052_v34  ;;  %v5381_v0 = vshrl.u32 %v5348_v55, 16  ;;  %7487 = vmatmul.bf16.gmra.mxu0 %v11854_v21  ;;  %v14047_v37 = vpop.f32.mrf.mxu3  ;;  %v3675_v21 = vpop.f32.mrf.mxu1 }
 0x2f3   : > { %5939 = vst [vmem:[#allocation3 + $0x64] sm:$0xf] %v5842_v47  ;;  %v6939_v42 = vsel %vm12663_vm8, %v6937_v36, %v6938_v35  ;;  %v7052_v53 = vunpack.c.l.b16 %v6936_v38  ;;  %v6473_v7 = vpack.c.b16 %v6446_v23, %v6445_v54  ;;  %v6157_v56 = vshrl.u32 %v5982_v22, 16 }
 0x2f4   : > { %v5460_v44 = vpack.c.b16 %v5444_v52, %v5332_v25  ;;  %v5620_v40 = vpack.c.b16 %v5444_v52, %v5444_v52  ;;  %v5129_v10 = vadd.f32 %v14014_v48, %v4703_v60  ;;  %v3970_v39 = vpop.f32.mrf.mxu2  ;;  %v7053_v8 = vunpack.c.l.b16 %v6939_v42  ;;  %v14054_v48 = vld [vmem:[#allocation3 + $0x44] sm:$0x1] }
 0x2f5   : > { %v4022_v4 = vadd.f32 %v3970_v39, %v13630_v51  ;;  %v6160_v11 = vshll.u32 %v5982_v22, 16  ;;  %v6159_v16 = vrot.slane %v6157_v56, 4  ;;  %v6166_v63 = vshll.u32 %v14051_v20, 16 }
 0x2f6   : > { %v5525_v24 = vshrl.u32 %v5460_v44, 16  ;;  %v5528_v2 = vshll.u32 %v5460_v44, 16  ;;  %v5661_v57 = vshll.u32 %v5620_v40, 16  ;;  %v5165_v59 = vadd.f32 %v13893_v13, %v5129_v10  ;;  %6577 = vmatmul.bf16.gmra.mxu1 %v6473_v7  ;;  %v6874_v10 = vld [vmem:[#allocation3 + $0x24] sm:$0xe] }
 0x2f7   : > { %v7082_v25 = vpack.c.b16 %v7053_v8, %v7052_v53  ;;  %v4704_v58 = vadd.f32 %v14007_v3, %v4022_v4  ;;  %v6162_v26 = vrot.slane %v6160_v11, 5  ;;  %v6170_v47 = vshrl.u32 %v14051_v20, 16 }
 0x2f8   : > { %v5527_v61 = vrot.slane %v5525_v24, 7  ;;  %v5663_v51 = vrot.slane %v5661_v57, 3  ;;  %vm5197_vm14 = vcmp.gt.f32.partialorder %v5165_v59, 0.0  ;;  %v5230_v55 = vmul.f32 %v13516_v30, %v5165_v59  ;;  %v5081_v41 = vpop.f32.mrf.mxu0 }
 0x2f9   : > { %7178 = vmatmul.bf16.gmra.mxu3 %v7082_v25  ;;  %v5130_v17 = vadd.f32 %v5078_v45, %v4704_v58  ;;  %v6163_v54 = vor.u32 %v6162_v26, %v6159_v16  ;;  %6800 = vmatmul.bf16.gmra.mxu2 %v11815_v5  ;;  %v6176_v31 = vshll.u32 %v14054_v48, 16  ;;  %v16053_v45 = vld [vmem:[#allocation14_spill] sm:$0xff]  ;;  %v6168_v60 = vrot.slane %v6166_v63, 5  ;;  %v16054_v58 = vld [vmem:[#allocation15_spill] sm:$0xff] }
 0x2fa   : > { %v5530_v3 = vor.u32 %v5528_v2, %v5527_v61  ;;  %v5732_v15 = vsel %vm12227_vm2, %v5527_v61, %v5663_v51  ;;  %v5262_v14 = vsel %vm5197_vm14, %v5165_v59, %v5230_v55  ;;  %v14064_v52 = vadd.f32 %v3673_v27, %v16053_v45  ;;  %v14068_v53 = vpop.f32.mrf.mxu3  ;;  %v11855_v61 = vld [vmem:[#allocation3 + $0x24] sm:$0xff]  ;;  %v14078_v55 = vld [vmem:[#allocation3 + $0x30] sm:$0xe] }
 0x2fb   : > { %v5798_v38 = vunpack.c.l.b16 %v5732_v15  ;;  %v5294_v36 = vpack.c.bf16 %v5262_v14, %v5262_v14  ;;  %v5166_v35 = vadd.f32 %v13893_v13, %v5130_v17  ;;  %v6164_v32 = vrot.slane %v6163_v54, 4 }
 0x2fc   : > { %v5716_v23 = vsel %vm12227_vm2, %v5381_v0, %v5530_v3  ;;  %v6172_v34 = vrot.slane %v6170_v47, 4  ;;  %v3973_v42 = vpop.f32.mrf.mxu2  ;;  %v6178_v11 = vrot.slane %v6176_v31, 5  ;;  %v11178_v25 = vrot.slane %v6874_v10, 9 }
 0x2fd   : > { %v5796_v22 = vunpack.c.l.b16 %v5716_v23  ;;  %v5797_v44 = vunpack.c.h.b16 %v5716_v23  ;;  %v5846_v40 = vpack.c.b16 %v5798_v38, %v5798_v38  ;;  %v5333_v7 = vunpack.c.l.b16 %v5294_v36  ;;  %v5984_v38 = vld [vmem:[#allocation3 + $0x48] sm:$0xf] }
 0x2fe   : > { %vm5198_vm15 = vcmp.gt.f32.partialorder %v5166_v35, 0.0  ;;  %v5231_v39 = vmul.f32 %v13516_v30, %v5166_v35  ;;  %v6169_v27 = vsel %vm12318_vm5, %v6164_v32, %v6168_v60  ;;  %v6173_v8 = vor.u32 %v6172_v34, %v6168_v60 }
 0x2ff   : > { %v5844_v4 = vpack.c.b16 %v5796_v22, %v5796_v22  ;;  %v5845_v56 = vpack.c.b16 %v5797_v44, %v5797_v44  ;;  %5943 = vst [vmem:[#allocation3 + $0x74] sm:$0x1] %v5846_v40  ;;  %v5349_v0 = vpack.c.b16 %v5333_v7, %v5333_v7  ;;  %v4023_v57 = vadd.f32 %v3973_v42, %v13638_v43  ;;  %v11816_v40 = vld [vmem:[#allocation3 + $0x24] sm:$0xff] }
 0x300   : > { %v5263_v24 = vsel %vm5198_vm15, %v5166_v35, %v5231_v39  ;;  %v6174_v2 = vrot.slane %v6173_v8, 4  ;;  %v5083_v59 = vpop.f32.mrf.mxu0  ;;  %v14075_v16 = vadd.f32 %v3675_v21, %v16054_v58  ;;  %v6447_v5 = vunpack.c.l.b16 %v6169_v27 }
 0x301   : > { %5941 = vst [vmem:[#allocation3 + $0x6c] sm:$0xf] %v5844_v4  ;;  %v5295_v26 = vpack.c.bf16 %v5263_v24, %v5263_v24  ;;  %v6942_v51 = vrot.slane %v13948_v46, 5  ;;  %v5384_v17 = vshrl.u32 %v5349_v0, 16  ;;  %v4705_v43 = vadd.f32 %v14022_v29, %v4023_v57  ;;  %v3678_v29 = vpop.f32.mrf.mxu1 }
 0x302   : > { %5942 = vst [vmem:[#allocation3 + $0x70] sm:$0xf] %v5845_v56  ;;  %v6179_v54 = vsel %vm12318_vm5, %v6174_v2, %v6178_v11  ;;  %v6945_v63 = vrot.slane %v13968_v12, 5  ;;  %7492 = vmatmul.bf16.gmra.mxu0 %v11855_v61  ;;  %v14086_v36 = vpop.f32.mrf.mxu3  ;;  %v11179_v35 = vrot.slane %v14078_v55, 9  ;;  %v6949_v32 = vrot.slane %v13998_v49, 5 }
 0x303   : > { %v5445_v47 = vunpack.c.l.b16 %v5295_v26  ;;  %v6448_v3 = vunpack.c.l.b16 %v6179_v54  ;;  %v6943_v15 = vsel %vm12663_vm8, %v11178_v25, %v6942_v51  ;;  %v6944_v14 = vrot.slane %v6942_v51, 4  ;;  %v14103_v26 = vld [vmem:[#allocation3 + $0x50] sm:$0x1] }
 0x304   : > { %v5131_v31 = vadd.f32 %v5081_v41, %v4705_v43  ;;  %v7054_v46 = vunpack.c.l.b16 %v6943_v15  ;;  %v3975_v21 = vpop.f32.mrf.mxu2  ;;  %v11881_v41 = vld [vmem:[%s15980_s3 + $0x120] sm:$0xff]  ;;  %v6181_v44 = vshrl.u32 %v5984_v38, 16  ;;  %v6184_v8 = vshll.u32 %v5984_v38, 16 }
 0x305   : > { %v5461_v45 = vpack.c.b16 %v5445_v47, %v5333_v7  ;;  %v5621_v12 = vpack.c.b16 %v5445_v47, %v5445_v47  ;;  %v6474_v23 = vpack.c.b16 %v6448_v3, %v6447_v5  ;;  %v6946_v60 = vsel %vm12663_vm8, %v6944_v14, %v6945_v63  ;;  %v14097_v7 = vld [vmem:[#allocation3 + $0x4c] sm:$0xf]  ;;  %8159 = vmatpush.bf16.msrb.mxu1 %v11881_v41 }
 0x306   : > { %v5167_v34 = vadd.f32 %v13893_v13, %v5131_v31  ;;  %v7055_v42 = vunpack.c.l.b16 %v6946_v60  ;;  %v4024_v22 = vadd.f32 %v3975_v21, %v13854_v33  ;;  %v6183_v2 = vrot.slane %v6181_v44, 4 }
 0x307   : > { %v5532_v10 = vshrl.u32 %v5461_v45, 16  ;;  %v5535_v39 = vshll.u32 %v5461_v45, 16  ;;  %v5665_v27 = vshll.u32 %v5621_v12, 16  ;;  %6582 = vmatmul.bf16.gmra.mxu1 %v6474_v23  ;;  %v6186_v57 = vrot.slane %v6184_v8, 5 }
 0x308   : > { %vm5199_vm0 = vcmp.gt.f32.partialorder %v5167_v34, 0.0  ;;  %v5232_v4 = vmul.f32 %v13516_v30, %v5167_v34  ;;  %v7083_v56 = vpack.c.b16 %v7055_v42, %v7054_v46  ;;  %v4706_v0 = vadd.f32 %v14047_v37, %v4024_v22  ;;  %v14101_v11 = vpop.f32.mrf.mxu0 }
 0x309   : > { %v5534_v24 = vrot.slane %v5532_v10, 7  ;;  %v5667_v33 = vrot.slane %v5665_v27, 3  ;;  %6805 = vmatmul.bf16.gmra.mxu2 %v11816_v40  ;;  %v6190_v5 = vshll.u32 %v14097_v7, 16  ;;  %v6194_v61 = vshrl.u32 %v14097_v7, 16  ;;  %v14115_v60 = vpop.f32.mrf.mxu1 }
 0x30a   : > { %v5264_v25 = vsel %vm5199_vm0, %v5167_v34, %v5232_v4  ;;  %7183 = vmatmul.bf16.gmra.mxu3 %v7083_v56  ;;  %v5132_v58 = vadd.f32 %v5083_v59, %v4706_v0  ;;  %v6187_v43 = vor.u32 %v6186_v57, %v6183_v2  ;;  %v6200_v21 = vshll.u32 %v14103_v26, 16  ;;  %v14113_v38 = vpop.f32.mrf.mxu3  ;;  %v11856_v0 = vld [vmem:[#allocation3 + $0x30] sm:$0xff] }
 0x30b   : > { %v5537_v51 = vor.u32 %v5535_v39, %v5534_v24  ;;  %v5733_v37 = vsel %vm12227_vm2, %v5534_v24, %v5667_v33  ;;  %v5296_v54 = vpack.c.bf16 %v5264_v25, %v5264_v25  ;;  %v6192_v3 = vrot.slane %v6190_v5, 5  ;;  %v5986_v25 = vld [vmem:[#allocation3 + $0x54] sm:$0xf] }
 0x30c   : > { %v5801_v63 = vunpack.c.l.b16 %v5733_v37  ;;  %v5168_v47 = vadd.f32 %v13893_v13, %v5132_v58  ;;  %v6196_v15 = vrot.slane %v6194_v61, 4  ;;  %v3978_v14 = vpop.f32.mrf.mxu2  ;;  %v6188_v46 = vrot.slane %v6187_v43, 4  ;;  %v14140_v43 = vld [vmem:[#allocation3 + $0x58] sm:$0xf] }
 0x30d   : > { %v5717_v59 = vsel %vm12227_vm2, %v5384_v17, %v5537_v51  ;;  %v5334_v31 = vunpack.c.l.b16 %v5296_v54  ;;  %v16055_v17 = vld [vmem:[#allocation13_spill] sm:$0xff]  ;;  %v6950_v27 = vsel %vm12663_vm8, %v11179_v35, %v6949_v32  ;;  %v6202_v56 = vrot.slane %v6200_v21, 5 }
 0x30e   : > { %v5799_v45 = vunpack.c.l.b16 %v5717_v59  ;;  %v5800_v12 = vunpack.c.h.b16 %v5717_v59  ;;  %v5849_v23 = vpack.c.b16 %v5801_v63, %v5801_v63  ;;  %vm5200_vm1 = vcmp.gt.f32.partialorder %v5168_v47, 0.0 }
 0x30f   : > { %v5350_v41 = vpack.c.b16 %v5334_v31, %v5334_v31  ;;  %v5233_v34 = vmul.f32 %v13516_v30, %v5168_v47  ;;  %v6193_v42 = vsel %vm12318_vm5, %v6188_v46, %v6192_v3  ;;  %v6197_v22 = vor.u32 %v6196_v15, %v6192_v3 }
 0x310   : > { %v14121_v44 = vadd.f32 %v3678_v29, %v16055_v17  ;;  %v5847_v40 = vpack.c.b16 %v5799_v45, %v5799_v45  ;;  %v5848_v10 = vpack.c.b16 %v5800_v12, %v5800_v12  ;;  %5946 = vst [vmem:[#allocation3 + $0x80] sm:$0x1] %v5849_v23  ;;  %v5088_v39 = vpop.f32.mrf.mxu0  ;;  %v4025_v24 = vadd.f32 %v3978_v14, %v13882_v9  ;;  %v11817_v12 = vld [vmem:[#allocation3 + $0x30] sm:$0xff] }
 0x311   : > { %v5265_v8 = vsel %vm5200_vm1, %v5168_v47, %v5233_v34  ;;  %v6198_v4 = vrot.slane %v6197_v22, 4  ;;  %v6449_v33 = vunpack.c.l.b16 %v6193_v42  ;;  %v6951_v2 = vrot.slane %v6949_v32, 4  ;;  %v14148_v34 = vld [vmem:[#allocation3 + $0x5c] sm:$0x1]  ;;  %v14151_v42 = vpop.f32.mrf.mxu1 }
 0x312   : > { %5944 = vst [vmem:[#allocation3 + $0x78] sm:$0xf] %v5847_v40  ;;  %v5297_v29 = vpack.c.bf16 %v5265_v8, %v5265_v8  ;;  %v6952_v57 = vrot.slane %v14012_v62, 5  ;;  %v5387_v55 = vshrl.u32 %v5350_v41, 16  ;;  %7497 = vmatmul.bf16.gmra.mxu0 %v11856_v0  ;;  %v4707_v58 = vadd.f32 %v14068_v53, %v4025_v24  ;;  %v14144_v45 = vpop.f32.mrf.mxu3 }
 0x313   : > { %5945 = vst [vmem:[#allocation3 + $0x7c] sm:$0xf] %v5848_v10  ;;  %v6203_v35 = vsel %vm12318_vm5, %v6198_v4, %v6202_v56  ;;  %v7056_v5 = vunpack.c.l.b16 %v6950_v27  ;;  %v6205_v49 = vshrl.u32 %v5986_v25, 16  ;;  %v6208_v63 = vshll.u32 %v5986_v25, 16 }
 0x314   : > { %v5446_v61 = vunpack.c.l.b16 %v5297_v29  ;;  %v6450_v9 = vunpack.c.l.b16 %v6203_v35  ;;  %v6953_v51 = vsel %vm12663_vm8, %v6951_v2, %v6952_v57  ;;  %v3980_v37 = vpop.f32.mrf.mxu2  ;;  %v5133_v32 = vadd.f32 %v14101_v11, %v4707_v58 }
 0x315   : > { %v7057_v62 = vunpack.c.l.b16 %v6953_v51  ;;  %v4026_v54 = vadd.f32 %v3980_v37, %v13994_v6  ;;  %v6207_v53 = vrot.slane %v6205_v49, 4  ;;  %v6210_v21 = vrot.slane %v6208_v63, 5  ;;  %v6876_v51 = vld [vmem:[#allocation3 + $0x3c] sm:$0xe] }
 0x316   : > { %v5462_v47 = vpack.c.b16 %v5446_v61, %v5334_v31  ;;  %v5622_v3 = vpack.c.b16 %v5446_v61, %v5446_v61  ;;  %v6475_v15 = vpack.c.b16 %v6450_v9, %v6449_v33  ;;  %v5169_v14 = vadd.f32 %v13893_v13, %v5133_v32 }
 0x317   : > { %v7084_v59 = vpack.c.b16 %v7057_v62, %v7056_v5  ;;  %v4708_v46 = vadd.f32 %v14086_v36, %v4026_v54  ;;  %v6214_v31 = vshll.u32 %v14140_v43, 16  ;;  %v6211_v17 = vor.u32 %v6210_v21, %v6207_v53 }
 0x318   : > { %v5539_v11 = vshrl.u32 %v5462_v47, 16  ;;  %v5542_v23 = vshll.u32 %v5462_v47, 16  ;;  %v5669_v41 = vshll.u32 %v5622_v3, 16  ;;  %6587 = vmatmul.bf16.gmra.mxu1 %v6475_v15  ;;  %v14146_v6 = vpop.f32.mrf.mxu0  ;;  %vm5201_vm3 = vcmp.gt.f32.partialorder %v5169_v14, 0.0 }
 0x319   : > { %v5234_v22 = vmul.f32 %v13516_v30, %v5169_v14  ;;  %v5134_v36 = vadd.f32 %v5088_v39, %v4708_v46  ;;  %6810 = vmatmul.bf16.gmra.mxu2 %v11817_v12  ;;  %v6216_v27 = vrot.slane %v6214_v31, 5  ;;  %v6218_v8 = vshrl.u32 %v14140_v43, 16  ;;  %v16056_v12 = vld [vmem:[#allocation17_spill] sm:$0xff] }
 0x31a   : > { %v5541_v40 = vrot.slane %v5539_v11, 7  ;;  %v5671_v10 = vrot.slane %v5669_v41, 3  ;;  %7188 = vmatmul.bf16.gmra.mxu3 %v7084_v59  ;;  %v6212_v0 = vrot.slane %v6211_v17, 4  ;;  %v6224_v24 = vshll.u32 %v14148_v34, 16  ;;  %v11857_v59 = vld [vmem:[#allocation3 + $0x3c] sm:$0xff]  ;;  %v14165_v21 = vpop.f32.mrf.mxu3 }
 0x31b   : > { %v5266_v4 = vsel %vm5201_vm3, %v5169_v14, %v5234_v22  ;;  %v5170_v56 = vadd.f32 %v13893_v13, %v5134_v36  ;;  %v6220_v39 = vrot.slane %v6218_v8, 4  ;;  %v14169_v11 = vadd.f32 %v14115_v60, %v16056_v12  ;;  %v14174_v22 = vpop.f32.mrf.mxu1  ;;  %v11880_v60 = vld [vmem:[%s15980_s3 + $0x118] sm:$0xff] }
 0x31c   : > { %v5544_v29 = vor.u32 %v5542_v23, %v5541_v40  ;;  %v5734_v33 = vsel %vm12227_vm2, %v5541_v40, %v5671_v10  ;;  %v5298_v2 = vpack.c.bf16 %v5266_v4, %v5266_v4  ;;  %v3983_v57 = vpop.f32.mrf.mxu2  ;;  %v6217_v58 = vsel %vm12318_vm5, %v6212_v0, %v6216_v27  ;;  %8160 = vmatpush.bf16.msrb.mxu1 %v11880_v60 }
 0x31d   : > { %v5804_v25 = vunpack.c.l.b16 %v5734_v33  ;;  %vm5202_vm4 = vcmp.gt.f32.partialorder %v5170_v56, 0.0  ;;  %v5235_v35 = vmul.f32 %v13516_v30, %v5170_v56  ;;  %v6221_v61 = vor.u32 %v6220_v39, %v6216_v27 }
 0x31e   : > { %v5718_v13 = vsel %vm12227_vm2, %v5387_v55, %v5544_v29  ;;  %v5335_v5 = vunpack.c.l.b16 %v5298_v2  ;;  %v6226_v9 = vrot.slane %v6224_v24, 5  ;;  %v6451_v3 = vunpack.c.l.b16 %v6217_v58 }
 0x31f   : > { %v5802_v37 = vunpack.c.l.b16 %v5718_v13  ;;  %v5803_v49 = vunpack.c.h.b16 %v5718_v13  ;;  %v5852_v32 = vpack.c.b16 %v5804_v25, %v5804_v25  ;;  %v5267_v62 = vsel %vm5202_vm4, %v5170_v56, %v5235_v35  ;;  %v5988_v56 = vld [vmem:[#allocation3 + $0x60] sm:$0xf]  ;;  %v14192_v25 = vld [vmem:[%s15979_s2] ss:$0 sm:$0xff] }
 0x320   : > { %v5351_v54 = vpack.c.b16 %v5335_v5, %v5335_v5  ;;  %v5299_v63 = vpack.c.bf16 %v5267_v62, %v5267_v62  ;;  %v6222_v47 = vrot.slane %v6221_v61, 4  ;;  %v5093_v15 = vpop.f32.mrf.mxu0  ;;  %v4027_v46 = vadd.f32 %v3983_v57, %v14038_v1  ;;  %v11818_v13 = vld [vmem:[#allocation3 + $0x3c] sm:$0xff] }
 0x321   : > { %v5850_v53 = vpack.c.b16 %v5802_v37, %v5802_v37  ;;  %v5851_v14 = vpack.c.b16 %v5803_v49, %v5803_v49  ;;  %5949 = vst [vmem:[#allocation3 + $0x8c] sm:$0x1] %v5852_v32  ;;  %v11180_v55 = vrot.slane %v6876_v51, 9  ;;  %v6956_v31 = vrot.slane %v14051_v20, 5 }
 0x322   : > { %v5447_v23 = vunpack.c.l.b16 %v5299_v63  ;;  %v6227_v41 = vsel %vm12318_vm5, %v6222_v47, %v6226_v9  ;;  %v5390_v36 = vshrl.u32 %v5351_v54, 16  ;;  %7502 = vmatmul.bf16.gmra.mxu0 %v11857_v59  ;;  %v4709_v1 = vadd.f32 %v14113_v38, %v4027_v46 }
 0x323   : > { %5947 = vst [vmem:[#allocation3 + $0x84] sm:$0xf] %v5850_v53  ;;  %v6452_v17 = vunpack.c.l.b16 %v6227_v41  ;;  %v6959_v40 = vrot.slane %v14054_v48, 5  ;;  %v6957_v20 = vsel %vm12663_vm8, %v11180_v55, %v6956_v31  ;;  %v6958_v8 = vrot.slane %v6956_v31, 4  ;;  %v14185_v48 = vld [vmem:[#allocation3 + $0x64] sm:$0xf]  ;;  %v14203_v55 = vpop.f32.mrf.mxu3 }
 0x324   : > { %5948 = vst [vmem:[#allocation3 + $0x88] sm:$0xf] %v5851_v14  ;;  %v5463_v10 = vpack.c.b16 %v5447_v23, %v5335_v5  ;;  %v5623_v27 = vpack.c.b16 %v5447_v23, %v5447_v23  ;;  %v3985_v4 = vpop.f32.mrf.mxu2  ;;  %v5135_v24 = vadd.f32 %v14146_v6, %v4709_v1  ;;  %v7058_v29 = vunpack.c.l.b16 %v6957_v20  ;;  %v14207_v23 = vld [vmem:[#allocation3 + $0x68] sm:$0x1] }
 0x325   : > { %v6476_v0 = vpack.c.b16 %v6452_v17, %v6451_v3  ;;  %v4028_v38 = vadd.f32 %v3985_v4, %v14042_v19  ;;  %v6960_v57 = vsel %vm12663_vm8, %v6958_v8, %v6959_v40  ;;  %v6229_v19 = vshrl.u32 %v5988_v56, 16 }
 0x326   : > { %v5546_v33 = vshrl.u32 %v5463_v10, 16  ;;  %v5549_v2 = vshll.u32 %v5463_v10, 16  ;;  %v5673_v39 = vshll.u32 %v5623_v27, 16  ;;  %v5171_v35 = vadd.f32 %v14192_v25, %v5135_v24  ;;  %v6877_v24 = vld [vmem:[#allocation3 + $0x48] sm:$0xe] }
 0x327   : > { %v7059_v6 = vunpack.c.l.b16 %v6960_v57  ;;  %v4710_v58 = vadd.f32 %v14144_v45, %v4028_v38  ;;  %v6232_v51 = vshll.u32 %v5988_v56, 16  ;;  %v6238_v37 = vshll.u32 %v14185_v48, 16 }
 0x328   : > { %v5548_v5 = vrot.slane %v5546_v33, 7  ;;  %v5675_v61 = vrot.slane %v5673_v39, 3  ;;  %6592 = vmatmul.bf16.gmra.mxu1 %v6476_v0  ;;  %v5096_v9 = vpop.f32.mrf.mxu0  ;;  %vm5203_vm6 = vcmp.gt.f32.partialorder %v5171_v35, 0.0  ;;  %v5236_v49 = vmul.f32 %v13516_v30, %v5171_v35  ;;  %v14215_v39 = vld [vmem:[#allocation3 + $0x54] sm:$0xe] }
 0x329   : > { %v7085_v32 = vpack.c.b16 %v7059_v6, %v7058_v29  ;;  %v5136_v62 = vadd.f32 %v5093_v15, %v4710_v58  ;;  %6815 = vmatmul.bf16.gmra.mxu2 %v11818_v13  ;;  %v6231_v45 = vrot.slane %v6229_v19, 4  ;;  %v6234_v47 = vrot.slane %v6232_v51, 5  ;;  %v11858_v58 = vld [vmem:[#allocation3 + $0x48] sm:$0xff] }
 0x32a   : > { %v5551_v54 = vor.u32 %v5549_v2, %v5548_v5  ;;  %v5735_v63 = vsel %vm12227_vm2, %v5548_v5, %v5675_v61  ;;  %v5268_v53 = vsel %vm5203_vm6, %v5171_v35, %v5236_v49  ;;  %v6240_v46 = vrot.slane %v6238_v37, 5 }
 0x32b   : > { %v5807_v3 = vunpack.c.l.b16 %v5735_v63  ;;  %7193 = vmatmul.bf16.gmra.mxu3 %v7085_v32  ;;  %v14200_v14 = vpop.f32.mrf.mxu1  ;;  %v5172_v59 = vadd.f32 %v14192_v25, %v5136_v62  ;;  %v5300_v12 = vpack.c.bf16 %v5268_v53, %v5268_v53  ;;  %v6235_v41 = vor.u32 %v6234_v47, %v6231_v45 }
 0x32c   : > { %v5719_v15 = vsel %vm12227_vm2, %v5390_v36, %v5551_v54  ;;  %v6242_v31 = vshrl.u32 %v14185_v48, 16  ;;  %v3988_v17 = vpop.f32.mrf.mxu2  ;;  %v6248_v36 = vshll.u32 %v14207_v23, 16  ;;  %v11181_v61 = vrot.slane %v6877_v24, 9 }
 0x32d   : > { %v5805_v1 = vunpack.c.l.b16 %v5719_v15  ;;  %v5806_v40 = vunpack.c.h.b16 %v5719_v15  ;;  %v5855_v60 = vpack.c.b16 %v5807_v3, %v5807_v3  ;;  %vm5204_vm7 = vcmp.gt.f32.partialorder %v5172_v59, 0.0  ;;  %v5990_v3 = vld [vmem:[#allocation3 + $0x6c] sm:$0xf]  ;;  %v14229_v15 = vpop.f32.mrf.mxu3 }
 0x32e   : > { %v5336_v10 = vunpack.c.l.b16 %v5300_v12  ;;  %v5237_v27 = vmul.f32 %v13516_v30, %v5172_v59  ;;  %v6236_v20 = vrot.slane %v6235_v41, 4  ;;  %v6244_v8 = vrot.slane %v6242_v31, 4 }
 0x32f   : > { %v5853_v4 = vpack.c.b16 %v5805_v1, %v5805_v1  ;;  %v5854_v56 = vpack.c.b16 %v5806_v40, %v5806_v40  ;;  %5952 = vst [vmem:[#allocation3 + $0x98] sm:$0x1] %v5855_v60  ;;  %v4029_v0 = vadd.f32 %v3988_v17, %v14064_v52  ;;  %v6250_v35 = vrot.slane %v6248_v36, 5 }
 0x330   : > { %v5352_v29 = vpack.c.b16 %v5336_v10, %v5336_v10  ;;  %v5269_v38 = vsel %vm5204_vm7, %v5172_v59, %v5237_v27  ;;  %v6241_v33 = vsel %vm12318_vm5, %v6236_v20, %v6240_v46  ;;  %v6245_v2 = vor.u32 %v6244_v8, %v6240_v46  ;;  %v5098_v13 = vpop.f32.mrf.mxu0  ;;  %v14234_v27 = vld [vmem:[#allocation3 + $0x70] sm:$0xf] }
 0x331   : > { %5950 = vst [vmem:[#allocation3 + $0x90] sm:$0xf] %v5853_v4  ;;  %v5301_v57 = vpack.c.bf16 %v5269_v38, %v5269_v38  ;;  %v6453_v6 = vunpack.c.l.b16 %v6241_v33  ;;  %v4711_v19 = vadd.f32 %v14165_v21, %v4029_v0  ;;  %v6963_v51 = vrot.slane %v14097_v7, 5  ;;  %v14238_v33 = vld [vmem:[#allocation3 + $0x74] sm:$0x1] }
 0x332   : > { %5951 = vst [vmem:[#allocation3 + $0x94] sm:$0xf] %v5854_v56  ;;  %v5393_v5 = vshrl.u32 %v5352_v29, 16  ;;  %v6246_v52 = vrot.slane %v6245_v2, 4  ;;  %7507 = vmatmul.bf16.gmra.mxu0 %v11858_v58  ;;  %v6966_v62 = vrot.slane %v14103_v26, 5  ;;  %v11182_v54 = vrot.slane %v14215_v39, 9 }
 0x333   : > { %v5448_v37 = vunpack.c.l.b16 %v5301_v57  ;;  %v14219_v49 = vpop.f32.mrf.mxu1  ;;  %v5137_v32 = vadd.f32 %v5096_v9, %v4711_v19  ;;  %v6964_v21 = vsel %vm12663_vm8, %v11181_v61, %v6963_v51  ;;  %v6965_v45 = vrot.slane %v6963_v51, 4 }
 0x334   : > { %v6251_v63 = vsel %vm12318_vm5, %v6246_v52, %v6250_v35  ;;  %v3990_v47 = vpop.f32.mrf.mxu2  ;;  %v6970_v7 = vrot.slane %v14140_v43, 5  ;;  %v7060_v12 = vunpack.c.l.b16 %v6964_v21  ;;  %v6253_v31 = vshrl.u32 %v5990_v3, 16  ;;  %v11879_v43 = vld [vmem:[%s15980_s3 + $0x110] sm:$0xff] }
 0x335   : > { %v5464_v53 = vpack.c.b16 %v5448_v37, %v5336_v10  ;;  %v5624_v59 = vpack.c.b16 %v5448_v37, %v5448_v37  ;;  %v6454_v46 = vunpack.c.l.b16 %v6251_v63  ;;  %v5173_v9 = vadd.f32 %v14192_v25, %v5137_v32  ;;  %v11819_v10 = vld [vmem:[#allocation3 + $0x48] sm:$0xff]  ;;  %8161 = vmatpush.bf16.msrb.mxu1 %v11879_v43 }
 0x336   : > { %v6967_v26 = vsel %vm12663_vm8, %v6965_v45, %v6966_v62  ;;  %v4030_v41 = vadd.f32 %v3990_v47, %v14075_v16  ;;  %v6255_v0 = vrot.slane %v6253_v31, 4  ;;  %v6256_v24 = vshll.u32 %v5990_v3, 16 }
 0x337   : > { %v5553_v17 = vshrl.u32 %v5464_v53, 16  ;;  %v5556_v1 = vshll.u32 %v5464_v53, 16  ;;  %v5677_v40 = vshll.u32 %v5624_v59, 16  ;;  %v6477_v60 = vpack.c.b16 %v6454_v46, %v6453_v6 }
 0x338   : > { %vm5205_vm9 = vcmp.gt.f32.partialorder %v5173_v9, 0.0  ;;  %v5238_v20 = vmul.f32 %v13516_v30, %v5173_v9  ;;  %v7061_v8 = vunpack.c.l.b16 %v6967_v26  ;;  %v4712_v4 = vadd.f32 %v14203_v55, %v4030_v41  ;;  %v5101_v58 = vpop.f32.mrf.mxu0  ;;  %v4677_v26 = vpop.f32.mrf.mxu3 }
 0x339   : > { %v5555_v56 = vrot.slane %v5553_v17, 7  ;;  %v5679_v36 = vrot.slane %v5677_v40, 3  ;;  %6597 = vmatmul.bf16.gmra.mxu1 %v6477_v60  ;;  %6820 = vmatmul.bf16.gmra.mxu2 %v11819_v10  ;;  %v6262_v2 = vshll.u32 %v14234_v27, 16  ;;  %v6258_v55 = vrot.slane %v6256_v24, 5 }
 0x33a   : > { %v5270_v16 = vsel %vm5205_vm9, %v5173_v9, %v5238_v20  ;;  %v7086_v29 = vpack.c.b16 %v7061_v8, %v7060_v12  ;;  %v5138_v38 = vadd.f32 %v5098_v13, %v4712_v4  ;;  %v6266_v13 = vshrl.u32 %v14234_v27, 16  ;;  %v16057_v12 = vld [vmem:[#allocation18_spill] sm:$0xff]  ;;  %v11859_v8 = vld [vmem:[#allocation3 + $0x54] sm:$0xff] }
 0x33b   : > { %v5558_v57 = vor.u32 %v5556_v1, %v5555_v56  ;;  %v5736_v35 = vsel %vm12227_vm2, %v5555_v56, %v5679_v36  ;;  %v5302_v6 = vpack.c.bf16 %v5270_v16, %v5270_v16  ;;  %v14243_v52 = vpop.f32.mrf.mxu1  ;;  %v6264_v51 = vrot.slane %v6262_v2, 5  ;;  %v16058_v1 = vld [vmem:[#allocation16_spill] sm:$0xff] }
 0x33c   : > { %v5810_v19 = vunpack.c.l.b16 %v5736_v35  ;;  %7198 = vmatmul.bf16.gmra.mxu3 %v7086_v29  ;;  %v5174_v61 = vadd.f32 %v14192_v25, %v5138_v38  ;;  %v3993_v37 = vpop.f32.mrf.mxu2  ;;  %v6259_v63 = vor.u32 %v6258_v55, %v6255_v0  ;;  %v6272_v21 = vshll.u32 %v14238_v33, 16 }
 0x33d   : > { %v5720_v32 = vsel %vm12227_vm2, %v5393_v5, %v5558_v57  ;;  %v5337_v62 = vunpack.c.l.b16 %v5302_v6  ;;  %v6268_v9 = vrot.slane %v6266_v13, 4  ;;  %v14253_v41 = vadd.f32 %v14151_v42, %v16057_v12  ;;  %v5992_v57 = vld [vmem:[#allocation3 + $0x78] sm:$0xf] }
 0x33e   : > { %v5808_v45 = vunpack.c.l.b16 %v5720_v32  ;;  %v5809_v47 = vunpack.c.h.b16 %v5720_v32  ;;  %v5858_v3 = vpack.c.b16 %v5810_v19, %v5810_v19  ;;  %vm5206_vm10 = vcmp.gt.f32.partialorder %v5174_v61, 0.0 }
 0x33f   : > { %v5353_v53 = vpack.c.b16 %v5337_v62, %v5337_v62  ;;  %v5239_v59 = vmul.f32 %v13516_v30, %v5174_v61  ;;  %v6260_v46 = vrot.slane %v6259_v63, 4  ;;  %v4031_v17 = vadd.f32 %v3993_v37, %v14121_v44  ;;  %v14283_v37 = vld [vmem:[#allocation3 + $0x7c] sm:$0xf] }
 0x340   : > { %v5856_v31 = vpack.c.b16 %v5808_v45, %v5808_v45  ;;  %v5857_v5 = vpack.c.b16 %v5809_v47, %v5809_v47  ;;  %5955 = vst [vmem:[#allocation3 + $0xa4] sm:$0x1] %v5858_v3  ;;  %v14258_v40 = vadd.f32 %v14174_v22, %v16058_v1  ;;  %v6269_v20 = vor.u32 %v6268_v9, %v6264_v51 }
 0x341   : > { %v5271_v60 = vsel %vm5206_vm10, %v5174_v61, %v5239_v59  ;;  %v6265_v10 = vsel %vm12318_vm5, %v6260_v46, %v6264_v51  ;;  %v6274_v56 = vrot.slane %v6272_v21, 5  ;;  %v4713_v42 = vadd.f32 %v14229_v15, %v4031_v17  ;;  %v5103_v61 = vpop.f32.mrf.mxu0 }
 0x342   : > { %5953 = vst [vmem:[#allocation3 + $0x9c] sm:$0xf] %v5856_v31  ;;  %v5303_v4 = vpack.c.bf16 %v5271_v60, %v5271_v60  ;;  %v6971_v44 = vsel %vm12663_vm8, %v11182_v54, %v6970_v7  ;;  %v5396_v22 = vshrl.u32 %v5353_v53, 16  ;;  %v6270_v36 = vrot.slane %v6269_v20, 4  ;;  %7512 = vmatmul.bf16.gmra.mxu0 %v11859_v8 }
 0x343   : > { %5954 = vst [vmem:[#allocation3 + $0xa0] sm:$0xf] %v5857_v5  ;;  %v6972_v0 = vrot.slane %v6970_v7, 4  ;;  %v6973_v24 = vrot.slane %v14148_v34, 5  ;;  %v6455_v29 = vunpack.c.l.b16 %v6265_v10  ;;  %v5139_v38 = vadd.f32 %v5101_v58, %v4713_v42  ;;  %v14280_v58 = vpop.f32.mrf.mxu1 }
 0x344   : > { %v5449_v16 = vunpack.c.l.b16 %v5303_v4  ;;  %v7062_v15 = vunpack.c.l.b16 %v6971_v44  ;;  %v3995_v2 = vpop.f32.mrf.mxu2  ;;  %v6275_v39 = vsel %vm12318_vm5, %v6270_v36, %v6274_v56  ;;  %v6277_v6 = vshrl.u32 %v5992_v57, 16 }
 0x345   : > { %v6974_v54 = vsel %vm12663_vm8, %v6972_v0, %v6973_v24  ;;  %v4032_v35 = vadd.f32 %v3995_v2, %v14169_v11  ;;  %v6456_v55 = vunpack.c.l.b16 %v6275_v39  ;;  %v5175_v19 = vadd.f32 %v14192_v25, %v5139_v38  ;;  %v11820_v11 = vld [vmem:[#allocation3 + $0x54] sm:$0xff] }
 0x346   : > { %v5465_v34 = vpack.c.b16 %v5449_v16, %v5337_v62  ;;  %v5625_v7 = vpack.c.b16 %v5449_v16, %v5449_v16  ;;  %v7063_v51 = vunpack.c.l.b16 %v6974_v54  ;;  %v6279_v32 = vrot.slane %v6277_v6, 4  ;;  %v14285_v62 = vld [vmem:[#allocation3 + $0x80] sm:$0x1] }
 0x347   : > { %v4714_v13 = vadd.f32 %v4677_v26, %v4032_v35  ;;  %v6280_v63 = vshll.u32 %v5992_v57, 16  ;;  %v6478_v3 = vpack.c.b16 %v6456_v55, %v6455_v29  ;;  %vm5207_vm11 = vcmp.gt.f32.partialorder %v5175_v19, 0.0  ;;  %v6879_v55 = vld [vmem:[#allocation3 + $0x60] sm:$0xe] }
 0x348   : > { %v5560_v21 = vshrl.u32 %v5465_v34, 16  ;;  %v5563_v45 = vshll.u32 %v5465_v34, 16  ;;  %v5681_v47 = vshll.u32 %v5625_v7, 16  ;;  %v5240_v53 = vmul.f32 %v13516_v30, %v5175_v19  ;;  %v4680_v46 = vpop.f32.mrf.mxu3 }
 0x349   : > { %v7087_v59 = vpack.c.b16 %v7063_v51, %v7062_v15  ;;  %v5140_v9 = vadd.f32 %v5103_v61, %v4714_v13  ;;  %6825 = vmatmul.bf16.gmra.mxu2 %v11820_v11  ;;  %6602 = vmatmul.bf16.gmra.mxu1 %v6478_v3  ;;  %v6282_v31 = vrot.slane %v6280_v63, 5  ;;  %v6286_v5 = vshll.u32 %v14283_v37, 16 }
 0x34a   : > { %v5562_v26 = vrot.slane %v5560_v21, 7  ;;  %v5683_v12 = vrot.slane %v5681_v47, 3  ;;  %v5272_v17 = vsel %vm5207_vm11, %v5175_v19, %v5240_v53  ;;  %v6290_v60 = vshrl.u32 %v14283_v37, 16  ;;  %v14301_v19 = vld [vmem:[#allocation3 + $0x6c] sm:$0xe] }
 0x34b   : > { %v5176_v1 = vadd.f32 %v14192_v25, %v5140_v9  ;;  %v6296_v10 = vshll.u32 %v14285_v62, 16  ;;  %v5304_v4 = vpack.c.bf16 %v5272_v17, %v5272_v17  ;;  %v6283_v56 = vor.u32 %v6282_v31, %v6279_v32  ;;  %v14297_v35 = vpop.f32.mrf.mxu1  ;;  %v11860_v32 = vld [vmem:[#allocation3 + $0x60] sm:$0xff] }
 0x34c   : > { %v5565_v20 = vor.u32 %v5563_v45, %v5562_v26  ;;  %v5737_v8 = vsel %vm12227_vm2, %v5562_v26, %v5683_v12  ;;  %7203 = vmatmul.bf16.gmra.mxu3 %v7087_v59  ;;  %v3998_v42 = vpop.f32.mrf.mxu2  ;;  %v6288_v0 = vrot.slane %v6286_v5, 5  ;;  %v6292_v38 = vrot.slane %v6290_v60, 4 }
 0x34d   : > { %v5813_v44 = vunpack.c.l.b16 %v5737_v8  ;;  %vm5208_vm12 = vcmp.gt.f32.partialorder %v5176_v1, 0.0  ;;  %v5241_v36 = vmul.f32 %v13516_v30, %v5176_v1  ;;  %v5338_v16 = vunpack.c.l.b16 %v5304_v4 }
 0x34e   : > { %v5721_v24 = vsel %vm12227_vm2, %v5396_v22, %v5565_v20  ;;  %v6284_v29 = vrot.slane %v6283_v56, 4  ;;  %v6293_v7 = vor.u32 %v6292_v38, %v6288_v0  ;;  %v6298_v51 = vrot.slane %v6296_v10, 5  ;;  %v14312_v56 = vld [vmem:[#allocation3 + $0x88] sm:$0xf] }
 0x34f   : > { %v5811_v15 = vunpack.c.l.b16 %v5721_v24  ;;  %v5812_v2 = vunpack.c.h.b16 %v5721_v24  ;;  %v5861_v57 = vpack.c.b16 %v5813_v44, %v5813_v44  ;;  %v5273_v39 = vsel %vm5208_vm12, %v5176_v1, %v5241_v36  ;;  %v5106_v43 = vpop.f32.mrf.mxu0 }
 0x350   : > { %v5354_v54 = vpack.c.b16 %v5338_v16, %v5338_v16  ;;  %v5305_v6 = vpack.c.bf16 %v5273_v39, %v5273_v39  ;;  %v6289_v34 = vsel %vm12318_vm5, %v6284_v29, %v6288_v0  ;;  %v6294_v21 = vrot.slane %v6293_v7, 4  ;;  %v4682_v45 = vpop.f32.mrf.mxu3  ;;  %v11821_v0 = vld [vmem:[#allocation3 + $0x60] sm:$0xff] }
 0x351   : > { %v5859_v22 = vpack.c.b16 %v5811_v15, %v5811_v15  ;;  %v5860_v61 = vpack.c.b16 %v5812_v2, %v5812_v2  ;;  %5958 = vst [vmem:[#allocation3 + $0xb0] sm:$0x1] %v5861_v57  ;;  %v6457_v13 = vunpack.c.l.b16 %v6289_v34  ;;  %v4033_v47 = vadd.f32 %v3998_v42, %v14253_v41 }
 0x352   : > { %v5399_v63 = vshrl.u32 %v5354_v54, 16  ;;  %v5450_v11 = vunpack.c.l.b16 %v5305_v6  ;;  %7517 = vmatmul.bf16.gmra.mxu0 %v11860_v32  ;;  %v11183_v3 = vrot.slane %v6879_v55, 9  ;;  %v6977_v53 = vrot.slane %v14185_v48, 5  ;;  %v5994_v48 = vld [vmem:[#allocation3 + $0x84] sm:$0xf] }
 0x353   : > { %5956 = vst [vmem:[#allocation3 + $0xa8] sm:$0xf] %v5859_v22  ;;  %v6980_v59 = vrot.slane %v14207_v23, 5  ;;  %v11184_v9 = vrot.slane %v14301_v19, 9  ;;  %v6299_v31 = vsel %vm12318_vm5, %v6294_v21, %v6298_v51  ;;  %v4715_v5 = vadd.f32 %v4680_v46, %v4033_v47  ;;  %v11878_v51 = vld [vmem:[%s15980_s3 + $0x108] sm:$0xff] }
 0x354   : > { %5957 = vst [vmem:[#allocation3 + $0xac] sm:$0xf] %v5860_v61  ;;  %v5466_v26 = vpack.c.b16 %v5450_v11, %v5338_v16  ;;  %v5626_v12 = vpack.c.b16 %v5450_v11, %v5450_v11  ;;  %v4000_v17 = vpop.f32.mrf.mxu2  ;;  %v6458_v1 = vunpack.c.l.b16 %v6299_v31  ;;  %v6978_v41 = vsel %vm12663_vm8, %v11183_v3, %v6977_v53  ;;  %v14329_v21 = vld [vmem:[#allocation3 + $0x8c] sm:$0x1]  ;;  %8162 = vmatpush.bf16.msrb.mxu1 %v11878_v51 }
 0x355   : > { %v6979_v60 = vrot.slane %v6977_v53, 4  ;;  %v4034_v10 = vadd.f32 %v4000_v17, %v14258_v40  ;;  %v5141_v4 = vadd.f32 %v5106_v43, %v4715_v5  ;;  %v7064_v46 = vunpack.c.l.b16 %v6978_v41  ;;  %v14320_v43 = vpop.f32.mrf.mxu1 }
 0x356   : > { %v5567_v20 = vshrl.u32 %v5466_v26, 16  ;;  %v5570_v23 = vshll.u32 %v5466_v26, 16  ;;  %v5685_v8 = vshll.u32 %v5626_v12, 16  ;;  %v6479_v42 = vpack.c.b16 %v6458_v1, %v6457_v13 }
 0x357   : > { %v6981_v44 = vsel %vm12663_vm8, %v6979_v60, %v6980_v59  ;;  %v4716_v36 = vadd.f32 %v4682_v45, %v4034_v10  ;;  %v5177_v29 = vadd.f32 %v14192_v25, %v5141_v4  ;;  %v5108_v38 = vpop.f32.mrf.mxu0  ;;  %v6301_v2 = vshrl.u32 %v5994_v48, 16  ;;  %v11861_v4 = vld [vmem:[#allocation3 + $0x6c] sm:$0xff] }
 0x358   : > { %v5569_v24 = vrot.slane %v5567_v20, 7  ;;  %v5687_v16 = vrot.slane %v5685_v8, 3  ;;  %v7065_v40 = vunpack.c.l.b16 %v6981_v44  ;;  %v6304_v57 = vshll.u32 %v5994_v48, 16  ;;  %v5996_v44 = vld [vmem:[#allocation3 + $0x90] sm:$0xf] }
 0x359   : > { %v5142_v15 = vadd.f32 %v5108_v38, %v4716_v36  ;;  %v6310_v39 = vshll.u32 %v14312_v56, 16  ;;  %6830 = vmatmul.bf16.gmra.mxu2 %v11821_v0  ;;  %6607 = vmatmul.bf16.gmra.mxu1 %v6479_v42  ;;  %vm5209_vm13 = vcmp.gt.f32.partialorder %v5177_v29, 0.0  ;;  %v5242_v34 = vmul.f32 %v13516_v30, %v5177_v29 }
 0x35a   : > { %v5572_v54 = vor.u32 %v5570_v23, %v5569_v24  ;;  %v5738_v6 = vsel %vm12227_vm2, %v5569_v24, %v5687_v16  ;;  %v7088_v55 = vpack.c.b16 %v7065_v40, %v7064_v46  ;;  %v6303_v61 = vrot.slane %v6301_v2, 4  ;;  %v14342_v16 = vld [vmem:[#allocation3 + $0x94] sm:$0xf] }
 0x35b   : > { %v5816_v7 = vunpack.c.l.b16 %v5738_v6  ;;  %v5178_v22 = vadd.f32 %v14192_v25, %v5142_v15  ;;  %v5274_v32 = vsel %vm5209_vm13, %v5177_v29, %v5242_v34  ;;  %v6306_v45 = vrot.slane %v6304_v57, 5 }
 0x35c   : > { %v5722_v13 = vsel %vm12227_vm2, %v5399_v63, %v5572_v54  ;;  %v7169_v11 = vpop.f32.mrf.mxu3  ;;  %v6312_v47 = vrot.slane %v6310_v39, 5  ;;  %v6791_v3 = vpop.f32.mrf.mxu2  ;;  %v5306_v12 = vpack.c.bf16 %v5274_v32, %v5274_v32  ;;  %7208 = vmatmul.bf16.gmra.mxu3 %v7088_v55  ;;  %v6314_v5 = vshrl.u32 %v14312_v56, 16 }
 0x35d   : > { %v5814_v53 = vunpack.c.l.b16 %v5722_v13  ;;  %v5815_v59 = vunpack.c.h.b16 %v5722_v13  ;;  %v5864_v26 = vpack.c.b16 %v5816_v7, %v5816_v7  ;;  %vm5210_vm14 = vcmp.gt.f32.partialorder %v5178_v22, 0.0 }
 0x35e   : > { %v5243_v25 = vmul.f32 %v13516_v30, %v5178_v22  ;;  %v6307_v31 = vor.u32 %v6306_v45, %v6303_v61  ;;  %v5339_v1 = vunpack.c.l.b16 %v5306_v12  ;;  %v6320_v41 = vshll.u32 %v14329_v21, 16  ;;  %v11822_v45 = vld [vmem:[#allocation3 + $0x6c] sm:$0xff] }
 0x35f   : > { %v5862_v63 = vpack.c.b16 %v5814_v53, %v5814_v53  ;;  %v5863_v17 = vpack.c.b16 %v5815_v59, %v5815_v59  ;;  %5961 = vst [vmem:[#allocation3 + $0xbc] sm:$0x1] %v5864_v26  ;;  %v6316_v48 = vrot.slane %v6314_v5, 4  ;;  %v14334_v20 = vpop.f32.mrf.mxu0  ;;  %v6792_v23 = vadd.f32 %v6791_v3, %v14200_v14  ;;  %v14361_v5 = vld [vmem:[#allocation3 + $0x98] sm:$0x1] }
 0x360   : > { %5971 = vst [vmem:[#allocation3 + $0xd4] sm:$0x1] %v5864_v26  ;;  %v5275_v60 = vsel %vm5210_vm14, %v5178_v22, %v5243_v25  ;;  %v6308_v10 = vrot.slane %v6307_v31, 4  ;;  %v5355_v8 = vpack.c.b16 %v5339_v1, %v5339_v1  ;;  %v6984_v42 = vrot.slane %v14234_v27, 5 }
 0x361   : > { %5959 = vst [vmem:[#allocation3 + $0xb4] sm:$0xf] %v5862_v63  ;;  %v5307_v30 = vpack.c.bf16 %v5275_v60, %v5275_v60  ;;  %v6317_v36 = vor.u32 %v6316_v48, %v6312_v47  ;;  %v6322_v0 = vrot.slane %v6320_v41, 5  ;;  %v14340_v24 = vadd.f32 %v7169_v11, %v6792_v23 }
 0x362   : > { %5960 = vst [vmem:[#allocation3 + $0xb8] sm:$0xf] %v5863_v17  ;;  %v6313_v46 = vsel %vm12318_vm5, %v6308_v10, %v6312_v47  ;;  %7522 = vmatmul.bf16.gmra.mxu0 %v11861_v4  ;;  %v6985_v27 = vsel %vm12663_vm8, %v11184_v9, %v6984_v42  ;;  %v6987_v38 = vrot.slane %v14238_v33, 5  ;;  %v6986_v57 = vrot.slane %v6984_v42, 4  ;;  %v6881_v42 = vld [vmem:[#allocation3 + $0x78] sm:$0xe] }
 0x363   : > { %5969 = vst [vmem:[#allocation3 + $0xcc] sm:$0xf] %v5862_v63  ;;  %v5451_v29 = vunpack.c.l.b16 %v5307_v30  ;;  %v6459_v14 = vunpack.c.l.b16 %v6313_v46  ;;  %v14349_v40 = vpop.f32.mrf.mxu1  ;;  %v6318_v15 = vrot.slane %v6317_v36, 4  ;;  %v7066_v39 = vunpack.c.l.b16 %v6985_v27 }
 0x364   : > { %5970 = vst [vmem:[#allocation3 + $0xd0] sm:$0xf] %v5863_v17  ;;  %v7171_v2 = vpop.f32.mrf.mxu3  ;;  %v6325_v54 = vshrl.u32 %v5996_v44, 16  ;;  %v6793_v7 = vpop.f32.mrf.mxu2  ;;  %v6328_v55 = vshll.u32 %v5996_v44, 16  ;;  %v6334_v22 = vshll.u32 %v14342_v16, 16  ;;  %v6988_v33 = vsel %vm12663_vm8, %v6986_v57, %v6987_v38 }
 0x365   : > { %v5467_v6 = vpack.c.b16 %v5451_v29, %v5339_v1  ;;  %v5627_v34 = vpack.c.b16 %v5451_v29, %v5451_v29  ;;  %v6323_v19 = vsel %vm12318_vm5, %v6318_v15, %v6322_v0  ;;  %v6794_v9 = vadd.f32 %v6793_v7, %v14219_v49  ;;  %v5998_v38 = vld [vmem:[#allocation3 + $0x9c] sm:$0xf] }
 0x366   : > { %v6327_v61 = vrot.slane %v6325_v54, 4  ;;  %v6460_v11 = vunpack.c.l.b16 %v6323_v19  ;;  %v7067_v47 = vunpack.c.l.b16 %v6988_v33  ;;  %v6330_v59 = vrot.slane %v6328_v55, 5  ;;  %v11862_v55 = vld [vmem:[#allocation3 + $0x78] sm:$0xff] }
 0x367   : > { %v5574_v51 = vshrl.u32 %v5467_v6, 16  ;;  %v5577_v13 = vshll.u32 %v5467_v6, 16  ;;  %v5689_v32 = vshll.u32 %v5627_v34, 16  ;;  %v14357_v3 = vpop.f32.mrf.mxu0  ;;  %v14359_v53 = vadd.f32 %v7171_v2, %v6794_v9 }
 0x368   : > { %v6336_v26 = vrot.slane %v6334_v22, 5  ;;  %v6480_v31 = vpack.c.b16 %v6460_v11, %v6459_v14  ;;  %v6338_v49 = vshrl.u32 %v14342_v16, 16  ;;  %v5402_v63 = vshrl.u32 %v5355_v8, 16 }
 0x369   : > { %v5576_v12 = vrot.slane %v5574_v51, 7  ;;  %v5691_v25 = vrot.slane %v5689_v32, 3  ;;  %6835 = vmatmul.bf16.gmra.mxu2 %v11822_v45  ;;  %v6331_v17 = vor.u32 %v6330_v59, %v6327_v61  ;;  %v7089_v60 = vpack.c.b16 %v7067_v47, %v7066_v39  ;;  %v14373_v39 = vld [vmem:[#allocation3 + $0xa0] sm:$0xf] }
 0x36a   : > { %6612 = vmatmul.bf16.gmra.mxu1 %v6480_v31  ;;  %v6340_v10 = vrot.slane %v6338_v49, 4  ;;  %v6344_v4 = vshll.u32 %v14361_v5, 16  ;;  %v6991_v44 = vrot.slane %v14283_v37, 5  ;;  %v11185_v57 = vrot.slane %v6881_v42, 9 }
 0x36b   : > { %v5579_v1 = vor.u32 %v5577_v13, %v5576_v12  ;;  %v5739_v41 = vsel %vm12227_vm2, %v5576_v12, %v5691_v25  ;;  %v14366_v23 = vpop.f32.mrf.mxu1  ;;  %v6332_v46 = vrot.slane %v6331_v17, 4  ;;  %v6994_v19 = vrot.slane %v14285_v62, 5  ;;  %v11823_v17 = vld [vmem:[#allocation3 + $0x78] sm:$0xff] }
 0x36c   : > { %v5819_v48 = vunpack.c.l.b16 %v5739_v41  ;;  %v7174_v30 = vpop.f32.mrf.mxu3  ;;  %7213 = vmatmul.bf16.gmra.mxu3 %v7089_v60  ;;  %v6341_v36 = vor.u32 %v6340_v10, %v6336_v26  ;;  %v6796_v0 = vpop.f32.mrf.mxu2  ;;  %v6346_v37 = vrot.slane %v6344_v4, 5  ;;  %v6993_v34 = vrot.slane %v6991_v44, 4  ;;  %v14397_v60 = vld [vmem:[#allocation3 + $0xa4] sm:$0x1] }
 0x36d   : > { %v5723_v8 = vsel %vm12227_vm2, %v5402_v63, %v5579_v1  ;;  %v6797_v2 = vadd.f32 %v6796_v0, %v14243_v52  ;;  %v6337_v7 = vsel %vm12318_vm5, %v6332_v46, %v6336_v26  ;;  %v6349_v33 = vshrl.u32 %v5998_v38, 16 }
 0x36e   : > { %v5817_v29 = vunpack.c.l.b16 %v5723_v8  ;;  %v5818_v14 = vunpack.c.h.b16 %v5723_v8  ;;  %v5867_v27 = vpack.c.b16 %v5819_v48, %v5819_v48  ;;  %v6342_v15 = vrot.slane %v6341_v36, 4 }
 0x36f   : > { %v14375_v50 = vpop.f32.mrf.mxu0  ;;  %v14379_v22 = vadd.f32 %v7174_v30, %v6797_v2  ;;  %v6352_v9 = vshll.u32 %v5998_v38, 16  ;;  %v6358_v61 = vshll.u32 %v14373_v39, 16  ;;  %v6362_v51 = vshrl.u32 %v14373_v39, 16 }
 0x370   : > { %v5865_v54 = vpack.c.b16 %v5817_v29, %v5817_v29  ;;  %v5866_v6 = vpack.c.b16 %v5818_v14, %v5818_v14  ;;  %5964 = vst [vmem:[#allocation3 + $0xc8] sm:$0x1] %v5867_v27  ;;  %v6347_v52 = vsel %vm12318_vm5, %v6342_v15, %v6346_v37  ;;  %v6995_v11 = vsel %vm12663_vm8, %v6993_v34, %v6994_v19  ;;  %v6000_v29 = vld [vmem:[#allocation3 + $0xa8] sm:$0xf]  ;;  %v14407_v15 = vld [vmem:[#allocation3 + $0xac] sm:$0xf] }
 0x371   : > { %v6461_v45 = vunpack.c.l.b16 %v6337_v7  ;;  %v6462_v62 = vunpack.c.l.b16 %v6347_v52  ;;  %v6992_v47 = vsel %vm12663_vm8, %v11185_v57, %v6991_v44  ;;  %v6351_v26 = vrot.slane %v6349_v33, 4  ;;  %v11877_v44 = vld [vmem:[%s15980_s3 + $0x100] sm:$0xff]  ;;  %v6882_v57 = vld [vmem:[#allocation3 + $0x84] sm:$0xe] }
 0x372   : > { %5962 = vst [vmem:[#allocation3 + $0xc0] sm:$0xf] %v5865_v54  ;;  %7527 = vmatmul.bf16.gmra.mxu0 %v11862_v55  ;;  %v6354_v25 = vrot.slane %v6352_v9, 5  ;;  %v6360_v31 = vrot.slane %v6358_v61, 5  ;;  %v6364_v49 = vrot.slane %v6362_v51, 4  ;;  %v7069_v63 = vunpack.c.l.b16 %v6995_v11  ;;  %8163 = vmatpush.bf16.msrb.mxu1 %v11877_v44 }
 0x373   : > { %5963 = vst [vmem:[#allocation3 + $0xc4] sm:$0xf] %v5866_v6  ;;  %v14386_v13 = vpop.f32.mrf.mxu1  ;;  %v6481_v10 = vpack.c.b16 %v6462_v62, %v6461_v45  ;;  %v7068_v48 = vunpack.c.l.b16 %v6992_v47  ;;  %v6998_v36 = vrot.slane %v14312_v56, 5  ;;  %v6373_v34 = vshrl.u32 %v6000_v29, 16  ;;  %v11863_v56 = vld [vmem:[#allocation3 + $0x84] sm:$0xff] }
 0x374   : > { %v7176_v32 = vpop.f32.mrf.mxu3  ;;  %v6798_v59 = vpop.f32.mrf.mxu2  ;;  %v6355_v30 = vor.u32 %v6354_v25, %v6351_v26  ;;  %v6365_v4 = vor.u32 %v6364_v49, %v6360_v31  ;;  %v6376_v7 = vshll.u32 %v6000_v29, 16  ;;  %v6382_v55 = vshll.u32 %v14407_v15, 16  ;;  %v11824_v49 = vld [vmem:[#allocation3 + $0x84] sm:$0xff] }
 0x375   : > { %v6799_v12 = vadd.f32 %v6798_v59, %v14280_v58  ;;  %v7090_v42 = vpack.c.b16 %v7069_v63, %v7068_v48  ;;  %v6368_v58 = vshll.u32 %v14397_v60, 16  ;;  %v7000_v37 = vrot.slane %v6998_v36, 4 }
 0x376   : > { %v6356_v14 = vrot.slane %v6355_v30, 4  ;;  %v6366_v27 = vrot.slane %v6365_v4, 4  ;;  %v6386_v19 = vshrl.u32 %v14407_v15, 16  ;;  %v11186_v52 = vrot.slane %v6882_v57, 9  ;;  %v6883_v57 = vld [vmem:[#allocation3 + $0x90] sm:$0xe] }
 0x377   : > { %v14393_v1 = vpop.f32.mrf.mxu0  ;;  %v14395_v41 = vadd.f32 %v7176_v32, %v6799_v12  ;;  %v6370_v2 = vrot.slane %v6368_v58, 5  ;;  %v7001_v9 = vrot.slane %v14329_v21, 5  ;;  %v6375_v11 = vrot.slane %v6373_v34, 4  ;;  %v6002_v34 = vld [vmem:[#allocation3 + $0xb4] sm:$0xf] }
 0x378   : > { %v6361_v33 = vsel %vm12318_vm5, %v6356_v14, %v6360_v31  ;;  %v6378_v45 = vrot.slane %v6376_v7, 5  ;;  %v6384_v26 = vrot.slane %v6382_v55, 5  ;;  %v6388_v12 = vrot.slane %v6386_v19, 4  ;;  %v14444_v7 = vld [vmem:[#allocation3 + $0xb8] sm:$0xf] }
 0x379   : > { %6840 = vmatmul.bf16.gmra.mxu2 %v11823_v17  ;;  %v7002_v32 = vsel %vm12663_vm8, %v7000_v37, %v7001_v9  ;;  %v6463_v62 = vunpack.c.l.b16 %v6361_v33  ;;  %v6999_v25 = vsel %vm12663_vm8, %v11186_v52, %v6998_v36  ;;  %v7005_v36 = vrot.slane %v14342_v16, 5 }
 0x37a   : > { %6617 = vmatmul.bf16.gmra.mxu1 %v6481_v10  ;;  %v7071_v21 = vunpack.c.l.b16 %v7002_v32  ;;  %v14431_v10 = vld [vmem:[#allocation3 + $0xb0] sm:$0x1]  ;;  %v7070_v30 = vunpack.c.l.b16 %v6999_v25  ;;  %v6379_v4 = vor.u32 %v6378_v45, %v6375_v11  ;;  %v11187_v52 = vrot.slane %v6883_v57, 9 }
 0x37b   : > { %v14403_v8 = vpop.f32.mrf.mxu1  ;;  %v6392_v44 = vshll.u32 %v14431_v10, 16  ;;  %v7007_v55 = vrot.slane %v7005_v36, 4  ;;  %v6397_v9 = vshrl.u32 %v6002_v34, 16  ;;  %v6406_v32 = vshll.u32 %v14444_v7, 16 }
 0x37c   : > { %v7179_v46 = vpop.f32.mrf.mxu3  ;;  %7218 = vmatmul.bf16.gmra.mxu3 %v7090_v42  ;;  %v6801_v0 = vpop.f32.mrf.mxu2  ;;  %v6389_v42 = vor.u32 %v6388_v12, %v6384_v26  ;;  %v7091_v58 = vpack.c.b16 %v7071_v21, %v7070_v30  ;;  %v6380_v29 = vrot.slane %v6379_v4, 4  ;;  %v6410_v11 = vshrl.u32 %v14444_v7, 16 }
 0x37d   : > { %v6802_v38 = vadd.f32 %v6801_v0, %v14297_v35  ;;  %v6371_v35 = vsel %vm12318_vm5, %v6366_v27, %v6370_v2  ;;  %v6394_v37 = vrot.slane %v6392_v44, 5  ;;  %v7006_v12 = vsel %vm12663_vm8, %v11187_v52, %v7005_v36  ;;  %v14471_v36 = vld [vmem:[#allocation3 + $0xbc] sm:$0x1] }
 0x37e   : > { %v6464_v47 = vunpack.c.l.b16 %v6371_v35  ;;  %v6390_v14 = vrot.slane %v6389_v42, 4  ;;  %v6385_v19 = vsel %vm12318_vm5, %v6380_v29, %v6384_v26  ;;  %v11864_v35 = vld [vmem:[#allocation3 + $0x90] sm:$0xff]  ;;  %v6408_v21 = vrot.slane %v6406_v32, 5 }
 0x37f   : > { %v14409_v54 = vpop.f32.mrf.mxu0  ;;  %v14411_v6 = vadd.f32 %v7179_v46, %v6802_v38  ;;  %v11916_v38 = vld [vmem:[%s15980_s3 + $0x1b8] sm:$0xff]  ;;  %v11825_v42 = vld [vmem:[#allocation3 + $0x90] sm:$0xff] }
 0x380   : > { %v6482_v48 = vpack.c.b16 %v6464_v47, %v6463_v62  ;;  %8897 = vmatpush.bf16.msra.mxu3 %v11916_v38  ;;  %v6395_v33 = vsel %vm12318_vm5, %v6390_v14, %v6394_v37  ;;  %v6465_v47 = vunpack.c.l.b16 %v6385_v19  ;;  %v11932_v38 = vld [vmem:[%s15980_s3 + $0x238] sm:$0xff] }
 0x381   : > { %10005 = vmatpush.bf16.msra.mxu1 %v11932_v38  ;;  %v11826_v38 = vld [vmem:[#allocation3 + $0x9c] sm:$0xff] }
 0x382   : > { %7532 = vmatmul.bf16.gmra.mxu0 %v11863_v56 }
 0x384   : > { %v14420_v61 = vpop.f32.mrf.mxu1  ;;  %v7181_v51 = vpop.f32.mrf.mxu3 }
 0x385   : > { %v6803_v59 = vpop.f32.mrf.mxu2 }
 0x386   : > { %v6804_v31 = vadd.f32 %v6803_v59, %v14320_v43  ;;  %v11892_v43 = vld [vmem:[%s15980_s3 + $0x178] sm:$0xff]  ;;  %v6466_v59 = vunpack.c.l.b16 %v6395_v33 }
 0x387   : > { %v14427_v63 = vpop.f32.mrf.mxu0  ;;  %8582 = vmatpush.bf16.msra.mxu2 %v11892_v43  ;;  %v7072_v43 = vunpack.c.l.b16 %v7006_v12 }
 0x388   : > { %16059 = vst [vmem:[#allocation21_spill] sm:$0xff] %v14427_v63  ;;  %v14429_v17 = vadd.f32 %v7181_v51, %v6804_v31  ;;  %v6400_v51 = vshll.u32 %v6002_v34, 16  ;;  %v6483_v44 = vpack.c.b16 %v6466_v59, %v6465_v47  ;;  %v7595_v34 = vld [vmem:[#allocation3 + $0xc] sm:$0xf] }
 0x389   : > { %6845 = vmatmul.bf16.gmra.mxu2 %v11824_v49  ;;  %v6412_v49 = vrot.slane %v6410_v11, 4  ;;  %v7644_v11 = vshrl.u32 %v7595_v34, 16 }
 0x38a   : > { %16060 = vst [vmem:[#allocation22_spill] sm:$0xff] %v14429_v17  ;;  %6622 = vmatmul.bf16.gmra.mxu1 %v6482_v48  ;;  %v6402_v31 = vrot.slane %v6400_v51, 5  ;;  %v11924_v48 = vld [vmem:[%s15980_s3 + $0x1f8] sm:$0xff] }
 0x38b   : > { %9579 = vmatpush.bf16.msra.mxu0 %v11924_v48  ;;  %v6413_v14 = vor.u32 %v6412_v49, %v6408_v21  ;;  %v7646_v49 = vrot.slane %v7644_v11, 4  ;;  %v7019_v11 = vrot.slane %v14407_v15, 5 }
 0x38c   : > { %v14437_v46 = vpop.f32.mrf.mxu1  ;;  %7223 = vmatmul.bf16.gmra.mxu3 %v7091_v58 }
 0x38d   : > { %v7184_v0 = vpop.f32.mrf.mxu3  ;;  %v6806_v27 = vpop.f32.mrf.mxu2  ;;  %v6414_v19 = vrot.slane %v6413_v14, 4 }
 0x38e   : > { %v6807_v2 = vadd.f32 %v6806_v27, %v14349_v40  ;;  %v7008_v40 = vrot.slane %v14361_v5, 5  ;;  %v6399_v5 = vrot.slane %v6397_v9, 4 }
 0x38f   : > { %v14446_v56 = vpop.f32.mrf.mxu0 }
 0x390   : > { %16061 = vst [vmem:[#allocation23_spill] sm:$0xff] %v14446_v56  ;;  %v14448_v16 = vadd.f32 %v7184_v0, %v6807_v2  ;;  %v7009_v45 = vsel %vm12663_vm8, %v7007_v55, %v7008_v40  ;;  %v6403_v29 = vor.u32 %v6402_v31, %v6399_v5  ;;  %v7012_v2 = vrot.slane %v14373_v39, 5  ;;  %v6884_v40 = vld [vmem:[#allocation3 + $0x9c] sm:$0xe] }
 0x391   : > { %v7073_v30 = vunpack.c.l.b16 %v7009_v45  ;;  %v7647_v39 = vshll.u32 %v7595_v34, 16  ;;  %v11865_v45 = vld [vmem:[#allocation3 + $0x9c] sm:$0xff]  ;;  %v7015_v5 = vrot.slane %v14397_v60, 5  ;;  %v14506_v34 = vld [vmem:[#allocation3 + $0x14] sm:$0x1] }
 0x392   : > { %16062 = vst [vmem:[#allocation24_spill] sm:$0xff] %v14448_v16  ;;  %7537 = vmatmul.bf16.gmra.mxu0 %v11864_v35  ;;  %v6404_v55 = vrot.slane %v6403_v29, 4  ;;  %v14480_v35 = vld [vmem:[#allocation3 + $0x10] sm:$0xf]  ;;  %v7014_v32 = vrot.slane %v7012_v2, 4 }
 0x393   : > { %v7092_v27 = vpack.c.b16 %v7073_v30, %v7072_v43  ;;  %v7653_v59 = vshll.u32 %v14480_v35, 16  ;;  %v7649_v48 = vrot.slane %v7647_v39, 5  ;;  %v7598_v39 = vld [vmem:[#allocation3 + $0x18] sm:$0xf] }
 0x394   : > { %v6409_v12 = vsel %vm12318_vm5, %v6404_v55, %v6408_v21  ;;  %v7016_v31 = vsel %vm12663_vm8, %v7014_v32, %v7015_v5  ;;  %v7668_v15 = vshrl.u32 %v7598_v39, 16 }
 0x395   : > { %v14459_v62 = vpop.f32.mrf.mxu1  ;;  %v7186_v26 = vpop.f32.mrf.mxu3  ;;  %v7655_v43 = vrot.slane %v7653_v59, 5  ;;  %v7650_v55 = vor.u32 %v7649_v48, %v7646_v49  ;;  %v6885_v49 = vld [vmem:[#allocation3 + $0xa8] sm:$0xe] }
 0x396   : > { %v6808_v25 = vpop.f32.mrf.mxu2  ;;  %v11913_v48 = vld [vmem:[%s15980_s3 + $0x1a0] sm:$0xff] }
 0x397   : > { %v6809_v4 = vadd.f32 %v6808_v25, %v14366_v23  ;;  %v14467_v58 = vpop.f32.mrf.mxu0  ;;  %v6416_v23 = vshll.u32 %v14471_v36, 16  ;;  %v11188_v25 = vrot.slane %v6884_v40, 9  ;;  %v7651_v32 = vrot.slane %v7650_v55, 4 }
 0x398   : > { %16063 = vst [vmem:[#allocation25_spill] sm:$0xff] %v14467_v58  ;;  %v11189_v55 = vrot.slane %v6885_v49, 9 }
 0x399   : > { %v14469_v0 = vadd.f32 %v7186_v26, %v6809_v4  ;;  %6850 = vmatmul.bf16.gmra.mxu2 %v11825_v42  ;;  %v6418_v9 = vrot.slane %v6416_v23, 5  ;;  %v7657_v26 = vshrl.u32 %v14480_v35, 16  ;;  %v6467_v4 = vunpack.c.l.b16 %v6409_v12  ;;  %v11915_v23 = vld [vmem:[%s15980_s3 + $0x1b0] sm:$0xff] }
 0x39a   : > { %6627 = vmatmul.bf16.gmra.mxu1 %v6483_v44  ;;  %v7013_v21 = vsel %vm12663_vm8, %v11188_v25, %v7012_v2  ;;  %8898 = vmatpush.bf16.msra.mxu3 %v11915_v23  ;;  %v14520_v25 = vld [vmem:[#allocation3 + $0x1c] sm:$0xf] }
 0x39b   : > { %16064 = vst [vmem:[#allocation26_spill] sm:$0xff] %v14469_v0  ;;  %v7659_v29 = vrot.slane %v7657_v26, 4  ;;  %v7681_v23 = vshrl.u32 %v14520_v25, 16 }
 0x39c   : > { %7228 = vmatmul.bf16.gmra.mxu3 %v7092_v27  ;;  %v7075_v27 = vunpack.c.l.b16 %v7016_v31 }
 0x39d   : > { %v14478_v57 = vpop.f32.mrf.mxu1  ;;  %v7189_v37 = vpop.f32.mrf.mxu3  ;;  %v7660_v40 = vor.u32 %v7659_v29, %v7655_v43  ;;  %v7021_v29 = vrot.slane %v7019_v11, 4 }
 0x39e   : > { %v6811_v33 = vpop.f32.mrf.mxu2 }
 0x39f   : > { %v6812_v52 = vadd.f32 %v6811_v33, %v14386_v13  ;;  %v14483_v51 = vpop.f32.mrf.mxu0  ;;  %v6419_v13 = vsel %vm12318_vm5, %v6414_v19, %v6418_v9  ;;  %v7074_v33 = vunpack.c.l.b16 %v7013_v21  ;;  %v11914_v9 = vld [vmem:[%s15980_s3 + $0x1a8] sm:$0xff]  ;;  %v7661_v26 = vrot.slane %v7660_v40, 4 }
 0x3a0   : > { %16065 = vst [vmem:[#allocation27_spill] sm:$0xff] %v14483_v51  ;;  %v6468_v42 = vunpack.c.l.b16 %v6419_v13  ;;  %8899 = vmatpush.bf16.msra.mxu3 %v11914_v9  ;;  %v7671_v21 = vshll.u32 %v7598_v39, 16  ;;  %v7670_v40 = vrot.slane %v7668_v15, 4  ;;  %v11827_v15 = vld [vmem:[#allocation3 + $0xa8] sm:$0xff] }
 0x3a1   : > { %v14485_v47 = vadd.f32 %v7189_v37, %v6812_v52  ;;  %v7093_v2 = vpack.c.b16 %v7075_v27, %v7074_v33  ;;  %v11866_v27 = vld [vmem:[#allocation3 + $0xa8] sm:$0xff]  ;;  %v11912_v33 = vld [vmem:[%s15980_s3 + $0x198] sm:$0xff] }
 0x3a2   : > { %7542 = vmatmul.bf16.gmra.mxu0 %v11865_v45  ;;  %v6484_v19 = vpack.c.b16 %v6468_v42, %v6467_v4  ;;  %v11891_v45 = vld [vmem:[%s15980_s3 + $0x170] sm:$0xff] }
 0x3a3   : > { %16066 = vst [vmem:[#allocation19_spill] sm:$0xff] %v14485_v47  ;;  %8583 = vmatpush.bf16.msra.mxu2 %v11891_v45  ;;  %v11923_v4 = vld [vmem:[%s15980_s3 + $0x1f0] sm:$0xff]  ;;  %v7683_v45 = vrot.slane %v7681_v23, 4  ;;  %v14664_v47 = vld [vmem:[#allocation3 + $0x2c] sm:$0x1] }
 0x3a4   : > { %9580 = vmatpush.bf16.msra.mxu0 %v11923_v4  ;;  %8900 = vmatpush.bf16.msra.mxu3 %v11913_v48  ;;  %v11911_v48 = vld [vmem:[%s15980_s3 + $0x190] sm:$0xff] }
 0x3a5   : > { %v14496_v30 = vpop.f32.mrf.mxu1  ;;  %v7191_v44 = vpop.f32.mrf.mxu3 }
 0x3a6   : > { %v6813_v14 = vpop.f32.mrf.mxu2 }
 0x3a7   : > { %v6814_v60 = vadd.f32 %v6813_v14, %v14403_v8  ;;  %v14504_v37 = vpop.f32.mrf.mxu0  ;;  %v7663_v8 = vshll.u32 %v14506_v34, 16 }
 0x3a8   : > { %16067 = vst [vmem:[#allocation9_spill] sm:$0xff] %v14504_v37  ;;  %8901 = vmatpush.bf16.msra.mxu3 %v11912_v33  ;;  %v14623_v37 = vld [vmem:[#allocation3 + $0x38] sm:$0x1] }
 0x3a9   : > { %v14508_v52 = vadd.f32 %v7191_v44, %v6814_v60  ;;  %6855 = vmatmul.bf16.gmra.mxu2 %v11826_v38  ;;  %v7665_v5 = vrot.slane %v7663_v8, 5  ;;  %v7656_v44 = vsel %vm12318_vm5, %v7651_v32, %v7655_v43  ;;  %v7677_v38 = vshll.u32 %v14520_v25, 16  ;;  %v11922_v43 = vld [vmem:[%s15980_s3 + $0x1e8] sm:$0xff] }
 0x3aa   : > { %6632 = vmatmul.bf16.gmra.mxu1 %v6484_v19  ;;  %v7022_v19 = vrot.slane %v14431_v10, 5  ;;  %v7673_v32 = vrot.slane %v7671_v21, 5  ;;  %9581 = vmatpush.bf16.msra.mxu0 %v11922_v43 }
 0x3ab   : > { %16068 = vst [vmem:[#allocation20_spill] sm:$0xff] %v14508_v52  ;;  %v7666_v14 = vsel %vm12318_vm5, %v7661_v26, %v7665_v5  ;;  %v14551_v39 = vrot.slane %v7677_v38, 5  ;;  %v14553_v26 = vld [vmem:[#allocation3 + $0x1c] sm:$0xf]  ;;  %v7601_v5 = vld [vmem:[#allocation3 + $0x24] sm:$0xf] }
 0x3ac   : > { %7233 = vmatmul.bf16.gmra.mxu3 %v7093_v2  ;;  %v8044_v2 = vunpack.c.l.b16 %v7656_v44  ;;  %v8045_v8 = vunpack.c.l.b16 %v7666_v14  ;;  %v7023_v9 = vsel %vm12663_vm8, %v7021_v29, %v7022_v19  ;;  %v14563_v29 = vld [vmem:[#allocation3 + $0x20] sm:$0x1]  ;;  %v7674_v21 = vor.u32 %v7673_v32, %v7670_v40  ;;  %v14569_v38 = vld [vmem:[#allocation3 + $0x28] sm:$0xf]  ;;  %v9018_v52 = vld [vmem:[#allocation3 + $0x18] sm:$0xf] }
 0x3ad   : > { %v14518_v59 = vpop.f32.mrf.mxu1  ;;  %v15984_v14 = vrot.slane %v14553_v26, 5  ;;  %v7692_v23 = vshrl.u32 %v7601_v5, 16  ;;  %v7695_v43 = vshll.u32 %v7601_v5, 16  ;;  %8902 = vmatpush.bf16.msra.mxu3 %v11911_v48  ;;  %v7687_v33 = vshll.u32 %v14563_v29, 16  ;;  %v11889_v40 = vld [vmem:[%s15980_s3 + $0x160] sm:$0xff]  ;;  %v11910_v5 = vld [vmem:[%s15980_s3 + $0x188] sm:$0xff] }
 0x3ae   : > { %v7194_v12 = vpop.f32.mrf.mxu3  ;;  %v6816_v13 = vpop.f32.mrf.mxu2  ;;  %v8076_v4 = vpack.c.b16 %v8045_v8, %v8044_v2  ;;  %v11921_v2 = vld [vmem:[%s15980_s3 + $0x1e0] sm:$0xff]  ;;  %v11931_v8 = vld [vmem:[%s15980_s3 + $0x230] sm:$0xff]  ;;  %v9070_v51 = vshll.u32 %v9018_v52, 16 }
 0x3af   : > { %v6817_v31 = vadd.f32 %v6816_v13, %v14420_v61  ;;  %v14529_v42 = vpop.f32.mrf.mxu0  ;;  %v11890_v61 = vld [vmem:[%s15980_s3 + $0x168] sm:$0xff]  ;;  %v7020_v13 = vsel %vm12663_vm8, %v11189_v55, %v7019_v11  ;;  %v7697_v48 = vrot.slane %v7695_v43, 5  ;;  %9582 = vmatpush.bf16.msra.mxu0 %v11921_v2  ;;  %10006 = vmatpush.bf16.msra.mxu1 %v11931_v8  ;;  %v7689_v43 = vrot.slane %v7687_v33, 5 }
 0x3b0   : > { %16069 = vst [vmem:[#allocation8_spill] sm:$0xff] %v14529_v42  ;;  %8584 = vmatpush.bf16.msra.mxu2 %v11890_v61  ;;  %v14565_v61 = vld [vmem:[#allocation3 + $0x20] sm:$0x1]  ;;  %v7076_v11 = vunpack.c.l.b16 %v7020_v13  ;;  %v7701_v13 = vshll.u32 %v14569_v38, 16  ;;  %v11867_v33 = vld [vmem:[#allocation3 + $0xb4] sm:$0xff] }
 0x3b1   : > { %v14538_v60 = vadd.f32 %v7194_v12, %v6817_v31  ;;  %v7077_v31 = vunpack.c.l.b16 %v7023_v9  ;;  %v9768_v9 = vrot.slane %v15984_v14, 4  ;;  %v9769_v32 = vrot.slane %v14565_v61, 5  ;;  %8903 = vmatpush.bf16.msra.mxu3 %v11910_v5 }
 0x3b2   : > { %7547 = vmatmul.bf16.gmra.mxu0 %v11866_v27  ;;  %v7684_v27 = vor.u32 %v7683_v45, %v14551_v39  ;;  %v7675_v45 = vrot.slane %v7674_v21, 4  ;;  %v14602_v21 = vld [vmem:[#allocation3 + $0x2c] sm:$0x1] }
 0x3b3   : > { %16070 = vst [vmem:[#allocation11_spill] sm:$0xff] %v14538_v60  ;;  %v14617_v60 = vrot.slane %v7701_v13, 5  ;;  %v7711_v5 = vshll.u32 %v14602_v21, 16  ;;  %v11919_v13 = vld [vmem:[%s15980_s3 + $0x1d0] sm:$0xff] }
 0x3b4   : > { %8585 = vmatpush.bf16.msra.mxu2 %v11889_v40  ;;  %v6886_v40 = vld [vmem:[#allocation3 + $0xb4] sm:$0xe]  ;;  %v7680_v14 = vsel %vm12318_vm5, %v7675_v45, %v14551_v39  ;;  %v7029_v45 = vrot.slane %v14471_v36, 5 }
 0x3b6   : > { %v14555_v10 = vpop.f32.mrf.mxu1  ;;  %v7196_v12 = vpop.f32.mrf.mxu3 }
 0x3b7   : > { %v6818_v49 = vpop.f32.mrf.mxu2  ;;  %v14571_v55 = vpop.f32.mrf.mxu0 }
 0x3b8   : > { %v6819_v44 = vadd.f32 %v6818_v49, %v14437_v46  ;;  %16071 = vst [vmem:[#allocation12_spill] sm:$0xff] %v14571_v55  ;;  %v7094_v46 = vpack.c.b16 %v7077_v31, %v7076_v11  ;;  %v9700_v31 = vld [vmem:[#allocation3 + $0x18] sm:$0xe]  ;;  %v7685_v49 = vrot.slane %v7684_v27, 4  ;;  %v7705_v11 = vshrl.u32 %v14569_v38, 16  ;;  %v11920_v27 = vld [vmem:[%s15980_s3 + $0x1d8] sm:$0xff] }
 0x3b9   : > { %6860 = vmatmul.bf16.gmra.mxu2 %v11827_v15  ;;  %v7694_v15 = vrot.slane %v7692_v23, 4  ;;  %v7604_v55 = vld [vmem:[#allocation3 + $0x30] sm:$0xf]  ;;  %9583 = vmatpush.bf16.msra.mxu0 %v11920_v27 }
 0x3ba   : > { %v14573_v19 = vadd.f32 %v7196_v12, %v6819_v44  ;;  %8164 = vmatmul.bf16.vlgmr.msrb.gmra.mxu1 %v8076_v4  ;;  %v7026_v12 = vrot.slane %v14444_v7, 5  ;;  %v11888_v4 = vld [vmem:[%s15980_s3 + $0x158] sm:$0xff]  ;;  %v14598_v44 = vsel %vm12663_vm8, %v9768_v9, %v9769_v32  ;;  %v11909_v9 = vld [vmem:[%s15980_s3 + $0x180] sm:$0xff]  ;;  %v11623_v32 = vrot.slane %v9700_v31, 9  ;;  %v11887_v31 = vld [vmem:[%s15980_s3 + $0x150] sm:$0xff] }
 0x3bb   : > { %v7698_v42 = vor.u32 %v7697_v48, %v7694_v15  ;;  %8586 = vmatpush.bf16.msra.mxu2 %v11888_v4  ;;  %v8046_v15 = vunpack.c.l.b16 %v7680_v14  ;;  %8904 = vmatpush.bf16.msra.mxu3 %v11909_v9  ;;  %v7716_v48 = vshrl.u32 %v7604_v55, 16  ;;  %v14633_v4 = vld [vmem:[#allocation3 + $0x28] sm:$0xf]  ;;  %v9894_v14 = vunpack.c.l.b16 %v14598_v44 }
 0x3bc   : > { %16072 = vst [vmem:[#allocation10_spill] sm:$0xff] %v14573_v19  ;;  %7238 = vmatmul.bf16.gmra.mxu3 %v7094_v46  ;;  %v7028_v8 = vrot.slane %v7026_v12, 4  ;;  %v7690_v19 = vsel %vm12318_vm5, %v7685_v49, %v7689_v43  ;;  %v14631_v49 = vld [vmem:[#allocation3 + $0x34] sm:$0xf]  ;;  %v14647_v9 = vrot.slane %v7711_v5, 5 }
 0x3bd   : > { %9584 = vmatpush.bf16.msra.mxu0 %v11919_v13 }
 0x3be   : > { %v14600_v7 = vpop.f32.mrf.mxu1  ;;  %v7030_v27 = vsel %vm12663_vm8, %v7028_v8, %v7029_v45  ;;  %v11886_v8 = vld [vmem:[%s15980_s3 + $0x148] sm:$0xff] }
 0x3bf   : > { %v7199_v23 = vpop.f32.mrf.mxu3  ;;  %v6821_v46 = vpop.f32.mrf.mxu2  ;;  %8587 = vmatpush.bf16.msra.mxu2 %v11887_v31  ;;  %v7079_v45 = vunpack.c.l.b16 %v7030_v27  ;;  %v9076_v27 = vshll.u32 %v14553_v26, 16 }
 0x3c0   : > { %v6822_v2 = vadd.f32 %v6821_v46, %v14459_v62  ;;  %v11190_v62 = vrot.slane %v6886_v40, 9  ;;  %v7707_v46 = vrot.slane %v7705_v11, 4  ;;  %v14639_v36 = vpop.f32.mrf.mxu0  ;;  %v8047_v11 = vunpack.c.l.b16 %v7690_v19 }
 0x3c1   : > { %16075 = vst [vmem:[#allocation15_spill] sm:$0xff] %v14639_v36  ;;  %v9067_v36 = vshrl.u32 %v9018_v52, 16 }
 0x3c2   : > { %v14625_v39 = vadd.f32 %v7199_v23, %v6822_v2  ;;  %7552 = vmatmul.bf16.gmra.mxu0 %v11867_v33  ;;  %v16074_v23 = vrot.slane %v14553_v26, 5  ;;  %v14645_v2 = vrot.slane %v7698_v42, 4  ;;  %v7719_v33 = vshll.u32 %v7604_v55, 16  ;;  %v11918_v42 = vld [vmem:[%s15980_s3 + $0x1c8] sm:$0xff] }
 0x3c3   : > { %v7708_v19 = vor.u32 %v7707_v46, %v14617_v60  ;;  %v8343_v46 = vrot.slane %v14480_v35, 5  ;;  %v8077_v13 = vpack.c.b16 %v8047_v11, %v8046_v15  ;;  %8588 = vmatpush.bf16.msra.mxu2 %v11886_v8  ;;  %9585 = vmatpush.bf16.msra.mxu0 %v11918_v42  ;;  %v16077_v11 = vrot.slane %v14633_v4, 5 }
 0x3c4   : > { %16073 = vst [vmem:[#allocation14_spill] sm:$0xff] %v14625_v39  ;;  %v9767_v43 = vsel %vm12663_vm8, %v11623_v32, %v16074_v23  ;;  %v7725_v39 = vshll.u32 %v14631_v49, 16  ;;  %v7027_v32 = vsel %vm12663_vm8, %v11190_v62, %v7026_v12  ;;  %v11828_v23 = vld [vmem:[#allocation3 + $0xb4] sm:$0xff]  ;;  %v7718_v12 = vrot.slane %v7716_v48, 4 }
 0x3c5   : > { %v9893_v44 = vunpack.c.l.b16 %v9767_v43  ;;  %v7729_v62 = vshrl.u32 %v14631_v49, 16  ;;  %v7078_v43 = vunpack.c.l.b16 %v7027_v32  ;;  %v9080_v48 = vshrl.u32 %v14553_v26, 16  ;;  %v11885_v26 = vld [vmem:[%s15980_s3 + $0x140] sm:$0xff] }
 0x3c6   : > { %v14660_v5 = vpop.f32.mrf.mxu1  ;;  %v7704_v35 = vsel %vm12318_vm5, %v14645_v2, %v14617_v60  ;;  %v7709_v15 = vrot.slane %v7708_v19, 4  ;;  %v7721_v52 = vrot.slane %v7719_v33, 5  ;;  %v8277_v60 = vld [vmem:[#allocation3 + $0xc] sm:$0xe]  ;;  %v8345_v2 = vrot.slane %v8343_v46, 4 }
 0x3c7   : > { %v7201_v31 = vpop.f32.mrf.mxu3  ;;  %v6823_v40 = vpop.f32.mrf.mxu2  ;;  %v14666_v58 = vpack.c.b16 %v9894_v14, %v9893_v44  ;;  %v9775_v14 = vrot.slane %v16077_v11, 4  ;;  %v7095_v32 = vpack.c.b16 %v7079_v45, %v7078_v43  ;;  %v9776_v19 = vrot.slane %v14664_v47, 5  ;;  %8589 = vmatpush.bf16.msra.mxu2 %v11885_v26 }
 0x3c8   : > { %v6824_v55 = vadd.f32 %v6823_v40, %v14478_v57  ;;  %v11917_v40 = vld [vmem:[%s15980_s3 + $0x1c0] sm:$0xff]  ;;  %v14686_v33 = vrot.slane %v7725_v39, 5  ;;  %v7731_v8 = vrot.slane %v7729_v62, 4  ;;  %v8346_v42 = vrot.slane %v14506_v34, 5  ;;  %v14693_v11 = vpop.f32.mrf.mxu0 }
 0x3c9   : > { %16076 = vst [vmem:[#allocation13_spill] sm:$0xff] %v14666_v58  ;;  %6865 = vmatmul.bf16.gmra.mxu2 %v11828_v23  ;;  %v9069_v44 = vrot.slane %v9067_v36, 4  ;;  %v14689_v45 = vrot.slane %v9076_v27, 5  ;;  %v9082_v23 = vrot.slane %v9080_v48, 4  ;;  %v9777_v43 = vsel %vm12663_vm8, %v9775_v14, %v9776_v19  ;;  %9586 = vmatpush.bf16.msra.mxu0 %v11917_v40 }
 0x3ca   : > { %8169 = vmatmul.bf16.gmra.mxu1 %v8077_v13  ;;  %v14677_v57 = vadd.f32 %v7201_v31, %v6824_v55  ;;  %v9701_v55 = vld [vmem:[#allocation3 + $0x24] sm:$0xe]  ;;  %v9072_v31 = vrot.slane %v9070_v51, 5  ;;  %16079 = vst [vmem:[#allocation18_spill] sm:$0xff] %v14693_v11  ;;  %v7714_v39 = vsel %vm12318_vm5, %v7709_v15, %v14647_v9  ;;  %v7722_v62 = vor.u32 %v7721_v52, %v7718_v12 }
 0x3cb   : > { %v9021_v13 = vld [vmem:[#allocation3 + $0x24] sm:$0xf]  ;;  %v11399_v34 = vrot.slane %v8277_v60, 9  ;;  %v8048_v27 = vunpack.c.l.b16 %v7704_v35  ;;  %v8347_v48 = vsel %vm12663_vm8, %v8345_v2, %v8346_v42  ;;  %v7732_v14 = vor.u32 %v7731_v8, %v14686_v33 }
 0x3cc   : > { %16078 = vst [vmem:[#allocation17_spill] sm:$0xff] %v14677_v57  ;;  %7243 = vmatmul.bf16.gmra.mxu3 %v7095_v32  ;;  %v11624_v32 = vrot.slane %v9701_v55, 9  ;;  %v16080_v19 = vshll.u32 %v14623_v37, 16  ;;  %v9091_v9 = vshrl.u32 %v9021_v13, 16  ;;  %v9094_v12 = vshll.u32 %v9021_v13, 16  ;;  %v11868_v52 = vld [vmem:[#allocation3 + $0xc0] sm:$0xff] }
 0x3cd   : > { %v8049_v15 = vunpack.c.l.b16 %v7714_v39  ;;  %v9073_v40 = vor.u32 %v9072_v31, %v9069_v44  ;;  %v9083_v35 = vor.u32 %v9082_v23, %v14689_v45  ;;  %v7723_v60 = vrot.slane %v7722_v62, 4  ;;  %v14716_v57 = vld [vmem:[#allocation3 + $0x34] sm:$0xf] }
 0x3ce   : > { %v14698_v36 = vpop.f32.mrf.mxu1  ;;  %v14705_v11 = vrot.slane %v16080_v19, 5  ;;  %v8344_v2 = vsel %vm12663_vm8, %v11399_v34, %v8343_v46  ;;  %v8471_v42 = vunpack.c.l.b16 %v8347_v48  ;;  %v9086_v8 = vshll.u32 %v14565_v61, 16  ;;  %v8278_v19 = vld [vmem:[#allocation3 + $0x18] sm:$0xe] }
 0x3cf   : > { %v7204_v51 = vpop.f32.mrf.mxu3  ;;  %v6826_v58 = vpop.f32.mrf.mxu2  ;;  %v9100_v13 = vshll.u32 %v14633_v4, 16  ;;  %v9104_v39 = vshrl.u32 %v14633_v4, 16  ;;  %v7733_v44 = vrot.slane %v7732_v14, 4  ;;  %v8350_v46 = vrot.slane %v14520_v25, 5 }
 0x3d0   : > { %v6827_v26 = vadd.f32 %v6826_v58, %v14496_v30  ;;  %v16082_v58 = vrot.slane %v14633_v4, 5  ;;  %v9093_v31 = vrot.slane %v9091_v9, 4  ;;  %v9096_v61 = vrot.slane %v9094_v12, 5 }
 0x3d1   : > { %v8470_v23 = vunpack.c.l.b16 %v8344_v2  ;;  %v9074_v62 = vrot.slane %v9073_v40, 4  ;;  %v9084_v34 = vrot.slane %v9083_v35, 4  ;;  %v8078_v48 = vpack.c.b16 %v8049_v15, %v8048_v27  ;;  %v14731_v27 = vld [vmem:[#allocation3 + $0x38] sm:$0x1]  ;;  %v14735_v40 = vpop.f32.mrf.mxu0 }
 0x3d2   : > { %7557 = vmatmul.bf16.gmra.mxu0 %v11868_v52  ;;  %v14712_v55 = vadd.f32 %v7204_v51, %v6827_v26  ;;  %v9774_v30 = vsel %vm12663_vm8, %v11624_v32, %v16082_v58  ;;  %v9896_v51 = vunpack.c.l.b16 %v9777_v43  ;;  %v11400_v52 = vrot.slane %v8278_v19, 9  ;;  %16084 = vst [vmem:[#allocation29_spill] sm:$0xff] %v14735_v40 }
 0x3d3   : > { %v9895_v26 = vunpack.c.l.b16 %v9774_v30  ;;  %v8502_v56 = vpack.c.b16 %v8471_v42, %v8470_v23  ;;  %v9088_v16 = vrot.slane %v9086_v8, 5  ;;  %v14726_v32 = vrot.slane %v9100_v13, 5  ;;  %v9702_v13 = vld [vmem:[#allocation3 + $0x30] sm:$0xe] }
 0x3d4   : > { %16081 = vst [vmem:[#allocation16_spill] sm:$0xff] %v14712_v55  ;;  %v9780_v55 = vrot.slane %v14716_v57, 5  ;;  %v9106_v14 = vrot.slane %v9104_v39, 4  ;;  %v7728_v9 = vsel %vm12318_vm5, %v7723_v60, %v14686_v33  ;;  %v8352_v12 = vrot.slane %v8350_v46, 4  ;;  %v8279_v60 = vld [vmem:[#allocation3 + $0x24] sm:$0xe] }
 0x3d5   : > { %v9097_v43 = vor.u32 %v9096_v61, %v9093_v31  ;;  %v14733_v15 = vpack.c.b16 %v9896_v51, %v9895_v26  ;;  %v7738_v2 = vsel %vm12318_vm5, %v7733_v44, %v14705_v11  ;;  %v9079_v42 = vsel %vm12318_vm5, %v9074_v62, %v14689_v45  ;;  %v11893_v11 = vld [vmem:[#allocation3 + $0x18] sm:$0xff]  ;;  %v9024_v30 = vld [vmem:[#allocation3 + $0x30] sm:$0xf]  ;;  %v14770_v51 = vld [vmem:[#allocation3 + $0x40] sm:$0xf] }
 0x3d6   : > { %v14724_v0 = vpop.f32.mrf.mxu1  ;;  %v9089_v33 = vsel %vm12318_vm5, %v9084_v34, %v9088_v16  ;;  %v14748_v8 = vsel %vm12663_vm8, %v11400_v52, %v8350_v46  ;;  %v8353_v19 = vrot.slane %v14563_v29, 5  ;;  %v11930_v16 = vld [vmem:[%s15980_s3 + $0x228] sm:$0xff]  ;;  %v9107_v45 = vor.u32 %v9106_v14, %v14726_v32  ;;  %v7607_v62 = vld [vmem:[#allocation3 + $0x3c] sm:$0xf] }
 0x3d7   : > { %v7206_v4 = vpop.f32.mrf.mxu3  ;;  %v6828_v25 = vpop.f32.mrf.mxu2  ;;  %16083 = vst [vmem:[#allocation28_spill] sm:$0xff] %v14733_v15  ;;  %v8357_v58 = vrot.slane %v14569_v38, 5  ;;  %v9783_v29 = vrot.slane %v14731_v27, 5  ;;  %v9468_v44 = vunpack.c.l.b16 %v9089_v33  ;;  %v9098_v31 = vrot.slane %v9097_v43, 4  ;;  %10007 = vmatpush.bf16.msra.mxu1 %v11930_v16 }
 0x3d8   : > { %v6829_v35 = vadd.f32 %v6828_v25, %v14518_v59  ;;  %v9110_v59 = vshll.u32 %v14664_v47, 16  ;;  %v9467_v47 = vunpack.c.l.b16 %v9079_v42  ;;  %v8354_v46 = vsel %vm12663_vm8, %v8352_v12, %v8353_v19 }
 0x3d9   : > { %8590 = vmatmul.bf16.vlgmr.msra.gmra.mxu2 %v8502_v56  ;;  %v9782_v56 = vrot.slane %v9780_v55, 4  ;;  %v14764_v61 = vunpack.c.l.b16 %v7728_v9  ;;  %v14766_v23 = vunpack.c.l.b16 %v7738_v2  ;;  %v11625_v34 = vrot.slane %v9702_v13, 9 }
 0x3da   : > { %8174 = vmatmul.bf16.gmra.mxu1 %v8078_v48  ;;  %v14754_v39 = vadd.f32 %v7206_v4, %v6829_v35  ;;  %v8472_v48 = vunpack.c.l.b16 %v14748_v8  ;;  %v11401_v52 = vrot.slane %v8279_v60, 9  ;;  %v9115_v26 = vshrl.u32 %v9024_v30, 16 }
 0x3db   : > { %v9784_v38 = vsel %vm12663_vm8, %v9782_v56, %v9783_v29  ;;  %v9118_v4 = vshll.u32 %v9024_v30, 16  ;;  %v8473_v25 = vunpack.c.l.b16 %v8354_v46  ;;  %v9108_v9 = vrot.slane %v9107_v45, 4  ;;  %v14790_v30 = vpop.f32.mrf.mxu0 }
 0x3dc   : > { %16085 = vst [vmem:[#allocation30_spill] sm:$0xff] %v14754_v39  ;;  %8905 = vmatmul.bf16.vlgmr.msra.gmra.mxu3 %v11893_v11  ;;  %v9112_v12 = vrot.slane %v9110_v59, 5  ;;  %v8359_v43 = vrot.slane %v8357_v58, 4  ;;  %v9499_v2 = vpack.c.b16 %v9468_v44, %v9467_v47  ;;  %v7740_v42 = vshrl.u32 %v7607_v62, 16  ;;  %v14781_v11 = vld [vmem:[#allocation3 + $0x40] sm:$0xf] }
 0x3dd   : > { %v9103_v33 = vsel %vm12318_vm5, %v9098_v31, %v14726_v32  ;;  %v8360_v19 = vrot.slane %v14602_v21, 5  ;;  %v7743_v8 = vshll.u32 %v7607_v62, 16  ;;  %v7749_v60 = vshll.u32 %v14770_v51, 16  ;;  %16086 = vst [vmem:[#allocation31_spill] sm:$0xff] %v14790_v30 }
 0x3de   : > { %v14773_v14 = vpop.f32.mrf.mxu1  ;;  %v7753_v56 = vshrl.u32 %v14770_v51, 16  ;;  %v9781_v59 = vsel %vm12663_vm8, %v11625_v34, %v9780_v55  ;;  %v8358_v32 = vsel %vm12663_vm8, %v11401_v52, %v8357_v58  ;;  %v9117_v45 = vrot.slane %v9115_v26, 4 }
 0x3df   : > { %v7209_v35 = vpop.f32.mrf.mxu3  ;;  %v6831_v13 = vpop.f32.mrf.mxu2  ;;  %v9120_v21 = vrot.slane %v9118_v4, 5  ;;  %v9113_v29 = vsel %vm12318_vm5, %v9108_v9, %v9112_v12  ;;  %v8361_v47 = vsel %vm12663_vm8, %v8359_v43, %v8360_v19  ;;  %v9124_v44 = vshll.u32 %v14716_v57, 16  ;;  %v14803_v9 = vld [vmem:[#allocation3 + $0x44] sm:$0x1] }
 0x3e0   : > { %v6832_v16 = vadd.f32 %v6831_v13, %v14555_v10  ;;  %v9128_v55 = vshrl.u32 %v14716_v57, 16  ;;  %v9897_v10 = vunpack.c.l.b16 %v9781_v59  ;;  %v9898_v31 = vunpack.c.l.b16 %v9784_v38  ;;  %v14809_v57 = vld [vmem:[#allocation3 + $0x44] sm:$0x1]  ;;  %v9703_v59 = vld [vmem:[#allocation3 + $0x3c] sm:$0xe] }
 0x3e1   : > { %v9787_v58 = vrot.slane %v14781_v11, 5  ;;  %v7742_v62 = vrot.slane %v7740_v42, 4  ;;  %v7745_v34 = vrot.slane %v7743_v8, 5  ;;  %v14801_v52 = vrot.slane %v7749_v60, 5 }
 0x3e2   : > { %9587 = vmatmul.bf16.vlgmr.msra.gmra.mxu0 %v9499_v2  ;;  %v14798_v46 = vadd.f32 %v7209_v35, %v6832_v16  ;;  %v7755_v26 = vrot.slane %v7753_v56, 4  ;;  %v9121_v4 = vor.u32 %v9120_v21, %v9117_v45  ;;  %v14805_v12 = vpack.c.b16 %v9898_v31, %v9897_v10  ;;  %v8280_v56 = vld [vmem:[#allocation3 + $0x30] sm:$0xe] }
 0x3e3   : > { %v8079_v43 = vpack.c.b16 %v14766_v23, %v14764_v61  ;;  %v8503_v35 = vpack.c.b16 %v8473_v25, %v8472_v48  ;;  %v9469_v2 = vunpack.c.l.b16 %v9103_v33  ;;  %v8474_v38 = vunpack.c.l.b16 %v8358_v32 }
 0x3e4   : > { %16087 = vst [vmem:[#allocation32_spill] sm:$0xff] %v14798_v46  ;;  %v9470_v13 = vunpack.c.l.b16 %v9113_v29  ;;  %v8475_v8 = vunpack.c.l.b16 %v8361_v47  ;;  %v9126_v60 = vrot.slane %v9124_v44, 5  ;;  %v9789_v16 = vrot.slane %v9787_v58, 4  ;;  %v11894_v29 = vld [vmem:[#allocation3 + $0x24] sm:$0xff]  ;;  %v14851_v46 = vld [vmem:[#allocation3 + $0x50] sm:$0x1] }
 0x3e5   : > { %16088 = vst [vmem:[#allocation33_spill] sm:$0xff] %v14805_v12  ;;  %v7746_v21 = vor.u32 %v7745_v34, %v7742_v62  ;;  %v7756_v10 = vor.u32 %v7755_v26, %v14801_v52  ;;  %v9130_v61 = vrot.slane %v9128_v55, 4  ;;  %v9790_v23 = vrot.slane %v14803_v9, 5  ;;  %v7610_v26 = vld [vmem:[#allocation3 + $0x48] sm:$0xf] }
 0x3e6   : > { %v7759_v25 = vshll.u32 %v14809_v57, 16  ;;  %v9122_v33 = vrot.slane %v9121_v4, 4  ;;  %v9134_v32 = vshll.u32 %v14731_v27, 16  ;;  %v11402_v47 = vrot.slane %v8280_v56, 9 }
 0x3e7   : > { %v14811_v19 = vpop.f32.mrf.mxu1  ;;  %v7211_v42 = vpop.f32.mrf.mxu3  ;;  %v8364_v44 = vrot.slane %v14631_v49, 5  ;;  %v11626_v31 = vrot.slane %v9703_v59, 9  ;;  %v9791_v62 = vsel %vm12663_vm8, %v9789_v16, %v9790_v23  ;;  %v9500_v55 = vpack.c.b16 %v9470_v13, %v9469_v2  ;;  %v14834_v13 = vld [vmem:[#allocation3 + $0x4c] sm:$0xf] }
 0x3e8   : > { %v6833_v45 = vpop.f32.mrf.mxu2  ;;  %v7757_v4 = vrot.slane %v7756_v10, 4  ;;  %v8504_v27 = vpack.c.b16 %v8475_v8, %v8474_v38  ;;  %v7761_v56 = vrot.slane %v7759_v25, 5  ;;  %v9127_v49 = vsel %vm12318_vm5, %v9122_v33, %v9126_v60  ;;  %v9704_v38 = vld [vmem:[#allocation3 + $0x48] sm:$0xe] }
 0x3e9   : > { %8595 = vmatmul.bf16.gmra.mxu2 %v8503_v35  ;;  %v6834_v48 = vadd.f32 %v6833_v45, %v14600_v7  ;;  %v14823_v35 = vpop.f32.mrf.mxu0  ;;  %v7747_v7 = vrot.slane %v7746_v21, 4  ;;  %v14825_v45 = vld [vmem:[#allocation3 + $0x4c] sm:$0xf]  ;;  %v9136_v59 = vrot.slane %v9134_v32, 5  ;;  %v8367_v16 = vrot.slane %v14623_v37, 5 }
 0x3ea   : > { %8179 = vmatmul.bf16.gmra.mxu1 %v8079_v43  ;;  %16090 = vst [vmem:[#allocation35_spill] sm:$0xff] %v14823_v35  ;;  %v9131_v43 = vor.u32 %v9130_v61, %v9126_v60  ;;  %v7767_v23 = vshll.u32 %v7610_v26, 16  ;;  %v14832_v2 = vsel %vm12663_vm8, %v11402_v47, %v8364_v44  ;;  %v9788_v21 = vsel %vm12663_vm8, %v11626_v31, %v9787_v58 }
 0x3eb   : > { %v14821_v34 = vadd.f32 %v7211_v42, %v6834_v48  ;;  %v7764_v42 = vshrl.u32 %v7610_v26, 16  ;;  %v7773_v60 = vshll.u32 %v14825_v45, 16  ;;  %v7777_v61 = vshrl.u32 %v14825_v45, 16  ;;  %v9027_v48 = vld [vmem:[#allocation3 + $0x3c] sm:$0xf] }
 0x3ec   : > { %8910 = vmatmul.bf16.gmra.mxu3 %v11894_v29  ;;  %v8366_v37 = vrot.slane %v8364_v44, 4  ;;  %v9900_v25 = vunpack.c.l.b16 %v9791_v62  ;;  %v7752_v33 = vsel %vm12318_vm5, %v7747_v7, %v14801_v52  ;;  %v7762_v32 = vsel %vm12318_vm5, %v7757_v4, %v7761_v56 }
 0x3ed   : > { %16089 = vst [vmem:[#allocation34_spill] sm:$0xff] %v14821_v34  ;;  %v9132_v58 = vrot.slane %v9131_v43, 4  ;;  %v14847_v47 = vunpack.c.l.b16 %v9127_v49  ;;  %v9899_v26 = vunpack.c.l.b16 %v9788_v21  ;;  %v11627_v12 = vrot.slane %v9704_v38, 9 }
 0x3ee   : > { %v9794_v15 = vrot.slane %v14834_v13, 5  ;;  %v7766_v44 = vrot.slane %v7764_v42, 4  ;;  %v7769_v62 = vrot.slane %v7767_v23, 5  ;;  %v9139_v34 = vshrl.u32 %v9027_v48, 16  ;;  %v14864_v42 = vld [vmem:[#allocation3 + $0x50] sm:$0x1] }
 0x3ef   : > { %v14838_v8 = vpop.f32.mrf.mxu1  ;;  %v7214_v10 = vpop.f32.mrf.mxu3  ;;  %v9142_v35 = vshll.u32 %v9027_v48, 16  ;;  %v14855_v7 = vrot.slane %v7773_v60, 5  ;;  %v7779_v4 = vrot.slane %v7777_v61, 4  ;;  %v14857_v43 = vpack.c.b16 %v9900_v25, %v9899_v26 }
 0x3f0   : > { %v6836_v29 = vpop.f32.mrf.mxu2  ;;  %v8052_v56 = vunpack.c.l.b16 %v7752_v33  ;;  %v14861_v49 = vsel %vm12663_vm8, %v8366_v37, %v8367_v16  ;;  %v9152_v23 = vshrl.u32 %v14781_v11, 16  ;;  %v9795_v21 = vsel %vm12663_vm8, %v11627_v12, %v9794_v15 }
 0x3f1   : > { %v6837_v31 = vadd.f32 %v6836_v29, %v14660_v5  ;;  %16092 = vst [vmem:[#allocation37_spill] sm:$0xff] %v14857_v43  ;;  %v8053_v5 = vunpack.c.l.b16 %v7762_v32  ;;  %v9796_v38 = vrot.slane %v9794_v15, 4  ;;  %v14870_v60 = vpop.f32.mrf.mxu0  ;;  %v9137_v61 = vsel %vm12318_vm5, %v9132_v58, %v9136_v59  ;;  %v14879_v15 = vld [vmem:[#allocation3 + $0x3c] sm:$0xe] }
 0x3f2   : > { %9592 = vmatmul.bf16.gmra.mxu0 %v9500_v55  ;;  %v9148_v55 = vshll.u32 %v14781_v11, 16  ;;  %16093 = vst [vmem:[#allocation38_spill] sm:$0xff] %v14870_v60  ;;  %v9141_v48 = vrot.slane %v9139_v34, 4  ;;  %v9144_v16 = vrot.slane %v9142_v35, 5  ;;  %v7770_v32 = vor.u32 %v7769_v62, %v7766_v44 }
 0x3f3   : > { %v14853_v52 = vadd.f32 %v7214_v10, %v6837_v31  ;;  %v9797_v10 = vrot.slane %v14851_v46, 5  ;;  %v7780_v11 = vor.u32 %v7779_v4, %v14855_v7  ;;  %v9158_v12 = vshll.u32 %v14803_v9, 16  ;;  %v11895_v9 = vld [vmem:[#allocation3 + $0x30] sm:$0xff]  ;;  %v11929_v4 = vld [vmem:[%s15980_s3 + $0x220] sm:$0xff] }
 0x3f4   : > { %v8080_v31 = vpack.c.b16 %v8053_v5, %v8052_v56  ;;  %v7783_v34 = vshll.u32 %v14864_v42, 16  ;;  %v9901_v35 = vunpack.c.l.b16 %v9795_v21  ;;  %v9472_v37 = vunpack.c.l.b16 %v9137_v61  ;;  %v9030_v5 = vld [vmem:[#allocation3 + $0x48] sm:$0xf]  ;;  %10008 = vmatpush.bf16.msra.mxu1 %v11929_v4 }
 0x3f5   : > { %16091 = vst [vmem:[#allocation36_spill] sm:$0xff] %v14853_v52  ;;  %v9798_v29 = vsel %vm12663_vm8, %v9796_v38, %v9797_v10  ;;  %v14885_v44 = vrot.slane %v9148_v55, 5  ;;  %v9154_v62 = vrot.slane %v9152_v23, 4  ;;  %v9145_v38 = vor.u32 %v9144_v16, %v9141_v48  ;;  %v7613_v23 = vld [vmem:[#allocation3 + $0x54] sm:$0xf] }
 0x3f6   : > { %v9902_v59 = vunpack.c.l.b16 %v9798_v29  ;;  %v11403_v56 = vrot.slane %v14879_v15, 9  ;;  %v7771_v21 = vrot.slane %v7770_v32, 4  ;;  %v14895_v61 = vrot.slane %v9158_v12, 5  ;;  %v14901_v15 = vld [vmem:[#allocation3 + $0x58] sm:$0xf] }
 0x3f7   : > { %v14875_v25 = vpop.f32.mrf.mxu1  ;;  %v7216_v33 = vpop.f32.mrf.mxu3  ;;  %v7785_v55 = vrot.slane %v7783_v34, 5  ;;  %v8476_v29 = vunpack.c.l.b16 %v14832_v2  ;;  %v16096_v48 = vrot.slane %v14770_v51, 5  ;;  %v9155_v32 = vor.u32 %v9154_v62, %v14885_v44  ;;  %v9705_v34 = vld [vmem:[#allocation3 + $0x54] sm:$0xe] }
 0x3f8   : > { %v6838_v26 = vpop.f32.mrf.mxu2  ;;  %v14891_v10 = vpack.c.b16 %v9902_v59, %v9901_v35  ;;  %v9166_v12 = vshll.u32 %v9030_v5, 16  ;;  %v14907_v35 = vrot.slane %v9145_v38, 4  ;;  %v8374_v2 = vrot.slane %v14809_v57, 5 }
 0x3f9   : > { %8600 = vmatmul.bf16.gmra.mxu2 %v8504_v27  ;;  %v6839_v58 = vadd.f32 %v6838_v26, %v14698_v36  ;;  %v7781_v36 = vrot.slane %v7780_v11, 4  ;;  %v8373_v16 = vrot.slane %v16096_v48, 4  ;;  %v14904_v26 = vld [vmem:[#allocation3 + $0x58] sm:$0xf]  ;;  %v9163_v11 = vshrl.u32 %v9030_v5, 16  ;;  %v14920_v38 = vpop.f32.mrf.mxu0 }
 0x3fa   : > { %8184 = vmatmul.bf16.gmra.mxu1 %v8080_v31  ;;  %16094 = vst [vmem:[#allocation39_spill] sm:$0xff] %v14891_v10  ;;  %v8477_v31 = vunpack.c.l.b16 %v14861_v49  ;;  %v9172_v49 = vshll.u32 %v14834_v13, 16  ;;  %v9176_v59 = vshrl.u32 %v14834_v13, 16  ;;  %v7788_v62 = vshrl.u32 %v7613_v23, 16  ;;  %v14924_v10 = vld [vmem:[#allocation3 + $0x5c] sm:$0x1] }
 0x3fb   : > { %v14893_v27 = vadd.f32 %v7216_v33, %v6839_v58  ;;  %v9501_v33 = vpack.c.b16 %v9472_v37, %v14847_v47  ;;  %v7776_v47 = vsel %vm12318_vm5, %v7771_v21, %v14855_v7  ;;  %v7786_v37 = vsel %vm12318_vm5, %v7781_v36, %v7785_v55  ;;  %16097 = vst [vmem:[#allocation41_spill] sm:$0xff] %v14920_v38 }
 0x3fc   : > { %8915 = vmatmul.bf16.gmra.mxu3 %v11895_v9  ;;  %v9801_v4 = vrot.slane %v14901_v15, 5  ;;  %v7791_v5 = vshll.u32 %v7613_v23, 16  ;;  %v7797_v48 = vshll.u32 %v14904_v26, 16  ;;  %v7801_v13 = vshrl.u32 %v14904_v26, 16 }
 0x3fd   : > { %16095 = vst [vmem:[#allocation40_spill] sm:$0xff] %v14893_v27  ;;  %v11628_v43 = vrot.slane %v9705_v34, 9  ;;  %v9156_v7 = vrot.slane %v9155_v32, 4  ;;  %v9165_v21 = vrot.slane %v9163_v11, 4  ;;  %v9168_v52 = vrot.slane %v9166_v12, 5 }
 0x3fe   : > { %v8054_v36 = vunpack.c.l.b16 %v7776_v47  ;;  %v8055_v55 = vunpack.c.l.b16 %v7786_v37  ;;  %v14927_v60 = vrot.slane %v9172_v49, 5  ;;  %v9178_v38 = vrot.slane %v9176_v59, 4  ;;  %v14936_v32 = vld [vmem:[#allocation3 + $0x5c] sm:$0x1] }
 0x3ff   : > { %v14912_v58 = vpop.f32.mrf.mxu1  ;;  %v7219_v9 = vpop.f32.mrf.mxu3  ;;  %v7790_v23 = vrot.slane %v7788_v62, 4  ;;  %v9803_v39 = vrot.slane %v9801_v4, 4  ;;  %v9804_v40 = vrot.slane %v14924_v10, 5  ;;  %v7793_v63 = vrot.slane %v7791_v5, 5 }
 0x400   : > { %v6841_v57 = vpop.f32.mrf.mxu2  ;;  %v14932_v17 = vrot.slane %v7797_v48, 5  ;;  %v7803_v34 = vrot.slane %v7801_v13, 4  ;;  %v8505_v11 = vpack.c.b16 %v8477_v31, %v8476_v29  ;;  %v14946_v12 = vsel %vm12663_vm8, %v8373_v16, %v8374_v2  ;;  %v9033_v31 = vld [vmem:[#allocation3 + $0x54] sm:$0xf] }
 0x401   : > { %v6842_v27 = vadd.f32 %v6841_v57, %v14724_v0  ;;  %v9802_v0 = vsel %vm12663_vm8, %v11628_v43, %v9801_v4  ;;  %v9805_v49 = vsel %vm12663_vm8, %v9803_v39, %v9804_v40  ;;  %v9151_v43 = vsel %vm12318_vm5, %v14907_v35, %v14885_v44 }
 0x402   : > { %9597 = vmatmul.bf16.gmra.mxu0 %v9501_v33  ;;  %v16098_v33 = vrot.slane %v14770_v51, 5  ;;  %v9161_v51 = vsel %vm12318_vm5, %v9156_v7, %v14895_v61  ;;  %v9169_v29 = vor.u32 %v9168_v52, %v9165_v21  ;;  %v9179_v2 = vor.u32 %v9178_v38, %v14927_v60  ;;  %v14967_v38 = vpop.f32.mrf.mxu0 }
 0x403   : > { %v14929_v30 = vadd.f32 %v7219_v9, %v6842_v27  ;;  %v8282_v9 = vld [vmem:[#allocation3 + $0x48] sm:$0xe]  ;;  %v8378_v40 = vrot.slane %v14825_v45, 5  ;;  %v9903_v39 = vunpack.c.l.b16 %v9802_v0  ;;  %v9904_v47 = vunpack.c.l.b16 %v9805_v49  ;;  %v11896_v45 = vld [vmem:[#allocation3 + $0x3c] sm:$0xff] }
 0x404   : > { %v14942_v27 = vsel %vm12663_vm8, %v11403_v56, %v16098_v33  ;;  %v9182_v56 = vshll.u32 %v14851_v46, 16  ;;  %v8081_v37 = vpack.c.b16 %v8055_v55, %v8054_v36  ;;  %v7794_v35 = vor.u32 %v7793_v63, %v7790_v23  ;;  %v7616_v49 = vld [vmem:[#allocation3 + $0x60] sm:$0xf] }
 0x405   : > { %v7804_v62 = vor.u32 %v7803_v34, %v14932_v17  ;;  %v7807_v52 = vshll.u32 %v14936_v32, 16  ;;  %v9187_v61 = vshrl.u32 %v9033_v31, 16  ;;  %v9190_v4 = vshll.u32 %v9033_v31, 16 }
 0x406   : > { %v14965_v57 = vpack.c.b16 %v9904_v47, %v9903_v39  ;;  %v9473_v5 = vunpack.c.l.b16 %v9151_v43  ;;  %v9474_v48 = vunpack.c.l.b16 %v9161_v51  ;;  %v8478_v13 = vunpack.c.l.b16 %v14942_v27 }
 0x407   : > { %v14958_v59 = vpop.f32.mrf.mxu1  ;;  %v7221_v16 = vpop.f32.mrf.mxu3  ;;  %v11404_v63 = vrot.slane %v8282_v9, 9  ;;  %v9170_v21 = vrot.slane %v9169_v29, 4  ;;  %v9180_v36 = vrot.slane %v9179_v2, 4  ;;  %v8380_v55 = vrot.slane %v8378_v40, 4  ;;  %v9706_v9 = vld [vmem:[#allocation3 + $0x60] sm:$0xe] }
 0x408   : > { %v6843_v44 = vpop.f32.mrf.mxu2  ;;  %16099 = vst [vmem:[#allocation42_spill] sm:$0xff] %v14965_v57  ;;  %v7805_v23 = vrot.slane %v7804_v62, 4  ;;  %v8479_v34 = vunpack.c.l.b16 %v14946_v12  ;;  %v8381_v0 = vrot.slane %v14864_v42, 5  ;;  %v7809_v33 = vrot.slane %v7807_v52, 5  ;;  %v8284_v57 = vld [vmem:[#allocation3 + $0x60] sm:$0xe] }
 0x409   : > { %8605 = vmatmul.bf16.gmra.mxu2 %v8505_v11  ;;  %v6844_v46 = vadd.f32 %v6843_v44, %v14773_v14  ;;  %v7795_v14 = vrot.slane %v7794_v35, 4  ;;  %v14974_v11 = vld [vmem:[#allocation3 + $0x64] sm:$0xf]  ;;  %v9184_v43 = vrot.slane %v9182_v56, 5  ;;  %v9189_v51 = vrot.slane %v9187_v61, 4 }
 0x40a   : > { %8189 = vmatmul.bf16.gmra.mxu1 %v8081_v37  ;;  %v9192_v27 = vrot.slane %v9190_v4, 5  ;;  %v9502_v31 = vpack.c.b16 %v9474_v48, %v9473_v5  ;;  %v14980_v29 = vsel %vm12663_vm8, %v11404_v63, %v8378_v40  ;;  %v9196_v2 = vshll.u32 %v14901_v15, 16  ;;  %v8283_v40 = vld [vmem:[#allocation3 + $0x54] sm:$0xe] }
 0x40b   : > { %v14970_v7 = vadd.f32 %v7221_v16, %v6844_v46  ;;  %v14976_v16 = vld [vmem:[#allocation3 + $0x64] sm:$0xf]  ;;  %v9200_v12 = vshrl.u32 %v14901_v15, 16  ;;  %v9175_v56 = vsel %vm12318_vm5, %v9170_v21, %v14927_v60  ;;  %v9185_v47 = vsel %vm12318_vm5, %v9180_v36, %v9184_v43  ;;  %v14999_v60 = vld [vmem:[#allocation3 + $0x68] sm:$0x1] }
 0x40c   : > { %8920 = vmatmul.bf16.gmra.mxu3 %v11896_v45  ;;  %v8382_v37 = vsel %vm12663_vm8, %v8380_v55, %v8381_v0  ;;  %v9808_v44 = vrot.slane %v14974_v11, 5  ;;  %v7800_v15 = vsel %vm12318_vm5, %v7795_v14, %v14932_v17  ;;  %v7810_v35 = vsel %vm12318_vm5, %v7805_v23, %v7809_v33  ;;  %v15010_v0 = vpop.f32.mrf.mxu0 }
 0x40d   : > { %v7812_v52 = vshrl.u32 %v7616_v49, 16  ;;  %v7815_v46 = vshll.u32 %v7616_v49, 16  ;;  %v7821_v4 = vshll.u32 %v14976_v16, 16  ;;  %v7825_v45 = vshrl.u32 %v14976_v16, 16 }
 0x40e   : > { %v11629_v5 = vrot.slane %v9706_v9, 9  ;;  %v9193_v48 = vor.u32 %v9192_v27, %v9189_v51  ;;  %v15004_v63 = vrot.slane %v9196_v2, 5  ;;  %v9202_v17 = vrot.slane %v9200_v12, 4 }
 0x40f   : > { %v14984_v42 = vpop.f32.mrf.mxu1  ;;  %v7224_v39 = vpop.f32.mrf.mxu3  ;;  %v11405_v21 = vrot.slane %v8283_v40, 9  ;;  %v8385_v55 = vrot.slane %v14904_v26, 5  ;;  %v9810_v14 = vrot.slane %v9808_v44, 4  ;;  %v9811_v23 = vrot.slane %v14999_v60, 5 }
 0x410   : > { %v6846_v62 = vpop.f32.mrf.mxu2  ;;  %v8057_v33 = vunpack.c.l.b16 %v7810_v35  ;;  %v7814_v49 = vrot.slane %v7812_v52, 4  ;;  %v7817_v43 = vrot.slane %v7815_v46, 5  ;;  %v15012_v9 = vrot.slane %v7821_v4, 5  ;;  %v9036_v46 = vld [vmem:[#allocation3 + $0x60] sm:$0xf] }
 0x411   : > { %v6847_v61 = vadd.f32 %v6846_v62, %v14811_v19  ;;  %v8056_v19 = vunpack.c.l.b16 %v7800_v15  ;;  %v7827_v51 = vrot.slane %v7825_v45, 4  ;;  %v9809_v27 = vsel %vm12663_vm8, %v11629_v5, %v9808_v44  ;;  %v15024_v44 = vld [vmem:[#allocation3 + $0x68] sm:$0x1] }
 0x412   : > { %9602 = vmatmul.bf16.gmra.mxu0 %v9502_v31  ;;  %v9812_v31 = vsel %vm12663_vm8, %v9810_v14, %v9811_v23  ;;  %v8506_v2 = vpack.c.b16 %v8479_v34, %v8478_v13  ;;  %v15018_v26 = vunpack.c.l.b16 %v9175_v56  ;;  %v8480_v12 = vunpack.c.l.b16 %v14980_v29 }
 0x413   : > { %v15006_v36 = vadd.f32 %v7224_v39, %v6847_v61  ;;  %v9476_v15 = vunpack.c.l.b16 %v9185_v47  ;;  %v8481_v35 = vunpack.c.l.b16 %v8382_v37  ;;  %v9194_v62 = vrot.slane %v9193_v48, 4  ;;  %v11928_v37 = vld [vmem:[%s15980_s3 + $0x218] sm:$0xff] }
 0x414   : > { %v9206_v52 = vshll.u32 %v14924_v10, 16  ;;  %v8082_v61 = vpack.c.b16 %v8057_v33, %v8056_v19  ;;  %v9203_v13 = vor.u32 %v9202_v17, %v15004_v63  ;;  %v9905_v34 = vunpack.c.l.b16 %v9809_v27  ;;  %v11897_v10 = vld [vmem:[#allocation3 + $0x48] sm:$0xff]  ;;  %10009 = vmatpush.bf16.msra.mxu1 %v11928_v37 }
 0x415   : > { %16100 = vst [vmem:[#allocation43_spill] sm:$0xff] %v15006_v36  ;;  %v9906_v56 = vunpack.c.l.b16 %v9812_v31  ;;  %v7818_v45 = vor.u32 %v7817_v43, %v7814_v49  ;;  %v7828_v5 = vor.u32 %v7827_v51, %v15012_v9  ;;  %v15031_v47 = vsel %vm12663_vm8, %v11405_v21, %v8385_v55  ;;  %v7619_v49 = vld [vmem:[#allocation3 + $0x6c] sm:$0xf]  ;;  %v15046_v31 = vld [vmem:[#allocation3 + $0x70] sm:$0xf] }
 0x416   : > { %v9211_v48 = vshrl.u32 %v9036_v46, 16  ;;  %v9214_v14 = vshll.u32 %v9036_v46, 16  ;;  %v15041_v19 = vpack.c.b16 %v8481_v35, %v8480_v12  ;;  %v8388_v33 = vrot.slane %v14936_v32, 5  ;;  %v15048_v46 = vld [vmem:[#allocation3 + $0x70] sm:$0xf]  ;;  %v15053_v35 = vpop.f32.mrf.mxu0 }
 0x417   : > { %v15021_v39 = vpop.f32.mrf.mxu1  ;;  %v7226_v40 = vpop.f32.mrf.mxu3  ;;  %v15036_v17 = vpack.c.b16 %v9906_v56, %v9905_v34  ;;  %v9503_v21 = vpack.c.b16 %v9476_v15, %v15018_v26  ;;  %v9208_v43 = vrot.slane %v9206_v52, 5  ;;  %v8387_v51 = vrot.slane %v8385_v55, 4 }
 0x418   : > { %v6848_v4 = vpop.f32.mrf.mxu2  ;;  %v9199_v12 = vsel %vm12318_vm5, %v9194_v62, %v15004_v63  ;;  %v9204_v32 = vrot.slane %v9203_v13, 4  ;;  %v9213_v26 = vrot.slane %v9211_v48, 4  ;;  %v9216_v15 = vrot.slane %v9214_v14, 5 }
 0x419   : > { %8610 = vmatmul.bf16.gmra.mxu2 %v8506_v2  ;;  %v6849_v29 = vadd.f32 %v6848_v4, %v14838_v8  ;;  %16101 = vst [vmem:[#allocation44_spill] sm:$0xff] %v15036_v17  ;;  %v7831_v8 = vshll.u32 %v15024_v44, 16  ;;  %v7819_v2 = vrot.slane %v7818_v45, 4  ;;  %v9220_v52 = vshll.u32 %v14974_v11, 16 }
 0x41a   : > { %8194 = vmatmul.bf16.gmra.mxu1 %v8082_v61  ;;  %v9224_v55 = vshrl.u32 %v14974_v11, 16  ;;  %v9707_v61 = vld [vmem:[#allocation3 + $0x6c] sm:$0xe]  ;;  %v7839_v45 = vshll.u32 %v7619_v49, 16  ;;  %v7845_v63 = vshll.u32 %v15048_v46, 16  ;;  %v7849_v62 = vshrl.u32 %v15048_v46, 16 }
 0x41b   : > { %v15038_v23 = vadd.f32 %v7226_v40, %v6849_v29  ;;  %v7829_v40 = vrot.slane %v7828_v5, 4  ;;  %v7833_v56 = vrot.slane %v7831_v8, 5  ;;  %v7836_v29 = vshrl.u32 %v7619_v49, 16 }
 0x41c   : > { %8925 = vmatmul.bf16.gmra.mxu3 %v11897_v10  ;;  %v9815_v5 = vrot.slane %v15046_v31, 5  ;;  %v15062_v13 = vunpack.c.l.b16 %v9199_v12  ;;  %v8389_v37 = vsel %vm12663_vm8, %v8387_v51, %v8388_v33  ;;  %v7824_v11 = vsel %vm12318_vm5, %v7819_v2, %v15012_v9 }
 0x41d   : > { %16102 = vst [vmem:[#allocation45_spill] sm:$0xff] %v15038_v23  ;;  %v7834_v48 = vsel %vm12318_vm5, %v7829_v40, %v7833_v56  ;;  %v11630_v8 = vrot.slane %v9707_v61, 9  ;;  %v9209_v49 = vsel %vm12318_vm5, %v9204_v32, %v9208_v43  ;;  %v9217_v27 = vor.u32 %v9216_v15, %v9213_v26  ;;  %v15074_v23 = vld [vmem:[#allocation3 + $0x74] sm:$0x1] }
 0x41e   : > { %v9222_v12 = vrot.slane %v9220_v52, 5  ;;  %v9226_v17 = vrot.slane %v9224_v55, 4  ;;  %v7838_v51 = vrot.slane %v7836_v29, 4  ;;  %v7841_v9 = vrot.slane %v7839_v45, 5 }
 0x41f   : > { %v15057_v4 = vpop.f32.mrf.mxu1  ;;  %v7229_v34 = vpop.f32.mrf.mxu3  ;;  %v9817_v2 = vrot.slane %v9815_v5, 4  ;;  %v8058_v36 = vunpack.c.l.b16 %v7824_v11  ;;  %v8059_v40 = vunpack.c.l.b16 %v7834_v48  ;;  %v15078_v56 = vrot.slane %v7845_v63, 5 }
 0x420   : > { %v6851_v10 = vpop.f32.mrf.mxu2  ;;  %v11406_v61 = vrot.slane %v8284_v57, 9  ;;  %v8392_v43 = vrot.slane %v14976_v16, 5  ;;  %v9816_v32 = vsel %vm12663_vm8, %v11630_v8, %v9815_v5  ;;  %v9818_v26 = vrot.slane %v15074_v23, 5  ;;  %v15092_v11 = vpop.f32.mrf.mxu0 }
 0x421   : > { %v6852_v14 = vadd.f32 %v6851_v10, %v14875_v25  ;;  %v7851_v25 = vrot.slane %v7849_v62, 4  ;;  %v15084_v15 = vunpack.c.l.b16 %v9209_v49  ;;  %v8483_v52 = vunpack.c.l.b16 %v8389_v37  ;;  %v15088_v10 = vld [vmem:[#allocation3 + $0x74] sm:$0x1] }
 0x422   : > { %9607 = vmatmul.bf16.gmra.mxu0 %v9503_v21  ;;  %v9039_v21 = vld [vmem:[#allocation3 + $0x6c] sm:$0xf]  ;;  %v9218_v55 = vrot.slane %v9217_v27, 4  ;;  %v7842_v63 = vor.u32 %v7841_v9, %v7838_v51  ;;  %v9819_v16 = vsel %vm12663_vm8, %v9817_v2, %v9818_v26  ;;  %v8083_v5 = vpack.c.b16 %v8059_v40, %v8058_v36  ;;  %v15102_v9 = vld [vmem:[#allocation3 + $0x7c] sm:$0xf]  ;;  %v11898_v36 = vld [vmem:[#allocation3 + $0x54] sm:$0xff] }
 0x423   : > { %v15076_v33 = vadd.f32 %v7229_v34, %v6852_v14  ;;  %v9227_v34 = vor.u32 %v9226_v17, %v9222_v12  ;;  %v9235_v62 = vshrl.u32 %v9039_v21, 16  ;;  %v9238_v57 = vshll.u32 %v9039_v21, 16 }
 0x424   : > { %v7852_v14 = vor.u32 %v7851_v25, %v15078_v56  ;;  %v9907_v17 = vunpack.c.l.b16 %v9816_v32  ;;  %v9908_v27 = vunpack.c.l.b16 %v9819_v16  ;;  %v9230_v8 = vshll.u32 %v14999_v60, 16 }
 0x425   : > { %v15100_v49 = vsel %vm12663_vm8, %v11406_v61, %v8392_v43  ;;  %v8394_v51 = vrot.slane %v8392_v43, 4  ;;  %v7855_v2 = vshll.u32 %v15088_v10, 16  ;;  %v9228_v40 = vrot.slane %v9227_v34, 4 }
 0x426   : > { %v15107_v25 = vpack.c.b16 %v9908_v27, %v9907_v17  ;;  %v7843_v60 = vrot.slane %v7842_v63, 4  ;;  %v9237_v21 = vrot.slane %v9235_v62, 4  ;;  %v9240_v32 = vrot.slane %v9238_v57, 5  ;;  %v15118_v62 = vld [vmem:[#allocation3 + $0x7c] sm:$0xf] }
 0x427   : > { %v15086_v29 = vpop.f32.mrf.mxu1  ;;  %v7231_v45 = vpop.f32.mrf.mxu3  ;;  %v7853_v61 = vrot.slane %v7852_v14, 4  ;;  %v16105_v43 = vunpack.c.l.b16 %v15031_v47  ;;  %v9822_v16 = vrot.slane %v15102_v9, 5  ;;  %v7857_v63 = vrot.slane %v7855_v2, 5 }
 0x428   : > { %v6853_v48 = vpop.f32.mrf.mxu2  ;;  %16103 = vst [vmem:[#allocation46_spill] sm:$0xff] %v15107_v25  ;;  %v9244_v47 = vshll.u32 %v15046_v31, 16  ;;  %v9241_v27 = vor.u32 %v9240_v32, %v9237_v21  ;;  %v7583_v28 = vadd.f32 %v15010_v0, %v14929_v30  ;;  %v16166_v30 = vld [vmem:[#allocation45_spill] sm:$0xff] }
 0x429   : > { %8615 = vmatmul.bf16.gmra.mxu2 %v15041_v19  ;;  %v6854_v37 = vadd.f32 %v6853_v48, %v14912_v58  ;;  %v9223_v19 = vsel %vm12318_vm5, %v9218_v55, %v9222_v12  ;;  %v8508_v26 = vpack.c.b16 %v8483_v52, %v16105_v43  ;;  %v7622_v48 = vld [vmem:[#allocation3 + $0x78] sm:$0xf]  ;;  %v9232_v12 = vrot.slane %v9230_v8, 5 }
 0x42a   : > { %8199 = vmatmul.bf16.gmra.mxu1 %v8083_v5  ;;  %v9504_v5 = vpack.c.b16 %v15084_v15, %v15062_v13  ;;  %v8395_v55 = vrot.slane %v15024_v44, 5  ;;  %v15120_v57 = vunpack.c.l.b16 %v9223_v19  ;;  %v9248_v52 = vshrl.u32 %v15046_v31, 16 }
 0x42b   : > { %v15109_v58 = vadd.f32 %v7231_v45, %v6854_v37  ;;  %v9708_v45 = vld [vmem:[#allocation3 + $0x78] sm:$0xe]  ;;  %v7848_v13 = vsel %vm12318_vm5, %v7843_v60, %v15078_v56  ;;  %v9233_v44 = vsel %vm12318_vm5, %v9228_v40, %v9232_v12  ;;  %v15133_v37 = vld [vmem:[#allocation3 + $0x80] sm:$0x1]  ;;  %v7858_v8 = vsel %vm12318_vm5, %v7853_v61, %v7857_v63  ;;  %v15140_v60 = vpop.f32.mrf.mxu0  ;;  %v8285_v63 = vld [vmem:[#allocation3 + $0x6c] sm:$0xe] }
 0x42c   : > { %8930 = vmatmul.bf16.gmra.mxu3 %v11898_v36  ;;  %v8396_v15 = vsel %vm12663_vm8, %v8394_v51, %v8395_v55  ;;  %v7860_v36 = vshrl.u32 %v7622_v48, 16  ;;  %v11631_v2 = vrot.slane %v9708_v45, 9  ;;  %v9824_v19 = vrot.slane %v9822_v16, 4 }
 0x42d   : > { %16104 = vst [vmem:[#allocation47_spill] sm:$0xff] %v15109_v58  ;;  %v7863_v34 = vshll.u32 %v7622_v48, 16  ;;  %v7869_v56 = vshll.u32 %v15118_v62, 16  ;;  %v7873_v40 = vshrl.u32 %v15118_v62, 16  ;;  %v8485_v51 = vunpack.c.l.b16 %v8396_v15 }
 0x42e   : > { %v9246_v21 = vrot.slane %v9244_v47, 5  ;;  %v9250_v32 = vrot.slane %v9248_v52, 4  ;;  %v9825_v12 = vrot.slane %v15133_v37, 5  ;;  %v15145_v55 = vunpack.c.l.b16 %v9233_v44 }
 0x42f   : > { %v15124_v14 = vpop.f32.mrf.mxu1  ;;  %v7234_v17 = vpop.f32.mrf.mxu3  ;;  %v9242_v45 = vrot.slane %v9241_v27, 4  ;;  %v8060_v48 = vunpack.c.l.b16 %v7848_v13  ;;  %v9823_v25 = vsel %vm12663_vm8, %v11631_v2, %v9822_v16  ;;  %v7862_v47 = vrot.slane %v7860_v36, 4 }
 0x430   : > { %v6856_v31 = vpop.f32.mrf.mxu2  ;;  %v7865_v52 = vrot.slane %v7863_v34, 5  ;;  %v15152_v15 = vrot.slane %v7869_v56, 5  ;;  %v7563_v44 = vadd.f32 %v14334_v20, %v14340_v24  ;;  %v9251_v27 = vor.u32 %v9250_v32, %v9246_v21 }
 0x431   : > { %v6857_v43 = vadd.f32 %v6856_v31, %v14958_v59  ;;  %v8399_v59 = vrot.slane %v15048_v46, 5  ;;  %v8061_v31 = vunpack.c.l.b16 %v7858_v8  ;;  %v9254_v46 = vshll.u32 %v15074_v23, 16 }
 0x432   : > { %9612 = vmatmul.bf16.gmra.mxu0 %v9504_v5  ;;  %v9826_v5 = vsel %vm12663_vm8, %v9824_v19, %v9825_v12  ;;  %v11407_v13 = vrot.slane %v8285_v63, 9  ;;  %v9247_v16 = vsel %vm12318_vm5, %v9242_v45, %v9246_v21  ;;  %v9909_v19 = vunpack.c.l.b16 %v9823_v25  ;;  %v15161_v12 = vld [vmem:[#allocation3 + $0x80] sm:$0x1]  ;;  %v11927_v45 = vld [vmem:[%s15980_s3 + $0x210] sm:$0xff] }
 0x433   : > { %v15143_v61 = vadd.f32 %v7234_v17, %v6857_v43  ;;  %v7875_v17 = vrot.slane %v7873_v40, 4  ;;  %v9042_v43 = vld [vmem:[#allocation3 + $0x78] sm:$0xf]  ;;  %v8401_v2 = vrot.slane %v8399_v59, 4  ;;  %v9910_v36 = vunpack.c.l.b16 %v9826_v5  ;;  %v11899_v21 = vld [vmem:[#allocation3 + $0x60] sm:$0xff]  ;;  %10010 = vmatpush.bf16.msra.mxu1 %v11927_v45 }
 0x434   : > { %v8084_v56 = vpack.c.b16 %v8061_v31, %v8060_v48  ;;  %v9259_v20 = vshrl.u32 %v9042_v43, 16  ;;  %v9262_v24 = vshll.u32 %v9042_v43, 16  ;;  %v7866_v32 = vor.u32 %v7865_v52, %v7862_v47  ;;  %v15177_v5 = vld [vmem:[#allocation3 + $0x88] sm:$0xf] }
 0x435   : > { %16106 = vst [vmem:[#allocation48_spill] sm:$0xff] %v15143_v61  ;;  %v7876_v63 = vor.u32 %v7875_v17, %v15152_v15  ;;  %v15165_v58 = vpack.c.b16 %v9910_v36, %v9909_v19  ;;  %v9505_v25 = vpack.c.b16 %v15145_v55, %v15120_v57  ;;  %v9256_v31 = vrot.slane %v9254_v46, 5  ;;  %v7625_v17 = vld [vmem:[#allocation3 + $0x84] sm:$0xf]  ;;  %v15186_v55 = vpop.f32.mrf.mxu0 }
 0x436   : > { %v7879_v52 = vshll.u32 %v15161_v12, 16  ;;  %v9252_v43 = vrot.slane %v9251_v27, 4  ;;  %v15184_v57 = vsel %vm12663_vm8, %v11407_v13, %v8399_v59  ;;  %v7867_v46 = vrot.slane %v7866_v32, 4  ;;  %v9709_v59 = vld [vmem:[#allocation3 + $0x84] sm:$0xe] }
 0x437   : > { %v8165_v8 = vpop.f32.mrf.mxu1  ;;  %v7236_v61 = vpop.f32.mrf.mxu3  ;;  %16107 = vst [vmem:[#allocation49_spill] sm:$0xff] %v15165_v58  ;;  %v9829_v13 = vrot.slane %v15177_v5, 5  ;;  %v7564_v19 = vadd.f32 %v14357_v3, %v14359_v53  ;;  %v7884_v36 = vshrl.u32 %v7625_v17, 16  ;;  %v15209_v3 = vld [vmem:[#allocation3 + $0x8c] sm:$0x1]  ;;  %v11632_v53 = vrot.slane %v9709_v59, 9 }
 0x438   : > { %v15159_v34 = vadd.f32 %v8165_v8, %v7563_v44  ;;  %v6858_v40 = vpop.f32.mrf.mxu2  ;;  %v9264_v44 = vrot.slane %v9262_v24, 5  ;;  %v7877_v8 = vrot.slane %v7876_v63, 4  ;;  %v7881_v24 = vrot.slane %v7879_v52, 5 }
 0x439   : > { %8620 = vmatmul.bf16.gmra.mxu2 %v8508_v26  ;;  %v6859_v23 = vadd.f32 %v6858_v40, %v14984_v42  ;;  %v16108_v26 = vunpack.c.l.b16 %v15100_v49  ;;  %v8402_v42 = vrot.slane %v15088_v10, 5  ;;  %v15188_v49 = vld [vmem:[#allocation3 + $0x88] sm:$0xf]  ;;  %v9261_v10 = vrot.slane %v9259_v20, 4 }
 0x43a   : > { %8204 = vmatmul.bf16.gmra.mxu1 %v8084_v56  ;;  %v7887_v56 = vshll.u32 %v7625_v17, 16  ;;  %v7897_v32 = vshrl.u32 %v15188_v49, 16  ;;  %v9831_v17 = vrot.slane %v9829_v13, 4  ;;  %v7586_v0 = vadd.f32 %v15140_v60, %v16166_v30 }
 0x43b   : > { %v15174_v48 = vpack.c.b16 %v8485_v51, %v16108_v26  ;;  %v15179_v47 = vadd.f32 %v7236_v61, %v6859_v23  ;;  %v15190_v51 = vunpack.c.l.b16 %v9247_v16  ;;  %v9268_v61 = vshll.u32 %v15102_v9, 16 }
 0x43c   : > { %8935 = vmatmul.bf16.gmra.mxu3 %v11899_v21  ;;  %v15195_v27 = vsel %vm12663_vm8, %v8401_v2, %v8402_v42  ;;  %v9272_v16 = vshrl.u32 %v15102_v9, 16  ;;  %v7893_v23 = vshll.u32 %v15188_v49, 16  ;;  %v9257_v2 = vsel %vm12318_vm5, %v9252_v43, %v9256_v31 }
 0x43d   : > { %v9265_v45 = vor.u32 %v9264_v44, %v9261_v10  ;;  %v15207_v26 = vrot.slane %v9268_v61, 5  ;;  %v7872_v9 = vsel %vm12318_vm5, %v7867_v46, %v15152_v15  ;;  %v7882_v42 = vsel %vm12318_vm5, %v7877_v8, %v7881_v24  ;;  %v15234_v24 = vpop.f32.mrf.mxu0 }
 0x43e   : > { %v7886_v31 = vrot.slane %v7884_v36, 4  ;;  %v7889_v43 = vrot.slane %v7887_v56, 5  ;;  %v8406_v10 = vrot.slane %v15118_v62, 5  ;;  %v15220_v61 = vrot.slane %v7893_v23, 5  ;;  %v8286_v56 = vld [vmem:[#allocation3 + $0x78] sm:$0xe] }
 0x43f   : > { %v8167_v40 = vpop.f32.mrf.mxu1  ;;  %v7239_v20 = vpop.f32.mrf.mxu3  ;;  %v7899_v59 = vrot.slane %v7897_v32, 4  ;;  %v8062_v15 = vunpack.c.l.b16 %v7872_v9  ;;  %v8063_v46 = vunpack.c.l.b16 %v7882_v42  ;;  %v8487_v8 = vunpack.c.l.b16 %v15195_v27  ;;  %v15240_v9 = vld [vmem:[#allocation3 + $0x94] sm:$0xf] }
 0x440   : > { %v15205_v63 = vadd.f32 %v8167_v40, %v7564_v19  ;;  %v6861_v21 = vpop.f32.mrf.mxu2  ;;  %v9274_v19 = vrot.slane %v9272_v16, 4  ;;  %v9832_v40 = vrot.slane %v15209_v3, 5  ;;  %v15228_v36 = vunpack.c.l.b16 %v9257_v2 }
 0x441   : > { %v6862_v52 = vadd.f32 %v6861_v21, %v15021_v39  ;;  %v9830_v39 = vsel %vm12663_vm8, %v11632_v53, %v9829_v13  ;;  %v9278_v62 = vshll.u32 %v15133_v37, 16  ;;  %v8409_v16 = vrot.slane %v15161_v12, 5 }
 0x442   : > { %9617 = vmatmul.bf16.gmra.mxu0 %v9505_v25  ;;  %v15226_v25 = vld [vmem:[#allocation3 + $0x8c] sm:$0x1]  ;;  %v7565_v27 = vadd.f32 %v14375_v50, %v14379_v22  ;;  %v9266_v23 = vrot.slane %v9265_v45, 4  ;;  %v9275_v13 = vor.u32 %v9274_v19, %v15207_v26  ;;  %v8408_v32 = vrot.slane %v8406_v10, 4 }
 0x443   : > { %v15218_v44 = vadd.f32 %v7239_v20, %v6862_v52  ;;  %v9833_v20 = vsel %vm12663_vm8, %v9831_v17, %v9832_v40  ;;  %v7890_v53 = vor.u32 %v7889_v43, %v7886_v31  ;;  %v7900_v37 = vor.u32 %v7899_v59, %v15220_v61  ;;  %v11900_v43 = vld [vmem:[#allocation3 + $0x6c] sm:$0xff] }
 0x444   : > { %v9911_v12 = vunpack.c.l.b16 %v9830_v39  ;;  %v9912_v42 = vunpack.c.l.b16 %v9833_v20  ;;  %v8085_v17 = vpack.c.b16 %v8063_v46, %v8062_v15  ;;  %v7903_v58 = vshll.u32 %v15226_v25, 16  ;;  %v9045_v46 = vld [vmem:[#allocation3 + $0x84] sm:$0xf]  ;;  %v9710_v20 = vld [vmem:[#allocation3 + $0x90] sm:$0xe] }
 0x445   : > { %16109 = vst [vmem:[#allocation50_spill] sm:$0xff] %v15218_v44  ;;  %v11408_v50 = vrot.slane %v8286_v56, 9  ;;  %v8486_v45 = vunpack.c.l.b16 %v15184_v57  ;;  %v9271_v19 = vsel %vm12318_vm5, %v9266_v23, %v15207_v26  ;;  %v9276_v59 = vrot.slane %v9275_v13, 4  ;;  %v7628_v23 = vld [vmem:[#allocation3 + $0x90] sm:$0xf] }
 0x446   : > { %v15248_v31 = vpack.c.b16 %v9912_v42, %v9911_v12  ;;  %v15255_v15 = vsel %vm12663_vm8, %v8408_v32, %v8409_v16  ;;  %v7901_v57 = vrot.slane %v7900_v37, 4  ;;  %v9506_v26 = vpack.c.b16 %v15228_v36, %v15190_v51  ;;  %v15268_v32 = vld [vmem:[#allocation3 + $0x94] sm:$0xf]  ;;  %v15273_v37 = vld [vmem:[#allocation3 + $0x98] sm:$0x1] }
 0x447   : > { %v8170_v21 = vpop.f32.mrf.mxu1  ;;  %v7241_v2 = vpop.f32.mrf.mxu3  ;;  %v15260_v56 = vpack.c.b16 %v8487_v8, %v8486_v45  ;;  %v9280_v13 = vrot.slane %v9278_v62, 5  ;;  %v15266_v16 = vsel %vm12663_vm8, %v11408_v50, %v8406_v10  ;;  %v9283_v8 = vshrl.u32 %v9045_v46, 16 }
 0x448   : > { %v15242_v52 = vadd.f32 %v8170_v21, %v7565_v27  ;;  %v6863_v40 = vpop.f32.mrf.mxu2  ;;  %16110 = vst [vmem:[#allocation51_spill] sm:$0xff] %v15248_v31  ;;  %v7905_v27 = vrot.slane %v7903_v58, 5  ;;  %v15270_v21 = vunpack.c.l.b16 %v9271_v19  ;;  %v7566_v58 = vadd.f32 %v14393_v1, %v14395_v41  ;;  %v15306_v31 = vld [vmem:[#allocation3 + $0xa4] sm:$0x1] }
 0x449   : > { %8625 = vmatmul.bf16.gmra.mxu2 %v15174_v48  ;;  %v6864_v22 = vadd.f32 %v6863_v40, %v15057_v4  ;;  %v9836_v48 = vrot.slane %v15240_v9, 5  ;;  %v7891_v4 = vrot.slane %v7890_v53, 4  ;;  %v9286_v53 = vshll.u32 %v9045_v46, 16 }
 0x44a   : > { %8209 = vmatmul.bf16.gmra.mxu1 %v8085_v17  ;;  %v9281_v51 = vsel %vm12318_vm5, %v9276_v59, %v9280_v13  ;;  %v11633_v36 = vrot.slane %v9710_v20, 9  ;;  %v7906_v17 = vsel %vm12318_vm5, %v7901_v57, %v7905_v27  ;;  %v7908_v40 = vshrl.u32 %v7628_v23, 16  ;;  %v15296_v27 = vld [vmem:[#allocation3 + $0xa0] sm:$0xf] }
 0x44b   : > { %v15258_v39 = vadd.f32 %v7241_v2, %v6864_v22  ;;  %v9838_v62 = vrot.slane %v9836_v48, 4  ;;  %v7896_v42 = vsel %vm12318_vm5, %v7891_v4, %v15220_v61  ;;  %v7911_v50 = vshll.u32 %v7628_v23, 16  ;;  %v15284_v22 = vpop.f32.mrf.mxu0 }
 0x44c   : > { %8940 = vmatmul.bf16.gmra.mxu3 %v11900_v43  ;;  %v7917_v41 = vshll.u32 %v15268_v32, 16  ;;  %v7921_v43 = vshrl.u32 %v15268_v32, 16  ;;  %v9839_v19 = vrot.slane %v15273_v37, 5  ;;  %v15292_v46 = vunpack.c.l.b16 %v9281_v51 }
 0x44d   : > { %16111 = vst [vmem:[#allocation52_spill] sm:$0xff] %v15258_v39  ;;  %v9285_v61 = vrot.slane %v9283_v8, 4  ;;  %v9288_v4 = vrot.slane %v9286_v53, 5  ;;  %v9292_v57 = vshll.u32 %v15177_v5, 16  ;;  %v9296_v20 = vshrl.u32 %v15177_v5, 16 }
 0x44e   : > { %v9837_v23 = vsel %vm12663_vm8, %v11633_v36, %v9836_v48  ;;  %v9840_v13 = vsel %vm12663_vm8, %v9838_v62, %v9839_v19  ;;  %v7910_v8 = vrot.slane %v7908_v40, 4  ;;  %v7913_v53 = vrot.slane %v7911_v50, 5 }
 0x44f   : > { %v8172_v10 = vpop.f32.mrf.mxu1  ;;  %v7244_v12 = vpop.f32.mrf.mxu3  ;;  %v9914_v2 = vunpack.c.l.b16 %v9840_v13  ;;  %v9289_v5 = vor.u32 %v9288_v4, %v9285_v61  ;;  %v9913_v39 = vunpack.c.l.b16 %v9837_v23  ;;  %v9843_v48 = vrot.slane %v15296_v27, 5 }
 0x450   : > { %v15286_v45 = vadd.f32 %v8172_v10, %v7566_v58  ;;  %v6866_v1 = vpop.f32.mrf.mxu2  ;;  %v9711_v58 = vld [vmem:[#allocation3 + $0x9c] sm:$0xe]  ;;  %v8064_v10 = vunpack.c.l.b16 %v7896_v42  ;;  %v7567_v36 = vadd.f32 %v14409_v54, %v14411_v6  ;;  %v15311_v62 = vrot.slane %v9292_v57, 5 }
 0x451   : > { %v6867_v59 = vadd.f32 %v6866_v1, %v15086_v29  ;;  %v8065_v29 = vunpack.c.l.b16 %v7906_v17  ;;  %v7923_v1 = vrot.slane %v7921_v43, 4  ;;  %v11634_v44 = vrot.slane %v9711_v58, 9  ;;  %v8287_v17 = vld [vmem:[#allocation3 + $0x84] sm:$0xe]  ;;  %v15314_v43 = vld [vmem:[#allocation3 + $0x98] sm:$0x1] }
 0x452   : > { %9622 = vmatmul.bf16.gmra.mxu0 %v9506_v26  ;;  %v15304_v26 = vrot.slane %v7917_v41, 5  ;;  %v9302_v42 = vshll.u32 %v15209_v3, 16  ;;  %v8413_v19 = vrot.slane %v15188_v49, 5  ;;  %v9845_v61 = vrot.slane %v9843_v48, 4 }
 0x453   : > { %v15302_v51 = vadd.f32 %v7244_v12, %v6867_v59  ;;  %v9298_v12 = vrot.slane %v9296_v20, 4  ;;  %v8086_v50 = vpack.c.b16 %v8065_v29, %v8064_v10  ;;  %v15317_v59 = vpack.c.b16 %v9914_v2, %v9913_v39  ;;  %v15329_v39 = vpop.f32.mrf.mxu0  ;;  %v11901_v2 = vld [vmem:[#allocation3 + $0x78] sm:$0xff] }
 0x454   : > { %v7914_v54 = vor.u32 %v7913_v53, %v7910_v8  ;;  %v7924_v6 = vor.u32 %v7923_v1, %v15304_v26  ;;  %v9846_v3 = vrot.slane %v15306_v31, 5  ;;  %v15325_v20 = vrot.slane %v9289_v5, 4 }
 0x455   : > { %16112 = vst [vmem:[#allocation53_spill] sm:$0xff] %v15302_v51  ;;  %v11409_v13 = vrot.slane %v8287_v17, 9  ;;  %v9844_v49 = vsel %vm12663_vm8, %v11634_v44, %v9843_v48  ;;  %v7927_v58 = vshll.u32 %v15314_v43, 16  ;;  %v8488_v10 = vunpack.c.l.b16 %v15266_v16  ;;  %v9048_v16 = vld [vmem:[#allocation3 + $0x90] sm:$0xf] }
 0x456   : > { %16113 = vst [vmem:[#allocation54_spill] sm:$0xff] %v15317_v59  ;;  %v9847_v29 = vsel %vm12663_vm8, %v9845_v61, %v9846_v3  ;;  %v8415_v44 = vrot.slane %v8413_v19, 4  ;;  %v8416_v53 = vrot.slane %v15226_v25, 5  ;;  %v7915_v5 = vrot.slane %v7914_v54, 4  ;;  %v16117_v54 = vld [vmem:[#allocation21_spill] sm:$0xff] }
 0x457   : > { %v8175_v40 = vpop.f32.mrf.mxu1  ;;  %v7246_v41 = vpop.f32.mrf.mxu3  ;;  %v9916_v1 = vunpack.c.l.b16 %v9847_v29  ;;  %v7925_v48 = vrot.slane %v7924_v6, 4  ;;  %v16115_v17 = vunpack.c.l.b16 %v15255_v15  ;;  %v9295_v25 = vsel %vm12318_vm5, %v15325_v20, %v15311_v62  ;;  %v15358_v3 = vld [vmem:[#allocation3 + $0xa0] sm:$0xf]  ;;  %v9712_v29 = vld [vmem:[#allocation3 + $0xa8] sm:$0xe] }
 0x458   : > { %v15319_v4 = vadd.f32 %v8175_v40, %v7567_v36  ;;  %v6868_v23 = vpop.f32.mrf.mxu2  ;;  %v7631_v36 = vld [vmem:[#allocation3 + $0x9c] sm:$0xf]  ;;  %v15354_v61 = vsel %vm12663_vm8, %v11409_v13, %v8413_v19  ;;  %v7929_v6 = vrot.slane %v7927_v58, 5  ;;  %v9310_v20 = vshll.u32 %v9048_v16, 16  ;;  %v15366_v19 = vld [vmem:[#allocation3 + $0xac] sm:$0xf] }
 0x459   : > { %8630 = vmatmul.bf16.gmra.mxu2 %v15260_v56  ;;  %v6869_v57 = vadd.f32 %v6868_v23, %v15124_v14  ;;  %v11926_v56 = vld [vmem:[%s15980_s3 + $0x208] sm:$0xff]  ;;  %v9299_v14 = vor.u32 %v9298_v12, %v15311_v62  ;;  %v15344_v40 = vpack.c.b16 %v16115_v17, %v8488_v10  ;;  %v9915_v12 = vunpack.c.l.b16 %v9844_v49  ;;  %v16116_v23 = vld [vmem:[#allocation22_spill] sm:$0xff] }
 0x45a   : > { %8214 = vmatmul.bf16.gmra.mxu1 %v8086_v50  ;;  %v9507_v50 = vpack.c.b16 %v15292_v46, %v15270_v21  ;;  %v7568_v15 = vadd.f32 %v16117_v54, %v16116_v23  ;;  %v15364_v62 = vsel %vm12663_vm8, %v8415_v44, %v8416_v53  ;;  %v7920_v58 = vsel %vm12318_vm5, %v7915_v5, %v15304_v26  ;;  %v15378_v17 = vld [vmem:[#allocation3 + $0xb0] sm:$0x1] }
 0x45b   : > { %v15339_v8 = vadd.f32 %v7246_v41, %v6869_v57  ;;  %10011 = vmatpush.bf16.msra.mxu1 %v11926_v56  ;;  %v9304_v41 = vrot.slane %v9302_v42, 5  ;;  %v9300_v57 = vrot.slane %v9299_v14, 4  ;;  %v15360_v49 = vpack.c.b16 %v9916_v1, %v9915_v12 }
 0x45c   : > { %8945 = vmatmul.bf16.gmra.mxu3 %v11901_v2  ;;  %v7932_v2 = vshrl.u32 %v7631_v36, 16  ;;  %v9307_v42 = vshrl.u32 %v9048_v16, 16  ;;  %v7930_v56 = vsel %vm12318_vm5, %v7925_v48, %v7929_v6  ;;  %v7935_v14 = vshll.u32 %v7631_v36, 16 }
 0x45d   : > { %16114 = vst [vmem:[#allocation55_spill] sm:$0xff] %v15339_v8  ;;  %v7941_v44 = vshll.u32 %v15358_v3, 16  ;;  %v7945_v53 = vshrl.u32 %v15358_v3, 16  ;;  %v11635_v16 = vrot.slane %v9712_v29, 9  ;;  %v9305_v12 = vsel %vm12318_vm5, %v9300_v57, %v9304_v41 }
 0x45e   : > { %16118 = vst [vmem:[#allocation22_spill] sm:$0xff] %v15360_v49  ;;  %v9316_v26 = vshll.u32 %v15240_v9, 16  ;;  %v9320_v5 = vshrl.u32 %v15240_v9, 16  ;;  %v9850_v48 = vrot.slane %v15366_v19, 5  ;;  %v8066_v36 = vunpack.c.l.b16 %v7920_v58  ;;  %v16120_v49 = vld [vmem:[#allocation24_spill] sm:$0xff]  ;;  %v16121_v58 = vld [vmem:[#allocation23_spill] sm:$0xff] }
 0x45f   : > { %v8177_v21 = vpop.f32.mrf.mxu1  ;;  %v8906_v46 = vpop.f32.mrf.mxu3  ;;  %v8067_v23 = vunpack.c.l.b16 %v7930_v56  ;;  %v7934_v54 = vrot.slane %v7932_v2, 4  ;;  %v7937_v6 = vrot.slane %v7935_v14, 5  ;;  %v9853_v41 = vrot.slane %v15378_v17, 5 }
 0x460   : > { %v15368_v13 = vadd.f32 %v8177_v21, %v7568_v15  ;;  %v8591_v10 = vpop.f32.mrf.mxu2  ;;  %v15387_v15 = vpop.f32.mrf.mxu0  ;;  %v9852_v21 = vrot.slane %v9850_v48, 4  ;;  %v15392_v57 = vrot.slane %v7941_v44, 5  ;;  %v9309_v9 = vrot.slane %v9307_v42, 4 }
 0x461   : > { %v8671_v1 = vadd.f32 %v8591_v10, %v15159_v34  ;;  %v7947_v10 = vrot.slane %v7945_v53, 4  ;;  %v9312_v29 = vrot.slane %v9310_v20, 5  ;;  %v7569_v56 = vadd.f32 %v16121_v58, %v16120_v49  ;;  %v15402_v20 = vld [vmem:[#allocation3 + $0xa4] sm:$0x1]  ;;  %v16124_v58 = vld [vmem:[#allocation26_spill] sm:$0xff] }
 0x462   : > { %9627 = vmatmul.bf16.gmra.mxu0 %v9507_v50  ;;  %v9851_v50 = vsel %vm12663_vm8, %v11635_v16, %v9850_v48  ;;  %v9854_v2 = vsel %vm12663_vm8, %v9852_v21, %v9853_v41  ;;  %v9322_v16 = vrot.slane %v9320_v5, 4  ;;  %v8087_v53 = vpack.c.b16 %v8067_v23, %v8066_v36  ;;  %v11902_v5 = vld [vmem:[#allocation3 + $0x84] sm:$0xff] }
 0x463   : > { %v15385_v34 = vadd.f32 %v8906_v46, %v8671_v1  ;;  %v9485_v46 = vunpack.c.l.b16 %v9295_v25  ;;  %v9486_v1 = vunpack.c.l.b16 %v9305_v12  ;;  %v9917_v48 = vunpack.c.l.b16 %v9851_v50 }
 0x464   : > { %v9918_v8 = vunpack.c.l.b16 %v9854_v2  ;;  %v7938_v51 = vor.u32 %v7937_v6, %v7934_v54  ;;  %v9326_v25 = vshll.u32 %v15273_v37, 16  ;;  %v7948_v12 = vor.u32 %v7947_v10, %v15392_v57 }
 0x465   : > { %16119 = vst [vmem:[#allocation21_spill] sm:$0xff] %v15385_v34  ;;  %v15398_v34 = vrot.slane %v9316_v26, 5  ;;  %v9313_v26 = vor.u32 %v9312_v29, %v9309_v9  ;;  %v8420_v50 = vrot.slane %v15268_v32, 5  ;;  %v7951_v23 = vshll.u32 %v15402_v20, 16  ;;  %v7634_v9 = vld [vmem:[#allocation3 + $0xa8] sm:$0xf] }
 0x466   : > { %v15408_v21 = vpack.c.b16 %v9918_v8, %v9917_v48  ;;  %v7939_v37 = vrot.slane %v7938_v51, 4  ;;  %v8491_v6 = vunpack.c.l.b16 %v15364_v62  ;;  %v8423_v8 = vrot.slane %v15314_v43, 5  ;;  %v8288_v43 = vld [vmem:[#allocation3 + $0x90] sm:$0xe] }
 0x467   : > { %v8180_v14 = vpop.f32.mrf.mxu1  ;;  %v8908_v59 = vpop.f32.mrf.mxu3  ;;  %v9323_v54 = vor.u32 %v9322_v16, %v15398_v34  ;;  %v7949_v41 = vrot.slane %v7948_v12, 4  ;;  %v9508_v10 = vpack.c.b16 %v9486_v1, %v9485_v46  ;;  %v9314_v29 = vrot.slane %v9313_v26, 4 }
 0x468   : > { %v15400_v44 = vadd.f32 %v8180_v14, %v7569_v56  ;;  %v8593_v42 = vpop.f32.mrf.mxu2  ;;  %16122 = vst [vmem:[#allocation24_spill] sm:$0xff] %v15408_v21  ;;  %v9328_v32 = vrot.slane %v9326_v25, 5  ;;  %v16125_v56 = vld [vmem:[#allocation25_spill] sm:$0xff]  ;;  %v15422_v14 = vld [vmem:[#allocation3 + $0xac] sm:$0xf]  ;;  %v8422_v16 = vrot.slane %v8420_v50, 4 }
 0x469   : > { %8635 = vmatmul.bf16.gmra.mxu2 %v15344_v40  ;;  %v8672_v49 = vadd.f32 %v8593_v42, %v15205_v63  ;;  %v9051_v40 = vld [vmem:[#allocation3 + $0x9c] sm:$0xf]  ;;  %v8490_v63 = vunpack.c.l.b16 %v15354_v61  ;;  %v7570_v2 = vadd.f32 %v16125_v56, %v16124_v58  ;;  %v7953_v62 = vrot.slane %v7951_v23, 5 }
 0x46a   : > { %8219 = vmatmul.bf16.gmra.mxu1 %v8087_v53  ;;  %v9331_v51 = vshrl.u32 %v9051_v40, 16  ;;  %v9334_v48 = vshll.u32 %v9051_v40, 16  ;;  %v9324_v42 = vrot.slane %v9323_v54, 4  ;;  %v9340_v46 = vshll.u32 %v15296_v27, 16 }
 0x46b   : > { %v15411_v36 = vadd.f32 %v8908_v59, %v8672_v49  ;;  %v15418_v59 = vpop.f32.mrf.mxu0  ;;  %v9344_v1 = vshrl.u32 %v15296_v27, 16  ;;  %v7944_v49 = vsel %vm12318_vm5, %v7939_v37, %v15392_v57  ;;  %v7956_v26 = vshrl.u32 %v7634_v9, 16 }
 0x46c   : > { %8950 = vmatmul.bf16.gmra.mxu3 %v11902_v5  ;;  %v7959_v5 = vshll.u32 %v7634_v9, 16  ;;  %v7954_v40 = vsel %vm12318_vm5, %v7949_v41, %v7953_v62  ;;  %v7965_v54 = vshll.u32 %v15422_v14, 16  ;;  %v7969_v58 = vshrl.u32 %v15422_v14, 16 }
 0x46d   : > { %16123 = vst [vmem:[#allocation23_spill] sm:$0xff] %v15411_v36  ;;  %v9319_v27 = vsel %vm12318_vm5, %v9314_v29, %v15398_v34  ;;  %v11410_v56 = vrot.slane %v8288_v43, 9  ;;  %v9336_v57 = vrot.slane %v9334_v48, 5  ;;  %v8424_v9 = vsel %vm12663_vm8, %v8422_v16, %v8423_v8  ;;  %v16127_v29 = vld [vmem:[#allocation19_spill] sm:$0xff] }
 0x46e   : > { %v15443_v41 = vrot.slane %v9340_v46, 5  ;;  %v8069_v62 = vunpack.c.l.b16 %v7954_v40  ;;  %v7961_v21 = vrot.slane %v7959_v5, 5  ;;  %v7971_v36 = vrot.slane %v7969_v58, 4  ;;  %v11903_v58 = vld [vmem:[#allocation3 + $0x90] sm:$0xff] }
 0x46f   : > { %v8182_v61 = vpop.f32.mrf.mxu1  ;;  %v8911_v53 = vpop.f32.mrf.mxu3  ;;  %v9329_v34 = vsel %vm12318_vm5, %v9324_v42, %v9328_v32  ;;  %v9487_v16 = vunpack.c.l.b16 %v9319_v27  ;;  %v8421_v46 = vsel %vm12663_vm8, %v11410_v56, %v8420_v50  ;;  %v9350_v56 = vshll.u32 %v15306_v31, 16 }
 0x470   : > { %v15426_v25 = vadd.f32 %v8182_v61, %v7570_v2  ;;  %v8596_v12 = vpop.f32.mrf.mxu2  ;;  %v9333_v2 = vrot.slane %v9331_v51, 4  ;;  %v8068_v61 = vunpack.c.l.b16 %v7944_v49  ;;  %v16128_v51 = vld [vmem:[#allocation27_spill] sm:$0xff] }
 0x471   : > { %v8673_v23 = vadd.f32 %v8596_v12, %v15242_v52  ;;  %v9346_v52 = vrot.slane %v9344_v1, 4  ;;  %v7958_v12 = vrot.slane %v7956_v26, 4  ;;  %v7571_v48 = vadd.f32 %v16128_v51, %v16127_v29  ;;  %v8289_v26 = vld [vmem:[#allocation3 + $0x9c] sm:$0xe] }
 0x472   : > { %9632 = vmatmul.bf16.gmra.mxu0 %v9508_v10  ;;  %v15445_v10 = vrot.slane %v7965_v54, 5  ;;  %v9337_v43 = vor.u32 %v9336_v57, %v9333_v2  ;;  %v8493_v1 = vunpack.c.l.b16 %v8424_v9  ;;  %v8088_v32 = vpack.c.b16 %v8069_v62, %v8068_v61  ;;  %v15458_v54 = vld [vmem:[#allocation3 + $0xb0] sm:$0x1]  ;;  %v11925_v2 = vld [vmem:[%s15980_s3 + $0x200] sm:$0xff] }
 0x473   : > { %v15439_v37 = vadd.f32 %v8911_v53, %v8673_v23  ;;  %v8512_v53 = vpack.c.b16 %v8491_v6, %v8490_v63  ;;  %v9347_v49 = vor.u32 %v9346_v52, %v15443_v41  ;;  %v15454_v5 = vpop.f32.mrf.mxu0  ;;  %v7962_v63 = vor.u32 %v7961_v21, %v7958_v12  ;;  %v15467_v21 = vld [vmem:[#allocation3 + $0xb8] sm:$0xf]  ;;  %v7637_v12 = vld [vmem:[#allocation3 + $0xb4] sm:$0xf]  ;;  %10012 = vmatpush.bf16.msra.mxu1 %v11925_v2 }
 0x474   : > { %v9488_v6 = vunpack.c.l.b16 %v9329_v34  ;;  %v7972_v50 = vor.u32 %v7971_v36, %v15445_v10  ;;  %v8492_v57 = vunpack.c.l.b16 %v8421_v46  ;;  %v9338_v9 = vrot.slane %v9337_v43, 4  ;;  %v15472_v36 = vld [vmem:[#allocation3 + $0xb8] sm:$0xf]  ;;  %v16132_v43 = vld [vmem:[#allocation9_spill] sm:$0xff] }
 0x475   : > { %16126 = vst [vmem:[#allocation26_spill] sm:$0xff] %v15439_v37  ;;  %v11411_v52 = vrot.slane %v8289_v26, 9  ;;  %v8427_v61 = vrot.slane %v15358_v3, 5  ;;  %v9348_v31 = vrot.slane %v9347_v49, 4  ;;  %v7963_v34 = vrot.slane %v7962_v63, 4 }
 0x476   : > { %v9509_v29 = vpack.c.b16 %v9488_v6, %v9487_v16  ;;  %v8513_v51 = vpack.c.b16 %v8493_v1, %v8492_v57  ;;  %v9352_v46 = vrot.slane %v9350_v56, 5  ;;  %v9857_v26 = vrot.slane %v15467_v21, 5  ;;  %v9713_v63 = vld [vmem:[#allocation3 + $0xb4] sm:$0xe] }
 0x477   : > { %v8185_v23 = vpop.f32.mrf.mxu1  ;;  %v8913_v8 = vpop.f32.mrf.mxu3  ;;  %v7993_v49 = vshrl.u32 %v15472_v36, 16  ;;  %v15487_v56 = vsel %vm12663_vm8, %v11411_v52, %v8427_v61  ;;  %v7968_v57 = vsel %vm12318_vm5, %v7963_v34, %v15445_v10 }
 0x478   : > { %v15456_v40 = vadd.f32 %v8185_v23, %v7571_v48  ;;  %v8598_v42 = vpop.f32.mrf.mxu2  ;;  %v7973_v23 = vrot.slane %v7972_v50, 4  ;;  %v9353_v50 = vsel %vm12318_vm5, %v9348_v31, %v9352_v46  ;;  %v11636_v31 = vrot.slane %v9713_v63, 9 }
 0x479   : > { %8640 = vmatmul.bf16.gmra.mxu2 %v8512_v53  ;;  %v8674_v27 = vadd.f32 %v8598_v42, %v15286_v45  ;;  %v7975_v45 = vshll.u32 %v15458_v54, 16  ;;  %v16131_v53 = vld [vmem:[#allocation20_spill] sm:$0xff]  ;;  %v7983_v42 = vshll.u32 %v7637_v12, 16  ;;  %v9859_v46 = vrot.slane %v9857_v26, 4 }
 0x47a   : > { %16129 = vst [vmem:[#allocation25_spill] sm:$0xff] %v15456_v40  ;;  %8224 = vmatmul.bf16.gmra.mxu1 %v8088_v32  ;;  %v7572_v3 = vadd.f32 %v16132_v43, %v16131_v53  ;;  %v7980_v32 = vshrl.u32 %v7637_v12, 16  ;;  %v15494_v43 = vld [vmem:[#allocation3 + $0xbc] sm:$0x1]  ;;  %v7995_v10 = vrot.slane %v7993_v49, 4  ;;  %v16135_v49 = vld [vmem:[#allocation11_spill] sm:$0xff] }
 0x47b   : > { %v15469_v62 = vadd.f32 %v8913_v8, %v8674_v27  ;;  %v9054_v8 = vld [vmem:[#allocation3 + $0xa8] sm:$0xf]  ;;  %v7989_v27 = vshll.u32 %v15472_v36, 16  ;;  %v7977_v1 = vrot.slane %v7975_v45, 5  ;;  %v15499_v52 = vpop.f32.mrf.mxu0  ;;  %v9714_v40 = vld [vmem:[#allocation3 + $0xc0] sm:$0xe] }
 0x47c   : > { %8955 = vmatmul.bf16.gmra.mxu3 %v11903_v58  ;;  %v9343_v58 = vsel %vm12318_vm5, %v9338_v9, %v15443_v41  ;;  %v9355_v53 = vshrl.u32 %v9054_v8, 16  ;;  %v9358_v45 = vshll.u32 %v9054_v8, 16  ;;  %v9364_v8 = vshll.u32 %v15366_v19, 16 }
 0x47d   : > { %16130 = vst [vmem:[#allocation19_spill] sm:$0xff] %v15469_v62  ;;  %v7978_v41 = vsel %vm12318_vm5, %v7973_v23, %v7977_v1  ;;  %v15501_v48 = vrot.slane %v7989_v27, 5  ;;  %v9860_v23 = vrot.slane %v15494_v43, 5  ;;  %v8070_v1 = vunpack.c.l.b16 %v7968_v57 }
 0x47e   : > { %v15508_v63 = vunpack.c.l.b16 %v9343_v58  ;;  %v9858_v27 = vsel %vm12663_vm8, %v11636_v31, %v9857_v26  ;;  %v11637_v26 = vrot.slane %v9714_v40, 9 }
 0x47f   : > { %v8187_v16 = vpop.f32.mrf.mxu1  ;;  %v8916_v6 = vpop.f32.mrf.mxu3 }
 0x480   : > { %v15489_v2 = vadd.f32 %v8187_v16, %v7572_v3  ;;  %v8601_v12 = vpop.f32.mrf.mxu2  ;;  %v7982_v3 = vrot.slane %v7980_v32, 4  ;;  %v7985_v16 = vrot.slane %v7983_v42, 5  ;;  %v15512_v32 = vrot.slane %v9355_v53, 4  ;;  %v15514_v42 = vld [vmem:[#allocation3 + $0xc4] sm:$0xf] }
 0x481   : > { %v8675_v9 = vadd.f32 %v8601_v12, %v15319_v4  ;;  %v8071_v4 = vunpack.c.l.b16 %v7978_v41  ;;  %v8429_v12 = vrot.slane %v8427_v61, 4  ;;  %v15522_v41 = vld [vmem:[#allocation3 + $0xbc] sm:$0x1]  ;;  %v7996_v61 = vor.u32 %v7995_v10, %v15501_v48 }
 0x482   : > { %16133 = vst [vmem:[#allocation27_spill] sm:$0xff] %v15489_v2  ;;  %9637 = vmatmul.bf16.gmra.mxu0 %v9509_v29  ;;  %v9368_v2 = vshrl.u32 %v15366_v19, 16  ;;  %v15510_v29 = vunpack.c.l.b16 %v9353_v50  ;;  %v9861_v19 = vsel %vm12663_vm8, %v9859_v46, %v9860_v23  ;;  %v7986_v58 = vor.u32 %v7985_v16, %v7982_v3  ;;  %v9715_v16 = vld [vmem:[#allocation3 + $0xcc] sm:$0xe] }
 0x483   : > { %v15503_v34 = vadd.f32 %v8916_v6, %v8675_v9  ;;  %v16136_v6 = vld [vmem:[#allocation8_spill] sm:$0xff]  ;;  %v15525_v50 = vrot.slane %v9358_v45, 5  ;;  %v9920_v37 = vunpack.c.l.b16 %v9861_v19  ;;  %v8089_v46 = vpack.c.b16 %v8071_v4, %v8070_v1  ;;  %v15543_v1 = vld [vmem:[#allocation3 + $0xd0] sm:$0xf] }
 0x484   : > { %v7573_v57 = vadd.f32 %v16136_v6, %v16135_v49  ;;  %v9370_v62 = vrot.slane %v9368_v2, 4  ;;  %v15531_v49 = vld [vmem:[#allocation3 + $0xc8] sm:$0x1]  ;;  %v9919_v6 = vunpack.c.l.b16 %v9858_v27  ;;  %v9864_v3 = vrot.slane %v15514_v42, 5 }
 0x485   : > { %16134 = vst [vmem:[#allocation20_spill] sm:$0xff] %v15503_v34  ;;  %v15527_v34 = vrot.slane %v9364_v8, 5  ;;  %v7999_v10 = vshll.u32 %v15522_v41, 16  ;;  %v16138_v8 = vrot.slane %v15402_v20, 5  ;;  %v9374_v2 = vshll.u32 %v15378_v17, 16  ;;  %v15554_v17 = vpop.f32.mrf.mxu0 }
 0x486   : > { %v7987_v4 = vrot.slane %v7986_v58, 4  ;;  %v7997_v27 = vrot.slane %v7996_v61, 4  ;;  %v15545_v19 = vpack.c.b16 %v9920_v37, %v9919_v6  ;;  %v15551_v20 = vld [vmem:[#allocation3 + $0xd4] sm:$0x1]  ;;  %v9510_v58 = vpack.c.b16 %v15510_v29, %v15508_v63  ;;  %v7640_v61 = vld [vmem:[#allocation3 + $0xc0] sm:$0xf] }
 0x487   : > { %v8190_v53 = vpop.f32.mrf.mxu1  ;;  %v8918_v9 = vpop.f32.mrf.mxu3  ;;  %v15540_v40 = vsel %vm12663_vm8, %v8429_v12, %v16138_v8  ;;  %v9867_v12 = vrot.slane %v15531_v49, 5  ;;  %v9361_v37 = vor.u32 %v15525_v50, %v15512_v32  ;;  %v16142_v6 = vld [vmem:[#allocation12_spill] sm:$0xff]  ;;  %v15564_v8 = vld [vmem:[#allocation3 + $0xc4] sm:$0xf]  ;;  %v9874_v32 = vrot.slane %v15551_v20, 5 }
 0x488   : > { %v15529_v31 = vadd.f32 %v8190_v53, %v7573_v57  ;;  %v8603_v23 = vpop.f32.mrf.mxu2  ;;  %16139 = vst [vmem:[#allocation11_spill] sm:$0xff] %v15545_v19  ;;  %v9866_v53 = vrot.slane %v9864_v3, 4  ;;  %v7992_v50 = vsel %vm12318_vm5, %v7987_v4, %v15501_v48  ;;  %v8017_v48 = vshrl.u32 %v15564_v8, 16 }
 0x489   : > { %8645 = vmatmul.bf16.gmra.mxu2 %v8513_v51  ;;  %v8676_v45 = vadd.f32 %v8603_v23, %v15368_v13  ;;  %v11904_v51 = vld [vmem:[#allocation3 + $0x9c] sm:$0xff]  ;;  %v9865_v13 = vsel %vm12663_vm8, %v11637_v26, %v9864_v3  ;;  %v11638_v23 = vrot.slane %v9715_v16, 9  ;;  %v9371_v26 = vor.u32 %v9370_v62, %v15527_v34 }
 0x48a   : > { %16137 = vst [vmem:[#allocation9_spill] sm:$0xff] %v15529_v31  ;;  %8229 = vmatmul.bf16.gmra.mxu1 %v8089_v46  ;;  %v16141_v46 = vld [vmem:[#allocation10_spill] sm:$0xff]  ;;  %v9868_v16 = vsel %vm12663_vm8, %v9866_v53, %v9867_v12  ;;  %v8013_v12 = vshll.u32 %v15564_v8, 16 }
 0x48b   : > { %v15549_v57 = vadd.f32 %v8918_v9, %v8676_v45  ;;  %v9871_v9 = vrot.slane %v15543_v1, 5  ;;  %v7574_v3 = vadd.f32 %v16142_v6, %v16141_v46  ;;  %v8001_v45 = vrot.slane %v7999_v10, 5 }
 0x48c   : > { %8960 = vmatmul.bf16.gmra.mxu3 %v11904_v51  ;;  %v9921_v51 = vunpack.c.l.b16 %v9865_v13  ;;  %v9922_v19 = vunpack.c.l.b16 %v9868_v16  ;;  %v8004_v46 = vshrl.u32 %v7640_v61, 16  ;;  %v8007_v6 = vshll.u32 %v7640_v61, 16 }
 0x48d   : > { %16140 = vst [vmem:[#allocation8_spill] sm:$0xff] %v15549_v57  ;;  %v9872_v63 = vsel %vm12663_vm8, %v11638_v23, %v9871_v9  ;;  %v9873_v29 = vrot.slane %v9871_v9, 4  ;;  %v8002_v10 = vsel %vm12318_vm5, %v7997_v27, %v8001_v45  ;;  %v8495_v27 = vunpack.c.l.b16 %v15540_v40  ;;  %v16147_v40 = vld [vmem:[#allocation15_spill] sm:$0xff] }
 0x48e   : > { %v15579_v23 = vpack.c.b16 %v9922_v19, %v9921_v51  ;;  %v9923_v4 = vunpack.c.l.b16 %v9872_v63  ;;  %v9362_v61 = vrot.slane %v9361_v37, 4  ;;  %v8072_v45 = vunpack.c.l.b16 %v7992_v50 }
 0x48f   : > { %v8192_v62 = vpop.f32.mrf.mxu1  ;;  %v8921_v13 = vpop.f32.mrf.mxu3  ;;  %v9875_v9 = vsel %vm12663_vm8, %v9873_v29, %v9874_v32  ;;  %v8494_v51 = vunpack.c.l.b16 %v15487_v56  ;;  %v9376_v29 = vrot.slane %v9374_v2, 5  ;;  %v9057_v32 = vld [vmem:[#allocation3 + $0xb4] sm:$0xf]  ;;  %v8019_v63 = vrot.slane %v8017_v48, 4  ;;  %v8290_v2 = vld [vmem:[#allocation3 + $0xa8] sm:$0xe] }
 0x490   : > { %v15576_v31 = vadd.f32 %v8192_v62, %v7574_v3  ;;  %v8606_v53 = vpop.f32.mrf.mxu2  ;;  %16144 = vst [vmem:[#allocation12_spill] sm:$0xff] %v15579_v23  ;;  %v9924_v57 = vunpack.c.l.b16 %v9875_v9  ;;  %v9372_v3 = vrot.slane %v9371_v26, 4  ;;  %v8073_v62 = vunpack.c.l.b16 %v8002_v10  ;;  %v15591_v9 = vpop.f32.mrf.mxu0 }
 0x491   : > { %v8677_v16 = vadd.f32 %v8606_v53, %v15400_v44  ;;  %v8006_v44 = vrot.slane %v8004_v46, 4  ;;  %v8009_v53 = vrot.slane %v8007_v6, 5  ;;  %v8015_v23 = vrot.slane %v8013_v12, 5 }
 0x492   : > { %16143 = vst [vmem:[#allocation10_spill] sm:$0xff] %v15576_v31  ;;  %9642 = vmatmul.bf16.gmra.mxu0 %v9510_v58  ;;  %v15588_v19 = vpack.c.b16 %v9924_v57, %v9923_v4  ;;  %v16146_v58 = vld [vmem:[#allocation14_spill] sm:$0xff]  ;;  %v8514_v26 = vpack.c.b16 %v8495_v27, %v8494_v51  ;;  %v9367_v50 = vsel %vm12318_vm5, %v9362_v61, %v15527_v34  ;;  %v8434_v46 = vrot.slane %v15422_v14, 5 }
 0x493   : > { %v15586_v31 = vadd.f32 %v8921_v13, %v8677_v16  ;;  %v7575_v37 = vadd.f32 %v16147_v40, %v16146_v58  ;;  %v8090_v10 = vpack.c.b16 %v8073_v62, %v8072_v45  ;;  %v9377_v56 = vsel %vm12318_vm5, %v9372_v3, %v9376_v29  ;;  %v15603_v16 = vld [vmem:[#allocation3 + $0xc8] sm:$0x1] }
 0x494   : > { %16145 = vst [vmem:[#allocation56_spill] sm:$0xff] %v15588_v19  ;;  %v9379_v6 = vshrl.u32 %v9057_v32, 16  ;;  %v9382_v48 = vshll.u32 %v9057_v32, 16  ;;  %v9388_v4 = vshll.u32 %v15467_v21, 16  ;;  %v9392_v34 = vshrl.u32 %v15467_v21, 16  ;;  %v11905_v62 = vld [vmem:[#allocation3 + $0xa8] sm:$0xff] }
 0x495   : > { %v8010_v61 = vor.u32 %v8009_v53, %v8006_v44  ;;  %v8020_v45 = vor.u32 %v8019_v63, %v8015_v23  ;;  %v9491_v14 = vunpack.c.l.b16 %v9367_v50  ;;  %v9492_v51 = vunpack.c.l.b16 %v9377_v56  ;;  %v16148_v53 = vld [vmem:[#allocation17_spill] sm:$0xff]  ;;  %v16149_v63 = vld [vmem:[#allocation18_spill] sm:$0xff] }
 0x496   : > { %v8023_v58 = vshll.u32 %v15603_v16, 16  ;;  %v11412_v40 = vrot.slane %v8290_v2, 9  ;;  %v9381_v32 = vrot.slane %v9379_v6, 4  ;;  %v9394_v21 = vrot.slane %v9392_v34, 4 }
 0x497   : > { %v8195_v57 = vpop.f32.mrf.mxu1  ;;  %v8923_v3 = vpop.f32.mrf.mxu3  ;;  %v8011_v19 = vrot.slane %v8010_v61, 4  ;;  %v8437_v44 = vrot.slane %v15458_v54, 5 }
 0x498   : > { %v15601_v13 = vadd.f32 %v8195_v57, %v7575_v37  ;;  %v8608_v12 = vpop.f32.mrf.mxu2  ;;  %v8436_v37 = vrot.slane %v8434_v46, 4  ;;  %v9390_v57 = vrot.slane %v9388_v4, 5  ;;  %v8025_v56 = vrot.slane %v8023_v58, 5  ;;  %v15616_v2 = vpop.f32.mrf.mxu0 }
 0x499   : > { %8650 = vmatmul.bf16.gmra.mxu2 %v8514_v26  ;;  %v8678_v27 = vadd.f32 %v8608_v12, %v15426_v25  ;;  %v9384_v26 = vrot.slane %v9382_v48, 5  ;;  %v8021_v25 = vrot.slane %v8020_v45, 4  ;;  %v9511_v12 = vpack.c.b16 %v9492_v51, %v9491_v14 }
 0x49a   : > { %8234 = vmatmul.bf16.gmra.mxu1 %v8090_v10  ;;  %v7576_v10 = vadd.f32 %v16149_v63, %v16148_v53  ;;  %v8435_v6 = vsel %vm12663_vm8, %v11412_v40, %v8434_v46  ;;  %v9395_v4 = vor.u32 %v9394_v21, %v9390_v57  ;;  %v8016_v54 = vsel %vm12318_vm5, %v8011_v19, %v8015_v23  ;;  %v16151_v53 = vld [vmem:[#allocation29_spill] sm:$0xff] }
 0x49b   : > { %v15608_v29 = vadd.f32 %v8923_v3, %v8678_v27  ;;  %v8438_v27 = vsel %vm12663_vm8, %v8436_v37, %v8437_v44  ;;  %v9385_v48 = vor.u32 %v9384_v26, %v9381_v32  ;;  %v8026_v34 = vsel %vm12318_vm5, %v8021_v25, %v8025_v56  ;;  %v16150_v44 = vld [vmem:[#allocation16_spill] sm:$0xff]  ;;  %v9060_v26 = vld [vmem:[#allocation3 + $0xc0] sm:$0xf] }
 0x49c   : > { %8965 = vmatmul.bf16.gmra.mxu3 %v11905_v62  ;;  %v8497_v61 = vunpack.c.l.b16 %v8438_v27  ;;  %v9398_v45 = vshll.u32 %v15494_v43, 16  ;;  %v8496_v62 = vunpack.c.l.b16 %v8435_v6  ;;  %v8074_v14 = vunpack.c.l.b16 %v8016_v54 }
 0x49d   : > { %v8075_v51 = vunpack.c.l.b16 %v8026_v34  ;;  %v9386_v58 = vrot.slane %v9385_v48, 4  ;;  %v9396_v37 = vrot.slane %v9395_v4, 4  ;;  %v7577_v46 = vadd.f32 %v16151_v53, %v16150_v44 }
 0x49e   : > { %v8515_v40 = vpack.c.b16 %v8497_v61, %v8496_v62  ;;  %v9400_v32 = vrot.slane %v9398_v45, 5  ;;  %v8441_v23 = vrot.slane %v15472_v36, 5  ;;  %v9406_v56 = vshll.u32 %v9060_v26, 16  ;;  %v11906_v36 = vld [vmem:[#allocation3 + $0xb4] sm:$0xff] }
 0x49f   : > { %v8197_v50 = vpop.f32.mrf.mxu1  ;;  %v8091_v25 = vpack.c.b16 %v8075_v51, %v8074_v14  ;;  %v9391_v43 = vsel %vm12318_vm5, %v9386_v58, %v9390_v57  ;;  %v9416_v27 = vshrl.u32 %v15514_v42, 16  ;;  %v8444_v57 = vrot.slane %v15522_v41, 5  ;;  %v16152_v51 = vld [vmem:[#allocation30_spill] sm:$0xff]  ;;  %v16153_v58 = vld [vmem:[#allocation31_spill] sm:$0xff] }
 0x4a0   : > { %v15618_v3 = vadd.f32 %v8197_v50, %v7576_v10  ;;  %v9401_v63 = vsel %vm12318_vm5, %v9396_v37, %v9400_v32  ;;  %v8291_v10 = vld [vmem:[#allocation3 + $0xb4] sm:$0xe]  ;;  %v9403_v50 = vshrl.u32 %v9060_v26, 16  ;;  %v15638_v6 = vpop.f32.mrf.mxu0  ;;  %v8443_v48 = vrot.slane %v8441_v23, 4 }
 0x4a1   : > { %v9493_v4 = vunpack.c.l.b16 %v9391_v43  ;;  %v9494_v54 = vunpack.c.l.b16 %v9401_v63  ;;  %v11413_v34 = vrot.slane %v8291_v10, 9  ;;  %v9408_v45 = vrot.slane %v9406_v56, 5  ;;  %v16154_v56 = vld [vmem:[#allocation32_spill] sm:$0xff] }
 0x4a2   : > { %9647 = vmatmul.bf16.gmra.mxu0 %v9511_v12  ;;  %v9412_v12 = vshll.u32 %v15514_v42, 16  ;;  %v9405_v61 = vrot.slane %v9403_v50, 4  ;;  %v9418_v14 = vrot.slane %v9416_v27, 4  ;;  %v7578_v37 = vadd.f32 %v16153_v58, %v16152_v51  ;;  %v9063_v50 = vld [vmem:[#allocation3 + $0xcc] sm:$0xf]  ;;  %v16156_v51 = vld [vmem:[#allocation13_spill] sm:$0xff] }
 0x4a3   : > { %v8445_v42 = vsel %vm12663_vm8, %v8443_v48, %v8444_v57  ;;  %v9430_v57 = vshll.u32 %v9063_v50, 16  ;;  %v11907_v58 = vld [vmem:[#allocation3 + $0xc0] sm:$0xff] }
 0x4a4   : > { %v9414_v62 = vrot.slane %v9412_v12, 5  ;;  %v9409_v32 = vor.u32 %v9408_v45, %v9405_v61  ;;  %v8499_v41 = vunpack.c.l.b16 %v8445_v42  ;;  %v16155_v12 = vld [vmem:[#allocation35_spill] sm:$0xff]  ;;  %v9436_v45 = vshll.u32 %v15543_v1, 16 }
 0x4a5   : > { %v7579_v27 = vadd.f32 %v16155_v12, %v16154_v56 }
 0x4a6   : > { %v9419_v26 = vor.u32 %v9418_v14, %v9414_v62  ;;  %v9410_v63 = vrot.slane %v9409_v32, 4  ;;  %v9440_v14 = vshrl.u32 %v15543_v1, 16 }
 0x4a7   : > { %v8200_v21 = vpop.f32.mrf.mxu1 }
 0x4a8   : > { %v15630_v19 = vadd.f32 %v8200_v21, %v7577_v46  ;;  %v9512_v46 = vpack.c.b16 %v9494_v54, %v9493_v4  ;;  %v9422_v21 = vshll.u32 %v15531_v49, 16  ;;  %v9420_v10 = vrot.slane %v9419_v26, 4 }
 0x4a9   : > { %8655 = vmatmul.bf16.gmra.mxu2 %v8515_v40  ;;  %v8442_v40 = vsel %vm12663_vm8, %v11413_v34, %v8441_v23  ;;  %v8448_v23 = vrot.slane %v15564_v8, 5  ;;  %v9427_v34 = vshrl.u32 %v9063_v50, 16  ;;  %v9415_v49 = vsel %vm12318_vm5, %v9410_v63, %v9414_v62  ;;  %v16158_v63 = vld [vmem:[#allocation38_spill] sm:$0xff] }
 0x4aa   : > { %8239 = vmatmul.bf16.gmra.mxu1 %v8091_v25  ;;  %v15650_v25 = vpop.f32.mrf.mxu0  ;;  %v8498_v43 = vunpack.c.l.b16 %v8442_v40  ;;  %v9424_v4 = vrot.slane %v9422_v21, 5  ;;  %v9432_v40 = vrot.slane %v9430_v57, 5  ;;  %v8451_v62 = vrot.slane %v15603_v16, 5 }
 0x4ab   : > { %v8450_v8 = vrot.slane %v8448_v23, 4  ;;  %v9438_v26 = vrot.slane %v9436_v45, 5  ;;  %v16160_v45 = vld [vmem:[#allocation41_spill] sm:$0xff] }
 0x4ac   : > { %8970 = vmatmul.bf16.gmra.mxu3 %v11906_v36  ;;  %v8516_v36 = vpack.c.b16 %v8499_v41, %v8498_v43  ;;  %v9425_v61 = vsel %vm12318_vm5, %v9420_v10, %v9424_v4  ;;  %v9442_v41 = vrot.slane %v9440_v14, 4  ;;  %v16157_v43 = vld [vmem:[#allocation34_spill] sm:$0xff]  ;;  %v9446_v4 = vshll.u32 %v15551_v20, 16 }
 0x4ad   : > { %v9496_v42 = vunpack.c.l.b16 %v9425_v61  ;;  %v7580_v1 = vadd.f32 %v16158_v63, %v16157_v43  ;;  %v8452_v50 = vsel %vm12663_vm8, %v8450_v8, %v8451_v62  ;;  %v16159_v61 = vld [vmem:[#allocation36_spill] sm:$0xff] }
 0x4ae   : > { %v8501_v16 = vunpack.c.l.b16 %v8452_v50  ;;  %v7581_v14 = vadd.f32 %v16160_v45, %v16159_v61  ;;  %v16163_v50 = vld [vmem:[#allocation33_spill] sm:$0xff]  ;;  %v16167_v45 = vld [vmem:[#allocation39_spill] sm:$0xff] }
 0x4af   : > { %v8202_v44 = vpop.f32.mrf.mxu1 }
 0x4b0   : > { %v15645_v53 = vadd.f32 %v8202_v44, %v7578_v37  ;;  %v8292_v37 = vld [vmem:[#allocation3 + $0xc0] sm:$0xe]  ;;  %v9495_v44 = vunpack.c.l.b16 %v9415_v49 }
 0x4b1   : > { %v11414_v32 = vrot.slane %v8292_v37, 9  ;;  %v9448_v37 = vrot.slane %v9446_v4, 5 }
 0x4b2   : > { %9652 = vmatmul.bf16.gmra.mxu0 %v9512_v46  ;;  %v9429_v46 = vrot.slane %v9427_v34, 4  ;;  %v15665_v21 = vpop.f32.mrf.mxu0  ;;  %v9513_v12 = vpack.c.b16 %v9496_v42, %v9495_v44  ;;  %v11908_v42 = vld [vmem:[#allocation3 + $0xcc] sm:$0xff] }
 0x4b7   : > { %v8205_v48 = vpop.f32.mrf.mxu1 }
 0x4b8   : > { %v15655_v54 = vadd.f32 %v8205_v48, %v7579_v27  ;;  %v8449_v27 = vsel %vm12663_vm8, %v11414_v32, %v8448_v23  ;;  %v9443_v48 = vor.u32 %v9442_v41, %v9438_v26  ;;  %v16161_v23 = vld [vmem:[#allocation28_spill] sm:$0xff] }
 0x4b9   : > { %8660 = vmatmul.bf16.gmra.mxu2 %v8516_v36  ;;  %v9433_v36 = vor.u32 %v9432_v40, %v9429_v46  ;;  %v8500_v34 = vunpack.c.l.b16 %v8449_v27  ;;  %v16162_v32 = vld [vmem:[#allocation40_spill] sm:$0xff] }
 0x4ba   : > { %10013 = vmatmul.bf16.vlgmr.msra.gmra.mxu1 %v16156_v51  ;;  %v9444_v49 = vrot.slane %v9443_v48, 4  ;;  %v15678_v8 = vpop.f32.mrf.mxu0  ;;  %v7582_v62 = vadd.f32 %v14967_v38, %v16162_v32 }
 0x4bb   : > { %v9434_v57 = vrot.slane %v9433_v36, 4  ;;  %v8517_v51 = vpack.c.b16 %v8501_v16, %v8500_v34  ;;  %v16164_v36 = vld [vmem:[#allocation43_spill] sm:$0xff]  ;;  %v16165_v34 = vld [vmem:[#allocation37_spill] sm:$0xff] }
 0x4bc   : > { %8975 = vmatmul.bf16.gmra.mxu3 %v11907_v58  ;;  %v9449_v20 = vsel %vm12318_vm5, %v9444_v49, %v9448_v37  ;;  %v7585_v48 = vadd.f32 %v15092_v11, %v16164_v36  ;;  %v16168_v11 = vld [vmem:[#allocation47_spill] sm:$0xff]  ;;  %v16169_v37 = vld [vmem:[#allocation48_spill] sm:$0xff] }
 0x4bd   : > { %v9439_v18 = vsel %vm12318_vm5, %v9434_v57, %v9438_v26  ;;  %v9498_v40 = vunpack.c.l.b16 %v9449_v20  ;;  %v7589_v60 = vadd.f32 %v15284_v22, %v16169_v37  ;;  %v16173_v22 = vld [vmem:[#allocation52_spill] sm:$0xff] }
 0x4be   : > { %v9497_v46 = vunpack.c.l.b16 %v9439_v18 }
 0x4bf   : > { %v8207_v10 = vpop.f32.mrf.mxu1 }
 0x4c0   : > { %v15671_v56 = vadd.f32 %v8207_v10, %v7580_v1  ;;  %v9514_v63 = vpack.c.b16 %v9498_v40, %v9497_v46  ;;  %v16171_v46 = vld [vmem:[#allocation50_spill] sm:$0xff] }
 0x4c2   : > { %9657 = vmatmul.bf16.gmra.mxu0 %v9513_v12  ;;  %v15691_v1 = vpop.f32.mrf.mxu0  ;;  %v7584_v12 = vadd.f32 %v15053_v35, %v14970_v7  ;;  %v7587_v7 = vadd.f32 %v15186_v55, %v15076_v33  ;;  %v7590_v33 = vadd.f32 %v15329_v39, %v15179_v47  ;;  %v16174_v47 = vld [vmem:[#allocation53_spill] sm:$0xff] }
 0x4c3   : > { %v7593_v39 = vadd.f32 %v15454_v5, %v16174_v47 }
 0x4c7   : > { %v8210_v58 = vpop.f32.mrf.mxu1 }
 0x4c8   : > { %v15680_v44 = vadd.f32 %v8210_v58, %v7581_v14  ;;  %v7588_v14 = vadd.f32 %v15234_v24, %v16168_v11  ;;  %v7591_v24 = vadd.f32 %v15387_v15, %v16171_v46  ;;  %v16175_v15 = vld [vmem:[#allocation46_spill] sm:$0xff] }
 0x4c9   : > { %8665 = vmatmul.bf16.gmra.mxu2 %v8517_v51  ;;  %v16180_v46 = vld [vmem:[#allocation26_spill] sm:$0xff] }
 0x4ca   : > { %10018 = vmatmul.bf16.gmra.mxu1 %v16161_v23  ;;  %v16170_v23 = vld [vmem:[#allocation42_spill] sm:$0xff] }
 0x4cc   : > { %8980 = vmatmul.bf16.gmra.mxu3 %v11908_v42 }
 0x4cf   : > { %v8212_v41 = vpop.f32.mrf.mxu1 }
 0x4d0   : > { %v15689_v43 = vadd.f32 %v8212_v41, %v7582_v62  ;;  %v16172_v62 = vld [vmem:[#allocation44_spill] sm:$0xff]  ;;  %v7592_v41 = vadd.f32 %v15418_v59, %v16173_v22 }
 0x4d2   : > { %9662 = vmatmul.bf16.gmra.mxu0 %v9514_v63 }
 0x4d7   : > { %v8215_v26 = vpop.f32.mrf.mxu1 }
 0x4d8   : > { %v15695_v10 = vadd.f32 %v8215_v26, %v7583_v28 }
 0x4da   : > { %10023 = vmatmul.bf16.gmra.mxu1 %v16163_v50 }
 0x4df   : > { %v8217_v27 = vpop.f32.mrf.mxu1 }
 0x4e0   : > { %v15700_v38 = vadd.f32 %v8217_v27, %v7584_v12  ;;  %v16176_v12 = vld [vmem:[#allocation55_spill] sm:$0xff] }
 0x4e1   : > { %v7594_v27 = vadd.f32 %v15499_v52, %v16176_v12  ;;  %v16178_v52 = vld [vmem:[#allocation49_spill] sm:$0xff] }
 0x4e7   : > { %v8220_v16 = vpop.f32.mrf.mxu1 }
 0x4e8   : > { %v15704_v4 = vadd.f32 %v8220_v16, %v7585_v48  ;;  %v16177_v16 = vld [vmem:[#allocation21_spill] sm:$0xff] }
 0x4e9   : > { %v9668_v59 = vadd.f32 %v15554_v17, %v16177_v16 }
 0x4ea   : > { %10028 = vmatmul.bf16.gmra.mxu1 %v16165_v34  ;;  %v15752_v34 = vld [vmem:[%s15981_s4] ss:$0 sm:$0xff] }
 0x4ef   : > { %v8222_v57 = vpop.f32.mrf.mxu1 }
 0x4f0   : > { %v15709_v49 = vadd.f32 %v8222_v57, %v7586_v0  ;;  %v10194_v57 = vld [vmem:[%s12200_s10] sm:$0xff] }
 0x4f7   : > { %v8225_v35 = vpop.f32.mrf.mxu1 }
 0x4f8   : > { %v15713_v61 = vadd.f32 %v8225_v35, %v7587_v7  ;;  %v15760_v35 = vpop.f32.mrf.mxu2 }
 0x4fa   : > { %10033 = vmatmul.bf16.gmra.mxu1 %v16167_v45  ;;  %v16179_v45 = vld [vmem:[#allocation23_spill] sm:$0xff] }
 0x4fb   : > { %v9669_v11 = vadd.f32 %v15591_v9, %v16179_v45  ;;  %v9670_v9 = vadd.f32 %v15616_v2, %v16180_v46 }
 0x4ff   : > { %v8227_v51 = vpop.f32.mrf.mxu1 }
 0x500   : > { %v15718_v58 = vadd.f32 %v8227_v51, %v7588_v14 }
 0x507   : > { %v8230_v18 = vpop.f32.mrf.mxu1 }
 0x508   : > { %v15722_v20 = vadd.f32 %v8230_v18, %v7589_v60  ;;  %v15768_v60 = vpop.f32.mrf.mxu3  ;;  %v10195_v18 = vld [vmem:[%s12200_s10 + $0x8] sm:$0xff] }
 0x50a   : > { %10038 = vmatmul.bf16.gmra.mxu1 %v16170_v23 }
 0x50f   : > { %v8232_v55 = vpop.f32.mrf.mxu1 }
 0x510   : > { %v15727_v42 = vadd.f32 %v8232_v55, %v7590_v33  ;;  %v15771_v33 = vpop.f32.mrf.mxu0 }
 0x517   : > { %v8235_v40 = vpop.f32.mrf.mxu1 }
 0x518   : > { %v15731_v32 = vadd.f32 %v8235_v40, %v7591_v24  ;;  %v15775_v24 = vpop.f32.mrf.mxu2 }
 0x51a   : > { %10043 = vmatmul.bf16.gmra.mxu1 %v16172_v62 }
 0x51f   : > { %v8237_v63 = vpop.f32.mrf.mxu1 }
 0x520   : > { %v15736_v28 = vadd.f32 %v8237_v63, %v7592_v41  ;;  %v16181_v41 = vld [vmem:[#allocation51_spill] sm:$0xff]  ;;  %v10196_v63 = vld [vmem:[%s12200_s10 + $0x10] sm:$0xff]  ;;  %v15788_v16 = vpop.f32.mrf.mxu2 }
 0x527   : > { %v8240_v26 = vpop.f32.mrf.mxu1 }
 0x528   : > { %v15740_v50 = vadd.f32 %v8240_v26, %v7593_v39  ;;  %v15781_v39 = vpop.f32.mrf.mxu3 }
 0x52a   : > { %10048 = vmatmul.bf16.gmra.mxu1 %v16175_v15  ;;  %v16182_v15 = vld [vmem:[#allocation19_spill] sm:$0xff] }
 0x52b   : > { %v9671_v12 = vadd.f32 %v15638_v6, %v16182_v15  ;;  %v9674_v15 = vadd.f32 %v15678_v8, %v15586_v31  ;;  %v9675_v31 = vadd.f32 %v15691_v1, %v15608_v29 }
 0x52f   : > { %v8242_v36 = vpop.f32.mrf.mxu1 }
 0x530   : > { %v15745_v48 = vadd.f32 %v8242_v36, %v7594_v27  ;;  %v15785_v27 = vpop.f32.mrf.mxu0 }
 0x537   : > { %v10014_v5 = vpop.f32.mrf.mxu1 }
 0x538   : > { %v10094_v30 = vadd.f32 %v10014_v5, %v9668_v59  ;;  %v10197_v5 = vld [vmem:[%s12200_s10 + $0x18] sm:$0xff]  ;;  %v15797_v45 = vpop.f32.mrf.mxu0 }
 0x53a   : > { %v10130_v0 = vadd.f32 %v15752_v34, %v10094_v30  ;;  %10053 = vmatmul.bf16.gmra.mxu1 %v16178_v52  ;;  %v16183_v52 = vld [vmem:[#allocation20_spill] sm:$0xff] }
 0x53c   : > { %v10162_v7 = vmul.f32 0.1, %v10130_v0 }
 0x53e   : > { %v10226_v17 = vadd.f32 %v10194_v57, %v10162_v7  ;;  %v9672_v57 = vadd.f32 %v15650_v25, %v16183_v52  ;;  %v15794_v7 = vpop.f32.mrf.mxu3 }
 0x53f   : > { %v10016_v14 = vpop.f32.mrf.mxu1 }
 0x540   : > { %10258 = vst [vmem:[%s15764_s13] sm:$0xff] %v10226_v17  ;;  %v10095_v51 = vadd.f32 %v10016_v14, %v9669_v11  ;;  %v16184_v14 = vld [vmem:[#allocation54_spill] sm:$0xff] }
 0x542   : > { %v10131_v37 = vadd.f32 %v15752_v34, %v10095_v51  ;;  %v15801_v51 = vpop.f32.mrf.mxu2 }
 0x544   : > { %v10163_v23 = vmul.f32 0.1, %v10131_v37  ;;  %v10198_v37 = vld [vmem:[%s12200_s10 + $0x20] sm:$0xff] }
 0x546   : > { %v10227_v55 = vadd.f32 %v10195_v18, %v10163_v23 }
 0x547   : > { %v10019_v40 = vpop.f32.mrf.mxu1 }
 0x548   : > { %10259 = vst [vmem:[%s15764_s13 + $0x8] sm:$0xff] %v10227_v55  ;;  %v10096_v62 = vadd.f32 %v10019_v40, %v9670_v9  ;;  %v16185_v55 = vld [vmem:[#allocation8_spill] sm:$0xff]  ;;  %v8933_v40 = vpop.f32.mrf.mxu3 }
 0x549   : > { %v9673_v25 = vadd.f32 %v15665_v21, %v16185_v55 }
 0x54a   : > { %v10132_v22 = vadd.f32 %v15752_v34, %v10096_v62  ;;  %10058 = vmatmul.bf16.gmra.mxu1 %v16181_v41  ;;  %v15809_v41 = vpop.f32.mrf.mxu0 }
 0x54c   : > { %v10164_v47 = vmul.f32 0.1, %v10132_v22  ;;  %v10199_v22 = vld [vmem:[%s12200_s10 + $0x28] sm:$0xff] }
 0x54e   : > { %v10228_v26 = vadd.f32 %v10196_v63, %v10164_v47  ;;  %v15811_v47 = vpop.f32.mrf.mxu2 }
 0x54f   : > { %v10021_v2 = vpop.f32.mrf.mxu1 }
 0x550   : > { %10260 = vst [vmem:[%s15764_s13 + $0x10] sm:$0xff] %v10228_v26  ;;  %v10097_v36 = vadd.f32 %v10021_v2, %v9671_v12 }
 0x552   : > { %v10133_v59 = vadd.f32 %v15752_v34, %v10097_v36  ;;  %v16186_v36 = vld [vmem:[#allocation22_spill] sm:$0xff] }
 0x554   : > { %v10165_v30 = vmul.f32 0.1, %v10133_v59  ;;  %v8936_v59 = vpop.f32.mrf.mxu3 }
 0x556   : > { %v10229_v0 = vadd.f32 %v10197_v5, %v10165_v30  ;;  %v10200_v5 = vld [vmem:[%s12200_s10 + $0x30] sm:$0xff]  ;;  %v8623_v8 = vpop.f32.mrf.mxu2 }
 0x557   : > { %v10024_v6 = vpop.f32.mrf.mxu1 }
 0x558   : > { %10261 = vst [vmem:[%s15764_s13 + $0x18] sm:$0xff] %v10229_v0  ;;  %v10098_v17 = vadd.f32 %v10024_v6, %v9672_v57  ;;  %v16187_v0 = vld [vmem:[#allocation25_spill] sm:$0xff]  ;;  %v15821_v57 = vpop.f32.mrf.mxu0 }
 0x559   : > { %v8679_v52 = vadd.f32 %v15760_v35, %v16187_v0  ;;  %v16188_v35 = vld [vmem:[#allocation27_spill] sm:$0xff] }
 0x55a   : > { %v10134_v11 = vadd.f32 %v15752_v34, %v10098_v17  ;;  %10063 = vmatmul.bf16.gmra.mxu1 %v16184_v14 }
 0x55b   : > { %v8994_v14 = vadd.f32 %v15768_v60, %v8679_v52 }
 0x55c   : > { %v10166_v18 = vmul.f32 0.1, %v10134_v11  ;;  %v8938_v55 = vpop.f32.mrf.mxu3 }
 0x55e   : > { %v10230_v23 = vadd.f32 %v10198_v37, %v10166_v18  ;;  %v10201_v18 = vld [vmem:[%s12200_s10 + $0x38] sm:$0xff] }
 0x55f   : > { %v10026_v46 = vpop.f32.mrf.mxu1 }
 0x560   : > { %10262 = vst [vmem:[%s15764_s13 + $0x20] sm:$0xff] %v10230_v23  ;;  %v10099_v9 = vadd.f32 %v10026_v46, %v9673_v25  ;;  %v8680_v25 = vadd.f32 %v15775_v24, %v16188_v35  ;;  %v15832_v1 = vpop.f32.mrf.mxu0  ;;  %v16190_v24 = vld [vmem:[#allocation9_spill] sm:$0xff] }
 0x562   : > { %v10135_v62 = vadd.f32 %v15752_v34, %v10099_v9  ;;  %v9676_v9 = vadd.f32 %v15771_v33, %v8994_v14  ;;  %v8995_v60 = vadd.f32 %v15781_v39, %v8680_v25  ;;  %v16192_v25 = vld [vmem:[#allocation11_spill] sm:$0xff] }
 0x564   : > { %v10167_v63 = vmul.f32 0.1, %v10135_v62 }
 0x566   : > { %v10231_v26 = vadd.f32 %v10199_v22, %v10167_v63  ;;  %v8626_v22 = vpop.f32.mrf.mxu2 }
 0x567   : > { %v10029_v12 = vpop.f32.mrf.mxu1 }
 0x568   : > { %10263 = vst [vmem:[%s15764_s13 + $0x28] sm:$0xff] %v10231_v26  ;;  %v10100_v21 = vadd.f32 %v10029_v12, %v9674_v15  ;;  %v16189_v26 = vld [vmem:[#allocation24_spill] sm:$0xff]  ;;  %v10202_v15 = vld [vmem:[%s12200_s10 + $0x40] sm:$0xff]  ;;  %v9623_v0 = vpop.f32.mrf.mxu0 }
 0x56a   : > { %v10136_v2 = vadd.f32 %v15752_v34, %v10100_v21  ;;  %10068 = vmatmul.bf16.gmra.mxu1 %v16186_v36  ;;  %v8681_v21 = vadd.f32 %v15788_v16, %v16190_v24  ;;  %v8941_v36 = vpop.f32.mrf.mxu3  ;;  %v10205_v24 = vld [vmem:[%s12200_s10 + $0x58] sm:$0xff] }
 0x56c   : > { %v10168_v30 = vmul.f32 0.1, %v10136_v2  ;;  %v9677_v2 = vadd.f32 %v15785_v27, %v8995_v60  ;;  %v8996_v39 = vadd.f32 %v15794_v7, %v8681_v21 }
 0x56e   : > { %v10232_v6 = vadd.f32 %v10200_v5, %v10168_v30 }
 0x56f   : > { %v10031_v17 = vpop.f32.mrf.mxu1 }
 0x570   : > { %10264 = vst [vmem:[%s15764_s13 + $0x30] sm:$0xff] %v10232_v6  ;;  %v10101_v11 = vadd.f32 %v10031_v17, %v9675_v31  ;;  %v8628_v6 = vpop.f32.mrf.mxu2  ;;  %v10203_v31 = vld [vmem:[%s12200_s10 + $0x48] sm:$0xff] }
 0x572   : > { %v10137_v37 = vadd.f32 %v15752_v34, %v10101_v11  ;;  %v16191_v11 = vld [vmem:[#allocation10_spill] sm:$0xff] }
 0x573   : > { %v8682_v16 = vadd.f32 %v15801_v51, %v16191_v11  ;;  %v8683_v51 = vadd.f32 %v15811_v47, %v15601_v13 }
 0x574   : > { %v10169_v23 = vmul.f32 0.1, %v10137_v37  ;;  %v9678_v37 = vadd.f32 %v15797_v45, %v8996_v39 }
 0x575   : > { %v8997_v35 = vadd.f32 %v8933_v40, %v8682_v16  ;;  %v8998_v40 = vadd.f32 %v8936_v59, %v8683_v51 }
 0x576   : > { %v10233_v46 = vadd.f32 %v10201_v18, %v10169_v23  ;;  %v8943_v23 = vpop.f32.mrf.mxu3 }
 0x577   : > { %v10034_v29 = vpop.f32.mrf.mxu1  ;;  %v9679_v45 = vadd.f32 %v15809_v41, %v8997_v35  ;;  %v9680_v13 = vadd.f32 %v15821_v57, %v8998_v40  ;;  %v10207_v35 = vld [vmem:[%s12200_s10 + $0x68] sm:$0xff] }
 0x578   : > { %10265 = vst [vmem:[%s15764_s13 + $0x38] sm:$0xff] %v10233_v46  ;;  %v10102_v62 = vadd.f32 %v10034_v29, %v9676_v9  ;;  %v10204_v46 = vld [vmem:[%s12200_s10 + $0x50] sm:$0xff]  ;;  %v9625_v9 = vpop.f32.mrf.mxu0 }
 0x57a   : > { %v10138_v63 = vadd.f32 %v15752_v34, %v10102_v62  ;;  %10073 = vmatmul.bf16.gmra.mxu1 %v16189_v26  ;;  %v8631_v62 = vpop.f32.mrf.mxu2 }
 0x57c   : > { %v10170_v12 = vmul.f32 0.1, %v10138_v63 }
 0x57e   : > { %v10234_v33 = vadd.f32 %v10202_v15, %v10170_v12  ;;  %v8946_v12 = vpop.f32.mrf.mxu3 }
 0x57f   : > { %v10036_v5 = vpop.f32.mrf.mxu1 }
 0x580   : > { %10266 = vst [vmem:[%s15764_s13 + $0x40] sm:$0xff] %v10234_v33  ;;  %v10103_v30 = vadd.f32 %v10036_v5, %v9677_v2  ;;  %v8684_v33 = vadd.f32 %v8623_v8, %v15618_v3  ;;  %v9628_v2 = vpop.f32.mrf.mxu0  ;;  %v8685_v3 = vadd.f32 %v8626_v22, %v15630_v19 }
 0x582   : > { %v10139_v52 = vadd.f32 %v15752_v34, %v10103_v30  ;;  %v8633_v47 = vpop.f32.mrf.mxu2  ;;  %v8999_v39 = vadd.f32 %v8938_v55, %v8684_v33  ;;  %v9000_v55 = vadd.f32 %v8941_v36, %v8685_v3  ;;  %v16194_v36 = vld [vmem:[#allocation56_spill] sm:$0xff] }
 0x584   : > { %v10171_v17 = vmul.f32 0.1, %v10139_v52  ;;  %v16193_v52 = vld [vmem:[#allocation12_spill] sm:$0xff]  ;;  %v9681_v57 = vadd.f32 %v15832_v1, %v8999_v39  ;;  %v8688_v39 = vadd.f32 %v8633_v47, %v15671_v56 }
 0x586   : > { %v10235_v14 = vadd.f32 %v10203_v31, %v10171_v17  ;;  %v10206_v31 = vld [vmem:[%s12200_s10 + $0x60] sm:$0xff]  ;;  %v8948_v11 = vpop.f32.mrf.mxu3 }
 0x587   : > { %v10039_v27 = vpop.f32.mrf.mxu1 }
 0x588   : > { %10267 = vst [vmem:[%s15764_s13 + $0x48] sm:$0xff] %v10235_v14  ;;  %v10104_v18 = vadd.f32 %v10039_v27, %v9678_v37  ;;  %v9630_v14 = vpop.f32.mrf.mxu0 }
 0x58a   : > { %v10140_v7 = vadd.f32 %v15752_v34, %v10104_v18  ;;  %10078 = vmatmul.bf16.gmra.mxu1 %v16192_v25  ;;  %v8636_v27 = vpop.f32.mrf.mxu2  ;;  %v8686_v25 = vadd.f32 %v8628_v6, %v15645_v53 }
 0x58c   : > { %v10172_v29 = vmul.f32 0.1, %v10140_v7  ;;  %v9001_v51 = vadd.f32 %v8943_v23, %v8686_v25 }
 0x58e   : > { %v10236_v60 = vadd.f32 %v10204_v46, %v10172_v29  ;;  %v9682_v29 = vadd.f32 %v9623_v0, %v9000_v55  ;;  %v8951_v19 = vpop.f32.mrf.mxu3  ;;  %v9683_v0 = vadd.f32 %v9625_v9, %v9001_v51 }
 0x58f   : > { %v10041_v63 = vpop.f32.mrf.mxu1 }
 0x590   : > { %10268 = vst [vmem:[%s15764_s13 + $0x50] sm:$0xff] %v10236_v60  ;;  %v10105_v26 = vadd.f32 %v10041_v63, %v9679_v45  ;;  %v9633_v60 = vpop.f32.mrf.mxu0 }
 0x592   : > { %v10141_v15 = vadd.f32 %v15752_v34, %v10105_v26  ;;  %v8638_v63 = vpop.f32.mrf.mxu2  ;;  %v10208_v26 = vld [vmem:[%s12200_s10 + $0x70] sm:$0xff] }
 0x593   : > { %v8690_v25 = vadd.f32 %v8638_v63, %v15689_v43 }
 0x594   : > { %v10173_v21 = vmul.f32 0.1, %v10141_v15  ;;  %v8687_v15 = vadd.f32 %v8631_v62, %v15655_v54 }
 0x596   : > { %v10237_v5 = vadd.f32 %v10205_v24, %v10173_v21  ;;  %v8953_v21 = vpop.f32.mrf.mxu3  ;;  %v9002_v23 = vadd.f32 %v8946_v12, %v8687_v15  ;;  %v10210_v12 = vld [vmem:[%s12200_s10 + $0x80] sm:$0xff] }
 0x597   : > { %v10044_v30 = vpop.f32.mrf.mxu1 }
 0x598   : > { %10269 = vst [vmem:[%s15764_s13 + $0x58] sm:$0xff] %v10237_v5  ;;  %v10106_v41 = vadd.f32 %v10044_v30, %v9680_v13  ;;  %v10209_v5 = vld [vmem:[%s12200_s10 + $0x78] sm:$0xff]  ;;  %v9635_v13 = vpop.f32.mrf.mxu0  ;;  %v9684_v54 = vadd.f32 %v9628_v2, %v9002_v23 }
 0x59a   : > { %v10142_v59 = vadd.f32 %v15752_v34, %v10106_v41  ;;  %10083 = vmatmul.bf16.gmra.mxu1 %v16193_v52  ;;  %v8641_v41 = vpop.f32.mrf.mxu2  ;;  %v9003_v52 = vadd.f32 %v8948_v11, %v8688_v39  ;;  %v10211_v11 = vld [vmem:[%s12200_s10 + $0x88] sm:$0xff] }
 0x59c   : > { %v10174_v17 = vmul.f32 0.1, %v10142_v59 }
 0x59e   : > { %v10238_v8 = vadd.f32 %v10206_v31, %v10174_v17  ;;  %v8956_v17 = vpop.f32.mrf.mxu3 }
 0x59f   : > { %v10046_v16 = vpop.f32.mrf.mxu1 }
 0x5a0   : > { %10270 = vst [vmem:[%s15764_s13 + $0x60] sm:$0xff] %v10238_v8  ;;  %v10107_v37 = vadd.f32 %v10046_v16, %v9681_v57  ;;  %v8689_v8 = vadd.f32 %v8636_v27, %v15680_v44  ;;  %v9638_v57 = vpop.f32.mrf.mxu0 }
 0x5a2   : > { %v10143_v18 = vadd.f32 %v15752_v34, %v10107_v37  ;;  %v9685_v37 = vadd.f32 %v9630_v14, %v9003_v52  ;;  %v8643_v56 = vpop.f32.mrf.mxu2  ;;  %v9004_v55 = vadd.f32 %v8951_v19, %v8689_v8  ;;  %v10212_v19 = vld [vmem:[%s12200_s10 + $0x90] sm:$0xff] }
 0x5a3   : > { %v8692_v23 = vadd.f32 %v8643_v56, %v15700_v38 }
 0x5a4   : > { %v10175_v7 = vmul.f32 0.1, %v10143_v18  ;;  %v9686_v44 = vadd.f32 %v9633_v60, %v9004_v55 }
 0x5a6   : > { %v10239_v46 = vadd.f32 %v10207_v35, %v10175_v7  ;;  %v8958_v7 = vpop.f32.mrf.mxu3 }
 0x5a7   : > { %v10049_v22 = vpop.f32.mrf.mxu1 }
 0x5a8   : > { %10271 = vst [vmem:[%s15764_s13 + $0x68] sm:$0xff] %v10239_v46  ;;  %v10108_v1 = vadd.f32 %v10049_v22, %v9682_v29  ;;  %v9640_v29 = vpop.f32.mrf.mxu0 }
 0x5aa   : > { %v10144_v45 = vadd.f32 %v15752_v34, %v10108_v1  ;;  %10088 = vmatmul.bf16.gmra.mxu1 %v16194_v36  ;;  %v8646_v22 = vpop.f32.mrf.mxu2  ;;  %v9005_v1 = vadd.f32 %v8953_v21, %v8690_v25  ;;  %v8691_v36 = vadd.f32 %v8641_v41, %v15695_v10  ;;  %v9007_v41 = vadd.f32 %v8958_v7, %v8692_v23  ;;  %v10216_v25 = vld [vmem:[%s12200_s10 + $0xb0] sm:$0xff] }
 0x5ab   : > { %v8693_v52 = vadd.f32 %v8646_v22, %v15704_v4 }
 0x5ac   : > { %v10176_v40 = vmul.f32 0.1, %v10144_v45  ;;  %v9006_v15 = vadd.f32 %v8956_v17, %v8691_v36  ;;  %v9689_v38 = vadd.f32 %v9640_v29, %v9007_v41  ;;  %v10217_v36 = vld [vmem:[%s12200_s10 + $0xb8] sm:$0xff] }
 0x5ae   : > { %v10240_v53 = vadd.f32 %v10208_v26, %v10176_v40  ;;  %v9687_v40 = vadd.f32 %v9635_v13, %v9005_v1  ;;  %v8961_v43 = vpop.f32.mrf.mxu3  ;;  %v9688_v10 = vadd.f32 %v9638_v57, %v9006_v15 }
 0x5af   : > { %v10051_v6 = vpop.f32.mrf.mxu1 }
 0x5b0   : > { %10272 = vst [vmem:[%s15764_s13 + $0x70] sm:$0xff] %v10240_v53  ;;  %v10109_v24 = vadd.f32 %v10051_v6, %v9683_v0  ;;  %v9643_v53 = vpop.f32.mrf.mxu0 }
 0x5b2   : > { %v10145_v33 = vadd.f32 %v15752_v34, %v10109_v24  ;;  %v8648_v6 = vpop.f32.mrf.mxu2  ;;  %v10213_v24 = vld [vmem:[%s12200_s10 + $0x98] sm:$0xff] }
 0x5b3   : > { %v8694_v56 = vadd.f32 %v8648_v6, %v15709_v49 }
 0x5b4   : > { %v10177_v30 = vmul.f32 0.1, %v10145_v33 }
 0x5b6   : > { %v10241_v59 = vadd.f32 %v10209_v5, %v10177_v30  ;;  %v8963_v30 = vpop.f32.mrf.mxu3 }
 0x5b7   : > { %v10054_v62 = vpop.f32.mrf.mxu1 }
 0x5b8   : > { %10273 = vst [vmem:[%s15764_s13 + $0x78] sm:$0xff] %v10241_v59  ;;  %v10110_v9 = vadd.f32 %v10054_v62, %v9684_v54  ;;  %v10214_v59 = vld [vmem:[%s12200_s10 + $0xa0] sm:$0xff]  ;;  %v9645_v54 = vpop.f32.mrf.mxu0 }
 0x5ba   : > { %v10146_v31 = vadd.f32 %v15752_v34, %v10110_v9  ;;  %v8651_v9 = vpop.f32.mrf.mxu2 }
 0x5bc   : > { %v10178_v3 = vmul.f32 0.1, %v10146_v31 }
 0x5be   : > { %v10242_v16 = vadd.f32 %v10210_v12, %v10178_v3  ;;  %v9008_v3 = vadd.f32 %v8961_v43, %v8693_v52  ;;  %v8966_v57 = vpop.f32.mrf.mxu3 }
 0x5bf   : > { %v10056_v47 = vpop.f32.mrf.mxu1 }
 0x5c0   : > { %10274 = vst [vmem:[%s15764_s13 + $0x80] sm:$0xff] %v10242_v16  ;;  %v10111_v2 = vadd.f32 %v10056_v47, %v9685_v37  ;;  %v10215_v16 = vld [vmem:[%s12200_s10 + $0xa8] sm:$0xff]  ;;  %v9648_v47 = vpop.f32.mrf.mxu0  ;;  %v9690_v55 = vadd.f32 %v9643_v53, %v9008_v3 }
 0x5c2   : > { %v10147_v18 = vadd.f32 %v15752_v34, %v10111_v2  ;;  %v8653_v4 = vpop.f32.mrf.mxu2 }
 0x5c4   : > { %v10179_v35 = vmul.f32 0.1, %v10147_v18 }
 0x5c6   : > { %v10243_v46 = vadd.f32 %v10211_v11, %v10179_v35  ;;  %v9009_v35 = vadd.f32 %v8963_v30, %v8694_v56 }
 0x5c7   : > { %v10059_v27 = vpop.f32.mrf.mxu1 }
 0x5c8   : > { %10275 = vst [vmem:[%s15764_s13 + $0x88] sm:$0xff] %v10243_v46  ;;  %v10112_v14 = vadd.f32 %v10059_v27, %v9686_v44  ;;  %v8968_v44 = vpop.f32.mrf.mxu3  ;;  %v8695_v27 = vadd.f32 %v8651_v9, %v15713_v61  ;;  %v9691_v49 = vadd.f32 %v9645_v54, %v9009_v35  ;;  %v9650_v22 = vpop.f32.mrf.mxu0  ;;  %v10221_v35 = vld [vmem:[%s12200_s10 + $0xd8] sm:$0xff] }
 0x5ca   : > { %v10148_v51 = vadd.f32 %v15752_v34, %v10112_v14 }
 0x5cc   : > { %v10180_v45 = vmul.f32 0.1, %v10148_v51  ;;  %v8656_v51 = vpop.f32.mrf.mxu2 }
 0x5ce   : > { %v10244_v26 = vadd.f32 %v10212_v19, %v10180_v45  ;;  %v9010_v19 = vadd.f32 %v8966_v57, %v8695_v27  ;;  %v10220_v57 = vld [vmem:[%s12200_s10 + $0xd0] sm:$0xff] }
 0x5cf   : > { %v10061_v63 = vpop.f32.mrf.mxu1 }
 0x5d0   : > { %10276 = vst [vmem:[%s15764_s13 + $0x90] sm:$0xff] %v10244_v26  ;;  %v10113_v60 = vadd.f32 %v10061_v63, %v9687_v40  ;;  %v8696_v40 = vadd.f32 %v8653_v4, %v15718_v58  ;;  %v9692_v63 = vadd.f32 %v9648_v47, %v9010_v19  ;;  %v8971_v61 = vpop.f32.mrf.mxu3 }
 0x5d2   : > { %v10149_v0 = vadd.f32 %v15752_v34, %v10113_v60  ;;  %v9011_v53 = vadd.f32 %v8968_v44, %v8696_v40 }
 0x5d4   : > { %v10181_v21 = vmul.f32 0.1, %v10149_v0  ;;  %v9653_v0 = vpop.f32.mrf.mxu0  ;;  %v9693_v58 = vadd.f32 %v9650_v22, %v9011_v53  ;;  %v10223_v53 = vld [vmem:[%s12200_s10 + $0xe8] sm:$0xff] }
 0x5d6   : > { %v10245_v33 = vadd.f32 %v10213_v24, %v10181_v21  ;;  %v8658_v24 = vpop.f32.mrf.mxu2  ;;  %v10218_v21 = vld [vmem:[%s12200_s10 + $0xc0] sm:$0xff] }
 0x5d7   : > { %v10064_v5 = vpop.f32.mrf.mxu1  ;;  %v8698_v52 = vadd.f32 %v8658_v24, %v15727_v42 }
 0x5d8   : > { %10277 = vst [vmem:[%s15764_s13 + $0x98] sm:$0xff] %v10245_v33  ;;  %v10114_v13 = vadd.f32 %v10064_v5, %v9688_v10  ;;  %v8697_v33 = vadd.f32 %v8656_v51, %v15722_v20  ;;  %v8973_v30 = vpop.f32.mrf.mxu3  ;;  %v10222_v51 = vld [vmem:[%s12200_s10 + $0xe0] sm:$0xff] }
 0x5da   : > { %v10150_v39 = vadd.f32 %v15752_v34, %v10114_v13  ;;  %v9012_v41 = vadd.f32 %v8971_v61, %v8697_v33 }
 0x5dc   : > { %v10182_v62 = vmul.f32 0.1, %v10150_v39  ;;  %v9655_v54 = vpop.f32.mrf.mxu0  ;;  %v9694_v20 = vadd.f32 %v9653_v0, %v9012_v41 }
 0x5de   : > { %v10246_v31 = vadd.f32 %v10214_v59, %v10182_v62  ;;  %v10219_v59 = vld [vmem:[%s12200_s10 + $0xc8] sm:$0xff]  ;;  %v8661_v9 = vpop.f32.mrf.mxu2 }
 0x5df   : > { %v10066_v17 = vpop.f32.mrf.mxu1  ;;  %v8699_v56 = vadd.f32 %v8661_v9, %v15731_v32 }
 0x5e0   : > { %10278 = vst [vmem:[%s15764_s13 + $0xa0] sm:$0xff] %v10246_v31  ;;  %v10115_v12 = vadd.f32 %v10066_v17, %v9689_v38 }
 0x5e2   : > { %v10151_v8 = vadd.f32 %v15752_v34, %v10115_v12  ;;  %v9013_v12 = vadd.f32 %v8973_v30, %v8698_v52 }
 0x5e4   : > { %v10183_v37 = vmul.f32 0.1, %v10151_v8  ;;  %v8976_v8 = vpop.f32.mrf.mxu3 }
 0x5e6   : > { %v10247_v2 = vadd.f32 %v10215_v16, %v10183_v37  ;;  %v9658_v37 = vpop.f32.mrf.mxu0  ;;  %v8663_v42 = vpop.f32.mrf.mxu2 }
 0x5e7   : > { %v10069_v18 = vpop.f32.mrf.mxu1 }
 0x5e8   : > { %10279 = vst [vmem:[%s15764_s13 + $0xa8] sm:$0xff] %v10247_v2  ;;  %v10116_v11 = vadd.f32 %v10069_v18, %v9690_v55  ;;  %v9695_v2 = vadd.f32 %v9655_v54, %v9013_v12  ;;  %v9014_v18 = vadd.f32 %v8976_v8, %v8699_v56 }
 0x5ea   : > { %v10152_v7 = vadd.f32 %v15752_v34, %v10116_v11  ;;  %v9696_v27 = vadd.f32 %v9658_v37, %v9014_v18 }
 0x5ec   : > { %v10184_v46 = vmul.f32 0.1, %v10152_v7 }
 0x5ee   : > { %v10248_v29 = vadd.f32 %v10216_v25, %v10184_v46  ;;  %v8978_v25 = vpop.f32.mrf.mxu3  ;;  %v8700_v46 = vadd.f32 %v8663_v42, %v15736_v28 }
 0x5ef   : > { %v10071_v14 = vpop.f32.mrf.mxu1 }
 0x5f0   : > { %10280 = vst [vmem:[%s15764_s13 + $0xb0] sm:$0xff] %v10248_v29  ;;  %v10117_v1 = vadd.f32 %v10071_v14, %v9691_v49  ;;  %v9660_v49 = vpop.f32.mrf.mxu0  ;;  %v8666_v14 = vpop.f32.mrf.mxu2  ;;  %v9015_v22 = vadd.f32 %v8978_v25, %v8700_v46 }
 0x5f2   : > { %v10153_v45 = vadd.f32 %v15752_v34, %v10117_v1 }
 0x5f4   : > { %v10185_v26 = vmul.f32 0.1, %v10153_v45  ;;  %v8701_v45 = vadd.f32 %v8666_v14, %v15740_v50 }
 0x5f6   : > { %v10249_v43 = vadd.f32 %v10217_v36, %v10185_v26  ;;  %v9697_v26 = vadd.f32 %v9660_v49, %v9015_v22  ;;  %v8981_v28 = vpop.f32.mrf.mxu3 }
 0x5f7   : > { %v10074_v60 = vpop.f32.mrf.mxu1 }
 0x5f8   : > { %10281 = vst [vmem:[%s15764_s13 + $0xb8] sm:$0xff] %v10249_v43  ;;  %v10118_v15 = vadd.f32 %v10074_v60, %v9692_v63  ;;  %v9016_v63 = vadd.f32 %v8981_v28, %v8701_v45  ;;  %v9663_v60 = vpop.f32.mrf.mxu0 }
 0x5fa   : > { %v10154_v6 = vadd.f32 %v15752_v34, %v10118_v15  ;;  %v8668_v15 = vpop.f32.mrf.mxu2  ;;  %v9698_v50 = vadd.f32 %v9663_v60, %v9016_v63 }
 0x5fc   : > { %v10186_v23 = vmul.f32 0.1, %v10154_v6  ;;  %v8702_v6 = vadd.f32 %v8668_v15, %v15745_v48 }
 0x5fe   : > { %v10250_v10 = vadd.f32 %v10218_v21, %v10186_v23  ;;  %v8983_v33 = vpop.f32.mrf.mxu3 }
 0x5ff   : > { %v10076_v5 = vpop.f32.mrf.mxu1 }
 0x600   : > { %10282 = vst [vmem:[%s15764_s13 + $0xc0] sm:$0xff] %v10250_v10  ;;  %v10119_v13 = vadd.f32 %v10076_v5, %v9693_v58  ;;  %v9017_v10 = vadd.f32 %v8983_v33, %v8702_v6  ;;  %v10224_v5 = vld [vmem:[%s12200_s10 + $0xf0] sm:$0xff]  ;;  %v9665_v30 = vpop.f32.mrf.mxu0 }
 0x602   : > { %v10155_v39 = vadd.f32 %v15752_v34, %v10119_v13  ;;  %v9699_v48 = vadd.f32 %v9665_v30, %v9017_v10 }
 0x604   : > { %v10187_v62 = vmul.f32 0.1, %v10155_v39 }
 0x606   : > { %v10251_v31 = vadd.f32 %v10219_v59, %v10187_v62  ;;  %v10225_v62 = vld [vmem:[%s12200_s10 + $0xf8] sm:$0xff] }
 0x607   : > { %v10079_v38 = vpop.f32.mrf.mxu1 }
 0x608   : > { %10283 = vst [vmem:[%s15764_s13 + $0xc8] sm:$0xff] %v10251_v31  ;;  %v10120_v17 = vadd.f32 %v10079_v38, %v9694_v20 }
 0x60a   : > { %v10156_v3 = vadd.f32 %v15752_v34, %v10120_v17 }
 0x60c   : > { %v10188_v16 = vmul.f32 0.1, %v10156_v3 }
 0x60e   : > { %v10252_v47 = vadd.f32 %v10220_v57, %v10188_v16 }
 0x60f   : > { %v10081_v55 = vpop.f32.mrf.mxu1 }
 0x610   : > { %10284 = vst [vmem:[%s15764_s13 + $0xd0] sm:$0xff] %v10252_v47  ;;  %v10121_v4 = vadd.f32 %v10081_v55, %v9695_v2 }
 0x612   : > { %v10157_v11 = vadd.f32 %v15752_v34, %v10121_v4 }
 0x614   : > { %v10189_v7 = vmul.f32 0.1, %v10157_v11 }
 0x616   : > { %v10253_v44 = vadd.f32 %v10221_v35, %v10189_v7 }
 0x617   : > { %v10084_v32 = vpop.f32.mrf.mxu1 }
 0x618   : > { %10285 = vst [vmem:[%s15764_s13 + $0xd8] sm:$0xff] %v10253_v44  ;;  %v10122_v29 = vadd.f32 %v10084_v32, %v9696_v27 }
 0x61a   : > { %v10158_v1 = vadd.f32 %v15752_v34, %v10122_v29 }
 0x61c   : > { %v10190_v19 = vmul.f32 0.1, %v10158_v1 }
 0x61e   : > { %v10254_v36 = vadd.f32 %v10222_v51, %v10190_v19 }
 0x61f   : > { %v10086_v40 = vpop.f32.mrf.mxu1 }
 0x620   : > { %10286 = vst [vmem:[%s15764_s13 + $0xe0] sm:$0xff] %v10254_v36  ;;  %v10123_v43 = vadd.f32 %v10086_v40, %v9697_v26 }
 0x622   : > { %v10159_v61 = vadd.f32 %v15752_v34, %v10123_v43 }
 0x624   : > { %v10191_v0 = vmul.f32 0.1, %v10159_v61 }
 0x626   : > { %v10255_v24 = vadd.f32 %v10223_v53, %v10191_v0 }
 0x627   : > { %v10089_v21 = vpop.f32.mrf.mxu1 }
 0x628   : > { %10287 = vst [vmem:[%s15764_s13 + $0xe8] sm:$0xff] %v10255_v24  ;;  %v10124_v23 = vadd.f32 %v10089_v21, %v9698_v50 }
 0x62a   : > { %v10160_v58 = vadd.f32 %v15752_v34, %v10124_v23 }
 0x62c   : > { %v10192_v13 = vmul.f32 0.1, %v10160_v58 }
 0x62e   : > { %v10256_v41 = vadd.f32 %v10224_v5, %v10192_v13 }
 0x62f   : > { %v10091_v39 = vpop.f32.mrf.mxu1 }
 0x630   : > { %10288 = vst [vmem:[%s15764_s13 + $0xf0] sm:$0xff] %v10256_v41  ;;  %v10125_v59 = vadd.f32 %v10091_v39, %v9699_v48 }
 0x632   : > { %v10161_v54 = vadd.f32 %v15752_v34, %v10125_v59 }
 0x634   : > { %v10193_v9 = vmul.f32 0.1, %v10161_v54 }
 0x636   : > { %v10257_v52 = vadd.f32 %v10225_v62, %v10193_v9 }
 0x638   : > { %10289 = vst [vmem:[%s15764_s13 + $0xf8] sm:$0xff] %v10257_v52 }
 0x639   : > { %12052 = shalt.err (!%p12049_p3)
}
 0x63a   : > { %s12089_s11 = smov 128   ;;  %s12090_s12 = smov 8  }
 0x63b   : > { %11950 = dma.vmem_to_hbm [thread:$0]  (%p12167_p5), %s10304_s18, 4096, %s10306_s19, %s10291_s5, %s12089_s11, %s12089_s11, %s12090_s12  }
 0x63c PF: > { %p11956_p4 = scmp.ge.s32.totalorder %s12087_s26, 2  ;;  %s10320_s13 = sand.u32 1, %s12075_s23  }
 0x63d   : > { %s10321_s14 = scalar_lea.sflag [#allocation6], %s10320_s13 }
 0x63e   : > { %p11953_p7 = pnand %p11956_p4, %p12171_p6 }
 0x640   : > { %p11954_p8 = pneg %p11953_p7 }
 0x642   : > { %12070 = dma.done.wait (%p11954_p8), %s10321_s14, 4096  }
 0x643   : > { %12072 = vsyncadd (%p11954_p8), %s10321_s14, 4294963200  ;;  %p17_p9 = scmp.ge.s32.totalorder %s12154_s28, 4   ;;  %s16195_s23 = smov %s12079_s24 }
 0x644   : > { %s16196_s24 = smov %s12083_s25  ;;  %s16197_s25 = smov %s12165_s7 }
 0x645   : > { %s16198_s26 = smov %s12154_s28  ;;  %19 = sbr.rel (!%p17_p9) target bundleno = 5 (0x5), region = 101 }
 0x64a   :  { %10327 = vsyncpa [#allocation6], 1 }
 0x64b   :  { %10329 = vsyncpa [#allocation6 + $0x1], 1 }

</bundles_post_ra>
